<compile_context>
chip_gen: v7x
topology: tpu7x:2x2x1
jax: 0.10.0
libtpu: 0.0.40
codegen_flags: <defaults>
</compile_context>

<pallas_src>
import functools

import jax
import jax.numpy as jnp
from jax.experimental import pallas as pl
from jax.experimental.pallas import tpu as pltpu

RESNET_FEATS = 2048      # resnet50 fc.in_features
EFFNET_FEATS = 1280      # efficientnet_b0 classifier[1].in_features
HIDDEN = 512
EMBED = 1024             # concat dim / attention embed_dim
NUM_HEADS = 8
CLS_HIDDEN = 256
NUM_CLASSES = 10
PADDED_CLASSES = 128     # lane-dense output slab; sliced to NUM_CLASSES outside
LN_EPS = 1e-5

WEIGHT_DTYPE = jnp.bfloat16   # MXU path; accumulation & elementwise stay f32


def _round_up(x, m):
    return (x + m - 1) // m * m


# ----------------------------------------------------------------------------
# Fused head kernel.
# ----------------------------------------------------------------------------
def _fused_head_kernel(x1_ref, x2_ref,
                       w_r_ref, b_r_ref, w_e_ref, b_e_ref,
                       w_a_ref, b_a_ref, ln_g_ref, ln_b_ref,
                       w_c1_ref, b_c1_ref, w_c2_ref, b_c2_ref,
                       o_ref, comb_ref):
    # resnet_fc / efficient_fc: Linear + ReLU (+ Dropout == identity in eval)
    h1 = jnp.dot(x1_ref[...].astype(WEIGHT_DTYPE), w_r_ref[...],
                 preferred_element_type=jnp.float32) + b_r_ref[...]
    h1 = jnp.maximum(h1, 0.0)
    h2 = jnp.dot(x2_ref[...].astype(WEIGHT_DTYPE), w_e_ref[...],
                 preferred_element_type=jnp.float32) + b_e_ref[...]
    h2 = jnp.maximum(h2, 0.0)

    # Concat into lane-aligned halves of a VMEM scratch (512 is 128-aligned);
    # 'combined' never round-trips through HBM.
    comb_ref[:, 0:HIDDEN] = h1
    comb_ref[:, HIDDEN:EMBED] = h2
    combined = comb_ref[...]

    # MultiheadAttention with L == 1: softmax over one key is 1, so the exact
    # result is attn = combined @ (Wv^T @ Wo^T) + (bv @ Wo^T + bo) — the
    # pre-folded W_attn / b_attn (attention dropout is identity in eval).
    attn = jnp.dot(combined.astype(WEIGHT_DTYPE), w_a_ref[...],
                   preferred_element_type=jnp.float32) + b_a_ref[...]

    # residual + LayerNorm(1024)  (biased variance, eps inside rsqrt — PyTorch)
    r = attn + combined
    mean = jnp.mean(r, axis=-1, keepdims=True)
    cent = r - mean
    var = jnp.mean(cent * cent, axis=-1, keepdims=True)
    ln = cent * jax.lax.rsqrt(var + LN_EPS) * ln_g_ref[...] + ln_b_ref[...]

    # classifier: Linear(1024,256) + ReLU (+Dropout) -> Linear(256, classes)
    c1 = jnp.dot(ln.astype(WEIGHT_DTYPE), w_c1_ref[...],
                 preferred_element_type=jnp.float32) + b_c1_ref[...]
    c1 = jnp.maximum(c1, 0.0)
    out = jnp.dot(c1.astype(WEIGHT_DTYPE), w_c2_ref[...],
                  preferred_element_type=jnp.float32) + b_c2_ref[...]
    o_ref[...] = out.astype(o_ref.dtype)


# ----------------------------------------------------------------------------
# Parameters.
# ----------------------------------------------------------------------------
def init_params(key):
    """Deterministic synthetic weights in PyTorch-equivalent layouts."""
    ks = jax.random.split(key, 12)
    scale = 0.02

    def w(k, shape):
        return scale * jax.random.normal(k, shape, dtype=jnp.float32)

    def b(k, shape):
        return 0.01 * jax.random.normal(k, shape, dtype=jnp.float32)

    return {
        # resnet_fc: Linear(2048, 512)   (stored (in, out))
        "w_r": w(ks[0], (RESNET_FEATS, HIDDEN)),
        "b_r": b(ks[1], (HIDDEN,)),
        # efficient_fc: Linear(1280, 512)
        "w_e": w(ks[2], (EFFNET_FEATS, HIDDEN)),
        "b_e": b(ks[3], (HIDDEN,)),
        # MultiheadAttention(1024, 8): packed in_proj (3E, E) + bias, out_proj
        "in_proj_w": w(ks[4], (3 * EMBED, EMBED)),      # PyTorch (3E, E)
        "in_proj_b": b(ks[5], (3 * EMBED,)),
        "out_proj_w": w(ks[6], (EMBED, EMBED)),         # PyTorch (out, in)
        "out_proj_b": b(ks[7], (EMBED,)),
        # LayerNorm(1024)
        "ln_g": jnp.ones((EMBED,), jnp.float32),
        "ln_b": jnp.zeros((EMBED,), jnp.float32),
        # classifier: Linear(1024, 256) -> ReLU -> Dropout -> Linear(256, 10)
        "w_c1": w(ks[8], (EMBED, CLS_HIDDEN)),
        "b_c1": b(ks[9], (CLS_HIDDEN,)),
        "w_c2": w(ks[10], (CLS_HIDDEN, NUM_CLASSES)),
        "b_c2": b(ks[11], (NUM_CLASSES,)),
    }


def prepare_params(params, weight_dtype=WEIGHT_DTYPE):
    """One-time fold / transpose / pad / cast of the weights for the kernel."""
    # V projection slice of packed in_proj, pre-transposed to (in, out).
    wv_t = params["in_proj_w"][2 * EMBED:3 * EMBED, :].T        # (E, E)
    bv = params["in_proj_b"][2 * EMBED:3 * EMBED]               # (E,)
    wo_t = params["out_proj_w"].T                               # (E, E)
    # Fold V-proj and out-proj (exact for seq_len == 1).  Keep the fold in f32.
    w_attn = wv_t @ wo_t
    b_attn = bv @ wo_t + params["out_proj_b"]

    # Pad classifier output to a lane-dense 128-wide slab (unmasked stores).
    w_c2 = jnp.zeros((CLS_HIDDEN, PADDED_CLASSES), jnp.float32)
    w_c2 = w_c2.at[:, :NUM_CLASSES].set(params["w_c2"])
    b_c2 = jnp.zeros((PADDED_CLASSES,), jnp.float32)
    b_c2 = b_c2.at[:NUM_CLASSES].set(params["b_c2"])

    return {
        "w_r": params["w_r"].astype(weight_dtype),
        "b_r": params["b_r"].reshape(1, HIDDEN),
        "w_e": params["w_e"].astype(weight_dtype),
        "b_e": params["b_e"].reshape(1, HIDDEN),
        "w_attn": w_attn.astype(weight_dtype),
        "b_attn": b_attn.reshape(1, EMBED),
        "ln_g": params["ln_g"].reshape(1, EMBED),
        "ln_b": params["ln_b"].reshape(1, EMBED),
        "w_c1": params["w_c1"].astype(weight_dtype),
        "b_c1": params["b_c1"].reshape(1, CLS_HIDDEN),
        "w_c2": w_c2.astype(weight_dtype),
        "b_c2": b_c2.reshape(1, PADDED_CLASSES),
    }


# ----------------------------------------------------------------------------
# Forward pass: pad batch, one fused pallas_call, slice result.
# ----------------------------------------------------------------------------
@functools.partial(jax.jit, static_argnames=("tile_b",))
def _hybrid_forward_impl(prep, x1_feat, x2_feat, *, tile_b):
    B = x1_feat.shape[0]
    bp = _round_up(B, 8)
    tb = min(tile_b, bp)
    bp = _round_up(bp, tb)
    if bp != B:
        x1_feat = jnp.pad(x1_feat, ((0, bp - B), (0, 0)))
        x2_feat = jnp.pad(x2_feat, ((0, bp - B), (0, 0)))

    row = lambda i: (i, 0)      # batch-tiled activations / output
    rep = lambda i: (0, 0)      # VMEM-resident weights / biases

    out = pl.pallas_call(
        _fused_head_kernel,
        out_shape=jax.ShapeDtypeStruct((bp, PADDED_CLASSES), jnp.float32),
        grid_spec=pltpu.PrefetchScalarGridSpec(
            num_scalar_prefetch=0,
            grid=(bp // tb,),
            in_specs=[
                pl.BlockSpec((tb, RESNET_FEATS), row),
                pl.BlockSpec((tb, EFFNET_FEATS), row),
                pl.BlockSpec((RESNET_FEATS, HIDDEN), rep),
                pl.BlockSpec((1, HIDDEN), rep),
                pl.BlockSpec((EFFNET_FEATS, HIDDEN), rep),
                pl.BlockSpec((1, HIDDEN), rep),
                pl.BlockSpec((EMBED, EMBED), rep),
                pl.BlockSpec((1, EMBED), rep),
                pl.BlockSpec((1, EMBED), rep),
                pl.BlockSpec((1, EMBED), rep),
                pl.BlockSpec((EMBED, CLS_HIDDEN), rep),
                pl.BlockSpec((1, CLS_HIDDEN), rep),
                pl.BlockSpec((CLS_HIDDEN, PADDED_CLASSES), rep),
                pl.BlockSpec((1, PADDED_CLASSES), rep),
            ],
            out_specs=pl.BlockSpec((tb, PADDED_CLASSES), row),
            scratch_shapes=[pltpu.VMEM((tb, EMBED), jnp.float32)],
        ),
        compiler_params=pltpu.CompilerParams(
            dimension_semantics=("parallel",),
            vmem_limit_bytes=48 << 20,   # fits v7x's 64 MiB physical VMEM
        ),
    )(x1_feat, x2_feat,
      prep["w_r"], prep["b_r"], prep["w_e"], prep["b_e"],
      prep["w_attn"], prep["b_attn"], prep["ln_g"], prep["ln_b"],
      prep["w_c1"], prep["b_c1"], prep["w_c2"], prep["b_c2"])

    return out[:B, :NUM_CLASSES]


def hybrid_forward(prep, x1_feat, x2_feat, tile_b=128):
    return _hybrid_forward_impl(prep, x1_feat, x2_feat, tile_b=tile_b)


# ----------------------------------------------------------------------------
# Pure-JAX f32 reference (unfused, raw PyTorch-layout params).
# ----------------------------------------------------------------------------
def _reference(params, x1_feat, x2_feat):
    h1 = jnp.maximum(x1_feat @ params["w_r"] + params["b_r"], 0.0)
    h2 = jnp.maximum(x2_feat @ params["w_e"] + params["b_e"], 0.0)
    x = jnp.concatenate([h1, h2], axis=1)
    wv = params["in_proj_w"][2 * EMBED:3 * EMBED, :].T
    bv = params["in_proj_b"][2 * EMBED:3 * EMBED]
    v = x @ wv + bv                                   # softmax over 1 key == 1
    attn = v @ params["out_proj_w"].T + params["out_proj_b"]
    r = attn + x
    mean = jnp.mean(r, axis=-1, keepdims=True)
    var = jnp.mean((r - mean) ** 2, axis=-1, keepdims=True)
    ln = (r - mean) / jnp.sqrt(var + LN_EPS) * params["ln_g"] + params["ln_b"]
    c1 = jnp.maximum(ln @ params["w_c1"] + params["b_c1"], 0.0)
    return c1 @ params["w_c2"] + params["b_c2"]


if __name__ == "__main__":
    key = jax.random.PRNGKey(0)
    k_param, k_x1, k_x2 = jax.random.split(key, 3)

    params = init_params(k_param)
    prep = prepare_params(params)

    # Small-batch case (B=2): single grid step, padded to 8 sublanes.
    B = 2
    x1_feat = jax.random.normal(k_x1, (B, RESNET_FEATS), dtype=jnp.float32)
    x2_feat = jax.random.normal(k_x2, (B, EFFNET_FEATS), dtype=jnp.float32)

    out = jax.block_until_ready(hybrid_forward(prep, x1_feat, x2_feat))
    assert out.shape == (B, NUM_CLASSES), out.shape

    # bf16 weights / MXU inputs loosen agreement vs the f32 reference.
    ref = _reference(params, x1_feat, x2_feat)
    assert jnp.allclose(out, ref, atol=3e-2, rtol=3e-2), \
        float(jnp.max(jnp.abs(out - ref)))

    # Multi-tile grid case (B=20, tile_b=8 -> 3 grid steps) to exercise the
    # batch pipeline + padding path.
    B2 = 20
    x1b = jax.random.normal(jax.random.PRNGKey(1), (B2, RESNET_FEATS),
                            dtype=jnp.float32)
    x2b = jax.random.normal(jax.random.PRNGKey(2), (B2, EFFNET_FEATS),
                            dtype=jnp.float32)
    out2 = jax.block_until_ready(hybrid_forward(prep, x1b, x2b, tile_b=8))
    ref2 = _reference(params, x1b, x2b)
    assert out2.shape == (B2, NUM_CLASSES), out2.shape
    assert jnp.allclose(out2, ref2, atol=3e-2, rtol=3e-2), \
        float(jnp.max(jnp.abs(out2 - ref2)))

    print("KERNEL_OK")
</pallas_src>

<mosaic_0001>
module attributes {stable_mosaic.version = 11 : i64} {
  func.func @_fused_head_kernel(%arg0: i32, %arg1: memref<8x2048xf32, #tpu.memory_space<vmem>>, %arg2: memref<8x1280xf32, #tpu.memory_space<vmem>>, %arg3: memref<2048x512xbf16, #tpu.memory_space<vmem>>, %arg4: memref<1x512xf32, #tpu.memory_space<vmem>>, %arg5: memref<1280x512xbf16, #tpu.memory_space<vmem>>, %arg6: memref<1x512xf32, #tpu.memory_space<vmem>>, %arg7: memref<1024x1024xbf16, #tpu.memory_space<vmem>>, %arg8: memref<1x1024xf32, #tpu.memory_space<vmem>>, %arg9: memref<1x1024xf32, #tpu.memory_space<vmem>>, %arg10: memref<1x1024xf32, #tpu.memory_space<vmem>>, %arg11: memref<1024x256xbf16, #tpu.memory_space<vmem>>, %arg12: memref<1x256xf32, #tpu.memory_space<vmem>>, %arg13: memref<256x128xbf16, #tpu.memory_space<vmem>>, %arg14: memref<1x128xf32, #tpu.memory_space<vmem>>, %arg15: memref<8x128xf32, #tpu.memory_space<vmem>>, %arg16: memref<8x1024xf32, #tpu.memory_space<vmem>>) attributes {dimension_semantics = [#tpu.dimension_semantics<parallel>], iteration_bounds = array<i64: 1>, scalar_prefetch = 0 : i64, scratch_operands = 1 : i64, tpu.core_type = #tpu.core_type<tc>, window_params = [{transform_indices = @transform_0, window_bounds = array<i64: 8, 2048>}, {transform_indices = @transform_1, window_bounds = array<i64: 8, 1280>}, {pipeline_mode = #tpu.pipeline_mode<synchronous>, transform_indices = @transform_2, window_bounds = array<i64: 2048, 512>}, {pipeline_mode = #tpu.pipeline_mode<synchronous>, transform_indices = @transform_3, window_bounds = array<i64: 1, 512>}, {pipeline_mode = #tpu.pipeline_mode<synchronous>, transform_indices = @transform_4, window_bounds = array<i64: 1280, 512>}, {pipeline_mode = #tpu.pipeline_mode<synchronous>, transform_indices = @transform_5, window_bounds = array<i64: 1, 512>}, {pipeline_mode = #tpu.pipeline_mode<synchronous>, transform_indices = @transform_6, window_bounds = array<i64: 1024, 1024>}, {pipeline_mode = #tpu.pipeline_mode<synchronous>, transform_indices = @transform_7, window_bounds = array<i64: 1, 1024>}, {pipeline_mode = #tpu.pipeline_mode<synchronous>, transform_indices = @transform_8, window_bounds = array<i64: 1, 1024>}, {pipeline_mode = #tpu.pipeline_mode<synchronous>, transform_indices = @transform_9, window_bounds = array<i64: 1, 1024>}, {pipeline_mode = #tpu.pipeline_mode<synchronous>, transform_indices = @transform_10, window_bounds = array<i64: 1024, 256>}, {pipeline_mode = #tpu.pipeline_mode<synchronous>, transform_indices = @transform_11, window_bounds = array<i64: 1, 256>}, {pipeline_mode = #tpu.pipeline_mode<synchronous>, transform_indices = @transform_12, window_bounds = array<i64: 256, 128>}, {pipeline_mode = #tpu.pipeline_mode<synchronous>, transform_indices = @transform_13, window_bounds = array<i64: 1, 128>}, {transform_indices = @transform_14, window_bounds = array<i64: 8, 128>}]} {
    %c0 = arith.constant 0 : index
    %c0_0 = arith.constant 0 : index
    %0 = vector.load %arg1[%c0, %c0_0] : memref<8x2048xf32, #tpu.memory_space<vmem>>, vector<8x2048xf32>
    %1 = arith.truncf %0 : vector<8x2048xf32> to vector<8x2048xbf16>
    %c0_1 = arith.constant 0 : index
    %c0_2 = arith.constant 0 : index
    %2 = vector.load %arg3[%c0_1, %c0_2] : memref<2048x512xbf16, #tpu.memory_space<vmem>>, vector<2048x512xbf16>
    %cst = arith.constant dense<0.000000e+00> : vector<8x512xf32>
    %3 = tpu.matmul %1, %2, %cst {dimension_numbers = #tpu.dot_dimension_numbers<[1], [0], [0], [1], [0, 0, 1, 1], [], []>} : vector<8x2048xbf16>, vector<2048x512xbf16>, vector<8x512xf32> -> vector<8x512xf32>
    %c0_3 = arith.constant 0 : index
    %c0_4 = arith.constant 0 : index
    %4 = vector.load %arg4[%c0_3, %c0_4] : memref<1x512xf32, #tpu.memory_space<vmem>>, vector<1x512xf32>
    %5 = vector.broadcast %4 : vector<1x512xf32> to vector<8x512xf32>
    %6 = arith.addf %3, %5 : vector<8x512xf32>
    %cst_5 = arith.constant 0.000000e+00 : f32
    %7 = vector.broadcast %cst_5 : f32 to vector<8x512xf32>
    %8 = arith.maximumf %6, %7 : vector<8x512xf32>
    %c0_6 = arith.constant 0 : index
    %c0_7 = arith.constant 0 : index
    %9 = vector.load %arg2[%c0_6, %c0_7] : memref<8x1280xf32, #tpu.memory_space<vmem>>, vector<8x1280xf32>
    %10 = arith.truncf %9 : vector<8x1280xf32> to vector<8x1280xbf16>
    %c0_8 = arith.constant 0 : index
    %c0_9 = arith.constant 0 : index
    %11 = vector.load %arg5[%c0_8, %c0_9] : memref<1280x512xbf16, #tpu.memory_space<vmem>>, vector<1280x512xbf16>
    %cst_10 = arith.constant dense<0.000000e+00> : vector<8x512xf32>
    %12 = tpu.matmul %10, %11, %cst_10 {dimension_numbers = #tpu.dot_dimension_numbers<[1], [0], [0], [1], [0, 0, 1, 1], [], []>} : vector<8x1280xbf16>, vector<1280x512xbf16>, vector<8x512xf32> -> vector<8x512xf32>
    %c0_11 = arith.constant 0 : index
    %c0_12 = arith.constant 0 : index
    %13 = vector.load %arg6[%c0_11, %c0_12] : memref<1x512xf32, #tpu.memory_space<vmem>>, vector<1x512xf32>
    %14 = vector.broadcast %13 : vector<1x512xf32> to vector<8x512xf32>
    %15 = arith.addf %12, %14 : vector<8x512xf32>
    %cst_13 = arith.constant 0.000000e+00 : f32
    %16 = vector.broadcast %cst_13 : f32 to vector<8x512xf32>
    %17 = arith.maximumf %15, %16 : vector<8x512xf32>
    %c0_14 = arith.constant 0 : index
    %c0_15 = arith.constant 0 : index
    %18 = vector.load %arg16[%c0_14, %c0_15] : memref<8x1024xf32, #tpu.memory_space<vmem>>, vector<8x512xf32>
    tpu.vector_store %arg16[%c0_14, %c0_15], %8 {strides = array<i32>} : memref<8x1024xf32, #tpu.memory_space<vmem>>, vector<8x512xf32>,
    %c0_16 = arith.constant 0 : index
    %c512 = arith.constant 512 : index
    %19 = vector.load %arg16[%c0_16, %c512] : memref<8x1024xf32, #tpu.memory_space<vmem>>, vector<8x512xf32>
    tpu.vector_store %arg16[%c0_16, %c512], %17 {strides = array<i32>} : memref<8x1024xf32, #tpu.memory_space<vmem>>, vector<8x512xf32>,
    %c0_17 = arith.constant 0 : index
    %c0_18 = arith.constant 0 : index
    %20 = vector.load %arg16[%c0_17, %c0_18] : memref<8x1024xf32, #tpu.memory_space<vmem>>, vector<8x1024xf32>
    %21 = arith.truncf %20 : vector<8x1024xf32> to vector<8x1024xbf16>
    %c0_19 = arith.constant 0 : index
    %c0_20 = arith.constant 0 : index
    %22 = vector.load %arg7[%c0_19, %c0_20] : memref<1024x1024xbf16, #tpu.memory_space<vmem>>, vector<1024x1024xbf16>
    %cst_21 = arith.constant dense<0.000000e+00> : vector<8x1024xf32>
    %23 = tpu.matmul %21, %22, %cst_21 {dimension_numbers = #tpu.dot_dimension_numbers<[1], [0], [0], [1], [0, 0, 1, 1], [], []>} : vector<8x1024xbf16>, vector<1024x1024xbf16>, vector<8x1024xf32> -> vector<8x1024xf32>
    %c0_22 = arith.constant 0 : index
    %c0_23 = arith.constant 0 : index
    %24 = vector.load %arg8[%c0_22, %c0_23] : memref<1x1024xf32, #tpu.memory_space<vmem>>, vector<1x1024xf32>
    %25 = vector.broadcast %24 : vector<1x1024xf32> to vector<8x1024xf32>
    %26 = arith.addf %23, %25 : vector<8x1024xf32>
    %27 = arith.addf %26, %20 : vector<8x1024xf32>
    %cst_24 = arith.constant dense<0.000000e+00> : vector<8xf32>
    %28 = vector.multi_reduction <add>, %27, %cst_24 [1] : vector<8x1024xf32> to vector<8xf32>
    %29 = vector.shape_cast %28 : vector<8xf32> to vector<8x1xf32>
    %cst_25 = arith.constant 1.024000e+03 : f32
    %30 = vector.broadcast %cst_25 : f32 to vector<8x1xf32>
    %31 = arith.divf %29, %30 : vector<8x1xf32>
    %32 = vector.broadcast %31 : vector<8x1xf32> to vector<8x1024xf32>
    %33 = arith.subf %27, %32 : vector<8x1024xf32>
    %34 = arith.mulf %33, %33 : vector<8x1024xf32>
    %cst_26 = arith.constant dense<0.000000e+00> : vector<8xf32>
    %35 = vector.multi_reduction <add>, %34, %cst_26 [1] : vector<8x1024xf32> to vector<8xf32>
    %36 = vector.shape_cast %35 : vector<8xf32> to vector<8x1xf32>
    %cst_27 = arith.constant 1.024000e+03 : f32
    %37 = vector.broadcast %cst_27 : f32 to vector<8x1xf32>
    %38 = arith.divf %36, %37 : vector<8x1xf32>
    %cst_28 = arith.constant 9.99999974E-6 : f32
    %39 = vector.broadcast %cst_28 : f32 to vector<8x1xf32>
    %40 = arith.addf %38, %39 : vector<8x1xf32>
    %41 = math.rsqrt %40 : vector<8x1xf32>
    %42 = vector.broadcast %41 : vector<8x1xf32> to vector<8x1024xf32>
    %43 = arith.mulf %33, %42 : vector<8x1024xf32>
    %c0_29 = arith.constant 0 : index
    %c0_30 = arith.constant 0 : index
    %44 = vector.load %arg9[%c0_29, %c0_30] : memref<1x1024xf32, #tpu.memory_space<vmem>>, vector<1x1024xf32>
    %45 = vector.broadcast %44 : vector<1x1024xf32> to vector<8x1024xf32>
    %46 = arith.mulf %43, %45 : vector<8x1024xf32>
    %c0_31 = arith.constant 0 : index
    %c0_32 = arith.constant 0 : index
    %47 = vector.load %arg10[%c0_31, %c0_32] : memref<1x1024xf32, #tpu.memory_space<vmem>>, vector<1x1024xf32>
    %48 = vector.broadcast %47 : vector<1x1024xf32> to vector<8x1024xf32>
    %49 = arith.addf %46, %48 : vector<8x1024xf32>
    %50 = arith.truncf %49 : vector<8x1024xf32> to vector<8x1024xbf16>
    %c0_33 = arith.constant 0 : index
    %c0_34 = arith.constant 0 : index
    %51 = vector.load %arg11[%c0_33, %c0_34] : memref<1024x256xbf16, #tpu.memory_space<vmem>>, vector<1024x256xbf16>
    %cst_35 = arith.constant dense<0.000000e+00> : vector<8x256xf32>
    %52 = tpu.matmul %50, %51, %cst_35 {dimension_numbers = #tpu.dot_dimension_numbers<[1], [0], [0], [1], [0, 0, 1, 1], [], []>} : vector<8x1024xbf16>, vector<1024x256xbf16>, vector<8x256xf32> -> vector<8x256xf32>
    %c0_36 = arith.constant 0 : index
    %c0_37 = arith.constant 0 : index
    %53 = vector.load %arg12[%c0_36, %c0_37] : memref<1x256xf32, #tpu.memory_space<vmem>>, vector<1x256xf32>
    %54 = vector.broadcast %53 : vector<1x256xf32> to vector<8x256xf32>
    %55 = arith.addf %52, %54 : vector<8x256xf32>
    %cst_38 = arith.constant 0.000000e+00 : f32
    %56 = vector.broadcast %cst_38 : f32 to vector<8x256xf32>
    %57 = arith.maximumf %55, %56 : vector<8x256xf32>
    %58 = arith.truncf %57 : vector<8x256xf32> to vector<8x256xbf16>
    %c0_39 = arith.constant 0 : index
    %c0_40 = arith.constant 0 : index
    %59 = vector.load %arg13[%c0_39, %c0_40] : memref<256x128xbf16, #tpu.memory_space<vmem>>, vector<256x128xbf16>
    %cst_41 = arith.constant dense<0.000000e+00> : vector<8x128xf32>
    %60 = tpu.matmul %58, %59, %cst_41 {dimension_numbers = #tpu.dot_dimension_numbers<[1], [0], [0], [1], [0, 0, 1, 1], [], []>} : vector<8x256xbf16>, vector<256x128xbf16>, vector<8x128xf32> -> vector<8x128xf32>
    %c0_42 = arith.constant 0 : index
    %c0_43 = arith.constant 0 : index
    %61 = vector.load %arg14[%c0_42, %c0_43] : memref<1x128xf32, #tpu.memory_space<vmem>>, vector<1x128xf32>
    %62 = vector.broadcast %61 : vector<1x128xf32> to vector<8x128xf32>
    %63 = arith.addf %60, %62 : vector<8x128xf32>
    %c0_44 = arith.constant 0 : index
    %c0_45 = arith.constant 0 : index
    %64 = vector.load %arg15[%c0_44, %c0_45] : memref<8x128xf32, #tpu.memory_space<vmem>>, vector<8x128xf32>
    tpu.vector_store %arg15[%c0_44, %c0_45], %63 {strides = array<i32>} : memref<8x128xf32, #tpu.memory_space<vmem>>, vector<8x128xf32>,
    return
  }
  func.func @transform_0(%arg0: i32) -> (i32, i32) {
    %c0_i32 = arith.constant 0 : i32
    %c0_i32_0 = arith.constant 0 : i32
    return %arg0, %c0_i32 : i32, i32
  }
  func.func @transform_1(%arg0: i32) -> (i32, i32) {
    %c0_i32 = arith.constant 0 : i32
    %c0_i32_0 = arith.constant 0 : i32
    return %arg0, %c0_i32 : i32, i32
  }
  func.func @transform_2(%arg0: i32) -> (i32, i32) {
    %c0_i32 = arith.constant 0 : i32
    %c0_i32_0 = arith.constant 0 : i32
    %c0_i32_1 = arith.constant 0 : i32
    return %c0_i32, %c0_i32_0 : i32, i32
  }
  func.func @transform_3(%arg0: i32) -> (i32, i32) {
    %c0_i32 = arith.constant 0 : i32
    %c0_i32_0 = arith.constant 0 : i32
    %c0_i32_1 = arith.constant 0 : i32
    return %c0_i32, %c0_i32_0 : i32, i32
  }
  func.func @transform_4(%arg0: i32) -> (i32, i32) {
    %c0_i32 = arith.constant 0 : i32
    %c0_i32_0 = arith.constant 0 : i32
    %c0_i32_1 = arith.constant 0 : i32
    return %c0_i32, %c0_i32_0 : i32, i32
  }
  func.func @transform_5(%arg0: i32) -> (i32, i32) {
    %c0_i32 = arith.constant 0 : i32
    %c0_i32_0 = arith.constant 0 : i32
    %c0_i32_1 = arith.constant 0 : i32
    return %c0_i32, %c0_i32_0 : i32, i32
  }
  func.func @transform_6(%arg0: i32) -> (i32, i32) {
    %c0_i32 = arith.constant 0 : i32
    %c0_i32_0 = arith.constant 0 : i32
    %c0_i32_1 = arith.constant 0 : i32
    return %c0_i32, %c0_i32_0 : i32, i32
  }
  func.func @transform_7(%arg0: i32) -> (i32, i32) {
    %c0_i32 = arith.constant 0 : i32
    %c0_i32_0 = arith.constant 0 : i32
    %c0_i32_1 = arith.constant 0 : i32
    return %c0_i32, %c0_i32_0 : i32, i32
  }
  func.func @transform_8(%arg0: i32) -> (i32, i32) {
    %c0_i32 = arith.constant 0 : i32
    %c0_i32_0 = arith.constant 0 : i32
    %c0_i32_1 = arith.constant 0 : i32
    return %c0_i32, %c0_i32_0 : i32, i32
  }
  func.func @transform_9(%arg0: i32) -> (i32, i32) {
    %c0_i32 = arith.constant 0 : i32
    %c0_i32_0 = arith.constant 0 : i32
    %c0_i32_1 = arith.constant 0 : i32
    return %c0_i32, %c0_i32_0 : i32, i32
  }
  func.func @transform_10(%arg0: i32) -> (i32, i32) {
    %c0_i32 = arith.constant 0 : i32
    %c0_i32_0 = arith.constant 0 : i32
    %c0_i32_1 = arith.constant 0 : i32
    return %c0_i32, %c0_i32_0 : i32, i32
  }
  func.func @transform_11(%arg0: i32) -> (i32, i32) {
    %c0_i32 = arith.constant 0 : i32
    %c0_i32_0 = arith.constant 0 : i32
    %c0_i32_1 = arith.constant 0 : i32
    return %c0_i32, %c0_i32_0 : i32, i32
  }
  func.func @transform_12(%arg0: i32) -> (i32, i32) {
    %c0_i32 = arith.constant 0 : i32
    %c0_i32_0 = arith.constant 0 : i32
    %c0_i32_1 = arith.constant 0 : i32
    return %c0_i32, %c0_i32_0 : i32, i32
  }
  func.func @transform_13(%arg0: i32) -> (i32, i32) {
    %c0_i32 = arith.constant 0 : i32
    %c0_i32_0 = arith.constant 0 : i32
    %c0_i32_1 = arith.constant 0 : i32
    return %c0_i32, %c0_i32_0 : i32, i32
  }
  func.func @transform_14(%arg0: i32) -> (i32, i32) {
    %c0_i32 = arith.constant 0 : i32
    %c0_i32_0 = arith.constant 0 : i32
    return %arg0, %c0_i32 : i32, i32
  }
}

</mosaic_0001>

<bundles_post_ra>
// kernel: _hybrid_forward_impl.1
= control target key start
LH: loop header
LB: loop body
LE: loop exit
PB: predicated region body
PF: predicated region fallthrough
CT: control target
= control target key end

     0   :  { %19 = vsyncpa [#allocation4], 0  ;;  %s15631_s0 = inlined_call_operand.vmem [shape: f32[8,2048], index: 0, kind: input, shape index: {}]   ;;  %s15632_s1 = inlined_call_operand.vmem [shape: f32[8,1280], index: 1, kind: input, shape index: {}]   ;;  %s15633_s2 = inlined_call_operand.hbm [shape: bf16[2048,512], index: 2, kind: input, shape index: {}]   ;;  %s15634_s3 = inlined_call_operand.hbm [shape: f32[1,512], index: 3, kind: input, shape index: {}]   ;;  %s15635_s4 = inlined_call_operand.hbm [shape: bf16[1280,512], index: 4, kind: input, shape index: {}]   ;;  %s15636_s5 = inlined_call_operand.hbm [shape: f32[1,512], index: 5, kind: input, shape index: {}]   ;;  %s15637_s6 = inlined_call_operand.hbm [shape: bf16[1024,1024], index: 6, kind: input, shape index: {}]   ;;  %s15638_s7 = inlined_call_operand.hbm [shape: f32[1,1024], index: 7, kind: input, shape index: {}]   ;;  %s15639_s8 = inlined_call_operand.hbm [shape: f32[1,1024], index: 8, kind: input, shape index: {}]   ;;  %s15640_s9 = inlined_call_operand.hbm [shape: f32[1,1024], index: 9, kind: input, shape index: {}]   ;;  %s15641_s10 = inlined_call_operand.hbm [shape: bf16[1024,256], index: 10, kind: input, shape index: {}]   ;;  %s15642_s11 = inlined_call_operand.hbm [shape: f32[1,256], index: 11, kind: input, shape index: {}]   ;;  %s15643_s12 = inlined_call_operand.hbm [shape: bf16[256,128], index: 12, kind: input, shape index: {}]   ;;  %s15644_s13 = inlined_call_operand.hbm [shape: f32[1,128], index: 13, kind: input, shape index: {}]   ;;  %s15645_s14 = inlined_call_operand.vmem [shape: f32[8,128], index: 14, kind: output, shape index: {}]  }
   0x1   :  { %20 = vsyncpa [#allocation6], 0 }
   0x2   :  { %21 = vsyncpa [#allocation9], 0 }
   0x3   :  { %22 = vsyncpa [#allocation12], 0 }
   0x4   :  { %23 = vsyncpa [#allocation15], 0 }
   0x5   :  { %24 = vsyncpa [#allocation18], 0 }
   0x6   :  { %25 = vsyncpa [#allocation21], 0  ;;  %s14829_s29 = smov [#allocation5]   ;;  %s14830_s15 = smov [#allocation8]  }
   0x7   :  { %s48_s30 = sshll.u32 %s14829_s29, 4  ;;  %s70_s16 = sshll.u32 %s14830_s15, 4  ;;  %s49_s30 = int_to_ptr.vmem [resolvable:$true] %s48_s30  ;;  %s71_s16 = int_to_ptr.vmem [resolvable:$true] %s70_s16 }
   0x8   :  { %s14551_s19 = scalar_lea.hbm %s15634_s3, 64 }
   0x9   :  { %p14552_p0 = scmp.ne.s32.totalorder %s15634_s3, %s14551_s19  ;;  %p14555_p1 = scmp.lt.u32.totalorder %s14551_s19, %s15634_s3 }
   0xb   :  { %p14557_p2 = pnand %p14555_p1, %p14552_p0 }
   0xd   :  { %14560 = shalt.err (!%p14557_p2)
}
   0xe   :  { %s14561_s24 = scalar_lea.vmem %s49_s30, 64  ;;  %p14566_p4 = scmp.lt.s32.totalorder %s49_s30, %s49_s30 }
   0xf   :  { %p14562_p3 = scmp.ne.s32.totalorder %s49_s30, %s14561_s24  ;;  %p14567_p5 = scmp.lt.s32.totalorder %s14561_s24, %s14561_s24 }
  0x11   :  { %p14568_p6 = por %p14567_p5, %p14566_p4 }
  0x13   :  { %p14569_p7 = pnand %p14568_p6, %p14562_p3 }
  0x15   :  { %14572 = shalt.err (!%p14569_p7)
}
  0x16   :  { %51 = dma.hbm_to_vmem [thread:$0]  %s15634_s3, 64, %s49_s30, [#allocation6]  }
  0x17   :  { %s14573_s29 = scalar_lea.hbm %s15636_s5, 64 }
  0x18   :  { %p14574_p8 = scmp.ne.s32.totalorder %s15636_s5, %s14573_s29  ;;  %p14577_p9 = scmp.lt.u32.totalorder %s14573_s29, %s15636_s5 }
  0x1a   :  { %p14579_p10 = pnand %p14577_p9, %p14574_p8 }
  0x1c   :  { %14582 = shalt.err (!%p14579_p10)
}
  0x1d   :  { %s14583_s20 = scalar_lea.vmem %s71_s16, 64  ;;  %p14588_p12 = scmp.lt.s32.totalorder %s71_s16, %s71_s16 }
  0x1e   :  { %p14584_p11 = scmp.ne.s32.totalorder %s71_s16, %s14583_s20  ;;  %p14589_p13 = scmp.lt.s32.totalorder %s14583_s20, %s14583_s20 }
  0x20   :  { %p14590_p0 = por %p14589_p13, %p14588_p12 }
  0x22   :  { %p14591_p1 = pnand %p14590_p0, %p14584_p11 }
  0x24   :  { %14594 = shalt.err (!%p14591_p1)
}
  0x25   :  { %73 = dma.hbm_to_vmem [thread:$0]  %s15636_s5, 64, %s71_s16, [#allocation9]  }
  0x26   :  { %s14831_s21 = smov [#allocation11]   ;;  %s14832_s23 = smov [#allocation14]  }
  0x27   :  { %s92_s22 = sshll.u32 %s14831_s21, 4  ;;  %s112_s24 = sshll.u32 %s14832_s23, 4  ;;  %s93_s22 = int_to_ptr.vmem [resolvable:$true] %s92_s22  ;;  %s113_s24 = int_to_ptr.vmem [resolvable:$true] %s112_s24 }
  0x28   :  { %s14595_s27 = scalar_lea.hbm %s15638_s7, 128 }
  0x29   :  { %p14596_p2 = scmp.ne.s32.totalorder %s15638_s7, %s14595_s27  ;;  %p14599_p3 = scmp.lt.u32.totalorder %s14595_s27, %s15638_s7 }
  0x2b   :  { %p14601_p4 = pnand %p14599_p3, %p14596_p2 }
  0x2d   :  { %14604 = shalt.err (!%p14601_p4)
}
  0x2e   :  { %s14605_s5 = scalar_lea.vmem %s93_s22, 128  ;;  %p14610_p6 = scmp.lt.s32.totalorder %s93_s22, %s93_s22 }
  0x2f   :  { %p14606_p5 = scmp.ne.s32.totalorder %s93_s22, %s14605_s5  ;;  %p14611_p7 = scmp.lt.s32.totalorder %s14605_s5, %s14605_s5 }
  0x31   :  { %p14612_p8 = por %p14611_p7, %p14610_p6 }
  0x33   :  { %p14613_p9 = pnand %p14612_p8, %p14606_p5 }
  0x35   :  { %14616 = shalt.err (!%p14613_p9)
}
  0x36   :  { %95 = dma.hbm_to_vmem [thread:$0]  %s15638_s7, 128, %s93_s22, [#allocation12]  }
  0x37   :  { %s14617_s3 = scalar_lea.hbm %s15640_s9, 128 }
  0x38   :  { %p14618_p10 = scmp.ne.s32.totalorder %s15640_s9, %s14617_s3  ;;  %p14621_p11 = scmp.lt.u32.totalorder %s14617_s3, %s15640_s9 }
  0x3a   :  { %p14623_p12 = pnand %p14621_p11, %p14618_p10 }
  0x3c   :  { %14626 = shalt.err (!%p14623_p12)
}
  0x3d   :  { %s14627_s26 = scalar_lea.vmem %s113_s24, 128  ;;  %p14632_p0 = scmp.lt.s32.totalorder %s113_s24, %s113_s24 }
  0x3e   :  { %p14628_p13 = scmp.ne.s32.totalorder %s113_s24, %s14627_s26  ;;  %p14633_p1 = scmp.lt.s32.totalorder %s14627_s26, %s14627_s26 }
  0x40   :  { %p14634_p2 = por %p14633_p1, %p14632_p0 }
  0x42   :  { %p14635_p3 = pnand %p14634_p2, %p14628_p13 }
  0x44   :  { %14638 = shalt.err (!%p14635_p3)
}
  0x45   :  { %115 = dma.hbm_to_vmem [thread:$0]  %s15640_s9, 128, %s113_s24, [#allocation15]  }
  0x46   :  { %s14833_s27 = smov [#allocation17]   ;;  %s14834_s29 = smov [#allocation3]  }
  0x47   :  { %s134_s28 = sshll.u32 %s14833_s27, 4  ;;  %s35_s15 = sshll.u32 %s14834_s29, 4  ;;  %s135_s28 = int_to_ptr.vmem [resolvable:$true] %s134_s28  ;;  %s14972_s15 = int_to_ptr.vmem [resolvable:$true] %s35_s15 }
  0x48   :  { %s14639_s16 = scalar_lea.hbm %s15642_s11, 32 }
  0x49   :  { %p14640_p4 = scmp.ne.s32.totalorder %s15642_s11, %s14639_s16  ;;  %p14643_p5 = scmp.lt.u32.totalorder %s14639_s16, %s15642_s11 }
  0x4b   :  { %p14645_p6 = pnand %p14643_p5, %p14640_p4 }
  0x4d   :  { %14648 = shalt.err (!%p14645_p6)
}
  0x4e   :  { %s14649_s9 = scalar_lea.vmem %s135_s28, 32  ;;  %p14654_p8 = scmp.lt.s32.totalorder %s135_s28, %s135_s28 }
  0x4f   :  { %p14650_p7 = scmp.ne.s32.totalorder %s135_s28, %s14649_s9  ;;  %p14655_p9 = scmp.lt.s32.totalorder %s14649_s9, %s14649_s9 }
  0x51   :  { %p14656_p10 = por %p14655_p9, %p14654_p8 }
  0x53   :  { %p14657_p11 = pnand %p14656_p10, %p14650_p7 }
  0x55   :  { %14660 = shalt.err (!%p14657_p11)
}
  0x56   :  { %137 = dma.hbm_to_vmem [thread:$0]  %s15642_s11, 32, %s135_s28, [#allocation18]  }
  0x57   :  { %s14661_s25 = scalar_lea.hbm %s15633_s2, 65536 }
  0x58   :  { %p14662_p12 = scmp.ne.s32.totalorder %s15633_s2, %s14661_s25  ;;  %p14665_p13 = scmp.lt.u32.totalorder %s14661_s25, %s15633_s2 }
  0x5a   :  { %p14667_p0 = pnand %p14665_p13, %p14662_p12 }
  0x5c   :  { %14670 = shalt.err (!%p14667_p0)
}
  0x5d   :  { %s14671_s29 = scalar_lea.vmem %s14972_s15, 65536  ;;  %p14676_p2 = scmp.lt.s32.totalorder %s14972_s15, %s14972_s15 }
  0x5e   :  { %p14672_p1 = scmp.ne.s32.totalorder %s14972_s15, %s14671_s29  ;;  %p14677_p3 = scmp.lt.s32.totalorder %s14671_s29, %s14671_s29 }
  0x60   :  { %p14678_p4 = por %p14677_p3, %p14676_p2 }
  0x62   :  { %p14679_p5 = pnand %p14678_p4, %p14672_p1 }
  0x64   :  { %14682 = shalt.err (!%p14679_p5)
}
  0x65   :  { %s14835_s11 = smov 256   ;;  %s14836_s28 = smov 16  }
  0x66   :  { %41 = dma.hbm_to_vmem [thread:$0]  %s15633_s2, 65536, %s14972_s15, [#allocation4], %s14835_s11, %s14835_s11, %s14836_s28  }
  0x67   :  { %s14837_s16 = smov [#allocation7]   ;;  %s14838_s19 = smov [#allocation10]  }
  0x68   :  { %s57_s18 = sshll.u32 %s14837_s16, 4  ;;  %s79_s20 = sshll.u32 %s14838_s19, 4  ;;  %s58_s18 = int_to_ptr.vmem [resolvable:$true] %s57_s18  ;;  %s15003_s20 = int_to_ptr.vmem [resolvable:$true] %s79_s20 }
  0x69   :  { %s14683_s24 = scalar_lea.hbm %s15635_s4, 40960 }
  0x6a   :  { %p14684_p6 = scmp.ne.s32.totalorder %s15635_s4, %s14683_s24  ;;  %p14687_p7 = scmp.lt.u32.totalorder %s14683_s24, %s15635_s4 }
  0x6c   :  { %p14689_p8 = pnand %p14687_p7, %p14684_p6 }
  0x6e   :  { %14692 = shalt.err (!%p14689_p8)
}
  0x6f   :  { %s14693_s2 = scalar_lea.vmem %s58_s18, 40960  ;;  %p14698_p10 = scmp.lt.s32.totalorder %s58_s18, %s58_s18 }
  0x70   :  { %p14694_p9 = scmp.ne.s32.totalorder %s58_s18, %s14693_s2  ;;  %p14699_p11 = scmp.lt.s32.totalorder %s14693_s2, %s14693_s2 }
  0x72   :  { %p14700_p12 = por %p14699_p11, %p14698_p10 }
  0x74   :  { %p14701_p13 = pnand %p14700_p12, %p14694_p9 }
  0x76   :  { %14704 = shalt.err (!%p14701_p13)
}
  0x77   :  { %63 = dma.hbm_to_vmem [thread:$0]  %s15635_s4, 40960, %s58_s18, [#allocation6], %s14835_s11, %s14835_s11, %s14836_s28  }
  0x78   :  { %s14705_s27 = scalar_lea.hbm %s15637_s6, 65536 }
  0x79   :  { %p14706_p0 = scmp.ne.s32.totalorder %s15637_s6, %s14705_s27  ;;  %p14709_p1 = scmp.lt.u32.totalorder %s14705_s27, %s15637_s6 }
  0x7b   :  { %p14711_p2 = pnand %p14709_p1, %p14706_p0 }
  0x7d   :  { %14714 = shalt.err (!%p14711_p2)
}
  0x7e   :  { %s14715_s19 = scalar_lea.vmem %s15003_s20, 65536  ;;  %p14720_p4 = scmp.lt.s32.totalorder %s15003_s20, %s15003_s20 }
  0x7f   :  { %p14716_p3 = scmp.ne.s32.totalorder %s15003_s20, %s14715_s19  ;;  %p14721_p5 = scmp.lt.s32.totalorder %s14715_s19, %s14715_s19 }
  0x81   :  { %p14722_p6 = por %p14721_p5, %p14720_p4 }
  0x83   :  { %p14723_p7 = pnand %p14722_p6, %p14716_p3 }
  0x85   :  { %14726 = shalt.err (!%p14723_p7)
}
  0x86   :  { %s14839_s4 = smov 512   ;;  %s14840_s11 = smov 32  }
  0x87   :  { %85 = dma.hbm_to_vmem [thread:$0]  %s15637_s6, 65536, %s15003_s20, [#allocation9], %s14839_s4, %s14839_s4, %s14840_s11  }
  0x88   :  { %s14841_s3 = smov [#allocation13]   ;;  %s14842_s24 = smov [#allocation16]  }
  0x89   :  { %s102_s9 = sshll.u32 %s14841_s3, 4  ;;  %s121_s30 = sshll.u32 %s14842_s24, 4  ;;  %s103_s9 = int_to_ptr.vmem [resolvable:$true] %s102_s9  ;;  %s15034_s30 = int_to_ptr.vmem [resolvable:$true] %s121_s30 }
  0x8a   :  { %s14727_s25 = scalar_lea.hbm %s15639_s8, 128 }
  0x8b   :  { %p14728_p8 = scmp.ne.s32.totalorder %s15639_s8, %s14727_s25  ;;  %p14731_p9 = scmp.lt.u32.totalorder %s14727_s25, %s15639_s8 }
  0x8d   :  { %p14733_p10 = pnand %p14731_p9, %p14728_p8 }
  0x8f   :  { %14736 = shalt.err (!%p14733_p10)
}
  0x90   :  { %s14737_s6 = scalar_lea.vmem %s103_s9, 128  ;;  %p14742_p12 = scmp.lt.s32.totalorder %s103_s9, %s103_s9 }
  0x91   :  { %p14738_p11 = scmp.ne.s32.totalorder %s103_s9, %s14737_s6  ;;  %p14743_p13 = scmp.lt.s32.totalorder %s14737_s6, %s14737_s6 }
  0x93   :  { %p14744_p0 = por %p14743_p13, %p14742_p12 }
  0x95   :  { %p14745_p1 = pnand %p14744_p0, %p14738_p11 }
  0x97   :  { %14748 = shalt.err (!%p14745_p1)
}
  0x98   :  { %105 = dma.hbm_to_vmem [thread:$0]  %s15639_s8, 128, %s103_s9, [#allocation12]  }
  0x99   :  { %s14749_s17 = scalar_lea.hbm %s15641_s10, 16384 }
  0x9a   :  { %p14750_p2 = scmp.ne.s32.totalorder %s15641_s10, %s14749_s17  ;;  %p14753_p3 = scmp.lt.u32.totalorder %s14749_s17, %s15641_s10 }
  0x9c   :  { %p14755_p4 = pnand %p14753_p3, %p14750_p2 }
  0x9e   :  { %14758 = shalt.err (!%p14755_p4)
}
  0x9f   :  { %s14759_s11 = scalar_lea.vmem %s15034_s30, 16384  ;;  %p14764_p6 = scmp.lt.s32.totalorder %s15034_s30, %s15034_s30 }
  0xa0   :  { %p14760_p5 = scmp.ne.s32.totalorder %s15034_s30, %s14759_s11  ;;  %p14765_p7 = scmp.lt.s32.totalorder %s14759_s11, %s14759_s11 }
  0xa2   :  { %p14766_p8 = por %p14765_p7, %p14764_p6 }
  0xa4   :  { %p14767_p9 = pnand %p14766_p8, %p14760_p5 }
  0xa6   :  { %14770 = shalt.err (!%p14767_p9)
}
  0xa7   :  { %s14843_s8 = smov 128   ;;  %s14844_s28 = smov 8  }
  0xa8   :  { %127 = dma.hbm_to_vmem [thread:$0]  %s15641_s10, 16384, %s15034_s30, [#allocation15], %s14843_s8, %s14843_s8, %s14844_s28  }
  0xa9   :  { %s14845_s9 = smov [#allocation19]   ;;  %s14771_s25 = scalar_lea.hbm %s15643_s12, 2048 }
  0xaa   :  { %s143_s24 = sshll.u32 %s14845_s9, 4  ;;  %p14772_p10 = scmp.ne.s32.totalorder %s15643_s12, %s14771_s25  ;;  %s144_s24 = int_to_ptr.vmem [resolvable:$true] %s143_s24 }
  0xab   :  { %p14775_p11 = scmp.lt.u32.totalorder %s14771_s25, %s15643_s12 }
  0xad   :  { %p14777_p12 = pnand %p14775_p11, %p14772_p10 }
  0xaf   :  { %14780 = shalt.err (!%p14777_p12)
}
  0xb0   :  { %s14781_s6 = scalar_lea.vmem %s144_s24, 2048  ;;  %p14786_p0 = scmp.lt.s32.totalorder %s144_s24, %s144_s24 }
  0xb1   :  { %p14782_p13 = scmp.ne.s32.totalorder %s144_s24, %s14781_s6  ;;  %p14787_p1 = scmp.lt.s32.totalorder %s14781_s6, %s14781_s6 }
  0xb3   :  { %p14788_p2 = por %p14787_p1, %p14786_p0 }
  0xb5   :  { %p14789_p3 = pnand %p14788_p2, %p14782_p13 }
  0xb7   :  { %14792 = shalt.err (!%p14789_p3)
}
  0xb8   :  { %s14846_s10 = smov 64   ;;  %s14847_s30 = smov 4  }
  0xb9   :  { %149 = dma.hbm_to_vmem [thread:$0]  %s15643_s12, 2048, %s144_s24, [#allocation18], %s14846_s10, %s14846_s10, %s14847_s30  }
  0xba   :  { %s14848_s27 = smov [#allocation20]   ;;  %s14793_s16 = scalar_lea.hbm %s15644_s13, 16 }
  0xbb   :  { %s156_s29 = sshll.u32 %s14848_s27, 4  ;;  %p14794_p4 = scmp.ne.s32.totalorder %s15644_s13, %s14793_s16  ;;  %s157_s29 = int_to_ptr.vmem [resolvable:$true] %s156_s29 }
  0xbc   :  { %p14797_p5 = scmp.lt.u32.totalorder %s14793_s16, %s15644_s13 }
  0xbe   :  { %p14799_p6 = pnand %p14797_p5, %p14794_p4 }
  0xc0   :  { %14802 = shalt.err (!%p14799_p6)
}
  0xc1   :  { %s14803_s28 = scalar_lea.vmem %s157_s29, 16  ;;  %s14807_s12 = scalar_lea.vmem %s157_s29, 32 }
  0xc2   :  { %p14804_p7 = scmp.ne.s32.totalorder %s157_s29, %s14803_s28  ;;  %p14808_p8 = scmp.lt.s32.totalorder %s157_s29, %s157_s29 }
  0xc3   :  { %p14809_p9 = scmp.lt.s32.totalorder %s14807_s12, %s14803_s28 }
  0xc5   :  { %p14810_p10 = por %p14809_p9, %p14808_p8 }
  0xc7   :  { %p14811_p11 = pnand %p14810_p10, %p14804_p7 }
  0xc9   :  { %14814 = shalt.err (!%p14811_p11)
}
  0xca   :  { %159 = dma.hbm_to_vmem [thread:$0]  %s15644_s13, 16, %s157_s29, [#allocation21]  }
  0xcb   :  { %14815 = dma.done.wait [#allocation4], 65536  }
  0xcc   :  { %14816 = vsyncadd [#allocation4], 4294901760 }
  0xcd   :  { %14817 = dma.done.wait [#allocation6], 41024  }
  0xce   :  { %14818 = vsyncadd [#allocation6], 4294926272 }
  0xcf   :  { %14819 = dma.done.wait [#allocation9], 65600  }
  0xd0   :  { %14820 = vsyncadd [#allocation9], 4294901696 }
  0xd1   :  { %14821 = dma.done.wait [#allocation12], 256  }
  0xd2   :  { %14822 = vsyncadd [#allocation12], 4294967040 }
  0xd3   :  { %14823 = dma.done.wait [#allocation15], 16512  }
  0xd4   :  { %14824 = vsyncadd [#allocation15], 4294950784 }
  0xd5   :  { %14825 = dma.done.wait [#allocation18], 2080  }
  0xd6   :  { %14826 = vsyncadd [#allocation18], 4294965216 }
  0xd7   :  { %14827 = dma.done.wait [#allocation21], 16  }
  0xd8   :  { %14828 = vsyncadd [#allocation21], 4294967280  ;;  %v13090_v0 = vld [vmem:[#allocation3 + $0x4] ss:$16 sps:$4 sm:$0xff]   ;;  %v13094_v2 = vld [vmem:[#allocation3] ss:$16 sps:$4 sm:$0xff]  }
  0xd9   :  { %v13092_v1 = vld [vmem:[#allocation3 + $0x404] ss:$16 sps:$4 sm:$0xff]   ;;  %3323 = vmatprep.subr.bf16.mxu1 %v13090_v0  ;;  %v13095_v3 = vld [vmem:[#allocation3 + $0x400] ss:$16 sps:$4 sm:$0xff]   ;;  %v198_v46 = vld [vmem:[%s15631_s0 + $0x8] sm:$0xff] }
  0xda   :  { %3405 = vmatprep.subr.bf16.mxu0 %v13092_v1  ;;  %v13096_v4 = vld [vmem:[#allocation3 + $0x24] ss:$16 sps:$4 sm:$0xff]   ;;  %3324 = vmatpush1.bf16.msra.mxu1 %v13094_v2  ;;  %v13100_v6 = vld [vmem:[#allocation3 + $0x20] ss:$16 sps:$4 sm:$0xff]   ;;  %v15092_v48 = vpack.c.bf16 %v198_v46, %v198_v46  ;;  %v202_v50 = vld [vmem:[%s15631_s0 + $0x28] sm:$0xff] }
  0xdb   :  { %3406 = vmatpush1.bf16.msra.mxu0 %v13095_v3  ;;  %v13098_v5 = vld [vmem:[#allocation3 + $0x424] ss:$16 sps:$4 sm:$0xff]   ;;  %3325 = vmatprep.subr.bf16.mxu1 %v13096_v4  ;;  %v13101_v7 = vld [vmem:[#allocation3 + $0x420] ss:$16 sps:$4 sm:$0xff]   ;;  %v15097_v53 = vpack.c.bf16 %v202_v50, %v202_v50 }
  0xdc   :  { %3407 = vmatprep.subr.bf16.mxu0 %v13098_v5  ;;  %v13102_v8 = vld [vmem:[#allocation3 + $0x44] ss:$16 sps:$4 sm:$0xff]   ;;  %v13106_v10 = vld [vmem:[#allocation3 + $0x40] ss:$16 sps:$4 sm:$0xff]   ;;  %3355 = vmatprep.mubr.bf16.mxu1 %v15092_v48 }
  0xdd   :  { %v13104_v9 = vld [vmem:[#allocation3 + $0x444] ss:$16 sps:$4 sm:$0xff]   ;;  %v13107_v11 = vld [vmem:[#allocation3 + $0x440] ss:$16 sps:$4 sm:$0xff]   ;;  %3437 = vmatprep.mubr.bf16.mxu0 %v15097_v53 }
  0xde   :  { %3326 = vmatpush1.bf16.msra.mxu1 %v13100_v6  ;;  %v13108_v12 = vld [vmem:[#allocation3 + $0x64] ss:$16 sps:$4 sm:$0xff]   ;;  %v13112_v14 = vld [vmem:[#allocation3 + $0x60] ss:$16 sps:$4 sm:$0xff]  }
  0xdf   :  { %3408 = vmatpush1.bf16.msra.mxu0 %v13101_v7  ;;  %3327 = vmatprep.subr.bf16.mxu1 %v13102_v8  ;;  %v13110_v13 = vld [vmem:[#allocation3 + $0x464] ss:$16 sps:$4 sm:$0xff]   ;;  %v13113_v15 = vld [vmem:[#allocation3 + $0x460] ss:$16 sps:$4 sm:$0xff]  }
  0xe0   :  { %3409 = vmatprep.subr.bf16.mxu0 %v13104_v9  ;;  %v13114_v16 = vld [vmem:[#allocation3 + $0x84] ss:$16 sps:$4 sm:$0xff]   ;;  %v13118_v18 = vld [vmem:[#allocation3 + $0x80] ss:$16 sps:$4 sm:$0xff]  }
  0xe1   :  { %v13116_v17 = vld [vmem:[#allocation3 + $0x484] ss:$16 sps:$4 sm:$0xff]   ;;  %v13119_v19 = vld [vmem:[#allocation3 + $0x480] ss:$16 sps:$4 sm:$0xff]  }
  0xe2   :  { %3328 = vmatpush1.bf16.msra.mxu1 %v13106_v10  ;;  %v13120_v20 = vld [vmem:[#allocation3 + $0xa4] ss:$16 sps:$4 sm:$0xff]   ;;  %v13124_v22 = vld [vmem:[#allocation3 + $0xa0] ss:$16 sps:$4 sm:$0xff]  }
  0xe3   :  { %3410 = vmatpush1.bf16.msra.mxu0 %v13107_v11  ;;  %3329 = vmatprep.subr.bf16.mxu1 %v13108_v12  ;;  %v13122_v21 = vld [vmem:[#allocation3 + $0x4a4] ss:$16 sps:$4 sm:$0xff]   ;;  %v13125_v23 = vld [vmem:[#allocation3 + $0x4a0] ss:$16 sps:$4 sm:$0xff]  }
  0xe4   :  { %3411 = vmatprep.subr.bf16.mxu0 %v13110_v13  ;;  %v13126_v24 = vld [vmem:[#allocation3 + $0xc4] ss:$16 sps:$4 sm:$0xff]   ;;  %v13130_v26 = vld [vmem:[#allocation3 + $0xc0] ss:$16 sps:$4 sm:$0xff]  }
  0xe5   :  { %v13128_v25 = vld [vmem:[#allocation3 + $0x4c4] ss:$16 sps:$4 sm:$0xff]   ;;  %v13131_v27 = vld [vmem:[#allocation3 + $0x4c0] ss:$16 sps:$4 sm:$0xff]  }
  0xe6   :  { %3330 = vmatpush1.bf16.msra.mxu1 %v13112_v14  ;;  %v13132_v28 = vld [vmem:[#allocation3 + $0xe4] ss:$16 sps:$4 sm:$0xff]   ;;  %v13136_v30 = vld [vmem:[#allocation3 + $0xe0] ss:$16 sps:$4 sm:$0xff]  }
  0xe7   :  { %3412 = vmatpush1.bf16.msra.mxu0 %v13113_v15  ;;  %3331 = vmatprep.subr.bf16.mxu1 %v13114_v16  ;;  %v13134_v29 = vld [vmem:[#allocation3 + $0x4e4] ss:$16 sps:$4 sm:$0xff]   ;;  %v13137_v31 = vld [vmem:[#allocation3 + $0x4e0] ss:$16 sps:$4 sm:$0xff]  }
  0xe8   :  { %3413 = vmatprep.subr.bf16.mxu0 %v13116_v17  ;;  %v13138_v32 = vld [vmem:[#allocation3 + $0x104] ss:$16 sps:$4 sm:$0xff]   ;;  %v13142_v34 = vld [vmem:[#allocation3 + $0x100] ss:$16 sps:$4 sm:$0xff]  }
  0xe9   :  { %v13140_v33 = vld [vmem:[#allocation3 + $0x504] ss:$16 sps:$4 sm:$0xff]   ;;  %v13143_v35 = vld [vmem:[#allocation3 + $0x500] ss:$16 sps:$4 sm:$0xff]  }
  0xea   :  { %3332 = vmatpush1.bf16.msra.mxu1 %v13118_v18  ;;  %v13144_v36 = vld [vmem:[#allocation3 + $0x124] ss:$16 sps:$4 sm:$0xff]   ;;  %v13148_v38 = vld [vmem:[#allocation3 + $0x120] ss:$16 sps:$4 sm:$0xff]  }
  0xeb   :  { %3414 = vmatpush1.bf16.msra.mxu0 %v13119_v19  ;;  %3333 = vmatprep.subr.bf16.mxu1 %v13120_v20  ;;  %v13146_v37 = vld [vmem:[#allocation3 + $0x524] ss:$16 sps:$4 sm:$0xff]   ;;  %v13149_v39 = vld [vmem:[#allocation3 + $0x520] ss:$16 sps:$4 sm:$0xff]  }
  0xec   :  { %3415 = vmatprep.subr.bf16.mxu0 %v13122_v21  ;;  %v13150_v40 = vld [vmem:[#allocation3 + $0x144] ss:$16 sps:$4 sm:$0xff]   ;;  %v13154_v42 = vld [vmem:[#allocation3 + $0x140] ss:$16 sps:$4 sm:$0xff]  }
  0xed   :  { %v13152_v41 = vld [vmem:[#allocation3 + $0x544] ss:$16 sps:$4 sm:$0xff]   ;;  %v13155_v43 = vld [vmem:[#allocation3 + $0x540] ss:$16 sps:$4 sm:$0xff]  }
  0xee   :  { %3334 = vmatpush1.bf16.msra.mxu1 %v13124_v22  ;;  %v13156_v44 = vld [vmem:[#allocation3 + $0x164] ss:$16 sps:$4 sm:$0xff]   ;;  %v13160_v47 = vld [vmem:[#allocation3 + $0x160] ss:$16 sps:$4 sm:$0xff]  }
  0xef   :  { %3416 = vmatpush1.bf16.msra.mxu0 %v13125_v23  ;;  %3335 = vmatprep.subr.bf16.mxu1 %v13126_v24  ;;  %v13158_v45 = vld [vmem:[#allocation3 + $0x564] ss:$16 sps:$4 sm:$0xff]   ;;  %v13161_v49 = vld [vmem:[#allocation3 + $0x560] ss:$16 sps:$4 sm:$0xff]  }
  0xf0   :  { %3417 = vmatprep.subr.bf16.mxu0 %v13128_v25  ;;  %v13162_v51 = vld [vmem:[#allocation3 + $0x184] ss:$16 sps:$4 sm:$0xff]   ;;  %v13166_v54 = vld [vmem:[#allocation3 + $0x180] ss:$16 sps:$4 sm:$0xff]  }
  0xf1   :  { %v13164_v52 = vld [vmem:[#allocation3 + $0x584] ss:$16 sps:$4 sm:$0xff]   ;;  %v13167_v55 = vld [vmem:[#allocation3 + $0x580] ss:$16 sps:$4 sm:$0xff]  }
  0xf2   :  { %3336 = vmatpush1.bf16.msra.mxu1 %v13130_v26  ;;  %v13168_v56 = vld [vmem:[#allocation3 + $0x1a4] ss:$16 sps:$4 sm:$0xff]   ;;  %v13172_v58 = vld [vmem:[#allocation3 + $0x1a0] ss:$16 sps:$4 sm:$0xff]  }
  0xf3   :  { %3418 = vmatpush1.bf16.msra.mxu0 %v13131_v27  ;;  %3337 = vmatprep.subr.bf16.mxu1 %v13132_v28  ;;  %v13170_v57 = vld [vmem:[#allocation3 + $0x5a4] ss:$16 sps:$4 sm:$0xff]   ;;  %v13173_v59 = vld [vmem:[#allocation3 + $0x5a0] ss:$16 sps:$4 sm:$0xff]  }
  0xf4   :  { %3419 = vmatprep.subr.bf16.mxu0 %v13134_v29  ;;  %v13174_v60 = vld [vmem:[#allocation3 + $0x1c4] ss:$16 sps:$4 sm:$0xff]   ;;  %v13178_v62 = vld [vmem:[#allocation3 + $0x1c0] ss:$16 sps:$4 sm:$0xff]  }
  0xf5   :  { %v13176_v61 = vld [vmem:[#allocation3 + $0x5c4] ss:$16 sps:$4 sm:$0xff]   ;;  %v13179_v63 = vld [vmem:[#allocation3 + $0x5c0] ss:$16 sps:$4 sm:$0xff]  }
  0xf6   :  { %3338 = vmatpush1.bf16.msra.mxu1 %v13136_v30  ;;  %v13180_v0 = vld [vmem:[#allocation3 + $0x1e4] ss:$16 sps:$4 sm:$0xff]   ;;  %v13184_v2 = vld [vmem:[#allocation3 + $0x1e0] ss:$16 sps:$4 sm:$0xff]  }
  0xf7   :  { %3420 = vmatpush1.bf16.msra.mxu0 %v13137_v31  ;;  %3339 = vmatprep.subr.bf16.mxu1 %v13138_v32  ;;  %v13182_v1 = vld [vmem:[#allocation3 + $0x5e4] ss:$16 sps:$4 sm:$0xff]   ;;  %v13185_v3 = vld [vmem:[#allocation3 + $0x5e0] ss:$16 sps:$4 sm:$0xff]  }
  0xf8   :  { %3421 = vmatprep.subr.bf16.mxu0 %v13140_v33  ;;  %v13188_v4 = vld [vmem:[#allocation3 + $0x204] ss:$16 sps:$4 sm:$0xff]   ;;  %v13186_v8 = vld [vmem:[#allocation3 + $0x200] ss:$16 sps:$4 sm:$0xff]  }
  0xf9   :  { %v197_v5 = vld [vmem:[%s15631_s0] sm:$0xff] }
  0xfa   :  { %3340 = vmatpush1.bf16.msra.mxu1 %v13142_v34  ;;  %v201_v6 = vld [vmem:[%s15631_s0 + $0x20] sm:$0xff]  ;;  %v15107_v10 = vpack.c.bf16 %v197_v5, %v197_v5  ;;  %v200_v34 = vld [vmem:[%s15631_s0 + $0x18] sm:$0xff] }
  0xfb   :  { %3422 = vmatpush1.bf16.msra.mxu0 %v13143_v35  ;;  %3341 = vmatprep.subr.bf16.mxu1 %v13144_v36  ;;  %v13191_v7 = vld [vmem:[#allocation3 + $0x604] ss:$16 sps:$4 sm:$0xff]   ;;  %v13189_v9 = vld [vmem:[#allocation3 + $0x600] ss:$16 sps:$4 sm:$0xff]   ;;  %v15109_v11 = vpack.c.bf16 %v201_v6, %v201_v6  ;;  %v15116_v36 = vpack.c.bf16 %v200_v34, %v200_v34 }
  0xfc   :  { %3423 = vmatprep.subr.bf16.mxu0 %v13146_v37  ;;  %v13194_v12 = vld [vmem:[#allocation3 + $0x224] ss:$16 sps:$4 sm:$0xff]   ;;  %v13192_v14 = vld [vmem:[#allocation3 + $0x220] ss:$16 sps:$4 sm:$0xff]   ;;  %v204_v37 = vld [vmem:[%s15631_s0 + $0x38] sm:$0xff] }
  0xfd   :  { %v13197_v13 = vld [vmem:[#allocation3 + $0x624] ss:$16 sps:$4 sm:$0xff]   ;;  %v13195_v15 = vld [vmem:[#allocation3 + $0x620] ss:$16 sps:$4 sm:$0xff]  }
  0xfe   :  { %3342 = vmatpush1.bf16.msra.mxu1 %v13148_v38  ;;  %v13200_v16 = vld [vmem:[#allocation3 + $0x244] ss:$16 sps:$4 sm:$0xff]   ;;  %v13198_v18 = vld [vmem:[#allocation3 + $0x240] ss:$16 sps:$4 sm:$0xff]  }
  0xff   :  { %3424 = vmatpush1.bf16.msra.mxu0 %v13149_v39  ;;  %3343 = vmatprep.subr.bf16.mxu1 %v13150_v40  ;;  %v13203_v17 = vld [vmem:[#allocation3 + $0x644] ss:$16 sps:$4 sm:$0xff]   ;;  %v13201_v19 = vld [vmem:[#allocation3 + $0x640] ss:$16 sps:$4 sm:$0xff]   ;;  %v15121_v40 = vpack.c.bf16 %v204_v37, %v204_v37 }
 0x100   :  { %3425 = vmatprep.subr.bf16.mxu0 %v13152_v41  ;;  %v13206_v20 = vld [vmem:[#allocation3 + $0x264] ss:$16 sps:$4 sm:$0xff]   ;;  %v13204_v22 = vld [vmem:[#allocation3 + $0x260] ss:$16 sps:$4 sm:$0xff]  }
 0x101   :  { %v13209_v21 = vld [vmem:[#allocation3 + $0x664] ss:$16 sps:$4 sm:$0xff]   ;;  %v13207_v23 = vld [vmem:[#allocation3 + $0x660] ss:$16 sps:$4 sm:$0xff]  }
 0x102   :  { %3344 = vmatpush1.bf16.msra.mxu1 %v13154_v42  ;;  %v13212_v24 = vld [vmem:[#allocation3 + $0x284] ss:$16 sps:$4 sm:$0xff]   ;;  %v13210_v26 = vld [vmem:[#allocation3 + $0x280] ss:$16 sps:$4 sm:$0xff]  }
 0x103   :  { %3426 = vmatpush1.bf16.msra.mxu0 %v13155_v43  ;;  %3345 = vmatprep.subr.bf16.mxu1 %v13156_v44  ;;  %v13215_v25 = vld [vmem:[#allocation3 + $0x684] ss:$16 sps:$4 sm:$0xff]   ;;  %v13213_v27 = vld [vmem:[#allocation3 + $0x680] ss:$16 sps:$4 sm:$0xff]  }
 0x104   :  { %3427 = vmatprep.subr.bf16.mxu0 %v13158_v45  ;;  %v13218_v28 = vld [vmem:[#allocation3 + $0x2a4] ss:$16 sps:$4 sm:$0xff]   ;;  %v13216_v30 = vld [vmem:[#allocation3 + $0x2a0] ss:$16 sps:$4 sm:$0xff]  }
 0x105   :  { %v13221_v29 = vld [vmem:[#allocation3 + $0x6a4] ss:$16 sps:$4 sm:$0xff]   ;;  %v13219_v31 = vld [vmem:[#allocation3 + $0x6a0] ss:$16 sps:$4 sm:$0xff]  }
 0x106   :  { %3346 = vmatpush1.bf16.msra.mxu1 %v13160_v47  ;;  %v13224_v32 = vld [vmem:[#allocation3 + $0x2c4] ss:$16 sps:$4 sm:$0xff]   ;;  %v13222_v35 = vld [vmem:[#allocation3 + $0x2c0] ss:$16 sps:$4 sm:$0xff]  }
 0x107   :  { %3428 = vmatpush1.bf16.msra.mxu0 %v13161_v49  ;;  %3347 = vmatprep.subr.bf16.mxu1 %v13162_v51  ;;  %v13227_v33 = vld [vmem:[#allocation3 + $0x6c4] ss:$16 sps:$4 sm:$0xff]   ;;  %v13225_v38 = vld [vmem:[#allocation3 + $0x6c0] ss:$16 sps:$4 sm:$0xff]  }
 0x108   :  { %3429 = vmatprep.subr.bf16.mxu0 %v13164_v52  ;;  %v13230_v39 = vld [vmem:[#allocation3 + $0x2e4] ss:$16 sps:$4 sm:$0xff]   ;;  %v13228_v42 = vld [vmem:[#allocation3 + $0x2e0] ss:$16 sps:$4 sm:$0xff]  }
 0x109   :  { %v13233_v41 = vld [vmem:[#allocation3 + $0x6e4] ss:$16 sps:$4 sm:$0xff]   ;;  %v13231_v43 = vld [vmem:[#allocation3 + $0x6e0] ss:$16 sps:$4 sm:$0xff]  }
 0x10a   :  { %3348 = vmatpush1.bf16.msra.mxu1 %v13166_v54  ;;  %v13236_v44 = vld [vmem:[#allocation3 + $0x304] ss:$16 sps:$4 sm:$0xff]   ;;  %v13234_v46 = vld [vmem:[#allocation3 + $0x300] ss:$16 sps:$4 sm:$0xff]  }
 0x10b   :  { %3430 = vmatpush1.bf16.msra.mxu0 %v13167_v55  ;;  %3349 = vmatprep.subr.bf16.mxu1 %v13168_v56  ;;  %v13239_v45 = vld [vmem:[#allocation3 + $0x704] ss:$16 sps:$4 sm:$0xff]   ;;  %v13237_v47 = vld [vmem:[#allocation3 + $0x700] ss:$16 sps:$4 sm:$0xff]  }
 0x10c   :  { %3431 = vmatprep.subr.bf16.mxu0 %v13170_v57  ;;  %v13242_v49 = vld [vmem:[#allocation3 + $0x324] ss:$16 sps:$4 sm:$0xff]   ;;  %v13240_v51 = vld [vmem:[#allocation3 + $0x320] ss:$16 sps:$4 sm:$0xff]  }
 0x10d   :  { %v13245_v50 = vld [vmem:[#allocation3 + $0x724] ss:$16 sps:$4 sm:$0xff]   ;;  %v13243_v52 = vld [vmem:[#allocation3 + $0x720] ss:$16 sps:$4 sm:$0xff]  }
 0x10e   :  { %3350 = vmatpush1.bf16.msra.mxu1 %v13172_v58  ;;  %v13248_v54 = vld [vmem:[#allocation3 + $0x344] ss:$16 sps:$4 sm:$0xff]   ;;  %v13246_v56 = vld [vmem:[#allocation3 + $0x340] ss:$16 sps:$4 sm:$0xff]  }
 0x10f   :  { %3432 = vmatpush1.bf16.msra.mxu0 %v13173_v59  ;;  %3351 = vmatprep.subr.bf16.mxu1 %v13174_v60  ;;  %v13251_v55 = vld [vmem:[#allocation3 + $0x744] ss:$16 sps:$4 sm:$0xff]   ;;  %v13249_v57 = vld [vmem:[#allocation3 + $0x740] ss:$16 sps:$4 sm:$0xff]  }
 0x110   :  { %3433 = vmatprep.subr.bf16.mxu0 %v13176_v61  ;;  %v13254_v58 = vld [vmem:[#allocation3 + $0x364] ss:$16 sps:$4 sm:$0xff]   ;;  %v13252_v60 = vld [vmem:[#allocation3 + $0x360] ss:$16 sps:$4 sm:$0xff]  }
 0x111   :  { %v13257_v59 = vld [vmem:[#allocation3 + $0x764] ss:$16 sps:$4 sm:$0xff]   ;;  %v13255_v61 = vld [vmem:[#allocation3 + $0x760] ss:$16 sps:$4 sm:$0xff]  }
 0x112   :  { %3352 = vmatpush1.bf16.msra.mxu1 %v13178_v62  ;;  %v13260_v62 = vld [vmem:[#allocation3 + $0x384] ss:$16 sps:$4 sm:$0xff]   ;;  %v13267_v5 = vld [vmem:[#allocation3 + $0x7a0] ss:$16 sps:$4 sm:$0xff]  }
 0x113   :  { %3434 = vmatpush1.bf16.msra.mxu0 %v13179_v63  ;;  %3353 = vmatprep.subr.bf16.mxu1 %v13180_v0  ;;  %v13263_v63 = vld [vmem:[#allocation3 + $0x784] ss:$16 sps:$4 sm:$0xff]   ;;  %v13258_v0 = vld [vmem:[#allocation3 + $0x380] ss:$16 sps:$4 sm:$0xff]  }
 0x114   :  { %3435 = vmatprep.subr.bf16.mxu0 %v13182_v1  ;;  %v13261_v1 = vld [vmem:[#allocation3 + $0x780] ss:$16 sps:$4 sm:$0xff]   ;;  %v13272_v6 = vld [vmem:[#allocation3 + $0x3c4] ss:$16 sps:$4 sm:$0xff]  }
 0x115   :  { %v13302_v34 = vld [vmem:[#allocation3 + $0x864] ss:$16 sps:$4 sm:$0xff]   ;;  %v13300_v37 = vld [vmem:[#allocation3 + $0x860] ss:$16 sps:$4 sm:$0xff]  }
 0x116   :  { %3354 = vmatpush1.bf16.msra.mxu1 %v13184_v2  ;;  %v13266_v2 = vld [vmem:[#allocation3 + $0x3a4] ss:$16 sps:$4 sm:$0xff]  }
 0x117   :  { %3436 = vmatpush1.bf16.msra.mxu0 %v13185_v3  ;;  %3364 = vmatprep.subr.bf16.mxu1 %v13188_v4  ;;  %v13269_v3 = vld [vmem:[#allocation3 + $0x7a4] ss:$16 sps:$4 sm:$0xff]   ;;  %v13264_v4 = vld [vmem:[#allocation3 + $0x3a0] ss:$16 sps:$4 sm:$0xff]  }
 0x118   :  { %3446 = vmatprep.subr.bf16.mxu0 %v13191_v7  ;;  %v13275_v7 = vld [vmem:[#allocation3 + $0x7c4] ss:$16 sps:$4 sm:$0xff]  }
 0x119   :  { %3356 = vmatmul.mubr.bf16.vlgmr.msra.gmra.mrb[0].mxu1 %v15107_v10 }
 0x11a   :  { %3438 = vmatmul.mubr.bf16.vlgmr.msra.gmra.mrb[0].mxu0 %v15109_v11  ;;  %3365 = vmatpush1.bf16.msra.mxu1 %v13186_v8  ;;  %v13270_v8 = vld [vmem:[#allocation3 + $0x3c0] ss:$16 sps:$4 sm:$0xff]  }
 0x11b   :  { %3447 = vmatpush1.bf16.msra.mxu0 %v13189_v9  ;;  %3366 = vmatprep.subr.bf16.mxu1 %v13194_v12  ;;  %v13273_v9 = vld [vmem:[#allocation3 + $0x7c0] ss:$16 sps:$4 sm:$0xff]   ;;  %v13278_v12 = vld [vmem:[#allocation3 + $0x3e4] ss:$16 sps:$4 sm:$0xff]  }
 0x11c   :  { %3448 = vmatprep.subr.bf16.mxu0 %v13197_v13  ;;  %3396 = vmatprep.mubr.bf16.mxu1 %v15116_v36  ;;  %v13281_v13 = vld [vmem:[#allocation3 + $0x7e4] ss:$16 sps:$4 sm:$0xff]  }
 0x11d   :  { %3478 = vmatprep.mubr.bf16.mxu0 %v15121_v40 }
 0x11e   :  { %3367 = vmatpush1.bf16.msra.mxu1 %v13192_v14  ;;  %v13276_v14 = vld [vmem:[#allocation3 + $0x3e0] ss:$16 sps:$4 sm:$0xff]  }
 0x11f   :  { %3449 = vmatpush1.bf16.msra.mxu0 %v13195_v15  ;;  %3368 = vmatprep.subr.bf16.mxu1 %v13200_v16  ;;  %v13279_v15 = vld [vmem:[#allocation3 + $0x7e0] ss:$16 sps:$4 sm:$0xff]  }
 0x120   :  { %3450 = vmatprep.subr.bf16.mxu0 %v13203_v17  ;;  %v199_v16 = vld [vmem:[%s15631_s0 + $0x10] sm:$0xff] }
 0x121   :  { %v13284_v17 = vld [vmem:[#allocation3 + $0x804] ss:$16 sps:$4 sm:$0xff]  }
 0x122   :  { %3369 = vmatpush1.bf16.msra.mxu1 %v13198_v18  ;;  %v203_v18 = vld [vmem:[%s15631_s0 + $0x30] sm:$0xff] }
 0x123   :  { %3451 = vmatpush1.bf16.msra.mxu0 %v13201_v19  ;;  %3370 = vmatprep.subr.bf16.mxu1 %v13206_v20  ;;  %v13287_v19 = vld [vmem:[#allocation3 + $0xc] ss:$16 sps:$4 sm:$0xff]   ;;  %v15131_v20 = vpack.c.bf16 %v199_v16, %v199_v16 }
 0x124   :  { %3452 = vmatprep.subr.bf16.mxu0 %v13209_v21  ;;  %v13282_v21 = vld [vmem:[#allocation3 + $0x800] ss:$16 sps:$4 sm:$0xff]   ;;  %v13365_v16 = vld [vmem:[#allocation3 + $0x1ac] ss:$16 sps:$4 sm:$0xff]  }
 0x126   :  { %3371 = vmatpush1.bf16.msra.mxu1 %v13204_v22  ;;  %v13285_v22 = vld [vmem:[#allocation3 + $0x8] ss:$16 sps:$4 sm:$0xff]  }
 0x127   :  { %3453 = vmatpush1.bf16.msra.mxu0 %v13207_v23  ;;  %3372 = vmatprep.subr.bf16.mxu1 %v13212_v24  ;;  %v15133_v23 = vpack.c.bf16 %v203_v18, %v203_v18  ;;  %v13290_v24 = vld [vmem:[#allocation3 + $0x824] ss:$16 sps:$4 sm:$0xff]   ;;  %v13363_v18 = vld [vmem:[#allocation3 + $0x1a8] ss:$16 sps:$4 sm:$0xff]  }
 0x128   :  { %3454 = vmatprep.subr.bf16.mxu0 %v13215_v25  ;;  %v13293_v25 = vld [vmem:[#allocation3 + $0x2c] ss:$16 sps:$4 sm:$0xff]  }
 0x12a   :  { %3373 = vmatpush1.bf16.msra.mxu1 %v13210_v26  ;;  %v206_v26 = vld [vmem:[%s15631_s0 + $0x48] sm:$0xff] }
 0x12b   :  { %3455 = vmatpush1.bf16.msra.mxu0 %v13213_v27  ;;  %3374 = vmatprep.subr.bf16.mxu1 %v13218_v28  ;;  %v13288_v27 = vld [vmem:[#allocation3 + $0x820] ss:$16 sps:$4 sm:$0xff]   ;;  %v15140_v28 = vpack.c.bf16 %v206_v26, %v206_v26  ;;  %v13377_v26 = vld [vmem:[#allocation3 + $0x1ec] ss:$16 sps:$4 sm:$0xff]  }
 0x12c   :  { %3456 = vmatprep.subr.bf16.mxu0 %v13221_v29  ;;  %v13291_v29 = vld [vmem:[#allocation3 + $0x28] ss:$16 sps:$4 sm:$0xff]  }
 0x12e   :  { %3375 = vmatpush1.bf16.msra.mxu1 %v13216_v30  ;;  %v13296_v30 = vld [vmem:[#allocation3 + $0x844] ss:$16 sps:$4 sm:$0xff]  }
 0x12f   :  { %3457 = vmatpush1.bf16.msra.mxu0 %v13219_v31  ;;  %3376 = vmatprep.subr.bf16.mxu1 %v13224_v32  ;;  %v13299_v31 = vld [vmem:[#allocation3 + $0x4c] ss:$16 sps:$4 sm:$0xff]   ;;  %v13294_v32 = vld [vmem:[#allocation3 + $0x840] ss:$16 sps:$4 sm:$0xff]  }
 0x130   :  { %3458 = vmatprep.subr.bf16.mxu0 %v13227_v33  ;;  %v13297_v33 = vld [vmem:[#allocation3 + $0x48] ss:$16 sps:$4 sm:$0xff]  }
 0x132   :  { %3377 = vmatpush1.bf16.msra.mxu1 %v13222_v35  ;;  %v13305_v35 = vld [vmem:[#allocation3 + $0x6c] ss:$16 sps:$4 sm:$0xff]  }
 0x133   :  { %3459 = vmatpush1.bf16.msra.mxu0 %v13225_v38  ;;  %3378 = vmatprep.subr.bf16.mxu1 %v13230_v39  ;;  %v13303_v38 = vld [vmem:[#allocation3 + $0x68] ss:$16 sps:$4 sm:$0xff]   ;;  %v13308_v39 = vld [vmem:[#allocation3 + $0x884] ss:$16 sps:$4 sm:$0xff]  }
 0x134   :  { %3460 = vmatprep.subr.bf16.mxu0 %v13233_v41  ;;  %v13311_v41 = vld [vmem:[#allocation3 + $0x8c] ss:$16 sps:$4 sm:$0xff]  }
 0x136   :  { %3379 = vmatpush1.bf16.msra.mxu1 %v13228_v42  ;;  %v13306_v42 = vld [vmem:[#allocation3 + $0x880] ss:$16 sps:$4 sm:$0xff]  }
 0x137   :  { %3461 = vmatpush1.bf16.msra.mxu0 %v13231_v43  ;;  %3380 = vmatprep.subr.bf16.mxu1 %v13236_v44  ;;  %v13314_v43 = vld [vmem:[#allocation3 + $0x8a4] ss:$16 sps:$4 sm:$0xff]   ;;  %v13317_v44 = vld [vmem:[#allocation3 + $0xac] ss:$16 sps:$4 sm:$0xff]  }
 0x138   :  { %3462 = vmatprep.subr.bf16.mxu0 %v13239_v45  ;;  %v13312_v45 = vld [vmem:[#allocation3 + $0x8a0] ss:$16 sps:$4 sm:$0xff]  }
 0x13a   :  { %3381 = vmatpush1.bf16.msra.mxu1 %v13234_v46  ;;  %v13315_v46 = vld [vmem:[#allocation3 + $0xa8] ss:$16 sps:$4 sm:$0xff]  }
 0x13b   :  { %3463 = vmatpush1.bf16.msra.mxu0 %v13237_v47  ;;  %3382 = vmatprep.subr.bf16.mxu1 %v13242_v49  ;;  %v13320_v47 = vld [vmem:[#allocation3 + $0x8c4] ss:$16 sps:$4 sm:$0xff]   ;;  %v13323_v49 = vld [vmem:[#allocation3 + $0xcc] ss:$16 sps:$4 sm:$0xff]  }
 0x13c   :  { %3464 = vmatprep.subr.bf16.mxu0 %v13245_v50  ;;  %v13318_v50 = vld [vmem:[#allocation3 + $0x8c0] ss:$16 sps:$4 sm:$0xff]  }
 0x13e   :  { %3383 = vmatpush1.bf16.msra.mxu1 %v13240_v51  ;;  %v13321_v51 = vld [vmem:[#allocation3 + $0xc8] ss:$16 sps:$4 sm:$0xff]  }
 0x13f   :  { %3465 = vmatpush1.bf16.msra.mxu0 %v13243_v52  ;;  %3384 = vmatprep.subr.bf16.mxu1 %v13248_v54  ;;  %v13326_v52 = vld [vmem:[#allocation3 + $0x8e4] ss:$16 sps:$4 sm:$0xff]   ;;  %v13329_v54 = vld [vmem:[#allocation3 + $0xec] ss:$16 sps:$4 sm:$0xff]  }
 0x140   :  { %3466 = vmatprep.subr.bf16.mxu0 %v13251_v55  ;;  %v13324_v55 = vld [vmem:[#allocation3 + $0x8e0] ss:$16 sps:$4 sm:$0xff]  }
 0x142   :  { %3385 = vmatpush1.bf16.msra.mxu1 %v13246_v56  ;;  %v13327_v56 = vld [vmem:[#allocation3 + $0xe8] ss:$16 sps:$4 sm:$0xff]  }
 0x143   :  { %3467 = vmatpush1.bf16.msra.mxu0 %v13249_v57  ;;  %3386 = vmatprep.subr.bf16.mxu1 %v13254_v58  ;;  %v13332_v57 = vld [vmem:[#allocation3 + $0x904] ss:$16 sps:$4 sm:$0xff]   ;;  %v13335_v58 = vld [vmem:[#allocation3 + $0x10c] ss:$16 sps:$4 sm:$0xff]  }
 0x144   :  { %3468 = vmatprep.subr.bf16.mxu0 %v13257_v59  ;;  %v13330_v59 = vld [vmem:[#allocation3 + $0x900] ss:$16 sps:$4 sm:$0xff]  }
 0x146   :  { %3387 = vmatpush1.bf16.msra.mxu1 %v13252_v60  ;;  %v13333_v60 = vld [vmem:[#allocation3 + $0x108] ss:$16 sps:$4 sm:$0xff]  }
 0x147   :  { %3469 = vmatpush1.bf16.msra.mxu0 %v13255_v61  ;;  %3388 = vmatprep.subr.bf16.mxu1 %v13260_v62  ;;  %v13338_v61 = vld [vmem:[#allocation3 + $0x924] ss:$16 sps:$4 sm:$0xff]   ;;  %v13341_v62 = vld [vmem:[#allocation3 + $0x12c] ss:$16 sps:$4 sm:$0xff]  }
 0x148   :  { %3470 = vmatprep.subr.bf16.mxu0 %v13263_v63  ;;  %v13336_v63 = vld [vmem:[#allocation3 + $0x920] ss:$16 sps:$4 sm:$0xff]  }
 0x14a   :  { %3389 = vmatpush1.bf16.msra.mxu1 %v13258_v0  ;;  %v13339_v0 = vld [vmem:[#allocation3 + $0x128] ss:$16 sps:$4 sm:$0xff]  }
 0x14b   :  { %3471 = vmatpush1.bf16.msra.mxu0 %v13261_v1  ;;  %3390 = vmatprep.subr.bf16.mxu1 %v13266_v2  ;;  %v13344_v1 = vld [vmem:[#allocation3 + $0x944] ss:$16 sps:$4 sm:$0xff]   ;;  %v13347_v2 = vld [vmem:[#allocation3 + $0x14c] ss:$16 sps:$4 sm:$0xff]  }
 0x14c   :  { %3472 = vmatprep.subr.bf16.mxu0 %v13269_v3  ;;  %v13342_v3 = vld [vmem:[#allocation3 + $0x940] ss:$16 sps:$4 sm:$0xff]  }
 0x14e   :  { %3391 = vmatpush1.bf16.msra.mxu1 %v13264_v4  ;;  %v13345_v4 = vld [vmem:[#allocation3 + $0x148] ss:$16 sps:$4 sm:$0xff]  }
 0x14f   :  { %3473 = vmatpush1.bf16.msra.mxu0 %v13267_v5  ;;  %3392 = vmatprep.subr.bf16.mxu1 %v13272_v6  ;;  %v13350_v5 = vld [vmem:[#allocation3 + $0x964] ss:$16 sps:$4 sm:$0xff]   ;;  %v13353_v6 = vld [vmem:[#allocation3 + $0x16c] ss:$16 sps:$4 sm:$0xff]  }
 0x150   :  { %3474 = vmatprep.subr.bf16.mxu0 %v13275_v7  ;;  %v13348_v7 = vld [vmem:[#allocation3 + $0x960] ss:$16 sps:$4 sm:$0xff]  }
 0x152   :  { %3393 = vmatpush1.bf16.msra.mxu1 %v13270_v8  ;;  %v13351_v8 = vld [vmem:[#allocation3 + $0x168] ss:$16 sps:$4 sm:$0xff]  }
 0x153   :  { %3475 = vmatpush1.bf16.msra.mxu0 %v13273_v9  ;;  %3394 = vmatprep.subr.bf16.mxu1 %v13278_v12  ;;  %v13356_v9 = vld [vmem:[#allocation3 + $0x984] ss:$16 sps:$4 sm:$0xff]   ;;  %v13359_v12 = vld [vmem:[#allocation3 + $0x18c] ss:$16 sps:$4 sm:$0xff]  }
 0x154   :  { %3476 = vmatprep.subr.bf16.mxu0 %v13281_v13  ;;  %v13354_v13 = vld [vmem:[#allocation3 + $0x980] ss:$16 sps:$4 sm:$0xff]  }
 0x156   :  { %3395 = vmatpush1.bf16.msra.mxu1 %v13276_v14  ;;  %v13357_v14 = vld [vmem:[#allocation3 + $0x188] ss:$16 sps:$4 sm:$0xff]  }
 0x157   :  { %3477 = vmatpush1.bf16.msra.mxu0 %v13279_v15  ;;  %3651 = vmatprep.subr.bf16.mxu1 %v13287_v19  ;;  %v13362_v15 = vld [vmem:[#allocation3 + $0x9a4] ss:$16 sps:$4 sm:$0xff]  }
 0x158   :  { %3487 = vmatprep.subr.bf16.mxu0 %v13284_v17  ;;  %v13360_v17 = vld [vmem:[#allocation3 + $0x9a0] ss:$16 sps:$4 sm:$0xff]   ;;  %v13368_v19 = vld [vmem:[#allocation3 + $0x9c4] ss:$16 sps:$4 sm:$0xff]  }
 0x159   :  { %3397 = vmatmul.mubr.bf16.vlgmr.msra.gmra.mrb[0].mxu1 %v15131_v20 }
 0x15a   :  { %3479 = vmatmul.mubr.bf16.vlgmr.msra.gmra.mrb[0].mxu0 %v15133_v23  ;;  %3652 = vmatpush1.bf16.msra.mxu1 %v13285_v22  ;;  %v13366_v22 = vld [vmem:[#allocation3 + $0x9c0] ss:$16 sps:$4 sm:$0xff]  }
 0x15b   :  { %3488 = vmatpush1.bf16.msra.mxu0 %v13282_v21  ;;  %3653 = vmatprep.subr.bf16.mxu1 %v13293_v25  ;;  %v13371_v21 = vld [vmem:[#allocation3 + $0x1cc] ss:$16 sps:$4 sm:$0xff]   ;;  %v13374_v25 = vld [vmem:[#allocation3 + $0x9e4] ss:$16 sps:$4 sm:$0xff]  }
 0x15c   :  { %3489 = vmatprep.subr.bf16.mxu0 %v13290_v24  ;;  %3519 = vmatprep.mubr.bf16.mxu0 %v15140_v28  ;;  %v13369_v24 = vld [vmem:[#allocation3 + $0x1c8] ss:$16 sps:$4 sm:$0xff]  }
 0x15d   :  { %3683 = vmatprep.mubr.bf16.mxu1 %v15092_v48  ;;  %v13309_v48 = vld [vmem:[#allocation3 + $0x88] ss:$16 sps:$4 sm:$0xff]  }
 0x15e   :  { %3654 = vmatpush1.bf16.msra.mxu1 %v13291_v29  ;;  %v13375_v29 = vld [vmem:[#allocation3 + $0x1e8] ss:$16 sps:$4 sm:$0xff]  }
 0x15f   :  { %3490 = vmatpush1.bf16.msra.mxu0 %v13288_v27  ;;  %3655 = vmatprep.subr.bf16.mxu1 %v13299_v31  ;;  %v13372_v27 = vld [vmem:[#allocation3 + $0x9e0] ss:$16 sps:$4 sm:$0xff]  }
 0x160   :  { %3491 = vmatprep.subr.bf16.mxu0 %v13296_v30  ;;  %v13380_v30 = vld [vmem:[#allocation3 + $0xa04] ss:$16 sps:$4 sm:$0xff]  }
 0x161   :  { %v205_v31 = vld [vmem:[%s15631_s0 + $0x40] sm:$0xff] }
 0x162   :  { %3656 = vmatpush1.bf16.msra.mxu1 %v13297_v33  ;;  %v13378_v33 = vld [vmem:[#allocation3 + $0xa00] ss:$16 sps:$4 sm:$0xff]  }
 0x163   :  { %3492 = vmatpush1.bf16.msra.mxu0 %v13294_v32  ;;  %3657 = vmatprep.subr.bf16.mxu1 %v13305_v35  ;;  %v13383_v32 = vld [vmem:[#allocation3 + $0x20c] ss:$16 sps:$4 sm:$0xff]   ;;  %v15147_v35 = vpack.c.bf16 %v205_v31, %v205_v31  ;;  %v13459_v31 = vld [vmem:[#allocation3 + $0x3a8] ss:$16 sps:$4 sm:$0xff]  }
 0x164   :  { %3493 = vmatprep.subr.bf16.mxu0 %v13302_v34  ;;  %v13381_v34 = vld [vmem:[#allocation3 + $0x208] ss:$16 sps:$4 sm:$0xff]  }
 0x166   :  { %3658 = vmatpush1.bf16.msra.mxu1 %v13303_v38  ;;  %v13386_v38 = vld [vmem:[#allocation3 + $0xa24] ss:$16 sps:$4 sm:$0xff]  }
 0x167   :  { %3494 = vmatpush1.bf16.msra.mxu0 %v13300_v37  ;;  %3659 = vmatprep.subr.bf16.mxu1 %v13311_v41  ;;  %v208_v37 = vld [vmem:[%s15631_s0 + $0x58] sm:$0xff] }
 0x168   :  { %3495 = vmatprep.subr.bf16.mxu0 %v13308_v39  ;;  %v13389_v39 = vld [vmem:[#allocation3 + $0x22c] ss:$16 sps:$4 sm:$0xff]   ;;  %v15152_v41 = vpack.c.bf16 %v208_v37, %v208_v37  ;;  %v13465_v37 = vld [vmem:[#allocation3 + $0x3c8] ss:$16 sps:$4 sm:$0xff]  }
 0x16a   :  { %3660 = vmatpush1.bf16.msra.mxu1 %v13309_v48  ;;  %v13387_v48 = vld [vmem:[#allocation3 + $0x228] ss:$16 sps:$4 sm:$0xff]  }
 0x16b   :  { %3496 = vmatpush1.bf16.msra.mxu0 %v13306_v42  ;;  %3661 = vmatprep.subr.bf16.mxu1 %v13317_v44  ;;  %v13384_v42 = vld [vmem:[#allocation3 + $0xa20] ss:$16 sps:$4 sm:$0xff]   ;;  %v13395_v44 = vld [vmem:[#allocation3 + $0x24c] ss:$16 sps:$4 sm:$0xff]  }
 0x16c   :  { %3497 = vmatprep.subr.bf16.mxu0 %v13314_v43  ;;  %v13392_v43 = vld [vmem:[#allocation3 + $0xa44] ss:$16 sps:$4 sm:$0xff]  }
 0x16e   :  { %3662 = vmatpush1.bf16.msra.mxu1 %v13315_v46  ;;  %v13393_v46 = vld [vmem:[#allocation3 + $0x248] ss:$16 sps:$4 sm:$0xff]  }
 0x16f   :  { %3498 = vmatpush1.bf16.msra.mxu0 %v13312_v45  ;;  %3663 = vmatprep.subr.bf16.mxu1 %v13323_v49  ;;  %v13390_v45 = vld [vmem:[#allocation3 + $0xa40] ss:$16 sps:$4 sm:$0xff]  }
 0x170   :  { %3499 = vmatprep.subr.bf16.mxu0 %v13320_v47  ;;  %v13398_v47 = vld [vmem:[#allocation3 + $0xa64] ss:$16 sps:$4 sm:$0xff]   ;;  %v13396_v49 = vld [vmem:[#allocation3 + $0xa60] ss:$16 sps:$4 sm:$0xff]  }
 0x172   :  { %3664 = vmatpush1.bf16.msra.mxu1 %v13321_v51  ;;  %v13404_v51 = vld [vmem:[#allocation3 + $0xa84] ss:$16 sps:$4 sm:$0xff]  }
 0x173   :  { %3500 = vmatpush1.bf16.msra.mxu0 %v13318_v50  ;;  %3665 = vmatprep.subr.bf16.mxu1 %v13329_v54  ;;  %v13399_v50 = vld [vmem:[#allocation3 + $0x268] ss:$16 sps:$4 sm:$0xff]   ;;  %v13402_v54 = vld [vmem:[#allocation3 + $0xa80] ss:$16 sps:$4 sm:$0xff]  }
 0x174   :  { %3501 = vmatprep.subr.bf16.mxu0 %v13326_v52  ;;  %v13407_v52 = vld [vmem:[#allocation3 + $0x28c] ss:$16 sps:$4 sm:$0xff]  }
 0x176   :  { %3666 = vmatpush1.bf16.msra.mxu1 %v13327_v56  ;;  %v13413_v56 = vld [vmem:[#allocation3 + $0x2ac] ss:$16 sps:$4 sm:$0xff]  }
 0x177   :  { %3502 = vmatpush1.bf16.msra.mxu0 %v13324_v55  ;;  %3667 = vmatprep.subr.bf16.mxu1 %v13335_v58  ;;  %v13405_v55 = vld [vmem:[#allocation3 + $0x288] ss:$16 sps:$4 sm:$0xff]  }
 0x178   :  { %3503 = vmatprep.subr.bf16.mxu0 %v13332_v57  ;;  %v13408_v57 = vld [vmem:[#allocation3 + $0xaa0] ss:$16 sps:$4 sm:$0xff]   ;;  %v13411_v58 = vld [vmem:[#allocation3 + $0x2a8] ss:$16 sps:$4 sm:$0xff]  }
 0x17a   :  { %3668 = vmatpush1.bf16.msra.mxu1 %v13333_v60  ;;  %v13419_v60 = vld [vmem:[#allocation3 + $0x2cc] ss:$16 sps:$4 sm:$0xff]  }
 0x17b   :  { %3504 = vmatpush1.bf16.msra.mxu0 %v13330_v59  ;;  %3669 = vmatprep.subr.bf16.mxu1 %v13341_v62  ;;  %v13416_v59 = vld [vmem:[#allocation3 + $0xac4] ss:$16 sps:$4 sm:$0xff]   ;;  %v13417_v62 = vld [vmem:[#allocation3 + $0x2c8] ss:$16 sps:$4 sm:$0xff]  }
 0x17c   :  { %3505 = vmatprep.subr.bf16.mxu0 %v13338_v61  ;;  %v13414_v61 = vld [vmem:[#allocation3 + $0xac0] ss:$16 sps:$4 sm:$0xff]  }
 0x17e   :  { %3670 = vmatpush1.bf16.msra.mxu1 %v13339_v0  ;;  %v13425_v0 = vld [vmem:[#allocation3 + $0x2ec] ss:$16 sps:$4 sm:$0xff]  }
 0x17f   :  { %3506 = vmatpush1.bf16.msra.mxu0 %v13336_v63  ;;  %3671 = vmatprep.subr.bf16.mxu1 %v13347_v2  ;;  %v13422_v63 = vld [vmem:[#allocation3 + $0xae4] ss:$16 sps:$4 sm:$0xff]   ;;  %v13423_v2 = vld [vmem:[#allocation3 + $0x2e8] ss:$16 sps:$4 sm:$0xff]  }
 0x180   :  { %3507 = vmatprep.subr.bf16.mxu0 %v13344_v1  ;;  %v13420_v1 = vld [vmem:[#allocation3 + $0xae0] ss:$16 sps:$4 sm:$0xff]  }
 0x182   :  { %3672 = vmatpush1.bf16.msra.mxu1 %v13345_v4  ;;  %v13431_v4 = vld [vmem:[#allocation3 + $0x30c] ss:$16 sps:$4 sm:$0xff]  }
 0x183   :  { %3508 = vmatpush1.bf16.msra.mxu0 %v13342_v3  ;;  %3673 = vmatprep.subr.bf16.mxu1 %v13353_v6  ;;  %v13428_v3 = vld [vmem:[#allocation3 + $0xb04] ss:$16 sps:$4 sm:$0xff]   ;;  %v13429_v6 = vld [vmem:[#allocation3 + $0x308] ss:$16 sps:$4 sm:$0xff]  }
 0x184   :  { %3509 = vmatprep.subr.bf16.mxu0 %v13350_v5  ;;  %v13426_v5 = vld [vmem:[#allocation3 + $0xb00] ss:$16 sps:$4 sm:$0xff]  }
 0x186   :  { %3674 = vmatpush1.bf16.msra.mxu1 %v13351_v8  ;;  %v13437_v8 = vld [vmem:[#allocation3 + $0x32c] ss:$16 sps:$4 sm:$0xff]  }
 0x187   :  { %3510 = vmatpush1.bf16.msra.mxu0 %v13348_v7  ;;  %3675 = vmatprep.subr.bf16.mxu1 %v13359_v12  ;;  %v13434_v7 = vld [vmem:[#allocation3 + $0xb24] ss:$16 sps:$4 sm:$0xff]   ;;  %v13435_v12 = vld [vmem:[#allocation3 + $0x328] ss:$16 sps:$4 sm:$0xff]  }
 0x188   :  { %3511 = vmatprep.subr.bf16.mxu0 %v13356_v9  ;;  %v13432_v9 = vld [vmem:[#allocation3 + $0xb20] ss:$16 sps:$4 sm:$0xff]  }
 0x18a   :  { %3676 = vmatpush1.bf16.msra.mxu1 %v13357_v14  ;;  %v13443_v14 = vld [vmem:[#allocation3 + $0x34c] ss:$16 sps:$4 sm:$0xff]  }
 0x18b   :  { %3512 = vmatpush1.bf16.msra.mxu0 %v13354_v13  ;;  %3677 = vmatprep.subr.bf16.mxu1 %v13365_v16  ;;  %v13440_v13 = vld [vmem:[#allocation3 + $0xb44] ss:$16 sps:$4 sm:$0xff]   ;;  %v13441_v16 = vld [vmem:[#allocation3 + $0x348] ss:$16 sps:$4 sm:$0xff]  }
 0x18c   :  { %3513 = vmatprep.subr.bf16.mxu0 %v13362_v15  ;;  %v13438_v15 = vld [vmem:[#allocation3 + $0xb40] ss:$16 sps:$4 sm:$0xff]  }
 0x18e   :  { %3678 = vmatpush1.bf16.msra.mxu1 %v13363_v18  ;;  %v13449_v18 = vld [vmem:[#allocation3 + $0x36c] ss:$16 sps:$4 sm:$0xff]  }
 0x18f   :  { %3514 = vmatpush1.bf16.msra.mxu0 %v13360_v17  ;;  %3679 = vmatprep.subr.bf16.mxu1 %v13371_v21  ;;  %v13446_v17 = vld [vmem:[#allocation3 + $0xb64] ss:$16 sps:$4 sm:$0xff]   ;;  %v13447_v21 = vld [vmem:[#allocation3 + $0x368] ss:$16 sps:$4 sm:$0xff]  }
 0x190   :  { %3515 = vmatprep.subr.bf16.mxu0 %v13368_v19  ;;  %v13444_v19 = vld [vmem:[#allocation3 + $0xb60] ss:$16 sps:$4 sm:$0xff]  }
 0x192   :  { %3680 = vmatpush1.bf16.msra.mxu1 %v13369_v24  ;;  %v13455_v24 = vld [vmem:[#allocation3 + $0x38c] ss:$16 sps:$4 sm:$0xff]  }
 0x193   :  { %3516 = vmatpush1.bf16.msra.mxu0 %v13366_v22  ;;  %3681 = vmatprep.subr.bf16.mxu1 %v13377_v26  ;;  %v13452_v22 = vld [vmem:[#allocation3 + $0xb84] ss:$16 sps:$4 sm:$0xff]   ;;  %v13453_v26 = vld [vmem:[#allocation3 + $0x388] ss:$16 sps:$4 sm:$0xff]  }
 0x194   :  { %3517 = vmatprep.subr.bf16.mxu0 %v13374_v25  ;;  %v13450_v25 = vld [vmem:[#allocation3 + $0xb80] ss:$16 sps:$4 sm:$0xff]  }
 0x196   :  { %3682 = vmatpush1.bf16.msra.mxu1 %v13375_v29  ;;  %v13461_v29 = vld [vmem:[#allocation3 + $0x3ac] ss:$16 sps:$4 sm:$0xff]  }
 0x197   :  { %3518 = vmatpush1.bf16.msra.mxu0 %v13372_v27  ;;  %3692 = vmatprep.subr.bf16.mxu1 %v13383_v32  ;;  %v13458_v27 = vld [vmem:[#allocation3 + $0xba4] ss:$16 sps:$4 sm:$0xff]  }
 0x198   :  { %3528 = vmatprep.subr.bf16.mxu0 %v13380_v30  ;;  %v13456_v30 = vld [vmem:[#allocation3 + $0xba0] ss:$16 sps:$4 sm:$0xff]   ;;  %v13464_v32 = vld [vmem:[#allocation3 + $0xbc4] ss:$16 sps:$4 sm:$0xff]  }
 0x199   :  { %3684 = vmatmul.mubr.bf16.vlgmr.msra.gmra.mrb[4].mxu1 %v15107_v10  ;;  %v13401_v10 = vld [vmem:[#allocation3 + $0x26c] ss:$16 sps:$4 sm:$0xff]  }
 0x19a   :  { %3520 = vmatmul.mubr.bf16.vlgmr.msra.gmra.mrb[0].mxu0 %v15147_v35  ;;  %3693 = vmatpush1.bf16.msra.mxu1 %v13381_v34  ;;  %v13462_v34 = vld [vmem:[#allocation3 + $0xbc0] ss:$16 sps:$4 sm:$0xff]  }
 0x19b   :  { %3529 = vmatpush1.bf16.msra.mxu0 %v13378_v33  ;;  %3694 = vmatprep.subr.bf16.mxu1 %v13389_v39  ;;  %v13467_v33 = vld [vmem:[#allocation3 + $0x3cc] ss:$16 sps:$4 sm:$0xff]  }
 0x19c   :  { %3530 = vmatprep.subr.bf16.mxu0 %v13386_v38  ;;  %3560 = vmatprep.mubr.bf16.mxu0 %v15152_v41  ;;  %v13470_v38 = vld [vmem:[#allocation3 + $0xbe4] ss:$16 sps:$4 sm:$0xff]   ;;  %v13473_v39 = vld [vmem:[#allocation3 + $0x3ec] ss:$16 sps:$4 sm:$0xff]  }
 0x19d   :  { %3724 = vmatprep.mubr.bf16.mxu1 %v15116_v36  ;;  %v13410_v36 = vld [vmem:[#allocation3 + $0xaa4] ss:$16 sps:$4 sm:$0xff]  }
 0x19e   :  { %3695 = vmatpush1.bf16.msra.mxu1 %v13387_v48  ;;  %v13471_v48 = vld [vmem:[#allocation3 + $0x3e8] ss:$16 sps:$4 sm:$0xff]  }
 0x19f   :  { %3531 = vmatpush1.bf16.msra.mxu0 %v13384_v42  ;;  %3696 = vmatprep.subr.bf16.mxu1 %v13395_v44  ;;  %v13468_v42 = vld [vmem:[#allocation3 + $0xbe0] ss:$16 sps:$4 sm:$0xff]  }
 0x1a0   :  { %3532 = vmatprep.subr.bf16.mxu0 %v13392_v43  ;;  %v13476_v43 = vld [vmem:[#allocation3 + $0xc04] ss:$16 sps:$4 sm:$0xff]  }
 0x1a1   :  { %v207_v44 = vld [vmem:[%s15631_s0 + $0x50] sm:$0xff] }
 0x1a2   :  { %3697 = vmatpush1.bf16.msra.mxu1 %v13393_v46  ;;  %v13474_v46 = vld [vmem:[#allocation3 + $0xc00] ss:$16 sps:$4 sm:$0xff]  }
 0x1a3   :  { %3533 = vmatpush1.bf16.msra.mxu0 %v13390_v45  ;;  %3698 = vmatprep.subr.bf16.mxu1 %v13401_v10  ;;  %v13479_v45 = vld [vmem:[#allocation3 + $0x40c] ss:$16 sps:$4 sm:$0xff]  }
 0x1a4   :  { %3534 = vmatprep.subr.bf16.mxu0 %v13398_v47  ;;  %v15161_v47 = vpack.c.bf16 %v207_v44, %v207_v44  ;;  %v210_v10 = vld [vmem:[%s15631_s0 + $0x68] sm:$0xff] }
 0x1a5   :  { %v13555_v44 = vld [vmem:[#allocation3 + $0x5a8] ss:$16 sps:$4 sm:$0xff]  }
 0x1a6   :  { %3699 = vmatpush1.bf16.msra.mxu1 %v13399_v50  ;;  %v13482_v50 = vld [vmem:[#allocation3 + $0xc24] ss:$16 sps:$4 sm:$0xff]  }
 0x1a7   :  { %3535 = vmatpush1.bf16.msra.mxu0 %v13396_v49  ;;  %3700 = vmatprep.subr.bf16.mxu1 %v13407_v52  ;;  %v13477_v49 = vld [vmem:[#allocation3 + $0x408] ss:$16 sps:$4 sm:$0xff]   ;;  %v15166_v52 = vpack.c.bf16 %v210_v10, %v210_v10  ;;  %v13558_v10 = vld [vmem:[#allocation3 + $0xdc0] ss:$16 sps:$4 sm:$0xff]  }
 0x1a8   :  { %3536 = vmatprep.subr.bf16.mxu0 %v13404_v51  ;;  %v13485_v51 = vld [vmem:[#allocation3 + $0x42c] ss:$16 sps:$4 sm:$0xff]  }
 0x1aa   :  { %3701 = vmatpush1.bf16.msra.mxu1 %v13405_v55  ;;  %v13483_v55 = vld [vmem:[#allocation3 + $0x428] ss:$16 sps:$4 sm:$0xff]  }
 0x1ab   :  { %3537 = vmatpush1.bf16.msra.mxu0 %v13402_v54  ;;  %3702 = vmatprep.subr.bf16.mxu1 %v13413_v56  ;;  %v13480_v54 = vld [vmem:[#allocation3 + $0xc20] ss:$16 sps:$4 sm:$0xff]   ;;  %v13491_v56 = vld [vmem:[#allocation3 + $0x44c] ss:$16 sps:$4 sm:$0xff]  }
 0x1ac   :  { %3538 = vmatprep.subr.bf16.mxu0 %v13410_v36  ;;  %v13488_v36 = vld [vmem:[#allocation3 + $0xc44] ss:$16 sps:$4 sm:$0xff]  }
 0x1ae   :  { %3703 = vmatpush1.bf16.msra.mxu1 %v13411_v58  ;;  %v13489_v58 = vld [vmem:[#allocation3 + $0x448] ss:$16 sps:$4 sm:$0xff]  }
 0x1af   :  { %3539 = vmatpush1.bf16.msra.mxu0 %v13408_v57  ;;  %3704 = vmatprep.subr.bf16.mxu1 %v13419_v60  ;;  %v13486_v57 = vld [vmem:[#allocation3 + $0xc40] ss:$16 sps:$4 sm:$0xff]  }
 0x1b0   :  { %3540 = vmatprep.subr.bf16.mxu0 %v13416_v59  ;;  %v13494_v59 = vld [vmem:[#allocation3 + $0xc64] ss:$16 sps:$4 sm:$0xff]   ;;  %v13492_v60 = vld [vmem:[#allocation3 + $0xc60] ss:$16 sps:$4 sm:$0xff]  }
 0x1b2   :  { %3705 = vmatpush1.bf16.msra.mxu1 %v13417_v62  ;;  %v13500_v62 = vld [vmem:[#allocation3 + $0xc84] ss:$16 sps:$4 sm:$0xff]  }
 0x1b3   :  { %3541 = vmatpush1.bf16.msra.mxu0 %v13414_v61  ;;  %3706 = vmatprep.subr.bf16.mxu1 %v13425_v0  ;;  %v13495_v61 = vld [vmem:[#allocation3 + $0x468] ss:$16 sps:$4 sm:$0xff]   ;;  %v13498_v0 = vld [vmem:[#allocation3 + $0xc80] ss:$16 sps:$4 sm:$0xff]  }
 0x1b4   :  { %3542 = vmatprep.subr.bf16.mxu0 %v13422_v63  ;;  %v13503_v63 = vld [vmem:[#allocation3 + $0x48c] ss:$16 sps:$4 sm:$0xff]  }
 0x1b6   :  { %3707 = vmatpush1.bf16.msra.mxu1 %v13423_v2  ;;  %v13509_v2 = vld [vmem:[#allocation3 + $0x4ac] ss:$16 sps:$4 sm:$0xff]  }
 0x1b7   :  { %3543 = vmatpush1.bf16.msra.mxu0 %v13420_v1  ;;  %3708 = vmatprep.subr.bf16.mxu1 %v13431_v4  ;;  %v13506_v1 = vld [vmem:[#allocation3 + $0xca4] ss:$16 sps:$4 sm:$0xff]   ;;  %v13507_v4 = vld [vmem:[#allocation3 + $0x4a8] ss:$16 sps:$4 sm:$0xff]  }
 0x1b8   :  { %3544 = vmatprep.subr.bf16.mxu0 %v13428_v3  ;;  %v13504_v3 = vld [vmem:[#allocation3 + $0xca0] ss:$16 sps:$4 sm:$0xff]  }
 0x1ba   :  { %3709 = vmatpush1.bf16.msra.mxu1 %v13429_v6  ;;  %v13515_v6 = vld [vmem:[#allocation3 + $0x4cc] ss:$16 sps:$4 sm:$0xff]  }
 0x1bb   :  { %3545 = vmatpush1.bf16.msra.mxu0 %v13426_v5  ;;  %3710 = vmatprep.subr.bf16.mxu1 %v13437_v8  ;;  %v13512_v5 = vld [vmem:[#allocation3 + $0xcc4] ss:$16 sps:$4 sm:$0xff]   ;;  %v13513_v8 = vld [vmem:[#allocation3 + $0x4c8] ss:$16 sps:$4 sm:$0xff]  }
 0x1bc   :  { %3546 = vmatprep.subr.bf16.mxu0 %v13434_v7  ;;  %v13510_v7 = vld [vmem:[#allocation3 + $0xcc0] ss:$16 sps:$4 sm:$0xff]  }
 0x1be   :  { %3711 = vmatpush1.bf16.msra.mxu1 %v13435_v12  ;;  %v13521_v12 = vld [vmem:[#allocation3 + $0x4ec] ss:$16 sps:$4 sm:$0xff]  }
 0x1bf   :  { %3547 = vmatpush1.bf16.msra.mxu0 %v13432_v9  ;;  %3712 = vmatprep.subr.bf16.mxu1 %v13443_v14  ;;  %v13518_v9 = vld [vmem:[#allocation3 + $0xce4] ss:$16 sps:$4 sm:$0xff]   ;;  %v13519_v14 = vld [vmem:[#allocation3 + $0x4e8] ss:$16 sps:$4 sm:$0xff]  }
 0x1c0   :  { %3548 = vmatprep.subr.bf16.mxu0 %v13440_v13  ;;  %v13516_v13 = vld [vmem:[#allocation3 + $0xce0] ss:$16 sps:$4 sm:$0xff]  }
 0x1c2   :  { %3713 = vmatpush1.bf16.msra.mxu1 %v13441_v16  ;;  %v13527_v16 = vld [vmem:[#allocation3 + $0x50c] ss:$16 sps:$4 sm:$0xff]  }
 0x1c3   :  { %3549 = vmatpush1.bf16.msra.mxu0 %v13438_v15  ;;  %3714 = vmatprep.subr.bf16.mxu1 %v13449_v18  ;;  %v13524_v15 = vld [vmem:[#allocation3 + $0xd04] ss:$16 sps:$4 sm:$0xff]   ;;  %v13525_v18 = vld [vmem:[#allocation3 + $0x508] ss:$16 sps:$4 sm:$0xff]  }
 0x1c4   :  { %3550 = vmatprep.subr.bf16.mxu0 %v13446_v17  ;;  %v13522_v17 = vld [vmem:[#allocation3 + $0xd00] ss:$16 sps:$4 sm:$0xff]  }
 0x1c6   :  { %3715 = vmatpush1.bf16.msra.mxu1 %v13447_v21  ;;  %v13533_v21 = vld [vmem:[#allocation3 + $0x52c] ss:$16 sps:$4 sm:$0xff]  }
 0x1c7   :  { %3551 = vmatpush1.bf16.msra.mxu0 %v13444_v19  ;;  %3716 = vmatprep.subr.bf16.mxu1 %v13455_v24  ;;  %v13530_v19 = vld [vmem:[#allocation3 + $0xd24] ss:$16 sps:$4 sm:$0xff]   ;;  %v13531_v24 = vld [vmem:[#allocation3 + $0x528] ss:$16 sps:$4 sm:$0xff]  }
 0x1c8   :  { %3552 = vmatprep.subr.bf16.mxu0 %v13452_v22  ;;  %v13528_v22 = vld [vmem:[#allocation3 + $0xd20] ss:$16 sps:$4 sm:$0xff]  }
 0x1ca   :  { %3717 = vmatpush1.bf16.msra.mxu1 %v13453_v26  ;;  %v13539_v26 = vld [vmem:[#allocation3 + $0x54c] ss:$16 sps:$4 sm:$0xff]  }
 0x1cb   :  { %3553 = vmatpush1.bf16.msra.mxu0 %v13450_v25  ;;  %3718 = vmatprep.subr.bf16.mxu1 %v13461_v29  ;;  %v13536_v25 = vld [vmem:[#allocation3 + $0xd44] ss:$16 sps:$4 sm:$0xff]   ;;  %v13537_v29 = vld [vmem:[#allocation3 + $0x548] ss:$16 sps:$4 sm:$0xff]  }
 0x1cc   :  { %3554 = vmatprep.subr.bf16.mxu0 %v13458_v27  ;;  %v13534_v27 = vld [vmem:[#allocation3 + $0xd40] ss:$16 sps:$4 sm:$0xff]  }
 0x1ce   :  { %3719 = vmatpush1.bf16.msra.mxu1 %v13459_v31  ;;  %v13545_v31 = vld [vmem:[#allocation3 + $0x56c] ss:$16 sps:$4 sm:$0xff]  }
 0x1cf   :  { %3555 = vmatpush1.bf16.msra.mxu0 %v13456_v30  ;;  %3720 = vmatprep.subr.bf16.mxu1 %v13467_v33  ;;  %v13542_v30 = vld [vmem:[#allocation3 + $0xd64] ss:$16 sps:$4 sm:$0xff]   ;;  %v13543_v33 = vld [vmem:[#allocation3 + $0x568] ss:$16 sps:$4 sm:$0xff]  }
 0x1d0   :  { %3556 = vmatprep.subr.bf16.mxu0 %v13464_v32  ;;  %v13540_v32 = vld [vmem:[#allocation3 + $0xd60] ss:$16 sps:$4 sm:$0xff]  }
 0x1d2   :  { %3721 = vmatpush1.bf16.msra.mxu1 %v13465_v37  ;;  %v13551_v37 = vld [vmem:[#allocation3 + $0x58c] ss:$16 sps:$4 sm:$0xff]  }
 0x1d3   :  { %3557 = vmatpush1.bf16.msra.mxu0 %v13462_v34  ;;  %3722 = vmatprep.subr.bf16.mxu1 %v13473_v39  ;;  %v13548_v34 = vld [vmem:[#allocation3 + $0xd84] ss:$16 sps:$4 sm:$0xff]   ;;  %v13549_v39 = vld [vmem:[#allocation3 + $0x588] ss:$16 sps:$4 sm:$0xff]  }
 0x1d4   :  { %3558 = vmatprep.subr.bf16.mxu0 %v13470_v38  ;;  %v13546_v38 = vld [vmem:[#allocation3 + $0xd80] ss:$16 sps:$4 sm:$0xff]  }
 0x1d6   :  { %3723 = vmatpush1.bf16.msra.mxu1 %v13471_v48  ;;  %v13557_v48 = vld [vmem:[#allocation3 + $0x5ac] ss:$16 sps:$4 sm:$0xff]  }
 0x1d7   :  { %3559 = vmatpush1.bf16.msra.mxu0 %v13468_v42  ;;  %3733 = vmatprep.subr.bf16.mxu1 %v13479_v45  ;;  %v13554_v42 = vld [vmem:[#allocation3 + $0xda4] ss:$16 sps:$4 sm:$0xff]  }
 0x1d8   :  { %3569 = vmatprep.subr.bf16.mxu0 %v13476_v43  ;;  %v13552_v43 = vld [vmem:[#allocation3 + $0xda0] ss:$16 sps:$4 sm:$0xff]   ;;  %v13560_v45 = vld [vmem:[#allocation3 + $0xdc4] ss:$16 sps:$4 sm:$0xff]  }
 0x1d9   :  { %3725 = vmatmul.mubr.bf16.vlgmr.msra.gmra.mrb[4].mxu1 %v15131_v20  ;;  %v13497_v20 = vld [vmem:[#allocation3 + $0x46c] ss:$16 sps:$4 sm:$0xff]  }
 0x1da   :  { %3561 = vmatmul.mubr.bf16.vlgmr.msra.gmra.mrb[0].mxu0 %v15161_v47  ;;  %3734 = vmatpush1.bf16.msra.mxu1 %v13477_v49  ;;  %v13561_v49 = vld [vmem:[#allocation3 + $0x5c8] ss:$16 sps:$4 sm:$0xff]  }
 0x1db   :  { %3570 = vmatpush1.bf16.msra.mxu0 %v13474_v46  ;;  %3735 = vmatprep.subr.bf16.mxu1 %v13485_v51  ;;  %v13563_v46 = vld [vmem:[#allocation3 + $0x5cc] ss:$16 sps:$4 sm:$0xff]  }
 0x1dc   :  { %3571 = vmatprep.subr.bf16.mxu0 %v13482_v50  ;;  %3601 = vmatprep.mubr.bf16.mxu0 %v15166_v52  ;;  %v13566_v50 = vld [vmem:[#allocation3 + $0xde4] ss:$16 sps:$4 sm:$0xff]   ;;  %v13569_v51 = vld [vmem:[#allocation3 + $0x5ec] ss:$16 sps:$4 sm:$0xff]  }
 0x1dd   :  { %3765 = vmatprep.mubr.bf16.mxu1 %v15097_v53  ;;  %v13501_v53 = vld [vmem:[#allocation3 + $0x488] ss:$16 sps:$4 sm:$0xff]  }
 0x1de   :  { %3736 = vmatpush1.bf16.msra.mxu1 %v13483_v55  ;;  %v13567_v55 = vld [vmem:[#allocation3 + $0x5e8] ss:$16 sps:$4 sm:$0xff]  }
 0x1df   :  { %3572 = vmatpush1.bf16.msra.mxu0 %v13480_v54  ;;  %3737 = vmatprep.subr.bf16.mxu1 %v13491_v56  ;;  %v13564_v54 = vld [vmem:[#allocation3 + $0xde0] ss:$16 sps:$4 sm:$0xff]  }
 0x1e0   :  { %3573 = vmatprep.subr.bf16.mxu0 %v13488_v36  ;;  %v13572_v36 = vld [vmem:[#allocation3 + $0xe04] ss:$16 sps:$4 sm:$0xff]  }
 0x1e1   :  { %v209_v56 = vld [vmem:[%s15631_s0 + $0x60] sm:$0xff] }
 0x1e2   :  { %3738 = vmatpush1.bf16.msra.mxu1 %v13489_v58  ;;  %v212_v58 = vld [vmem:[%s15631_s0 + $0x78] sm:$0xff] }
 0x1e3   :  { %3574 = vmatpush1.bf16.msra.mxu0 %v13486_v57  ;;  %3739 = vmatprep.subr.bf16.mxu1 %v13497_v20  ;;  %v13575_v57 = vld [vmem:[#allocation3 + $0x60c] ss:$16 sps:$4 sm:$0xff]   ;;  %v13570_v20 = vld [vmem:[#allocation3 + $0xe00] ss:$16 sps:$4 sm:$0xff]  }
 0x1e4   :  { %3575 = vmatprep.subr.bf16.mxu0 %v13494_v59  ;;  %v15178_v59 = vpack.c.bf16 %v209_v56, %v209_v56  ;;  %v13645_v56 = vld [vmem:[#allocation3 + $0x788] ss:$16 sps:$4 sm:$0xff]  }
 0x1e6   :  { %3740 = vmatpush1.bf16.msra.mxu1 %v13495_v61  ;;  %v13578_v61 = vld [vmem:[#allocation3 + $0xe24] ss:$16 sps:$4 sm:$0xff]  }
 0x1e7   :  { %3576 = vmatpush1.bf16.msra.mxu0 %v13492_v60  ;;  %3741 = vmatprep.subr.bf16.mxu1 %v13503_v63  ;;  %v13573_v60 = vld [vmem:[#allocation3 + $0x608] ss:$16 sps:$4 sm:$0xff]   ;;  %v15180_v63 = vpack.c.bf16 %v212_v58, %v212_v58  ;;  %v13653_v58 = vld [vmem:[#allocation3 + $0x7ac] ss:$16 sps:$4 sm:$0xff]  }
 0x1e8   :  { %3577 = vmatprep.subr.bf16.mxu0 %v13500_v62  ;;  %v13581_v62 = vld [vmem:[#allocation3 + $0x62c] ss:$16 sps:$4 sm:$0xff]  }
 0x1ea   :  { %3742 = vmatpush1.bf16.msra.mxu1 %v13501_v53  ;;  %v13579_v53 = vld [vmem:[#allocation3 + $0x628] ss:$16 sps:$4 sm:$0xff]  }
 0x1eb   :  { %3578 = vmatpush1.bf16.msra.mxu0 %v13498_v0  ;;  %3743 = vmatprep.subr.bf16.mxu1 %v13509_v2  ;;  %v13576_v0 = vld [vmem:[#allocation3 + $0xe20] ss:$16 sps:$4 sm:$0xff]   ;;  %v13587_v2 = vld [vmem:[#allocation3 + $0x64c] ss:$16 sps:$4 sm:$0xff]  }
 0x1ec   :  { %3579 = vmatprep.subr.bf16.mxu0 %v13506_v1  ;;  %v13584_v1 = vld [vmem:[#allocation3 + $0xe44] ss:$16 sps:$4 sm:$0xff]  }
 0x1ee   :  { %3744 = vmatpush1.bf16.msra.mxu1 %v13507_v4  ;;  %v13585_v4 = vld [vmem:[#allocation3 + $0x648] ss:$16 sps:$4 sm:$0xff]  }
 0x1ef   :  { %3580 = vmatpush1.bf16.msra.mxu0 %v13504_v3  ;;  %3745 = vmatprep.subr.bf16.mxu1 %v13515_v6  ;;  %v13582_v3 = vld [vmem:[#allocation3 + $0xe40] ss:$16 sps:$4 sm:$0xff]  }
 0x1f0   :  { %3581 = vmatprep.subr.bf16.mxu0 %v13512_v5  ;;  %v13590_v5 = vld [vmem:[#allocation3 + $0xe64] ss:$16 sps:$4 sm:$0xff]   ;;  %v13588_v6 = vld [vmem:[#allocation3 + $0xe60] ss:$16 sps:$4 sm:$0xff]  }
 0x1f2   :  { %3746 = vmatpush1.bf16.msra.mxu1 %v13513_v8  ;;  %v13596_v8 = vld [vmem:[#allocation3 + $0xe84] ss:$16 sps:$4 sm:$0xff]  }
 0x1f3   :  { %3582 = vmatpush1.bf16.msra.mxu0 %v13510_v7  ;;  %3747 = vmatprep.subr.bf16.mxu1 %v13521_v12  ;;  %v13591_v7 = vld [vmem:[#allocation3 + $0x668] ss:$16 sps:$4 sm:$0xff]   ;;  %v13594_v12 = vld [vmem:[#allocation3 + $0xe80] ss:$16 sps:$4 sm:$0xff]  }
 0x1f4   :  { %3583 = vmatprep.subr.bf16.mxu0 %v13518_v9  ;;  %v13599_v9 = vld [vmem:[#allocation3 + $0x68c] ss:$16 sps:$4 sm:$0xff]  }
 0x1f6   :  { %3748 = vmatpush1.bf16.msra.mxu1 %v13519_v14  ;;  %v13605_v14 = vld [vmem:[#allocation3 + $0x6ac] ss:$16 sps:$4 sm:$0xff]  }
 0x1f7   :  { %3584 = vmatpush1.bf16.msra.mxu0 %v13516_v13  ;;  %3749 = vmatprep.subr.bf16.mxu1 %v13527_v16  ;;  %v13602_v13 = vld [vmem:[#allocation3 + $0xea4] ss:$16 sps:$4 sm:$0xff]   ;;  %v13603_v16 = vld [vmem:[#allocation3 + $0x6a8] ss:$16 sps:$4 sm:$0xff]  }
 0x1f8   :  { %3585 = vmatprep.subr.bf16.mxu0 %v13524_v15  ;;  %v13600_v15 = vld [vmem:[#allocation3 + $0xea0] ss:$16 sps:$4 sm:$0xff]  }
 0x1fa   :  { %3750 = vmatpush1.bf16.msra.mxu1 %v13525_v18  ;;  %v13611_v18 = vld [vmem:[#allocation3 + $0x6cc] ss:$16 sps:$4 sm:$0xff]  }
 0x1fb   :  { %3586 = vmatpush1.bf16.msra.mxu0 %v13522_v17  ;;  %3751 = vmatprep.subr.bf16.mxu1 %v13533_v21  ;;  %v13608_v17 = vld [vmem:[#allocation3 + $0xec4] ss:$16 sps:$4 sm:$0xff]  }
 0x1fc   :  { %3587 = vmatprep.subr.bf16.mxu0 %v13530_v19 }
 0x1fe   :  { %3752 = vmatpush1.bf16.msra.mxu1 %v13531_v24  ;;  %v13606_v24 = vld [vmem:[#allocation3 + $0xec0] ss:$16 sps:$4 sm:$0xff]  }
 0x1ff   :  { %3588 = vmatpush1.bf16.msra.mxu0 %v13528_v22  ;;  %3753 = vmatprep.subr.bf16.mxu1 %v13539_v26 }
 0x200   :  { %3589 = vmatprep.subr.bf16.mxu0 %v13536_v25  ;;  %v13609_v25 = vld [vmem:[#allocation3 + $0x6c8] ss:$16 sps:$4 sm:$0xff]  }
 0x202   :  { %3754 = vmatpush1.bf16.msra.mxu1 %v13537_v29  ;;  %v13617_v29 = vld [vmem:[#allocation3 + $0x6ec] ss:$16 sps:$4 sm:$0xff]  }
 0x203   :  { %3590 = vmatpush1.bf16.msra.mxu0 %v13534_v27  ;;  %3755 = vmatprep.subr.bf16.mxu1 %v13545_v31  ;;  %v13614_v27 = vld [vmem:[#allocation3 + $0xee4] ss:$16 sps:$4 sm:$0xff]   ;;  %v13615_v31 = vld [vmem:[#allocation3 + $0x6e8] ss:$16 sps:$4 sm:$0xff]  }
 0x204   :  { %3591 = vmatprep.subr.bf16.mxu0 %v13542_v30  ;;  %v13612_v30 = vld [vmem:[#allocation3 + $0xee0] ss:$16 sps:$4 sm:$0xff]  }
 0x206   :  { %3756 = vmatpush1.bf16.msra.mxu1 %v13543_v33  ;;  %v13623_v33 = vld [vmem:[#allocation3 + $0x70c] ss:$16 sps:$4 sm:$0xff]  }
 0x207   :  { %3592 = vmatpush1.bf16.msra.mxu0 %v13540_v32  ;;  %3757 = vmatprep.subr.bf16.mxu1 %v13551_v37  ;;  %v13620_v32 = vld [vmem:[#allocation3 + $0xf04] ss:$16 sps:$4 sm:$0xff]   ;;  %v13621_v37 = vld [vmem:[#allocation3 + $0x708] ss:$16 sps:$4 sm:$0xff]  }
 0x208   :  { %3593 = vmatprep.subr.bf16.mxu0 %v13548_v34  ;;  %v13618_v34 = vld [vmem:[#allocation3 + $0xf00] ss:$16 sps:$4 sm:$0xff]  }
 0x20a   :  { %3758 = vmatpush1.bf16.msra.mxu1 %v13549_v39  ;;  %v13629_v39 = vld [vmem:[#allocation3 + $0x72c] ss:$16 sps:$4 sm:$0xff]  }
 0x20b   :  { %3594 = vmatpush1.bf16.msra.mxu0 %v13546_v38  ;;  %3759 = vmatprep.subr.bf16.mxu1 %v13557_v48  ;;  %v13626_v38 = vld [vmem:[#allocation3 + $0xf24] ss:$16 sps:$4 sm:$0xff]   ;;  %v13627_v48 = vld [vmem:[#allocation3 + $0x728] ss:$16 sps:$4 sm:$0xff]  }
 0x20c   :  { %3595 = vmatprep.subr.bf16.mxu0 %v13554_v42  ;;  %v13624_v42 = vld [vmem:[#allocation3 + $0xf20] ss:$16 sps:$4 sm:$0xff]  }
 0x20e   :  { %3760 = vmatpush1.bf16.msra.mxu1 %v13555_v44  ;;  %v13635_v44 = vld [vmem:[#allocation3 + $0x74c] ss:$16 sps:$4 sm:$0xff]  }
 0x20f   :  { %3596 = vmatpush1.bf16.msra.mxu0 %v13552_v43  ;;  %3761 = vmatprep.subr.bf16.mxu1 %v13563_v46  ;;  %v13632_v43 = vld [vmem:[#allocation3 + $0xf44] ss:$16 sps:$4 sm:$0xff]   ;;  %v13633_v46 = vld [vmem:[#allocation3 + $0x748] ss:$16 sps:$4 sm:$0xff]  }
 0x210   :  { %3597 = vmatprep.subr.bf16.mxu0 %v13560_v45  ;;  %v13630_v45 = vld [vmem:[#allocation3 + $0xf40] ss:$16 sps:$4 sm:$0xff]  }
 0x212   :  { %3762 = vmatpush1.bf16.msra.mxu1 %v13561_v49  ;;  %v13641_v49 = vld [vmem:[#allocation3 + $0x76c] ss:$16 sps:$4 sm:$0xff]  }
 0x213   :  { %3598 = vmatpush1.bf16.msra.mxu0 %v13558_v10  ;;  %3763 = vmatprep.subr.bf16.mxu1 %v13569_v51  ;;  %v13638_v10 = vld [vmem:[#allocation3 + $0xf64] ss:$16 sps:$4 sm:$0xff]   ;;  %v13639_v51 = vld [vmem:[#allocation3 + $0x768] ss:$16 sps:$4 sm:$0xff]  }
 0x214   :  { %3599 = vmatprep.subr.bf16.mxu0 %v13566_v50  ;;  %v13636_v50 = vld [vmem:[#allocation3 + $0xf60] ss:$16 sps:$4 sm:$0xff]  }
 0x216   :  { %3764 = vmatpush1.bf16.msra.mxu1 %v13567_v55  ;;  %v13647_v55 = vld [vmem:[#allocation3 + $0x78c] ss:$16 sps:$4 sm:$0xff]  }
 0x217   :  { %3600 = vmatpush1.bf16.msra.mxu0 %v13564_v54  ;;  %3774 = vmatprep.subr.bf16.mxu1 %v13575_v57  ;;  %v13644_v54 = vld [vmem:[#allocation3 + $0xf84] ss:$16 sps:$4 sm:$0xff]  }
 0x218   :  { %3610 = vmatprep.subr.bf16.mxu0 %v13572_v36  ;;  %v13642_v36 = vld [vmem:[#allocation3 + $0xf80] ss:$16 sps:$4 sm:$0xff]   ;;  %v13650_v57 = vld [vmem:[#allocation3 + $0xfa4] ss:$16 sps:$4 sm:$0xff]  }
 0x219   :  { %3766 = vmatmul.mubr.bf16.vlgmr.msra.gmra.mrb[4].mxu1 %v15109_v11  ;;  %v13593_v11 = vld [vmem:[#allocation3 + $0x66c] ss:$16 sps:$4 sm:$0xff]  }
 0x21a   :  { %3602 = vmatmul.mubr.bf16.vlgmr.msra.gmra.mrb[0].mxu0 %v15178_v59  ;;  %3775 = vmatpush1.bf16.msra.mxu1 %v13573_v60  ;;  %v13651_v60 = vld [vmem:[#allocation3 + $0x7a8] ss:$16 sps:$4 sm:$0xff]  }
 0x21b   :  { %3611 = vmatpush1.bf16.msra.mxu0 %v13570_v20  ;;  %3776 = vmatprep.subr.bf16.mxu1 %v13581_v62  ;;  %v13648_v20 = vld [vmem:[#allocation3 + $0xfa0] ss:$16 sps:$4 sm:$0xff]   ;;  %v13659_v62 = vld [vmem:[#allocation3 + $0x7cc] ss:$16 sps:$4 sm:$0xff]  }
 0x21c   :  { %3612 = vmatprep.subr.bf16.mxu0 %v13578_v61  ;;  %3642 = vmatprep.mubr.bf16.mxu0 %v15180_v63  ;;  %v13656_v61 = vld [vmem:[#allocation3 + $0xfc4] ss:$16 sps:$4 sm:$0xff]  }
 0x21d   :  { %3806 = vmatprep.mubr.bf16.mxu1 %v15121_v40  ;;  %v13597_v40 = vld [vmem:[#allocation3 + $0x688] ss:$16 sps:$4 sm:$0xff]  }
 0x21e   :  { %3777 = vmatpush1.bf16.msra.mxu1 %v13579_v53  ;;  %v13657_v53 = vld [vmem:[#allocation3 + $0x7c8] ss:$16 sps:$4 sm:$0xff]  }
 0x21f   :  { %3613 = vmatpush1.bf16.msra.mxu0 %v13576_v0  ;;  %3778 = vmatprep.subr.bf16.mxu1 %v13587_v2  ;;  %v13654_v0 = vld [vmem:[#allocation3 + $0xfc0] ss:$16 sps:$4 sm:$0xff]   ;;  %v13665_v2 = vld [vmem:[#allocation3 + $0x7ec] ss:$16 sps:$4 sm:$0xff]  }
 0x220   :  { %3614 = vmatprep.subr.bf16.mxu0 %v13584_v1  ;;  %v13662_v1 = vld [vmem:[#allocation3 + $0xfe4] ss:$16 sps:$4 sm:$0xff]  }
 0x222   :  { %3779 = vmatpush1.bf16.msra.mxu1 %v13585_v4  ;;  %v13663_v4 = vld [vmem:[#allocation3 + $0x7e8] ss:$16 sps:$4 sm:$0xff]  }
 0x223   :  { %3615 = vmatpush1.bf16.msra.mxu0 %v13582_v3  ;;  %3780 = vmatprep.subr.bf16.mxu1 %v13593_v11  ;;  %v13660_v3 = vld [vmem:[#allocation3 + $0xfe0] ss:$16 sps:$4 sm:$0xff]   ;;  %v13668_v11 = vld [vmem:[#allocation3 + $0x80c] ss:$16 sps:$4 sm:$0xff]  }
 0x224   :  { %3616 = vmatprep.subr.bf16.mxu0 %v13590_v5  ;;  %v211_v5 = vld [vmem:[%s15631_s0 + $0x70] sm:$0xff] }
 0x226   :  { %3781 = vmatpush1.bf16.msra.mxu1 %v13591_v7  ;;  %v3984_v7 = vld [vmem:[%s15632_s1 + $0x8] sm:$0xff] }
 0x227   :  { %3617 = vmatpush1.bf16.msra.mxu0 %v13588_v6  ;;  %3782 = vmatprep.subr.bf16.mxu1 %v13599_v9  ;;  %v13671_v6 = vld [vmem:[#allocation7 + $0x4] ss:$16 sps:$4 sm:$0xff]  }
 0x228   :  { %3618 = vmatprep.subr.bf16.mxu0 %v13596_v8  ;;  %v15196_v8 = vpack.c.bf16 %v211_v5, %v211_v5  ;;  %v13666_v9 = vld [vmem:[#allocation3 + $0x808] ss:$16 sps:$4 sm:$0xff]   ;;  %v13746_v5 = vld [vmem:[#allocation3 + $0x9ac] ss:$16 sps:$4 sm:$0xff]  }
 0x22a   :  { %3783 = vmatpush1.bf16.msra.mxu1 %v13597_v40  ;;  %v13674_v40 = vld [vmem:[#allocation3 + $0x82c] ss:$16 sps:$4 sm:$0xff]  }
 0x22b   :  { %3619 = vmatpush1.bf16.msra.mxu0 %v13594_v12  ;;  %3784 = vmatprep.subr.bf16.mxu1 %v13605_v14  ;;  %v13669_v12 = vld [vmem:[#allocation7] ss:$16 sps:$4 sm:$0xff]   ;;  %v15198_v14 = vpack.c.bf16 %v3984_v7, %v3984_v7 }
 0x22c   :  { %3620 = vmatprep.subr.bf16.mxu0 %v13602_v13  ;;  %v15186_v19 = vpop.f32.mrb[0].mxu1  ;;  %v13677_v13 = vld [vmem:[#allocation7 + $0x24] ss:$16 sps:$4 sm:$0xff]   ;;  %v13747_v7 = vld [vmem:[#allocation7 + $0x1a0] ss:$16 sps:$4 sm:$0xff]  }
 0x22d   :  { %v15188_v21 = vpop.f32.mrb[1].mxu1 }
 0x22e   :  { %v3402_v22 = vpop.f32.mrb[2].mxu1  ;;  %3785 = vmatpush1.bf16.msra.mxu1 %v13603_v16  ;;  %v13675_v16 = vld [vmem:[#allocation7 + $0x20] ss:$16 sps:$4 sm:$0xff]  }
 0x22f   :  { %3621 = vmatpush1.bf16.msra.mxu0 %v13600_v15  ;;  %v3403_v26 = vpop.f32.mrb[3].mxu1  ;;  %3786 = vmatprep.subr.bf16.mxu1 %v13611_v18  ;;  %v13672_v15 = vld [vmem:[#allocation3 + $0x828] ss:$16 sps:$4 sm:$0xff]  }
 0x230   :  { %3622 = vmatprep.subr.bf16.mxu0 %v13608_v17  ;;  %v13680_v17 = vld [vmem:[#allocation3 + $0x84c] ss:$16 sps:$4 sm:$0xff]   ;;  %v13683_v18 = vld [vmem:[#allocation7 + $0x44] ss:$16 sps:$4 sm:$0xff]  }
 0x231   :  { %v13678_v22 = vld [vmem:[#allocation3 + $0x848] ss:$16 sps:$4 sm:$0xff]  }
 0x232   :  { %3787 = vmatpush1.bf16.msra.mxu1 %v13609_v25  ;;  %v13686_v25 = vld [vmem:[#allocation3 + $0x86c] ss:$16 sps:$4 sm:$0xff]   ;;  %v13684_v26 = vld [vmem:[#allocation3 + $0x868] ss:$16 sps:$4 sm:$0xff]  }
 0x233   :  { %3623 = vmatpush1.bf16.msra.mxu0 %v13606_v24  ;;  %3788 = vmatprep.subr.bf16.mxu1 %v13617_v29  ;;  %v13681_v24 = vld [vmem:[#allocation7 + $0x40] ss:$16 sps:$4 sm:$0xff]   ;;  %v13692_v29 = vld [vmem:[#allocation3 + $0x88c] ss:$16 sps:$4 sm:$0xff]  }
 0x234   :  { %3624 = vmatprep.subr.bf16.mxu0 %v13614_v27  ;;  %v13687_v27 = vld [vmem:[#allocation7 + $0x60] ss:$16 sps:$4 sm:$0xff]  }
 0x236   :  { %3789 = vmatpush1.bf16.msra.mxu1 %v13615_v31  ;;  %v13693_v31 = vld [vmem:[#allocation7 + $0x80] ss:$16 sps:$4 sm:$0xff]  }
 0x237   :  { %3625 = vmatpush1.bf16.msra.mxu0 %v13612_v30  ;;  %3790 = vmatprep.subr.bf16.mxu1 %v13623_v33  ;;  %v13695_v30 = vld [vmem:[#allocation7 + $0x84] ss:$16 sps:$4 sm:$0xff]  }
 0x238   :  { %3626 = vmatprep.subr.bf16.mxu0 %v13620_v32  ;;  %v13698_v32 = vld [vmem:[#allocation3 + $0x8ac] ss:$16 sps:$4 sm:$0xff]   ;;  %v13701_v33 = vld [vmem:[#allocation7 + $0xa4] ss:$16 sps:$4 sm:$0xff]  }
 0x23a   :  { %3791 = vmatpush1.bf16.msra.mxu1 %v13621_v37  ;;  %v13699_v37 = vld [vmem:[#allocation7 + $0xa0] ss:$16 sps:$4 sm:$0xff]  }
 0x23b   :  { %3627 = vmatpush1.bf16.msra.mxu0 %v13618_v34  ;;  %3792 = vmatprep.subr.bf16.mxu1 %v13629_v39  ;;  %v13696_v34 = vld [vmem:[#allocation3 + $0x8a8] ss:$16 sps:$4 sm:$0xff]  }
 0x23c   :  { %3628 = vmatprep.subr.bf16.mxu0 %v13626_v38  ;;  %v13704_v38 = vld [vmem:[#allocation3 + $0x8cc] ss:$16 sps:$4 sm:$0xff]   ;;  %v13707_v39 = vld [vmem:[#allocation7 + $0xc4] ss:$16 sps:$4 sm:$0xff]  }
 0x23e   :  { %3793 = vmatpush1.bf16.msra.mxu1 %v13627_v48  ;;  %v13705_v48 = vld [vmem:[#allocation7 + $0xc0] ss:$16 sps:$4 sm:$0xff]  }
 0x23f   :  { %3629 = vmatpush1.bf16.msra.mxu0 %v13624_v42  ;;  %3794 = vmatprep.subr.bf16.mxu1 %v13635_v44  ;;  %v13702_v42 = vld [vmem:[#allocation3 + $0x8c8] ss:$16 sps:$4 sm:$0xff]  }
 0x240   :  { %3630 = vmatprep.subr.bf16.mxu0 %v13632_v43  ;;  %v13710_v43 = vld [vmem:[#allocation3 + $0x8ec] ss:$16 sps:$4 sm:$0xff]   ;;  %v13713_v44 = vld [vmem:[#allocation7 + $0xe4] ss:$16 sps:$4 sm:$0xff]  }
 0x242   :  { %3795 = vmatpush1.bf16.msra.mxu1 %v13633_v46  ;;  %v13711_v46 = vld [vmem:[#allocation7 + $0xe0] ss:$16 sps:$4 sm:$0xff]  }
 0x243   :  { %3631 = vmatpush1.bf16.msra.mxu0 %v13630_v45  ;;  %3796 = vmatprep.subr.bf16.mxu1 %v13641_v49  ;;  %v13708_v45 = vld [vmem:[#allocation3 + $0x8e8] ss:$16 sps:$4 sm:$0xff]  }
 0x244   :  { %3632 = vmatprep.subr.bf16.mxu0 %v13638_v10  ;;  %v13716_v10 = vld [vmem:[#allocation3 + $0x90c] ss:$16 sps:$4 sm:$0xff]   ;;  %v13719_v49 = vld [vmem:[#allocation7 + $0x104] ss:$16 sps:$4 sm:$0xff]  }
 0x246   :  { %3797 = vmatpush1.bf16.msra.mxu1 %v13639_v51  ;;  %v13717_v51 = vld [vmem:[#allocation7 + $0x100] ss:$16 sps:$4 sm:$0xff]  }
 0x247   :  { %3633 = vmatpush1.bf16.msra.mxu0 %v13636_v50  ;;  %3798 = vmatprep.subr.bf16.mxu1 %v13647_v55  ;;  %v13714_v50 = vld [vmem:[#allocation3 + $0x908] ss:$16 sps:$4 sm:$0xff]  }
 0x248   :  { %3634 = vmatprep.subr.bf16.mxu0 %v13644_v54  ;;  %v13722_v54 = vld [vmem:[#allocation3 + $0x92c] ss:$16 sps:$4 sm:$0xff]   ;;  %v13725_v55 = vld [vmem:[#allocation7 + $0x124] ss:$16 sps:$4 sm:$0xff]  }
 0x24a   :  { %3799 = vmatpush1.bf16.msra.mxu1 %v13645_v56  ;;  %v13723_v56 = vld [vmem:[#allocation7 + $0x120] ss:$16 sps:$4 sm:$0xff]  }
 0x24b   :  { %3635 = vmatpush1.bf16.msra.mxu0 %v13642_v36  ;;  %3800 = vmatprep.subr.bf16.mxu1 %v13653_v58  ;;  %v13720_v36 = vld [vmem:[#allocation3 + $0x928] ss:$16 sps:$4 sm:$0xff]  }
 0x24c   :  { %3636 = vmatprep.subr.bf16.mxu0 %v13650_v57  ;;  %v13728_v57 = vld [vmem:[#allocation3 + $0x94c] ss:$16 sps:$4 sm:$0xff]   ;;  %v13731_v58 = vld [vmem:[#allocation7 + $0x144] ss:$16 sps:$4 sm:$0xff]  }
 0x24e   :  { %3801 = vmatpush1.bf16.msra.mxu1 %v13651_v60  ;;  %v13729_v60 = vld [vmem:[#allocation7 + $0x140] ss:$16 sps:$4 sm:$0xff]  }
 0x24f   :  { %3637 = vmatpush1.bf16.msra.mxu0 %v13648_v20  ;;  %3802 = vmatprep.subr.bf16.mxu1 %v13659_v62  ;;  %v13726_v20 = vld [vmem:[#allocation3 + $0x948] ss:$16 sps:$4 sm:$0xff]  }
 0x250   :  { %3638 = vmatprep.subr.bf16.mxu0 %v13656_v61  ;;  %v13734_v61 = vld [vmem:[#allocation3 + $0x96c] ss:$16 sps:$4 sm:$0xff]   ;;  %v13737_v62 = vld [vmem:[#allocation7 + $0x164] ss:$16 sps:$4 sm:$0xff]  }
 0x252   :  { %3803 = vmatpush1.bf16.msra.mxu1 %v13657_v53  ;;  %v13735_v53 = vld [vmem:[#allocation7 + $0x160] ss:$16 sps:$4 sm:$0xff]  }
 0x253   :  { %3639 = vmatpush1.bf16.msra.mxu0 %v13654_v0  ;;  %3804 = vmatprep.subr.bf16.mxu1 %v13665_v2  ;;  %v13732_v0 = vld [vmem:[#allocation3 + $0x968] ss:$16 sps:$4 sm:$0xff]  }
 0x254   :  { %3640 = vmatprep.subr.bf16.mxu0 %v13662_v1  ;;  %v13740_v1 = vld [vmem:[#allocation3 + $0x98c] ss:$16 sps:$4 sm:$0xff]   ;;  %v13743_v2 = vld [vmem:[#allocation7 + $0x184] ss:$16 sps:$4 sm:$0xff]  }
 0x256   :  { %3805 = vmatpush1.bf16.msra.mxu1 %v13663_v4  ;;  %v13741_v4 = vld [vmem:[#allocation7 + $0x180] ss:$16 sps:$4 sm:$0xff]  }
 0x257   :  { %3641 = vmatpush1.bf16.msra.mxu0 %v13660_v3  ;;  %3815 = vmatprep.subr.bf16.mxu1 %v13668_v11  ;;  %v13738_v3 = vld [vmem:[#allocation3 + $0x988] ss:$16 sps:$4 sm:$0xff]  }
 0x258   :  { %5945 = vmatprep.subr.bf16.mxu0 %v13671_v6  ;;  %v13749_v11 = vld [vmem:[#allocation7 + $0x1a4] ss:$16 sps:$4 sm:$0xff]  }
 0x259   :  { %3807 = vmatmul.mubr.bf16.vlgmr.msra.gmra.mrb[4].mxu1 %v15133_v23  ;;  %v13689_v23 = vld [vmem:[#allocation7 + $0x64] ss:$16 sps:$4 sm:$0xff]  }
 0x25a   :  { %3643 = vmatmul.mubr.bf16.vlgmr.msra.gmra.mrb[0].mxu0 %v15196_v8  ;;  %3816 = vmatpush1.bf16.msra.mxu1 %v13666_v9  ;;  %v13744_v6 = vld [vmem:[#allocation3 + $0x9a8] ss:$16 sps:$4 sm:$0xff]   ;;  %v13752_v9 = vld [vmem:[#allocation3 + $0x9cc] ss:$16 sps:$4 sm:$0xff]  }
 0x25b   :  { %5946 = vmatpush1.bf16.msra.mxu0 %v13669_v12  ;;  %3817 = vmatprep.subr.bf16.mxu1 %v13674_v40  ;;  %v13755_v12 = vld [vmem:[#allocation7 + $0x1c4] ss:$16 sps:$4 sm:$0xff]  }
 0x25c   :  { %5947 = vmatprep.subr.bf16.mxu0 %v13677_v13  ;;  %3847 = vmatprep.mubr.bf16.mxu1 %v15140_v28  ;;  %v13690_v28 = vld [vmem:[#allocation3 + $0x888] ss:$16 sps:$4 sm:$0xff]   ;;  %v13753_v13 = vld [vmem:[#allocation7 + $0x1c0] ss:$16 sps:$4 sm:$0xff]  }
 0x25d   :  { %5977 = vmatprep.mubr.bf16.mxu0 %v15198_v14  ;;  %v13750_v40 = vld [vmem:[#allocation3 + $0x9c8] ss:$16 sps:$4 sm:$0xff]  }
 0x25e   :  { %3818 = vmatpush1.bf16.msra.mxu1 %v13672_v15  ;;  %v13758_v15 = vld [vmem:[#allocation3 + $0x9ec] ss:$16 sps:$4 sm:$0xff]  }
 0x25f   :  { %5948 = vmatpush1.bf16.msra.mxu0 %v13675_v16  ;;  %3819 = vmatprep.subr.bf16.mxu1 %v13680_v17  ;;  %v13761_v16 = vld [vmem:[#allocation7 + $0x1e4] ss:$16 sps:$4 sm:$0xff]  }
 0x260   :  { %5949 = vmatprep.subr.bf16.mxu0 %v13683_v18  ;;  %v13756_v17 = vld [vmem:[#allocation3 + $0x9e8] ss:$16 sps:$4 sm:$0xff]   ;;  %v13759_v18 = vld [vmem:[#allocation7 + $0x1e0] ss:$16 sps:$4 sm:$0xff]  }
 0x262   :  { %3820 = vmatpush1.bf16.msra.mxu1 %v13678_v22  ;;  %v13764_v22 = vld [vmem:[#allocation3 + $0xa0c] ss:$16 sps:$4 sm:$0xff]  }
 0x263   :  { %5950 = vmatpush1.bf16.msra.mxu0 %v13681_v24  ;;  %3821 = vmatprep.subr.bf16.mxu1 %v13686_v25  ;;  %v3983_v24 = vld [vmem:[%s15632_s1] sm:$0xff]  ;;  %v13767_v25 = vld [vmem:[#allocation7 + $0x204] ss:$16 sps:$4 sm:$0xff]  }
 0x264   :  { %5951 = vmatprep.subr.bf16.mxu0 %v13689_v23  ;;  %v3986_v23 = vld [vmem:[%s15632_s1 + $0x18] sm:$0xff] }
 0x266   :  { %3822 = vmatpush1.bf16.msra.mxu1 %v13684_v26  ;;  %v15210_v26 = vpack.c.bf16 %v3983_v24, %v3983_v24  ;;  %v13845_v24 = vld [vmem:[#allocation7 + $0x3a4] ss:$16 sps:$4 sm:$0xff]  }
 0x267   :  { %5952 = vmatpush1.bf16.msra.mxu0 %v13687_v27  ;;  %3823 = vmatprep.subr.bf16.mxu1 %v13692_v29  ;;  %v13762_v27 = vld [vmem:[#allocation3 + $0xa08] ss:$16 sps:$4 sm:$0xff]   ;;  %v13765_v29 = vld [vmem:[#allocation7 + $0x200] ss:$16 sps:$4 sm:$0xff]  }
 0x268   :  { %5953 = vmatprep.subr.bf16.mxu0 %v13695_v30  ;;  %v13770_v30 = vld [vmem:[#allocation3 + $0xa2c] ss:$16 sps:$4 sm:$0xff]  }
 0x26a   :  { %3824 = vmatpush1.bf16.msra.mxu1 %v13690_v28  ;;  %v13773_v28 = vld [vmem:[#allocation7 + $0x224] ss:$16 sps:$4 sm:$0xff]  }
 0x26b   :  { %5954 = vmatpush1.bf16.msra.mxu0 %v13693_v31  ;;  %3825 = vmatprep.subr.bf16.mxu1 %v13698_v32  ;;  %v15212_v31 = vpack.c.bf16 %v3986_v23, %v3986_v23  ;;  %v13768_v32 = vld [vmem:[#allocation3 + $0xa28] ss:$16 sps:$4 sm:$0xff]   ;;  %v13843_v23 = vld [vmem:[#allocation7 + $0x3a0] ss:$16 sps:$4 sm:$0xff]  }
 0x26c   :  { %5955 = vmatprep.subr.bf16.mxu0 %v13701_v33  ;;  %v13771_v33 = vld [vmem:[#allocation7 + $0x220] ss:$16 sps:$4 sm:$0xff]  }
 0x26e   :  { %3826 = vmatpush1.bf16.msra.mxu1 %v13696_v34  ;;  %v13776_v34 = vld [vmem:[#allocation3 + $0xa4c] ss:$16 sps:$4 sm:$0xff]  }
 0x26f   :  { %5956 = vmatpush1.bf16.msra.mxu0 %v13699_v37  ;;  %3827 = vmatprep.subr.bf16.mxu1 %v13704_v38  ;;  %v13779_v37 = vld [vmem:[#allocation7 + $0x244] ss:$16 sps:$4 sm:$0xff]  }
 0x270   :  { %5957 = vmatprep.subr.bf16.mxu0 %v13707_v39  ;;  %v13774_v38 = vld [vmem:[#allocation3 + $0xa48] ss:$16 sps:$4 sm:$0xff]   ;;  %v13777_v39 = vld [vmem:[#allocation7 + $0x240] ss:$16 sps:$4 sm:$0xff]  }
 0x272   :  { %3828 = vmatpush1.bf16.msra.mxu1 %v13702_v42  ;;  %v13785_v42 = vld [vmem:[#allocation7 + $0x264] ss:$16 sps:$4 sm:$0xff]  }
 0x273   :  { %5958 = vmatpush1.bf16.msra.mxu0 %v13705_v48  ;;  %3829 = vmatprep.subr.bf16.mxu1 %v13710_v43  ;;  %v13780_v48 = vld [vmem:[#allocation3 + $0xa68] ss:$16 sps:$4 sm:$0xff]   ;;  %v13783_v43 = vld [vmem:[#allocation7 + $0x260] ss:$16 sps:$4 sm:$0xff]  }
 0x274   :  { %5959 = vmatprep.subr.bf16.mxu0 %v13713_v44  ;;  %v13788_v44 = vld [vmem:[#allocation3 + $0xa8c] ss:$16 sps:$4 sm:$0xff]  }
 0x276   :  { %3830 = vmatpush1.bf16.msra.mxu1 %v13708_v45  ;;  %v13791_v45 = vld [vmem:[#allocation7 + $0x284] ss:$16 sps:$4 sm:$0xff]  }
 0x277   :  { %5960 = vmatpush1.bf16.msra.mxu0 %v13711_v46  ;;  %3831 = vmatprep.subr.bf16.mxu1 %v13716_v10  ;;  %v13789_v46 = vld [vmem:[#allocation7 + $0x280] ss:$16 sps:$4 sm:$0xff]   ;;  %v13794_v10 = vld [vmem:[#allocation3 + $0xaac] ss:$16 sps:$4 sm:$0xff]  }
 0x278   :  { %5961 = vmatprep.subr.bf16.mxu0 %v13719_v49  ;;  %v13797_v49 = vld [vmem:[#allocation7 + $0x2a4] ss:$16 sps:$4 sm:$0xff]  }
 0x27a   :  { %3832 = vmatpush1.bf16.msra.mxu1 %v13714_v50  ;;  %v13792_v50 = vld [vmem:[#allocation3 + $0xaa8] ss:$16 sps:$4 sm:$0xff]  }
 0x27b   :  { %5962 = vmatpush1.bf16.msra.mxu0 %v13717_v51  ;;  %3833 = vmatprep.subr.bf16.mxu1 %v13722_v54  ;;  %v13795_v51 = vld [vmem:[#allocation7 + $0x2a0] ss:$16 sps:$4 sm:$0xff]   ;;  %v13800_v54 = vld [vmem:[#allocation3 + $0xacc] ss:$16 sps:$4 sm:$0xff]  }
 0x27c   :  { %5963 = vmatprep.subr.bf16.mxu0 %v13725_v55  ;;  %v13803_v55 = vld [vmem:[#allocation7 + $0x2c4] ss:$16 sps:$4 sm:$0xff]  }
 0x27e   :  { %3834 = vmatpush1.bf16.msra.mxu1 %v13720_v36  ;;  %v13798_v36 = vld [vmem:[#allocation3 + $0xac8] ss:$16 sps:$4 sm:$0xff]  }
 0x27f   :  { %5964 = vmatpush1.bf16.msra.mxu0 %v13723_v56  ;;  %3835 = vmatprep.subr.bf16.mxu1 %v13728_v57  ;;  %v13801_v56 = vld [vmem:[#allocation7 + $0x2c0] ss:$16 sps:$4 sm:$0xff]   ;;  %v13806_v57 = vld [vmem:[#allocation3 + $0xaec] ss:$16 sps:$4 sm:$0xff]  }
 0x280   :  { %5965 = vmatprep.subr.bf16.mxu0 %v13731_v58  ;;  %v13809_v58 = vld [vmem:[#allocation7 + $0x2e4] ss:$16 sps:$4 sm:$0xff]  }
 0x282   :  { %3836 = vmatpush1.bf16.msra.mxu1 %v13726_v20  ;;  %v13804_v20 = vld [vmem:[#allocation3 + $0xae8] ss:$16 sps:$4 sm:$0xff]  }
 0x283   :  { %5966 = vmatpush1.bf16.msra.mxu0 %v13729_v60  ;;  %3837 = vmatprep.subr.bf16.mxu1 %v13734_v61  ;;  %v13807_v60 = vld [vmem:[#allocation7 + $0x2e0] ss:$16 sps:$4 sm:$0xff]   ;;  %v13812_v61 = vld [vmem:[#allocation3 + $0xb0c] ss:$16 sps:$4 sm:$0xff]  }
 0x284   :  { %5967 = vmatprep.subr.bf16.mxu0 %v13737_v62  ;;  %v13815_v62 = vld [vmem:[#allocation7 + $0x304] ss:$16 sps:$4 sm:$0xff]  }
 0x286   :  { %3838 = vmatpush1.bf16.msra.mxu1 %v13732_v0  ;;  %v13810_v0 = vld [vmem:[#allocation3 + $0xb08] ss:$16 sps:$4 sm:$0xff]  }
 0x287   :  { %5968 = vmatpush1.bf16.msra.mxu0 %v13735_v53  ;;  %3839 = vmatprep.subr.bf16.mxu1 %v13740_v1  ;;  %v13813_v53 = vld [vmem:[#allocation7 + $0x300] ss:$16 sps:$4 sm:$0xff]   ;;  %v13818_v1 = vld [vmem:[#allocation3 + $0xb2c] ss:$16 sps:$4 sm:$0xff]  }
 0x288   :  { %5969 = vmatprep.subr.bf16.mxu0 %v13743_v2  ;;  %v13821_v2 = vld [vmem:[#allocation7 + $0x324] ss:$16 sps:$4 sm:$0xff]  }
 0x28a   :  { %3840 = vmatpush1.bf16.msra.mxu1 %v13738_v3  ;;  %v13816_v3 = vld [vmem:[#allocation3 + $0xb28] ss:$16 sps:$4 sm:$0xff]  }
 0x28b   :  { %5970 = vmatpush1.bf16.msra.mxu0 %v13741_v4  ;;  %3841 = vmatprep.subr.bf16.mxu1 %v13746_v5  ;;  %v13819_v4 = vld [vmem:[#allocation7 + $0x320] ss:$16 sps:$4 sm:$0xff]   ;;  %v13824_v5 = vld [vmem:[#allocation3 + $0xb4c] ss:$16 sps:$4 sm:$0xff]  }
 0x28c   :  { %5971 = vmatprep.subr.bf16.mxu0 %v13749_v11  ;;  %v13827_v11 = vld [vmem:[#allocation7 + $0x344] ss:$16 sps:$4 sm:$0xff]  }
 0x28e   :  { %3842 = vmatpush1.bf16.msra.mxu1 %v13744_v6  ;;  %v13822_v6 = vld [vmem:[#allocation3 + $0xb48] ss:$16 sps:$4 sm:$0xff]  }
 0x28f   :  { %5972 = vmatpush1.bf16.msra.mxu0 %v13747_v7  ;;  %3843 = vmatprep.subr.bf16.mxu1 %v13752_v9  ;;  %v13825_v7 = vld [vmem:[#allocation7 + $0x340] ss:$16 sps:$4 sm:$0xff]   ;;  %v13830_v9 = vld [vmem:[#allocation3 + $0xb6c] ss:$16 sps:$4 sm:$0xff]  }
 0x290   :  { %5973 = vmatprep.subr.bf16.mxu0 %v13755_v12  ;;  %v13833_v12 = vld [vmem:[#allocation7 + $0x364] ss:$16 sps:$4 sm:$0xff]  }
 0x292   :  { %3844 = vmatpush1.bf16.msra.mxu1 %v13750_v40  ;;  %v13828_v40 = vld [vmem:[#allocation3 + $0xb68] ss:$16 sps:$4 sm:$0xff]  }
 0x293   :  { %5974 = vmatpush1.bf16.msra.mxu0 %v13753_v13  ;;  %3845 = vmatprep.subr.bf16.mxu1 %v13758_v15  ;;  %v13831_v13 = vld [vmem:[#allocation7 + $0x360] ss:$16 sps:$4 sm:$0xff]   ;;  %v13836_v15 = vld [vmem:[#allocation3 + $0xb8c] ss:$16 sps:$4 sm:$0xff]  }
 0x294   :  { %5975 = vmatprep.subr.bf16.mxu0 %v13761_v16  ;;  %v13839_v16 = vld [vmem:[#allocation7 + $0x384] ss:$16 sps:$4 sm:$0xff]  }
 0x296   :  { %3846 = vmatpush1.bf16.msra.mxu1 %v13756_v17  ;;  %v13834_v17 = vld [vmem:[#allocation3 + $0xb88] ss:$16 sps:$4 sm:$0xff]  }
 0x297   :  { %5976 = vmatpush1.bf16.msra.mxu0 %v13759_v18  ;;  %3856 = vmatprep.subr.bf16.mxu1 %v13764_v22  ;;  %v13837_v18 = vld [vmem:[#allocation7 + $0x380] ss:$16 sps:$4 sm:$0xff]   ;;  %v13842_v22 = vld [vmem:[#allocation3 + $0xbac] ss:$16 sps:$4 sm:$0xff]  }
 0x298   :  { %5986 = vmatprep.subr.bf16.mxu0 %v13767_v25  ;;  %v13840_v25 = vld [vmem:[#allocation3 + $0xba8] ss:$16 sps:$4 sm:$0xff]  }
 0x299   :  { %3848 = vmatmul.mubr.bf16.vlgmr.msra.gmra.mrb[4].mxu1 %v15147_v35  ;;  %v13782_v35 = vld [vmem:[#allocation3 + $0xa6c] ss:$16 sps:$4 sm:$0xff]  }
 0x29a   :  { %5978 = vmatmul.mubr.bf16.vlgmr.msra.gmra.mrb[4].mxu0 %v15210_v26  ;;  %3857 = vmatpush1.bf16.msra.mxu1 %v13762_v27  ;;  %v13848_v27 = vld [vmem:[#allocation3 + $0xbcc] ss:$16 sps:$4 sm:$0xff]  }
 0x29b   :  { %5987 = vmatpush1.bf16.msra.mxu0 %v13765_v29  ;;  %3858 = vmatprep.subr.bf16.mxu1 %v13770_v30  ;;  %v13851_v29 = vld [vmem:[#allocation7 + $0x3c4] ss:$16 sps:$4 sm:$0xff]  }
 0x29c   :  { %5988 = vmatprep.subr.bf16.mxu0 %v13773_v28  ;;  %3888 = vmatprep.mubr.bf16.mxu1 %v15152_v41  ;;  %v13786_v41 = vld [vmem:[#allocation3 + $0xa88] ss:$16 sps:$4 sm:$0xff]   ;;  %v13849_v28 = vld [vmem:[#allocation7 + $0x3c0] ss:$16 sps:$4 sm:$0xff]  }
 0x29d   :  { %6018 = vmatprep.mubr.bf16.mxu0 %v15212_v31  ;;  %v13846_v30 = vld [vmem:[#allocation3 + $0xbc8] ss:$16 sps:$4 sm:$0xff]  }
 0x29e   :  { %3859 = vmatpush1.bf16.msra.mxu1 %v13768_v32  ;;  %v13854_v32 = vld [vmem:[#allocation3 + $0xbec] ss:$16 sps:$4 sm:$0xff]  }
 0x29f   :  { %5989 = vmatpush1.bf16.msra.mxu0 %v13771_v33  ;;  %3860 = vmatprep.subr.bf16.mxu1 %v13776_v34  ;;  %v13857_v33 = vld [vmem:[#allocation7 + $0x3e4] ss:$16 sps:$4 sm:$0xff]  }
 0x2a0   :  { %5990 = vmatprep.subr.bf16.mxu0 %v13779_v37  ;;  %v13852_v34 = vld [vmem:[#allocation3 + $0xbe8] ss:$16 sps:$4 sm:$0xff]   ;;  %v13855_v37 = vld [vmem:[#allocation7 + $0x3e0] ss:$16 sps:$4 sm:$0xff]  }
 0x2a2   :  { %3861 = vmatpush1.bf16.msra.mxu1 %v13774_v38  ;;  %v13860_v38 = vld [vmem:[#allocation3 + $0xc0c] ss:$16 sps:$4 sm:$0xff]  }
 0x2a3   :  { %5991 = vmatpush1.bf16.msra.mxu0 %v13777_v39  ;;  %3862 = vmatprep.subr.bf16.mxu1 %v13782_v35  ;;  %v3985_v39 = vld [vmem:[%s15632_s1 + $0x10] sm:$0xff]  ;;  %v13863_v35 = vld [vmem:[#allocation7 + $0x404] ss:$16 sps:$4 sm:$0xff]  }
 0x2a4   :  { %5992 = vmatprep.subr.bf16.mxu0 %v13785_v42  ;;  %v3988_v42 = vld [vmem:[%s15632_s1 + $0x28] sm:$0xff] }
 0x2a6   :  { %3863 = vmatpush1.bf16.msra.mxu1 %v13780_v48  ;;  %v13858_v48 = vld [vmem:[#allocation3 + $0xc08] ss:$16 sps:$4 sm:$0xff]  }
 0x2a7   :  { %5993 = vmatpush1.bf16.msra.mxu0 %v13783_v43  ;;  %3864 = vmatprep.subr.bf16.mxu1 %v13788_v44  ;;  %v15224_v43 = vpack.c.bf16 %v3985_v39, %v3985_v39  ;;  %v13861_v44 = vld [vmem:[#allocation7 + $0x400] ss:$16 sps:$4 sm:$0xff]   ;;  %v13941_v39 = vld [vmem:[#allocation7 + $0x5a4] ss:$16 sps:$4 sm:$0xff]  }
 0x2a8   :  { %5994 = vmatprep.subr.bf16.mxu0 %v13791_v45  ;;  %v13866_v45 = vld [vmem:[#allocation3 + $0xc2c] ss:$16 sps:$4 sm:$0xff]  }
 0x2aa   :  { %3865 = vmatpush1.bf16.msra.mxu1 %v13786_v41  ;;  %v13869_v41 = vld [vmem:[#allocation7 + $0x424] ss:$16 sps:$4 sm:$0xff]  }
 0x2ab   :  { %5995 = vmatpush1.bf16.msra.mxu0 %v13789_v46  ;;  %3866 = vmatprep.subr.bf16.mxu1 %v13794_v10  ;;  %v15226_v46 = vpack.c.bf16 %v3988_v42, %v3988_v42  ;;  %v13864_v10 = vld [vmem:[#allocation3 + $0xc28] ss:$16 sps:$4 sm:$0xff]   ;;  %v13939_v42 = vld [vmem:[#allocation7 + $0x5a0] ss:$16 sps:$4 sm:$0xff]  }
 0x2ac   :  { %5996 = vmatprep.subr.bf16.mxu0 %v13797_v49  ;;  %v13867_v49 = vld [vmem:[#allocation7 + $0x420] ss:$16 sps:$4 sm:$0xff]  }
 0x2ae   :  { %3867 = vmatpush1.bf16.msra.mxu1 %v13792_v50  ;;  %v13872_v50 = vld [vmem:[#allocation3 + $0xc4c] ss:$16 sps:$4 sm:$0xff]  }
 0x2af   :  { %5997 = vmatpush1.bf16.msra.mxu0 %v13795_v51  ;;  %3868 = vmatprep.subr.bf16.mxu1 %v13800_v54  ;;  %v13875_v51 = vld [vmem:[#allocation7 + $0x444] ss:$16 sps:$4 sm:$0xff]  }
 0x2b0   :  { %5998 = vmatprep.subr.bf16.mxu0 %v13803_v55  ;;  %v13870_v54 = vld [vmem:[#allocation3 + $0xc48] ss:$16 sps:$4 sm:$0xff]   ;;  %v13873_v55 = vld [vmem:[#allocation7 + $0x440] ss:$16 sps:$4 sm:$0xff]  }
 0x2b2   :  { %3869 = vmatpush1.bf16.msra.mxu1 %v13798_v36  ;;  %v13881_v36 = vld [vmem:[#allocation7 + $0x464] ss:$16 sps:$4 sm:$0xff]  }
 0x2b3   :  { %5999 = vmatpush1.bf16.msra.mxu0 %v13801_v56  ;;  %3870 = vmatprep.subr.bf16.mxu1 %v13806_v57  ;;  %v13876_v56 = vld [vmem:[#allocation3 + $0xc68] ss:$16 sps:$4 sm:$0xff]   ;;  %v13879_v57 = vld [vmem:[#allocation7 + $0x460] ss:$16 sps:$4 sm:$0xff]  }
 0x2b4   :  { %6000 = vmatprep.subr.bf16.mxu0 %v13809_v58  ;;  %v13884_v58 = vld [vmem:[#allocation3 + $0xc8c] ss:$16 sps:$4 sm:$0xff]  }
 0x2b6   :  { %3871 = vmatpush1.bf16.msra.mxu1 %v13804_v20  ;;  %v13887_v20 = vld [vmem:[#allocation7 + $0x484] ss:$16 sps:$4 sm:$0xff]  }
 0x2b7   :  { %6001 = vmatpush1.bf16.msra.mxu0 %v13807_v60  ;;  %3872 = vmatprep.subr.bf16.mxu1 %v13812_v61  ;;  %v13885_v60 = vld [vmem:[#allocation7 + $0x480] ss:$16 sps:$4 sm:$0xff]   ;;  %v13890_v61 = vld [vmem:[#allocation3 + $0xcac] ss:$16 sps:$4 sm:$0xff]  }
 0x2b8   :  { %6002 = vmatprep.subr.bf16.mxu0 %v13815_v62  ;;  %v13893_v62 = vld [vmem:[#allocation7 + $0x4a4] ss:$16 sps:$4 sm:$0xff]  }
 0x2ba   :  { %3873 = vmatpush1.bf16.msra.mxu1 %v13810_v0  ;;  %v13888_v0 = vld [vmem:[#allocation3 + $0xca8] ss:$16 sps:$4 sm:$0xff]  }
 0x2bb   :  { %6003 = vmatpush1.bf16.msra.mxu0 %v13813_v53  ;;  %3874 = vmatprep.subr.bf16.mxu1 %v13818_v1  ;;  %v13891_v53 = vld [vmem:[#allocation7 + $0x4a0] ss:$16 sps:$4 sm:$0xff]   ;;  %v13896_v1 = vld [vmem:[#allocation3 + $0xccc] ss:$16 sps:$4 sm:$0xff]  }
 0x2bc   :  { %6004 = vmatprep.subr.bf16.mxu0 %v13821_v2  ;;  %v13899_v2 = vld [vmem:[#allocation7 + $0x4c4] ss:$16 sps:$4 sm:$0xff]  }
 0x2be   :  { %3875 = vmatpush1.bf16.msra.mxu1 %v13816_v3  ;;  %v13894_v3 = vld [vmem:[#allocation3 + $0xcc8] ss:$16 sps:$4 sm:$0xff]  }
 0x2bf   :  { %6005 = vmatpush1.bf16.msra.mxu0 %v13819_v4  ;;  %3876 = vmatprep.subr.bf16.mxu1 %v13824_v5  ;;  %v13897_v4 = vld [vmem:[#allocation7 + $0x4c0] ss:$16 sps:$4 sm:$0xff]   ;;  %v13902_v5 = vld [vmem:[#allocation3 + $0xcec] ss:$16 sps:$4 sm:$0xff]  }
 0x2c0   :  { %6006 = vmatprep.subr.bf16.mxu0 %v13827_v11  ;;  %v13905_v11 = vld [vmem:[#allocation7 + $0x4e4] ss:$16 sps:$4 sm:$0xff]  }
 0x2c2   :  { %3877 = vmatpush1.bf16.msra.mxu1 %v13822_v6  ;;  %v13900_v6 = vld [vmem:[#allocation3 + $0xce8] ss:$16 sps:$4 sm:$0xff]  }
 0x2c3   :  { %6007 = vmatpush1.bf16.msra.mxu0 %v13825_v7  ;;  %3878 = vmatprep.subr.bf16.mxu1 %v13830_v9  ;;  %v13903_v7 = vld [vmem:[#allocation7 + $0x4e0] ss:$16 sps:$4 sm:$0xff]   ;;  %v13908_v9 = vld [vmem:[#allocation3 + $0xd0c] ss:$16 sps:$4 sm:$0xff]  }
 0x2c4   :  { %6008 = vmatprep.subr.bf16.mxu0 %v13833_v12  ;;  %v13911_v12 = vld [vmem:[#allocation7 + $0x504] ss:$16 sps:$4 sm:$0xff]  }
 0x2c6   :  { %3879 = vmatpush1.bf16.msra.mxu1 %v13828_v40  ;;  %v13906_v40 = vld [vmem:[#allocation3 + $0xd08] ss:$16 sps:$4 sm:$0xff]  }
 0x2c7   :  { %6009 = vmatpush1.bf16.msra.mxu0 %v13831_v13  ;;  %3880 = vmatprep.subr.bf16.mxu1 %v13836_v15  ;;  %v13909_v13 = vld [vmem:[#allocation7 + $0x500] ss:$16 sps:$4 sm:$0xff]   ;;  %v13914_v15 = vld [vmem:[#allocation3 + $0xd2c] ss:$16 sps:$4 sm:$0xff]  }
 0x2c8   :  { %6010 = vmatprep.subr.bf16.mxu0 %v13839_v16  ;;  %v13917_v16 = vld [vmem:[#allocation7 + $0x524] ss:$16 sps:$4 sm:$0xff]  }
 0x2ca   :  { %3881 = vmatpush1.bf16.msra.mxu1 %v13834_v17  ;;  %v13912_v17 = vld [vmem:[#allocation3 + $0xd28] ss:$16 sps:$4 sm:$0xff]  }
 0x2cb   :  { %6011 = vmatpush1.bf16.msra.mxu0 %v13837_v18  ;;  %3882 = vmatprep.subr.bf16.mxu1 %v13842_v22  ;;  %v13915_v18 = vld [vmem:[#allocation7 + $0x520] ss:$16 sps:$4 sm:$0xff]   ;;  %v13920_v22 = vld [vmem:[#allocation3 + $0xd4c] ss:$16 sps:$4 sm:$0xff]  }
 0x2cc   :  { %6012 = vmatprep.subr.bf16.mxu0 %v13845_v24  ;;  %v13923_v24 = vld [vmem:[#allocation7 + $0x544] ss:$16 sps:$4 sm:$0xff]  }
 0x2ce   :  { %3883 = vmatpush1.bf16.msra.mxu1 %v13840_v25  ;;  %v13918_v25 = vld [vmem:[#allocation3 + $0xd48] ss:$16 sps:$4 sm:$0xff]  }
 0x2cf   :  { %6013 = vmatpush1.bf16.msra.mxu0 %v13843_v23  ;;  %3884 = vmatprep.subr.bf16.mxu1 %v13848_v27  ;;  %v13921_v23 = vld [vmem:[#allocation7 + $0x540] ss:$16 sps:$4 sm:$0xff]   ;;  %v13926_v27 = vld [vmem:[#allocation3 + $0xd6c] ss:$16 sps:$4 sm:$0xff]  }
 0x2d0   :  { %6014 = vmatprep.subr.bf16.mxu0 %v13851_v29  ;;  %v13929_v29 = vld [vmem:[#allocation7 + $0x564] ss:$16 sps:$4 sm:$0xff]  }
 0x2d2   :  { %3885 = vmatpush1.bf16.msra.mxu1 %v13846_v30  ;;  %v13924_v30 = vld [vmem:[#allocation3 + $0xd68] ss:$16 sps:$4 sm:$0xff]  }
 0x2d3   :  { %6015 = vmatpush1.bf16.msra.mxu0 %v13849_v28  ;;  %3886 = vmatprep.subr.bf16.mxu1 %v13854_v32  ;;  %v13927_v28 = vld [vmem:[#allocation7 + $0x560] ss:$16 sps:$4 sm:$0xff]   ;;  %v13932_v32 = vld [vmem:[#allocation3 + $0xd8c] ss:$16 sps:$4 sm:$0xff]  }
 0x2d4   :  { %6016 = vmatprep.subr.bf16.mxu0 %v13857_v33  ;;  %v13935_v33 = vld [vmem:[#allocation7 + $0x584] ss:$16 sps:$4 sm:$0xff]  }
 0x2d6   :  { %3887 = vmatpush1.bf16.msra.mxu1 %v13852_v34  ;;  %v13930_v34 = vld [vmem:[#allocation3 + $0xd88] ss:$16 sps:$4 sm:$0xff]  }
 0x2d7   :  { %6017 = vmatpush1.bf16.msra.mxu0 %v13855_v37  ;;  %3897 = vmatprep.subr.bf16.mxu1 %v13860_v38  ;;  %v13933_v37 = vld [vmem:[#allocation7 + $0x580] ss:$16 sps:$4 sm:$0xff]   ;;  %v13938_v38 = vld [vmem:[#allocation3 + $0xdac] ss:$16 sps:$4 sm:$0xff]  }
 0x2d8   :  { %6027 = vmatprep.subr.bf16.mxu0 %v13863_v35  ;;  %v13936_v35 = vld [vmem:[#allocation3 + $0xda8] ss:$16 sps:$4 sm:$0xff]  }
 0x2d9   :  { %3889 = vmatmul.mubr.bf16.vlgmr.msra.gmra.mrb[4].mxu1 %v15161_v47  ;;  %v13878_v47 = vld [vmem:[#allocation3 + $0xc6c] ss:$16 sps:$4 sm:$0xff]  }
 0x2da   :  { %6019 = vmatmul.mubr.bf16.vlgmr.msra.gmra.mrb[4].mxu0 %v15224_v43  ;;  %3898 = vmatpush1.bf16.msra.mxu1 %v13858_v48  ;;  %v13944_v48 = vld [vmem:[#allocation3 + $0xdcc] ss:$16 sps:$4 sm:$0xff]  }
 0x2db   :  { %6028 = vmatpush1.bf16.msra.mxu0 %v13861_v44  ;;  %3899 = vmatprep.subr.bf16.mxu1 %v13866_v45  ;;  %v13947_v44 = vld [vmem:[#allocation7 + $0x5c4] ss:$16 sps:$4 sm:$0xff]  }
 0x2dc   :  { %6029 = vmatprep.subr.bf16.mxu0 %v13869_v41  ;;  %3929 = vmatprep.mubr.bf16.mxu1 %v15166_v52  ;;  %v13882_v52 = vld [vmem:[#allocation3 + $0xc88] ss:$16 sps:$4 sm:$0xff]   ;;  %v13945_v41 = vld [vmem:[#allocation7 + $0x5c0] ss:$16 sps:$4 sm:$0xff]  }
 0x2dd   :  { %6059 = vmatprep.mubr.bf16.mxu0 %v15226_v46  ;;  %v13942_v45 = vld [vmem:[#allocation3 + $0xdc8] ss:$16 sps:$4 sm:$0xff]  }
 0x2de   :  { %3900 = vmatpush1.bf16.msra.mxu1 %v13864_v10  ;;  %v13950_v10 = vld [vmem:[#allocation3 + $0xdec] ss:$16 sps:$4 sm:$0xff]  }
 0x2df   :  { %6030 = vmatpush1.bf16.msra.mxu0 %v13867_v49  ;;  %3901 = vmatprep.subr.bf16.mxu1 %v13872_v50  ;;  %v13953_v49 = vld [vmem:[#allocation7 + $0x5e4] ss:$16 sps:$4 sm:$0xff]  }
 0x2e0   :  { %6031 = vmatprep.subr.bf16.mxu0 %v13875_v51  ;;  %v13948_v50 = vld [vmem:[#allocation3 + $0xde8] ss:$16 sps:$4 sm:$0xff]   ;;  %v13951_v51 = vld [vmem:[#allocation7 + $0x5e0] ss:$16 sps:$4 sm:$0xff]  }
 0x2e2   :  { %3902 = vmatpush1.bf16.msra.mxu1 %v13870_v54  ;;  %v3987_v54 = vld [vmem:[%s15632_s1 + $0x20] sm:$0xff] }
 0x2e3   :  { %6032 = vmatpush1.bf16.msra.mxu0 %v13873_v55  ;;  %3903 = vmatprep.subr.bf16.mxu1 %v13878_v47  ;;  %v13956_v55 = vld [vmem:[#allocation3 + $0xe0c] ss:$16 sps:$4 sm:$0xff]   ;;  %v13959_v47 = vld [vmem:[#allocation7 + $0x604] ss:$16 sps:$4 sm:$0xff]  }
 0x2e4   :  { %6033 = vmatprep.subr.bf16.mxu0 %v13881_v36  ;;  %v15235_v36 = vpack.c.bf16 %v3987_v54, %v3987_v54  ;;  %v14011_v54 = vld [vmem:[#allocation7 + $0x720] ss:$16 sps:$4 sm:$0xff]  }
 0x2e6   :  { %3904 = vmatpush1.bf16.msra.mxu1 %v13876_v56  ;;  %v3990_v56 = vld [vmem:[%s15632_s1 + $0x38] sm:$0xff] }
 0x2e7   :  { %6034 = vmatpush1.bf16.msra.mxu0 %v13879_v57  ;;  %3905 = vmatprep.subr.bf16.mxu1 %v13884_v58  ;;  %v13954_v57 = vld [vmem:[#allocation3 + $0xe08] ss:$16 sps:$4 sm:$0xff]   ;;  %v13957_v58 = vld [vmem:[#allocation7 + $0x600] ss:$16 sps:$4 sm:$0xff]  }
 0x2e8   :  { %6035 = vmatprep.subr.bf16.mxu0 %v13887_v20  ;;  %v13962_v20 = vld [vmem:[#allocation3 + $0xe2c] ss:$16 sps:$4 sm:$0xff]  }
 0x2ea   :  { %3906 = vmatpush1.bf16.msra.mxu1 %v13882_v52  ;;  %v13965_v52 = vld [vmem:[#allocation7 + $0x624] ss:$16 sps:$4 sm:$0xff]  }
 0x2eb   :  { %6036 = vmatpush1.bf16.msra.mxu0 %v13885_v60  ;;  %3907 = vmatprep.subr.bf16.mxu1 %v13890_v61  ;;  %v15240_v60 = vpack.c.bf16 %v3990_v56, %v3990_v56  ;;  %v13960_v61 = vld [vmem:[#allocation3 + $0xe28] ss:$16 sps:$4 sm:$0xff]  }
 0x2ec   :  { %6037 = vmatprep.subr.bf16.mxu0 %v13893_v62  ;;  %v13963_v62 = vld [vmem:[#allocation7 + $0x620] ss:$16 sps:$4 sm:$0xff]   ;;  %v14014_v56 = vld [vmem:[#allocation3 + $0xf48] ss:$16 sps:$4 sm:$0xff]  }
 0x2ee   :  { %3908 = vmatpush1.bf16.msra.mxu1 %v13888_v0  ;;  %v743_v0 = vlaneseq }
 0x2ef   :  { %6038 = vmatpush1.bf16.msra.mxu0 %v13891_v53  ;;  %3909 = vmatprep.subr.bf16.mxu1 %v13896_v1  ;;  %v13968_v53 = vld [vmem:[#allocation3 + $0xe4c] ss:$16 sps:$4 sm:$0xff]   ;;  %v13971_v1 = vld [vmem:[#allocation7 + $0x644] ss:$16 sps:$4 sm:$0xff]  }
 0x2f0   :  { %6039 = vmatprep.subr.bf16.mxu0 %v13899_v2  ;;  %v13966_v2 = vld [vmem:[#allocation3 + $0xe48] ss:$16 sps:$4 sm:$0xff]  }
 0x2f2   :  { %3910 = vmatpush1.bf16.msra.mxu1 %v13894_v3  ;;  %v13969_v3 = vld [vmem:[#allocation7 + $0x640] ss:$16 sps:$4 sm:$0xff]  }
 0x2f3   :  { %6040 = vmatpush1.bf16.msra.mxu0 %v13897_v4  ;;  %3911 = vmatprep.subr.bf16.mxu1 %v13902_v5  ;;  %v13974_v4 = vld [vmem:[#allocation3 + $0xe6c] ss:$16 sps:$4 sm:$0xff]   ;;  %v13977_v5 = vld [vmem:[#allocation7 + $0x664] ss:$16 sps:$4 sm:$0xff]  }
 0x2f4   :  { %6041 = vmatprep.subr.bf16.mxu0 %v13905_v11  ;;  %v13972_v11 = vld [vmem:[#allocation3 + $0xe68] ss:$16 sps:$4 sm:$0xff]  }
 0x2f6   :  { %3912 = vmatpush1.bf16.msra.mxu1 %v13900_v6  ;;  %v13975_v6 = vld [vmem:[#allocation7 + $0x660] ss:$16 sps:$4 sm:$0xff]  }
 0x2f7   :  { %6042 = vmatpush1.bf16.msra.mxu0 %v13903_v7  ;;  %3913 = vmatprep.subr.bf16.mxu1 %v13908_v9  ;;  %v13983_v9 = vld [vmem:[#allocation7 + $0x684] ss:$16 sps:$4 sm:$0xff]  }
 0x2f8   :  { %6043 = vmatprep.subr.bf16.mxu0 %v13911_v12  ;;  %v741_v12 = vld [vmem:[#allocation5] sm:$0xf] }
 0x2fa   :  { %3914 = vmatpush1.bf16.msra.mxu1 %v13906_v40 }
 0x2fb   :  { %6044 = vmatpush1.bf16.msra.mxu0 %v13909_v13  ;;  %3915 = vmatprep.subr.bf16.mxu1 %v13914_v15  ;;  %v13978_v13 = vld [vmem:[#allocation3 + $0xe88] ss:$16 sps:$4 sm:$0xff]   ;;  %v13981_v15 = vld [vmem:[#allocation7 + $0x680] ss:$16 sps:$4 sm:$0xff]  }
 0x2fc   :  { %6045 = vmatprep.subr.bf16.mxu0 %v13917_v16 }
 0x2fe   :  { %3916 = vmatpush1.bf16.msra.mxu1 %v13912_v17  ;;  %v13986_v17 = vld [vmem:[#allocation3 + $0xeac] ss:$16 sps:$4 sm:$0xff]  }
 0x2ff   :  { %6046 = vmatpush1.bf16.msra.mxu0 %v13915_v18  ;;  %3917 = vmatprep.subr.bf16.mxu1 %v13920_v22  ;;  %v13989_v18 = vld [vmem:[#allocation7 + $0x6a4] ss:$16 sps:$4 sm:$0xff]  }
 0x300   :  { %6047 = vmatprep.subr.bf16.mxu0 %v13923_v24  ;;  %v13984_v24 = vld [vmem:[#allocation3 + $0xea8] ss:$16 sps:$4 sm:$0xff]  }
 0x302   :  { %3918 = vmatpush1.bf16.msra.mxu1 %v13918_v25  ;;  %v13987_v25 = vld [vmem:[#allocation7 + $0x6a0] ss:$16 sps:$4 sm:$0xff]  }
 0x303   :  { %6048 = vmatpush1.bf16.msra.mxu0 %v13921_v23  ;;  %3919 = vmatprep.subr.bf16.mxu1 %v13926_v27  ;;  %v13992_v27 = vld [vmem:[#allocation3 + $0xecc] ss:$16 sps:$4 sm:$0xff]  }
 0x304   :  { %6049 = vmatprep.subr.bf16.mxu0 %v13929_v29  ;;  %v13995_v29 = vld [vmem:[#allocation7 + $0x6c4] ss:$16 sps:$4 sm:$0xff]  }
 0x306   :  { %3920 = vmatpush1.bf16.msra.mxu1 %v13924_v30 }
 0x307   :  { %6050 = vmatpush1.bf16.msra.mxu0 %v13927_v28  ;;  %3921 = vmatprep.subr.bf16.mxu1 %v13932_v32 }
 0x308   :  { %6051 = vmatprep.subr.bf16.mxu0 %v13935_v33 }
 0x30a   :  { %3922 = vmatpush1.bf16.msra.mxu1 %v13930_v34 }
 0x30b   :  { %6052 = vmatpush1.bf16.msra.mxu0 %v13933_v37  ;;  %3923 = vmatprep.subr.bf16.mxu1 %v13938_v38  ;;  %v13990_v38 = vld [vmem:[#allocation3 + $0xec8] ss:$16 sps:$4 sm:$0xff]  }
 0x30c   :  { %6053 = vmatprep.subr.bf16.mxu0 %v13941_v39  ;;  %v13993_v39 = vld [vmem:[#allocation7 + $0x6c0] ss:$16 sps:$4 sm:$0xff]  }
 0x30e   :  { %3924 = vmatpush1.bf16.msra.mxu1 %v13936_v35 }
 0x30f   :  { %6054 = vmatpush1.bf16.msra.mxu0 %v13939_v42  ;;  %3925 = vmatprep.subr.bf16.mxu1 %v13944_v48  ;;  %v14001_v42 = vld [vmem:[#allocation7 + $0x6e4] ss:$16 sps:$4 sm:$0xff]  }
 0x310   :  { %6055 = vmatprep.subr.bf16.mxu0 %v13947_v44  ;;  %v13996_v48 = vld [vmem:[#allocation3 + $0xee8] ss:$16 sps:$4 sm:$0xff]   ;;  %v14004_v44 = vld [vmem:[#allocation3 + $0xf0c] ss:$16 sps:$4 sm:$0xff]  }
 0x312   :  { %3926 = vmatpush1.bf16.msra.mxu1 %v13942_v45  ;;  %v14007_v45 = vld [vmem:[#allocation7 + $0x704] ss:$16 sps:$4 sm:$0xff]  }
 0x313   :  { %6056 = vmatpush1.bf16.msra.mxu0 %v13945_v41  ;;  %3927 = vmatprep.subr.bf16.mxu1 %v13950_v10  ;;  %v14002_v41 = vld [vmem:[#allocation3 + $0xf08] ss:$16 sps:$4 sm:$0xff]   ;;  %v14005_v10 = vld [vmem:[#allocation7 + $0x700] ss:$16 sps:$4 sm:$0xff]  }
 0x314   :  { %6057 = vmatprep.subr.bf16.mxu0 %v13953_v49  ;;  %v14010_v49 = vld [vmem:[#allocation3 + $0xf2c] ss:$16 sps:$4 sm:$0xff]  }
 0x316   :  { %3928 = vmatpush1.bf16.msra.mxu1 %v13948_v50  ;;  %v14013_v50 = vld [vmem:[#allocation7 + $0x724] ss:$16 sps:$4 sm:$0xff]  }
 0x317   :  { %6058 = vmatpush1.bf16.msra.mxu0 %v13951_v51  ;;  %3938 = vmatprep.subr.bf16.mxu1 %v13956_v55  ;;  %v14008_v51 = vld [vmem:[#allocation3 + $0xf28] ss:$16 sps:$4 sm:$0xff]   ;;  %v14016_v55 = vld [vmem:[#allocation3 + $0xf4c] ss:$16 sps:$4 sm:$0xff]  }
 0x318   :  { %6068 = vmatprep.subr.bf16.mxu0 %v13959_v47  ;;  %v14019_v47 = vld [vmem:[#allocation7 + $0x744] ss:$16 sps:$4 sm:$0xff]  }
 0x319   :  { %3930 = vmatmul.mubr.bf16.vlgmr.msra.gmra.mrb[4].mxu1 %v15178_v59  ;;  %v15246_v59 = vshrl.u32 %v743_v0, 7  ;;  %v14031_v0 = vld [vmem:[#allocation7 + $0x784] ss:$16 sps:$4 sm:$0xff]  }
 0x31a   :  { %6060 = vmatmul.mubr.bf16.vlgmr.msra.gmra.mrb[4].mxu0 %v15235_v36  ;;  %3939 = vmatpush1.bf16.msra.mxu1 %v13954_v57  ;;  %v14017_v57 = vld [vmem:[#allocation7 + $0x740] ss:$16 sps:$4 sm:$0xff]  }
 0x31b   :  { %6069 = vmatpush1.bf16.msra.mxu0 %v13957_v58  ;;  %3940 = vmatprep.subr.bf16.mxu1 %v13962_v20  ;;  %v15249_v7 = vsub.s32 0, %v15246_v59  ;;  %v15252_v40 = vsub.s32 1, %v15246_v59  ;;  %v14022_v58 = vld [vmem:[#allocation3 + $0xf6c] ss:$16 sps:$4 sm:$0xff]   ;;  %v14025_v20 = vld [vmem:[#allocation7 + $0x764] ss:$16 sps:$4 sm:$0xff]  }
 0x31c   :  { %6070 = vmatprep.subr.bf16.mxu0 %v13965_v52  ;;  %3970 = vmatprep.mubr.bf16.mxu1 %v15180_v63  ;;  %v13980_v63 = vld [vmem:[#allocation3 + $0xe8c] ss:$16 sps:$4 sm:$0xff]   ;;  %v14020_v52 = vld [vmem:[#allocation3 + $0xf68] ss:$16 sps:$4 sm:$0xff]  }
 0x31d   :  { %6100 = vmatprep.mubr.bf16.mxu0 %v15240_v60  ;;  %v746_v16 = vrot.slane %v741_v12, %v15249_v7  ;;  %v750_v22 = vrot.slane %v741_v12, %v15252_v40  ;;  %v14046_v12 = vld [vmem:[#allocation3 + $0xfec] ss:$16 sps:$4 sm:$0xff]  }
 0x31e   :  { %3941 = vmatpush1.bf16.msra.mxu1 %v13960_v61  ;;  %v14023_v61 = vld [vmem:[#allocation7 + $0x760] ss:$16 sps:$4 sm:$0xff]  }
 0x31f   :  { %6071 = vmatpush1.bf16.msra.mxu0 %v13963_v62  ;;  %3942 = vmatprep.subr.bf16.mxu1 %v13968_v53  ;;  %v12962_v23 = vadd.f32 %v15186_v19, %v746_v16  ;;  %v12964_v30 = vadd.f32 %v15188_v21, %v750_v22  ;;  %v13998_v19 = vld [vmem:[#allocation3 + $0xeec] ss:$16 sps:$4 sm:$0xff]   ;;  %v13999_v21 = vld [vmem:[#allocation7 + $0x6e0] ss:$16 sps:$4 sm:$0xff]   ;;  %v14026_v53 = vld [vmem:[#allocation3 + $0xf88] ss:$16 sps:$4 sm:$0xff]  }
 0x320   :  { %6072 = vmatprep.subr.bf16.mxu0 %v13971_v1  ;;  %v14028_v62 = vld [vmem:[#allocation3 + $0xf8c] ss:$16 sps:$4 sm:$0xff]   ;;  %v14029_v1 = vld [vmem:[#allocation7 + $0x780] ss:$16 sps:$4 sm:$0xff]   ;;  %v14055_v22 = vld [vmem:[#allocation7 + $0xc] ss:$16 sps:$4 sm:$0xff]  }
 0x321   :  { %v14047_v16 = vld [vmem:[#allocation7 + $0x7e0] ss:$16 sps:$4 sm:$0xff]  }
 0x322   :  { %3943 = vmatpush1.bf16.msra.mxu1 %v13966_v2  ;;  %v14034_v2 = vld [vmem:[#allocation3 + $0xfac] ss:$16 sps:$4 sm:$0xff]  }
 0x323   :  { %6073 = vmatpush1.bf16.msra.mxu0 %v13969_v3  ;;  %3944 = vmatprep.subr.bf16.mxu1 %v13974_v4  ;;  %v14037_v3 = vld [vmem:[#allocation7 + $0x7a4] ss:$16 sps:$4 sm:$0xff]  }
 0x324   :  { %6074 = vmatprep.subr.bf16.mxu0 %v13977_v5  ;;  %v14032_v4 = vld [vmem:[#allocation3 + $0xfa8] ss:$16 sps:$4 sm:$0xff]   ;;  %v14035_v5 = vld [vmem:[#allocation7 + $0x7a0] ss:$16 sps:$4 sm:$0xff]  }
 0x326   :  { %3945 = vmatpush1.bf16.msra.mxu1 %v13972_v11  ;;  %v14040_v11 = vld [vmem:[#allocation3 + $0xfcc] ss:$16 sps:$4 sm:$0xff]  }
 0x327   :  { %6075 = vmatpush1.bf16.msra.mxu0 %v13975_v6  ;;  %3946 = vmatprep.subr.bf16.mxu1 %v13980_v63  ;;  %v14043_v6 = vld [vmem:[#allocation7 + $0x7c4] ss:$16 sps:$4 sm:$0xff]  }
 0x328   :  { %6076 = vmatprep.subr.bf16.mxu0 %v13983_v9  ;;  %v14038_v63 = vld [vmem:[#allocation3 + $0xfc8] ss:$16 sps:$4 sm:$0xff]   ;;  %v14041_v9 = vld [vmem:[#allocation7 + $0x7c0] ss:$16 sps:$4 sm:$0xff]  }
 0x32a   :  { %3947 = vmatpush1.bf16.msra.mxu1 %v13978_v13  ;;  %v14049_v13 = vld [vmem:[#allocation7 + $0x7e4] ss:$16 sps:$4 sm:$0xff]  }
 0x32b   :  { %6077 = vmatpush1.bf16.msra.mxu0 %v13981_v15  ;;  %3948 = vmatprep.subr.bf16.mxu1 %v13986_v17  ;;  %v14044_v15 = vld [vmem:[#allocation3 + $0xfe8] ss:$16 sps:$4 sm:$0xff]   ;;  %v3989_v17 = vld [vmem:[%s15632_s1 + $0x30] sm:$0xff] }
 0x32c   :  { %6078 = vmatprep.subr.bf16.mxu0 %v13989_v18  ;;  %v14052_v18 = vld [vmem:[#allocation7 + $0x804] ss:$16 sps:$4 sm:$0xff]  }
 0x32d   :  { %v3644_v28 = vpop.f32.mrb[0].mxu0 }
 0x32e   :  { %v15258_v32 = vadd.f32 %v12962_v23, %v3644_v28  ;;  %v3646_v33 = vpop.f32.mrb[1].mxu0  ;;  %3949 = vmatpush1.bf16.msra.mxu1 %v13984_v24  ;;  %v15265_v24 = vpack.c.bf16 %v3989_v17, %v3989_v17  ;;  %v14050_v23 = vld [vmem:[#allocation7 + $0x800] ss:$16 sps:$4 sm:$0xff]   ;;  %v14127_v17 = vld [vmem:[#allocation7 + $0x18c] ss:$16 sps:$4 sm:$0xff]  }
 0x32f   :  { %v15260_v34 = vadd.f32 %v12964_v30, %v3646_v33  ;;  %v3648_v37 = vpop.f32.mrb[2].mxu0  ;;  %6079 = vmatpush1.bf16.msra.mxu0 %v13987_v25  ;;  %3950 = vmatprep.subr.bf16.mxu1 %v13992_v27  ;;  %v3992_v25 = vld [vmem:[%s15632_s1 + $0x48] sm:$0xff]  ;;  %v14061_v30 = vld [vmem:[#allocation7 + $0x2c] ss:$16 sps:$4 sm:$0xff]   ;;  %v14056_v33 = vld [vmem:[#allocation7 + $0x820] ss:$16 sps:$4 sm:$0xff]  }
 0x330   :  { %v3649_v35 = vpop.f32.mrb[3].mxu0  ;;  %6080 = vmatprep.subr.bf16.mxu0 %v13995_v29  ;;  %v14053_v27 = vld [vmem:[#allocation7 + $0x8] ss:$16 sps:$4 sm:$0xff]   ;;  %v14058_v29 = vld [vmem:[#allocation7 + $0x824] ss:$16 sps:$4 sm:$0xff]   ;;  %v15270_v28 = vpack.c.bf16 %v3992_v25, %v3992_v25 }
 0x331   :  { %v14059_v37 = vld [vmem:[#allocation7 + $0x28] ss:$16 sps:$4 sm:$0xff]   ;;  %v14062_v35 = vld [vmem:[#allocation7 + $0x840] ss:$16 sps:$4 sm:$0xff]   ;;  %v14130_v25 = vld [vmem:[#allocation7 + $0x9a4] ss:$16 sps:$4 sm:$0xff]  }
 0x332   :  { %3951 = vmatpush1.bf16.msra.mxu1 %v13990_v38  ;;  %v14064_v38 = vld [vmem:[#allocation7 + $0x844] ss:$16 sps:$4 sm:$0xff]  }
 0x333   :  { %6081 = vmatpush1.bf16.msra.mxu0 %v13993_v39  ;;  %3952 = vmatprep.subr.bf16.mxu1 %v13998_v19  ;;  %v14067_v39 = vld [vmem:[#allocation7 + $0x4c] ss:$16 sps:$4 sm:$0xff]   ;;  %v14065_v19 = vld [vmem:[#allocation7 + $0x48] ss:$16 sps:$4 sm:$0xff]  }
 0x334   :  { %6082 = vmatprep.subr.bf16.mxu0 %v14001_v42  ;;  %v14073_v42 = vld [vmem:[#allocation7 + $0x6c] ss:$16 sps:$4 sm:$0xff]  }
 0x336   :  { %3953 = vmatpush1.bf16.msra.mxu1 %v13996_v48  ;;  %v14068_v48 = vld [vmem:[#allocation7 + $0x860] ss:$16 sps:$4 sm:$0xff]  }
 0x337   :  { %6083 = vmatpush1.bf16.msra.mxu0 %v13999_v21  ;;  %3954 = vmatprep.subr.bf16.mxu1 %v14004_v44  ;;  %v14071_v21 = vld [vmem:[#allocation7 + $0x68] ss:$16 sps:$4 sm:$0xff]   ;;  %v14076_v44 = vld [vmem:[#allocation7 + $0x884] ss:$16 sps:$4 sm:$0xff]  }
 0x338   :  { %6084 = vmatprep.subr.bf16.mxu0 %v14007_v45  ;;  %v14079_v45 = vld [vmem:[#allocation7 + $0x8c] ss:$16 sps:$4 sm:$0xff]  }
 0x33a   :  { %3955 = vmatpush1.bf16.msra.mxu1 %v14002_v41  ;;  %v14074_v41 = vld [vmem:[#allocation7 + $0x880] ss:$16 sps:$4 sm:$0xff]  }
 0x33b   :  { %6085 = vmatpush1.bf16.msra.mxu0 %v14005_v10  ;;  %3956 = vmatprep.subr.bf16.mxu1 %v14010_v49  ;;  %v14082_v10 = vld [vmem:[#allocation7 + $0x8a4] ss:$16 sps:$4 sm:$0xff]   ;;  %v14085_v49 = vld [vmem:[#allocation7 + $0xac] ss:$16 sps:$4 sm:$0xff]  }
 0x33c   :  { %6086 = vmatprep.subr.bf16.mxu0 %v14013_v50  ;;  %v14080_v50 = vld [vmem:[#allocation7 + $0x8a0] ss:$16 sps:$4 sm:$0xff]  }
 0x33e   :  { %3957 = vmatpush1.bf16.msra.mxu1 %v14008_v51  ;;  %v14083_v51 = vld [vmem:[#allocation7 + $0xa8] ss:$16 sps:$4 sm:$0xff]  }
 0x33f   :  { %6087 = vmatpush1.bf16.msra.mxu0 %v14011_v54  ;;  %3958 = vmatprep.subr.bf16.mxu1 %v14016_v55  ;;  %v14088_v54 = vld [vmem:[#allocation7 + $0x8c4] ss:$16 sps:$4 sm:$0xff]   ;;  %v14091_v55 = vld [vmem:[#allocation7 + $0xcc] ss:$16 sps:$4 sm:$0xff]  }
 0x340   :  { %6088 = vmatprep.subr.bf16.mxu0 %v14019_v47  ;;  %v14086_v47 = vld [vmem:[#allocation7 + $0x8c0] ss:$16 sps:$4 sm:$0xff]  }
 0x342   :  { %3959 = vmatpush1.bf16.msra.mxu1 %v14014_v56  ;;  %v14089_v56 = vld [vmem:[#allocation7 + $0xc8] ss:$16 sps:$4 sm:$0xff]  }
 0x343   :  { %6089 = vmatpush1.bf16.msra.mxu0 %v14017_v57  ;;  %3960 = vmatprep.subr.bf16.mxu1 %v14022_v58  ;;  %v14094_v57 = vld [vmem:[#allocation7 + $0x8e4] ss:$16 sps:$4 sm:$0xff]   ;;  %v14097_v58 = vld [vmem:[#allocation7 + $0xec] ss:$16 sps:$4 sm:$0xff]  }
 0x344   :  { %6090 = vmatprep.subr.bf16.mxu0 %v14025_v20  ;;  %v14092_v20 = vld [vmem:[#allocation7 + $0x8e0] ss:$16 sps:$4 sm:$0xff]  }
 0x346   :  { %3961 = vmatpush1.bf16.msra.mxu1 %v14020_v52  ;;  %v14095_v52 = vld [vmem:[#allocation7 + $0xe8] ss:$16 sps:$4 sm:$0xff]  }
 0x347   :  { %6091 = vmatpush1.bf16.msra.mxu0 %v14023_v61  ;;  %3962 = vmatprep.subr.bf16.mxu1 %v14028_v62  ;;  %v14100_v61 = vld [vmem:[#allocation7 + $0x904] ss:$16 sps:$4 sm:$0xff]   ;;  %v14103_v62 = vld [vmem:[#allocation7 + $0x10c] ss:$16 sps:$4 sm:$0xff]  }
 0x348   :  { %6092 = vmatprep.subr.bf16.mxu0 %v14031_v0  ;;  %v14098_v0 = vld [vmem:[#allocation7 + $0x900] ss:$16 sps:$4 sm:$0xff]  }
 0x34a   :  { %3963 = vmatpush1.bf16.msra.mxu1 %v14026_v53  ;;  %v14101_v53 = vld [vmem:[#allocation7 + $0x108] ss:$16 sps:$4 sm:$0xff]  }
 0x34b   :  { %6093 = vmatpush1.bf16.msra.mxu0 %v14029_v1  ;;  %3964 = vmatprep.subr.bf16.mxu1 %v14034_v2  ;;  %v14106_v1 = vld [vmem:[#allocation7 + $0x924] ss:$16 sps:$4 sm:$0xff]   ;;  %v14109_v2 = vld [vmem:[#allocation7 + $0x12c] ss:$16 sps:$4 sm:$0xff]  }
 0x34c   :  { %6094 = vmatprep.subr.bf16.mxu0 %v14037_v3  ;;  %v14104_v3 = vld [vmem:[#allocation7 + $0x920] ss:$16 sps:$4 sm:$0xff]  }
 0x34e   :  { %3965 = vmatpush1.bf16.msra.mxu1 %v14032_v4  ;;  %v14107_v4 = vld [vmem:[#allocation7 + $0x128] ss:$16 sps:$4 sm:$0xff]  }
 0x34f   :  { %6095 = vmatpush1.bf16.msra.mxu0 %v14035_v5  ;;  %3966 = vmatprep.subr.bf16.mxu1 %v14040_v11  ;;  %v14112_v5 = vld [vmem:[#allocation7 + $0x944] ss:$16 sps:$4 sm:$0xff]   ;;  %v14115_v11 = vld [vmem:[#allocation7 + $0x14c] ss:$16 sps:$4 sm:$0xff]  }
 0x350   :  { %6096 = vmatprep.subr.bf16.mxu0 %v14043_v6  ;;  %v14110_v6 = vld [vmem:[#allocation7 + $0x940] ss:$16 sps:$4 sm:$0xff]  }
 0x352   :  { %3967 = vmatpush1.bf16.msra.mxu1 %v14038_v63  ;;  %v14113_v63 = vld [vmem:[#allocation7 + $0x148] ss:$16 sps:$4 sm:$0xff]  }
 0x353   :  { %6097 = vmatpush1.bf16.msra.mxu0 %v14041_v9  ;;  %3968 = vmatprep.subr.bf16.mxu1 %v14046_v12  ;;  %v14118_v9 = vld [vmem:[#allocation7 + $0x964] ss:$16 sps:$4 sm:$0xff]   ;;  %v14121_v12 = vld [vmem:[#allocation7 + $0x16c] ss:$16 sps:$4 sm:$0xff]  }
 0x354   :  { %6098 = vmatprep.subr.bf16.mxu0 %v14049_v13  ;;  %v14116_v13 = vld [vmem:[#allocation7 + $0x960] ss:$16 sps:$4 sm:$0xff]  }
 0x356   :  { %3969 = vmatpush1.bf16.msra.mxu1 %v14044_v15  ;;  %v14119_v15 = vld [vmem:[#allocation7 + $0x168] ss:$16 sps:$4 sm:$0xff]  }
 0x357   :  { %6099 = vmatpush1.bf16.msra.mxu0 %v14047_v16  ;;  %6150 = vmatprep.subr.bf16.mxu1 %v14055_v22  ;;  %v14124_v16 = vld [vmem:[#allocation7 + $0x984] ss:$16 sps:$4 sm:$0xff]   ;;  %v14125_v22 = vld [vmem:[#allocation7 + $0x188] ss:$16 sps:$4 sm:$0xff]  }
 0x358   :  { %6109 = vmatprep.subr.bf16.mxu0 %v14052_v18  ;;  %v14122_v18 = vld [vmem:[#allocation7 + $0x980] ss:$16 sps:$4 sm:$0xff]  }
 0x359   :  { %3971 = vmatmul.mubr.bf16.vlgmr.msra.gmra.mrb[4].mxu1 %v15196_v8  ;;  %v14070_v8 = vld [vmem:[#allocation7 + $0x864] ss:$16 sps:$4 sm:$0xff]  }
 0x35a   :  { %6101 = vmatmul.mubr.bf16.vlgmr.msra.gmra.mrb[4].mxu0 %v15265_v24  ;;  %6151 = vmatpush1.bf16.msra.mxu1 %v14053_v27  ;;  %v14128_v27 = vld [vmem:[#allocation7 + $0x9a0] ss:$16 sps:$4 sm:$0xff]  }
 0x35b   :  { %6110 = vmatpush1.bf16.msra.mxu0 %v14050_v23  ;;  %6152 = vmatprep.subr.bf16.mxu1 %v14061_v30  ;;  %v14133_v23 = vld [vmem:[#allocation7 + $0x1ac] ss:$16 sps:$4 sm:$0xff]   ;;  %v14136_v30 = vld [vmem:[#allocation7 + $0x9c4] ss:$16 sps:$4 sm:$0xff]  }
 0x35c   :  { %6111 = vmatprep.subr.bf16.mxu0 %v14058_v29  ;;  %6141 = vmatprep.mubr.bf16.mxu0 %v15270_v28  ;;  %v14131_v29 = vld [vmem:[#allocation7 + $0x1a8] ss:$16 sps:$4 sm:$0xff]  }
 0x35d   :  { %6182 = vmatprep.mubr.bf16.mxu1 %v15198_v14  ;;  %v14077_v14 = vld [vmem:[#allocation7 + $0x88] ss:$16 sps:$4 sm:$0xff]  }
 0x35e   :  { %6153 = vmatpush1.bf16.msra.mxu1 %v14059_v37  ;;  %v14134_v37 = vld [vmem:[#allocation7 + $0x9c0] ss:$16 sps:$4 sm:$0xff]  }
 0x35f   :  { %6112 = vmatpush1.bf16.msra.mxu0 %v14056_v33  ;;  %6154 = vmatprep.subr.bf16.mxu1 %v14067_v39  ;;  %v14139_v33 = vld [vmem:[#allocation7 + $0x1cc] ss:$16 sps:$4 sm:$0xff]   ;;  %v14142_v39 = vld [vmem:[#allocation7 + $0x9e4] ss:$16 sps:$4 sm:$0xff]  }
 0x360   :  { %6113 = vmatprep.subr.bf16.mxu0 %v14064_v38  ;;  %v14137_v38 = vld [vmem:[#allocation7 + $0x1c8] ss:$16 sps:$4 sm:$0xff]  }
 0x362   :  { %6155 = vmatpush1.bf16.msra.mxu1 %v14065_v19  ;;  %v6383_v19 = vld [vmem:[#allocation10] sm:$0xff] }
 0x363   :  { %6114 = vmatpush1.bf16.msra.mxu0 %v14062_v35  ;;  %6156 = vmatprep.subr.bf16.mxu1 %v14073_v42  ;;  %v14145_v35 = vld [vmem:[#allocation7 + $0x1ec] ss:$16 sps:$4 sm:$0xff]   ;;  %v14140_v42 = vld [vmem:[#allocation7 + $0x9e0] ss:$16 sps:$4 sm:$0xff]  }
 0x364   :  { %6115 = vmatprep.subr.bf16.mxu0 %v14070_v8  ;;  %v6387_v8 = vld [vmem:[#allocation10 + $0x20] sm:$0xff] }
 0x366   :  { %6157 = vmatpush1.bf16.msra.mxu1 %v14071_v21  ;;  %v3991_v21 = vld [vmem:[%s15632_s1 + $0x40] sm:$0xff] }
 0x367   :  { %6116 = vmatpush1.bf16.msra.mxu0 %v14068_v48  ;;  %6158 = vmatprep.subr.bf16.mxu1 %v14079_v45  ;;  %v14143_v48 = vld [vmem:[#allocation7 + $0x1e8] ss:$16 sps:$4 sm:$0xff]   ;;  %v12284_v45 = vcombine.high %v6383_v19, %v6387_v8 }
 0x368   :  { %6117 = vmatprep.subr.bf16.mxu0 %v14076_v44  ;;  %v14148_v44 = vld [vmem:[#allocation7 + $0x20c] ss:$16 sps:$4 sm:$0xff]  }
 0x36a   :  { %6159 = vmatpush1.bf16.msra.mxu1 %v14077_v14  ;;  %v15282_v14 = vpack.c.bf16 %v3991_v21, %v3991_v21  ;;  %v6455_v21 = vld [vmem:[#allocation10 + $0x240] sm:$0xff] }
 0x36b   :  { %6118 = vmatpush1.bf16.msra.mxu0 %v14074_v41  ;;  %6160 = vmatprep.subr.bf16.mxu1 %v14085_v49  ;;  %v15280_v41 = vmax.f32 %v15260_v34, 0.0  ;;  %v6395_v49 = vld [vmem:[#allocation10 + $0x60] sm:$0xff] }
 0x36c   :  { %6119 = vmatprep.subr.bf16.mxu0 %v14082_v10  ;;  %v6391_v10 = vld [vmem:[#allocation10 + $0x40] sm:$0xff] }
 0x36d   :  { %v14149_v34 = vld [vmem:[#allocation7 + $0x228] ss:$16 sps:$4 sm:$0xff]  }
 0x36e   :  { %6161 = vmatpush1.bf16.msra.mxu1 %v14083_v51  ;;  %v12283_v51 = vcombine.low %v6383_v19, %v6387_v8  ;;  %v14167_v19 = vld [vmem:[#allocation7 + $0x2e8] ss:$16 sps:$4 sm:$0xff]  }
 0x36f   :  { %6120 = vmatpush1.bf16.msra.mxu0 %v14080_v50  ;;  %6162 = vmatprep.subr.bf16.mxu1 %v14091_v55  ;;  %v14146_v50 = vld [vmem:[#allocation7 + $0x208] ss:$16 sps:$4 sm:$0xff]   ;;  %v12292_v55 = vcombine.high %v6391_v10, %v6395_v49 }
 0x370   :  { %6121 = vmatprep.subr.bf16.mxu0 %v14088_v54  ;;  %v14151_v54 = vld [vmem:[#allocation7 + $0x22c] ss:$16 sps:$4 sm:$0xff]  }
 0x372   :  { %6163 = vmatpush1.bf16.msra.mxu1 %v14089_v56  ;;  %v6403_v56 = vld [vmem:[#allocation10 + $0xa0] sm:$0xff] }
 0x373   :  { %6122 = vmatpush1.bf16.msra.mxu0 %v14086_v47  ;;  %6164 = vmatprep.subr.bf16.mxu1 %v14097_v58  ;;  %v6399_v47 = vld [vmem:[#allocation10 + $0x80] sm:$0xff]  ;;  %v12291_v58 = vcombine.low %v6391_v10, %v6395_v49  ;;  %v14175_v49 = vld [vmem:[#allocation7 + $0x32c] ss:$16 sps:$4 sm:$0xff]  }
 0x374   :  { %6123 = vmatprep.subr.bf16.mxu0 %v14094_v57  ;;  %v15286_v57 = vpack.c.bf16 %v15280_v41, %v15280_v41 }
 0x376   :  { %6165 = vmatpush1.bf16.msra.mxu1 %v14095_v52  ;;  %v12300_v52 = vcombine.high %v6399_v47, %v6403_v56 }
 0x377   :  { %6124 = vmatpush1.bf16.msra.mxu0 %v14092_v20  ;;  %6166 = vmatprep.subr.bf16.mxu1 %v14103_v62  ;;  %v14154_v20 = vld [vmem:[#allocation7 + $0x24c] ss:$16 sps:$4 sm:$0xff]   ;;  %v6411_v62 = vld [vmem:[#allocation10 + $0xe0] sm:$0xff] }
 0x378   :  { %6125 = vmatprep.subr.bf16.mxu0 %v14100_v61  ;;  %v6407_v61 = vld [vmem:[#allocation10 + $0xc0] sm:$0xff] }
 0x37a   :  { %6167 = vmatpush1.bf16.msra.mxu1 %v14101_v53  ;;  %v12299_v53 = vcombine.low %v6399_v47, %v6403_v56  ;;  %v14178_v56 = vld [vmem:[#allocation7 + $0x34c] ss:$16 sps:$4 sm:$0xff]  }
 0x37b   :  { %6126 = vmatpush1.bf16.msra.mxu0 %v14098_v0  ;;  %6168 = vmatprep.subr.bf16.mxu1 %v14109_v2  ;;  %v14152_v0 = vld [vmem:[#allocation7 + $0x248] ss:$16 sps:$4 sm:$0xff]  }
 0x37c   :  { %6127 = vmatprep.subr.bf16.mxu0 %v14106_v1  ;;  %v12308_v1 = vcombine.high %v6407_v61, %v6411_v62  ;;  %v6415_v2 = vld [vmem:[#allocation10 + $0x100] sm:$0xff] }
 0x37e   :  { %6169 = vmatpush1.bf16.msra.mxu1 %v14107_v4  ;;  %v14155_v4 = vld [vmem:[#allocation7 + $0x268] ss:$16 sps:$4 sm:$0xff]  }
 0x37f   :  { %6128 = vmatpush1.bf16.msra.mxu0 %v14104_v3  ;;  %6170 = vmatprep.subr.bf16.mxu1 %v14115_v11  ;;  %v6419_v3 = vld [vmem:[#allocation10 + $0x120] sm:$0xff]  ;;  %v14160_v11 = vld [vmem:[#allocation7 + $0x28c] ss:$16 sps:$4 sm:$0xff]  }
 0x380   :  { %6129 = vmatprep.subr.bf16.mxu0 %v14112_v5  ;;  %v12307_v5 = vcombine.low %v6407_v61, %v6411_v62  ;;  %v14181_v62 = vld [vmem:[#allocation7 + $0x36c] ss:$16 sps:$4 sm:$0xff]  }
 0x382   :  { %6171 = vmatpush1.bf16.msra.mxu1 %v14113_v63  ;;  %v6423_v63 = vld [vmem:[#allocation10 + $0x140] sm:$0xff] }
 0x383   :  { %6130 = vmatpush1.bf16.msra.mxu0 %v14110_v6  ;;  %6172 = vmatprep.subr.bf16.mxu1 %v14121_v12  ;;  %v12316_v6 = vcombine.high %v6415_v2, %v6419_v3  ;;  %v12315_v12 = vcombine.low %v6415_v2, %v6419_v3  ;;  %v14184_v3 = vld [vmem:[#allocation7 + $0x38c] ss:$16 sps:$4 sm:$0xff]  }
 0x384   :  { %6131 = vmatprep.subr.bf16.mxu0 %v14118_v9  ;;  %v14158_v9 = vld [vmem:[#allocation7 + $0x288] ss:$16 sps:$4 sm:$0xff]  }
 0x386   :  { %6173 = vmatpush1.bf16.msra.mxu1 %v14119_v15 }
 0x387   :  { %6132 = vmatpush1.bf16.msra.mxu0 %v14116_v13  ;;  %6174 = vmatprep.subr.bf16.mxu1 %v14127_v17  ;;  %v14163_v13 = vld [vmem:[#allocation7 + $0x2ac] ss:$16 sps:$4 sm:$0xff]   ;;  %v6435_v17 = vld [vmem:[#allocation10 + $0x1a0] sm:$0xff] }
 0x388   :  { %6133 = vmatprep.subr.bf16.mxu0 %v14124_v16  ;;  %v6431_v16 = vld [vmem:[#allocation10 + $0x180] sm:$0xff] }
 0x38a   :  { %6175 = vmatpush1.bf16.msra.mxu1 %v14125_v22 }
 0x38b   :  { %6134 = vmatpush1.bf16.msra.mxu0 %v14122_v18  ;;  %6176 = vmatprep.subr.bf16.mxu1 %v14133_v23  ;;  %v14161_v18 = vld [vmem:[#allocation7 + $0x2a8] ss:$16 sps:$4 sm:$0xff]   ;;  %v12332_v23 = vcombine.high %v6431_v16, %v6435_v17 }
 0x38c   :  { %6135 = vmatprep.subr.bf16.mxu0 %v14130_v25  ;;  %v14166_v25 = vld [vmem:[#allocation7 + $0x2cc] ss:$16 sps:$4 sm:$0xff]  }
 0x38e   :  { %6177 = vmatpush1.bf16.msra.mxu1 %v14131_v29  ;;  %v6443_v29 = vld [vmem:[#allocation10 + $0x1e0] sm:$0xff] }
 0x38f   :  { %6136 = vmatpush1.bf16.msra.mxu0 %v14128_v27  ;;  %6178 = vmatprep.subr.bf16.mxu1 %v14139_v33  ;;  %v6439_v27 = vld [vmem:[#allocation10 + $0x1c0] sm:$0xff]  ;;  %v12331_v33 = vcombine.low %v6431_v16, %v6435_v17  ;;  %v14190_v17 = vld [vmem:[#allocation7 + $0x3cc] ss:$16 sps:$4 sm:$0xff]  }
 0x390   :  { %6137 = vmatprep.subr.bf16.mxu0 %v14136_v30  ;;  %v14164_v30 = vld [vmem:[#allocation7 + $0x2c8] ss:$16 sps:$4 sm:$0xff]   ;;  %v12339_v8 = vcombine.low %v6439_v27, %v6443_v29 }
 0x392   :  { %6179 = vmatpush1.bf16.msra.mxu1 %v14137_v38  ;;  %v12340_v38 = vcombine.high %v6439_v27, %v6443_v29  ;;  %v14193_v29 = vld [vmem:[#allocation7 + $0x3ec] ss:$16 sps:$4 sm:$0xff]  }
 0x393   :  { %6138 = vmatpush1.bf16.msra.mxu0 %v14134_v37  ;;  %6180 = vmatprep.subr.bf16.mxu1 %v14145_v35  ;;  %v14169_v37 = vld [vmem:[#allocation7 + $0x2ec] ss:$16 sps:$4 sm:$0xff]   ;;  %v6451_v35 = vld [vmem:[#allocation10 + $0x220] sm:$0xff] }
 0x394   :  { %6139 = vmatprep.subr.bf16.mxu0 %v14142_v39  ;;  %v6447_v39 = vld [vmem:[#allocation10 + $0x200] sm:$0xff] }
 0x395   :  { %v12347_v10 = vcombine.low %v6447_v39, %v6451_v35 }
 0x396   :  { %6181 = vmatpush1.bf16.msra.mxu1 %v14143_v48  ;;  %v12348_v48 = vcombine.high %v6447_v39, %v6451_v35  ;;  %v15293_v35 = vmax.f32 %v15258_v32, 0.0  ;;  %v6655_v32 = vld [vmem:[#allocation10 + $0x880] sm:$0xff] }
 0x397   :  { %6140 = vmatpush1.bf16.msra.mxu0 %v14140_v42  ;;  %6191 = vmatprep.subr.bf16.mxu1 %v14148_v44  ;;  %v14172_v42 = vld [vmem:[#allocation7 + $0x30c] ss:$16 sps:$4 sm:$0xff]   ;;  %v6459_v44 = vld [vmem:[#allocation10 + $0x260] sm:$0xff] }
 0x398   :  { %9497 = vmatprep.subr.bf16.mxu0 %v12284_v45  ;;  %v14170_v45 = vld [vmem:[#allocation7 + $0x308] ss:$16 sps:$4 sm:$0xff]   ;;  %v12355_v47 = vcombine.low %v6455_v21, %v6459_v44 }
 0x399   :  { %6183 = vmatmul.mubr.bf16.vlgmr.msra.gmra.mrb[8].mxu1 %v15210_v26  ;;  %v14157_v26 = vld [vmem:[#allocation7 + $0x26c] ss:$16 sps:$4 sm:$0xff]  }
 0x39a   :  { %6142 = vmatmul.mubr.bf16.vlgmr.msra.gmra.mrb[4].mxu0 %v15282_v14  ;;  %6192 = vmatpush1.bf16.msra.mxu1 %v14146_v50  ;;  %v12356_v50 = vcombine.high %v6455_v21, %v6459_v44  ;;  %v14194_v21 = vld [vmem:[#allocation7 + $0x408] ss:$16 sps:$4 sm:$0xff]   ;;  %v15297_v44 = vpack.c.bf16 %v15293_v35, %v15293_v35 }
 0x39b   :  { %9498 = vmatpush1.bf16.msra.mxu0 %v12283_v51  ;;  %9529 = vmatprep.mubr.bf16.mxu0 %v15286_v57  ;;  %v6463_v51 = vld [vmem:[#allocation10 + $0x280] sm:$0xff] }
 0x39c   :  { %6193 = vmatprep.subr.bf16.mxu1 %v14151_v54  ;;  %9499 = vmatprep.subr.bf16.mxu0 %v12292_v55  ;;  %v6467_v54 = vld [vmem:[#allocation10 + $0x2a0] sm:$0xff] }
 0x39d   :  { %6223 = vmatprep.mubr.bf16.mxu1 %v15212_v31  ;;  %v6427_v31 = vld [vmem:[#allocation10 + $0x160] sm:$0xff]  ;;  %v12363_v61 = vcombine.low %v6463_v51, %v6467_v54 }
 0x39e   :  { %6194 = vmatpush1.bf16.msra.mxu1 %v14149_v34  ;;  %v12324_v15 = vcombine.high %v6423_v63, %v6427_v31  ;;  %v12323_v22 = vcombine.low %v6423_v63, %v6427_v31  ;;  %v14173_v55 = vld [vmem:[#allocation7 + $0x328] ss:$16 sps:$4 sm:$0xff]   ;;  %v12364_v34 = vcombine.high %v6463_v51, %v6467_v54  ;;  %v14187_v31 = vld [vmem:[#allocation7 + $0x3ac] ss:$16 sps:$4 sm:$0xff]  }
 0x39f   :  { %9500 = vmatpush1.bf16.msra.mxu0 %v12291_v58  ;;  %6195 = vmatprep.subr.bf16.mxu1 %v14154_v20  ;;  %v6471_v58 = vld [vmem:[#allocation10 + $0x2c0] sm:$0xff]  ;;  %v14202_v54 = vld [vmem:[#allocation7 + $0x44c] ss:$16 sps:$4 sm:$0xff]  }
 0x3a0   :  { %9501 = vmatprep.subr.bf16.mxu0 %v12300_v52  ;;  %v6475_v20 = vld [vmem:[#allocation10 + $0x2e0] sm:$0xff] }
 0x3a1   :  { %v14176_v52 = vld [vmem:[#allocation7 + $0x348] ss:$16 sps:$4 sm:$0xff]   ;;  %v12371_v2 = vcombine.low %v6471_v58, %v6475_v20 }
 0x3a2   :  { %6196 = vmatpush1.bf16.msra.mxu1 %v14152_v0  ;;  %v12372_v0 = vcombine.high %v6471_v58, %v6475_v20  ;;  %v14197_v51 = vld [vmem:[#allocation7 + $0x428] ss:$16 sps:$4 sm:$0xff]   ;;  %v14205_v20 = vld [vmem:[#allocation7 + $0x46c] ss:$16 sps:$4 sm:$0xff]  }
 0x3a3   :  { %9502 = vmatpush1.bf16.msra.mxu0 %v12299_v53  ;;  %6197 = vmatprep.subr.bf16.mxu1 %v14157_v26  ;;  %v6479_v53 = vld [vmem:[#allocation10 + $0x300] sm:$0xff] }
 0x3a4   :  { %9503 = vmatprep.subr.bf16.mxu0 %v12308_v1  ;;  %v6483_v26 = vld [vmem:[#allocation10 + $0x320] sm:$0xff] }
 0x3a5   :  { %v14179_v1 = vld [vmem:[#allocation7 + $0x368] ss:$16 sps:$4 sm:$0xff]   ;;  %v12379_v63 = vcombine.low %v6479_v53, %v6483_v26 }
 0x3a6   :  { %6198 = vmatpush1.bf16.msra.mxu1 %v14155_v4  ;;  %v12380_v4 = vcombine.high %v6479_v53, %v6483_v26  ;;  %v14200_v58 = vld [vmem:[#allocation7 + $0x448] ss:$16 sps:$4 sm:$0xff]  }
 0x3a7   :  { %9504 = vmatpush1.bf16.msra.mxu0 %v12307_v5  ;;  %6199 = vmatprep.subr.bf16.mxu1 %v14160_v11  ;;  %v6487_v5 = vld [vmem:[#allocation10 + $0x340] sm:$0xff] }
 0x3a8   :  { %9505 = vmatprep.subr.bf16.mxu0 %v12316_v6  ;;  %v6491_v11 = vld [vmem:[#allocation10 + $0x360] sm:$0xff] }
 0x3a9   :  { %v14182_v6 = vld [vmem:[#allocation7 + $0x388] ss:$16 sps:$4 sm:$0xff]   ;;  %v12387_v16 = vcombine.low %v6487_v5, %v6491_v11 }
 0x3aa   :  { %6200 = vmatpush1.bf16.msra.mxu1 %v14158_v9  ;;  %v12388_v9 = vcombine.high %v6487_v5, %v6491_v11 }
 0x3ab   :  { %9506 = vmatpush1.bf16.msra.mxu0 %v12315_v12  ;;  %6201 = vmatprep.subr.bf16.mxu1 %v14163_v13  ;;  %v6495_v12 = vld [vmem:[#allocation10 + $0x380] sm:$0xff] }
 0x3ac   :  { %9507 = vmatprep.subr.bf16.mxu0 %v12324_v15  ;;  %v6499_v13 = vld [vmem:[#allocation10 + $0x3a0] sm:$0xff] }
 0x3ad   :  { %v14185_v15 = vld [vmem:[#allocation7 + $0x3a8] ss:$16 sps:$4 sm:$0xff]   ;;  %v12395_v27 = vcombine.low %v6495_v12, %v6499_v13 }
 0x3ae   :  { %6202 = vmatpush1.bf16.msra.mxu1 %v14161_v18  ;;  %v12396_v18 = vcombine.high %v6495_v12, %v6499_v13 }
 0x3af   :  { %9508 = vmatpush1.bf16.msra.mxu0 %v12323_v22  ;;  %6203 = vmatprep.subr.bf16.mxu1 %v14166_v25  ;;  %v6503_v22 = vld [vmem:[#allocation10 + $0x3c0] sm:$0xff] }
 0x3b0   :  { %9509 = vmatprep.subr.bf16.mxu0 %v12332_v23  ;;  %v6507_v25 = vld [vmem:[#allocation10 + $0x3e0] sm:$0xff] }
 0x3b1   :  { %v14188_v23 = vld [vmem:[#allocation7 + $0x3c8] ss:$16 sps:$4 sm:$0xff]   ;;  %v12403_v39 = vcombine.low %v6503_v22, %v6507_v25 }
 0x3b2   :  { %6204 = vmatpush1.bf16.msra.mxu1 %v14164_v30  ;;  %v12404_v30 = vcombine.high %v6503_v22, %v6507_v25 }
 0x3b3   :  { %9510 = vmatpush1.bf16.msra.mxu0 %v12331_v33  ;;  %6205 = vmatprep.subr.bf16.mxu1 %v14169_v37  ;;  %v6639_v33 = vld [vmem:[#allocation10 + $0x800] sm:$0xff] }
 0x3b4   :  { %9511 = vmatprep.subr.bf16.mxu0 %v12340_v38  ;;  %v6643_v37 = vld [vmem:[#allocation10 + $0x820] sm:$0xff] }
 0x3b5   :  { %v14191_v38 = vld [vmem:[#allocation7 + $0x3e8] ss:$16 sps:$4 sm:$0xff]  }
 0x3b6   :  { %6206 = vmatpush1.bf16.msra.mxu1 %v14167_v19  ;;  %v14196_v19 = vld [vmem:[#allocation7 + $0x40c] ss:$16 sps:$4 sm:$0xff]  }
 0x3b7   :  { %9512 = vmatpush1.bf16.msra.mxu0 %v12339_v8  ;;  %6207 = vmatprep.subr.bf16.mxu1 %v14172_v42  ;;  %v12540_v8 = vcombine.high %v6639_v33, %v6643_v37  ;;  %v6647_v42 = vld [vmem:[#allocation10 + $0x840] sm:$0xff] }
 0x3b8   :  { %9513 = vmatprep.subr.bf16.mxu0 %v12348_v48  ;;  %v6651_v48 = vld [vmem:[#allocation10 + $0x860] sm:$0xff] }
 0x3ba   :  { %6208 = vmatpush1.bf16.msra.mxu1 %v14170_v45  ;;  %v14199_v45 = vld [vmem:[#allocation7 + $0x42c] ss:$16 sps:$4 sm:$0xff]  }
 0x3bb   :  { %9514 = vmatpush1.bf16.msra.mxu0 %v12347_v10  ;;  %6209 = vmatprep.subr.bf16.mxu1 %v14175_v49  ;;  %v12539_v10 = vcombine.low %v6639_v33, %v6643_v37  ;;  %v12548_v49 = vcombine.high %v6647_v42, %v6651_v48  ;;  %v15304_v33 = vld [vmem:[#allocation10 + $0x28] sm:$0xff] }
 0x3bc   :  { %9515 = vmatprep.subr.bf16.mxu0 %v12356_v50  ;;  %v6659_v50 = vld [vmem:[#allocation10 + $0x8a0] sm:$0xff]  ;;  %v14220_v37 = vld [vmem:[#allocation7 + $0x50c] ss:$16 sps:$4 sm:$0xff]  }
 0x3be   :  { %6210 = vmatpush1.bf16.msra.mxu1 %v14173_v55  ;;  %v12547_v55 = vcombine.low %v6647_v42, %v6651_v48  ;;  %v6715_v42 = vld [vmem:[#allocation10 + $0xa60] sm:$0xff] }
 0x3bf   :  { %9516 = vmatpush1.bf16.msra.mxu0 %v12355_v47  ;;  %6211 = vmatprep.subr.bf16.mxu1 %v14178_v56  ;;  %v12556_v47 = vcombine.high %v6655_v32, %v6659_v50  ;;  %v6663_v56 = vld [vmem:[#allocation10 + $0x8c0] sm:$0xff] }
 0x3c0   :  { %9517 = vmatprep.subr.bf16.mxu0 %v12364_v34  ;;  %v6667_v34 = vld [vmem:[#allocation10 + $0x8e0] sm:$0xff] }
 0x3c1   :  { %v12563_v53 = vcombine.low %v6663_v56, %v6667_v34  ;;  %v14218_v48 = vld [vmem:[#allocation7 + $0x508] ss:$16 sps:$4 sm:$0xff]  }
 0x3c2   :  { %6212 = vmatpush1.bf16.msra.mxu1 %v14176_v52  ;;  %v12564_v52 = vcombine.high %v6663_v56, %v6667_v34  ;;  %v6731_v56 = vld [vmem:[#allocation10 + $0xae0] sm:$0xff] }
 0x3c3   :  { %9518 = vmatpush1.bf16.msra.mxu0 %v12363_v61  ;;  %6213 = vmatprep.subr.bf16.mxu1 %v14181_v62  ;;  %v6671_v61 = vld [vmem:[#allocation10 + $0x900] sm:$0xff] }
 0x3c4   :  { %9519 = vmatprep.subr.bf16.mxu0 %v12372_v0  ;;  %v6675_v62 = vld [vmem:[#allocation10 + $0x920] sm:$0xff]  ;;  %v14208_v0 = vld [vmem:[#allocation7 + $0x48c] ss:$16 sps:$4 sm:$0xff]  }
 0x3c5   :  { %v12572_v26 = vcombine.high %v6671_v61, %v6675_v62  ;;  %v12571_v5 = vcombine.low %v6671_v61, %v6675_v62  ;;  %v14224_v34 = vld [vmem:[#allocation7 + $0x548] ss:$16 sps:$4 sm:$0xff]  }
 0x3c6   :  { %6214 = vmatpush1.bf16.msra.mxu1 %v14179_v1  ;;  %v6679_v1 = vld [vmem:[#allocation10 + $0x940] sm:$0xff] }
 0x3c7   :  { %9520 = vmatpush1.bf16.msra.mxu0 %v12371_v2  ;;  %6215 = vmatprep.subr.bf16.mxu1 %v14184_v3  ;;  %v6683_v2 = vld [vmem:[#allocation10 + $0x960] sm:$0xff] }
 0x3c8   :  { %9521 = vmatprep.subr.bf16.mxu0 %v12380_v4  ;;  %v14206_v3 = vld [vmem:[#allocation7 + $0x488] ss:$16 sps:$4 sm:$0xff]   ;;  %v14211_v4 = vld [vmem:[#allocation7 + $0x4ac] ss:$16 sps:$4 sm:$0xff]   ;;  %v12580_v11 = vcombine.high %v6679_v1, %v6683_v2  ;;  %v12579_v12 = vcombine.low %v6679_v1, %v6683_v2 }
 0x3c9   :  { %v6739_v61 = vld [vmem:[#allocation10 + $0xb20] sm:$0xff] }
 0x3ca   :  { %6216 = vmatpush1.bf16.msra.mxu1 %v14182_v6  ;;  %v6687_v6 = vld [vmem:[#allocation10 + $0x980] sm:$0xff] }
 0x3cb   :  { %9522 = vmatpush1.bf16.msra.mxu0 %v12379_v63  ;;  %6217 = vmatprep.subr.bf16.mxu1 %v14187_v31  ;;  %v6691_v63 = vld [vmem:[#allocation10 + $0x9a0] sm:$0xff] }
 0x3cc   :  { %9523 = vmatprep.subr.bf16.mxu0 %v12388_v9  ;;  %v14209_v31 = vld [vmem:[#allocation7 + $0x4a8] ss:$16 sps:$4 sm:$0xff]   ;;  %v14214_v9 = vld [vmem:[#allocation7 + $0x4cc] ss:$16 sps:$4 sm:$0xff]   ;;  %v12588_v13 = vcombine.high %v6687_v6, %v6691_v63  ;;  %v12587_v22 = vcombine.low %v6687_v6, %v6691_v63 }
 0x3cd   :  { %v14227_v62 = vld [vmem:[#allocation7 + $0x568] ss:$16 sps:$4 sm:$0xff]  }
 0x3ce   :  { %6218 = vmatpush1.bf16.msra.mxu1 %v14185_v15  ;;  %v6695_v15 = vld [vmem:[#allocation10 + $0x9c0] sm:$0xff] }
 0x3cf   :  { %9524 = vmatpush1.bf16.msra.mxu0 %v12387_v16  ;;  %6219 = vmatprep.subr.bf16.mxu1 %v14190_v17  ;;  %v6699_v16 = vld [vmem:[#allocation10 + $0x9e0] sm:$0xff] }
 0x3d0   :  { %9525 = vmatprep.subr.bf16.mxu0 %v12396_v18  ;;  %v14212_v17 = vld [vmem:[#allocation7 + $0x4c8] ss:$16 sps:$4 sm:$0xff]   ;;  %v14217_v18 = vld [vmem:[#allocation7 + $0x4ec] ss:$16 sps:$4 sm:$0xff]   ;;  %v12596_v25 = vcombine.high %v6695_v15, %v6699_v16 }
 0x3d1   :  { %v6747_v1 = vld [vmem:[#allocation10 + $0xb60] sm:$0xff] }
 0x3d2   :  { %6220 = vmatpush1.bf16.msra.mxu1 %v14188_v23  ;;  %v6703_v23 = vld [vmem:[#allocation10 + $0xa00] sm:$0xff] }
 0x3d3   :  { %9526 = vmatpush1.bf16.msra.mxu0 %v12395_v27  ;;  %6221 = vmatprep.subr.bf16.mxu1 %v14193_v29  ;;  %v6707_v27 = vld [vmem:[#allocation10 + $0xa20] sm:$0xff] }
 0x3d4   :  { %9527 = vmatprep.subr.bf16.mxu0 %v12404_v30  ;;  %v14215_v29 = vld [vmem:[#allocation7 + $0x4e8] ss:$16 sps:$4 sm:$0xff]   ;;  %v15302_v30 = vld [vmem:[#allocation10 + $0x8] sm:$0xff] }
 0x3d5   :  { %v14230_v2 = vld [vmem:[#allocation7 + $0x588] ss:$16 sps:$4 sm:$0xff]  }
 0x3d6   :  { %6222 = vmatpush1.bf16.msra.mxu1 %v14191_v38  ;;  %v12595_v38 = vcombine.low %v6695_v15, %v6699_v16  ;;  %v6755_v6 = vld [vmem:[#allocation10 + $0xba0] sm:$0xff] }
 0x3d7   :  { %9528 = vmatpush1.bf16.msra.mxu0 %v12403_v39  ;;  %6232 = vmatprep.subr.bf16.mxu1 %v14196_v19  ;;  %v12604_v39 = vcombine.high %v6703_v23, %v6707_v27  ;;  %v12285_v19 = vcombine.low %v15302_v30, %v15304_v33  ;;  %v14233_v63 = vld [vmem:[#allocation7 + $0x5a8] ss:$16 sps:$4 sm:$0xff]  }
 0x3d8   :  { %9579 = vmatprep.subr.bf16.mxu0 %v12540_v8  ;;  %v6711_v8 = vld [vmem:[#allocation10 + $0xa40] sm:$0xff] }
 0x3d9   :  { %6224 = vmatmul.mubr.bf16.vlgmr.msra.gmra.mrb[8].mxu1 %v15224_v43  ;;  %v12555_v43 = vcombine.low %v6655_v32, %v6659_v50  ;;  %v6723_v32 = vld [vmem:[#allocation10 + $0xaa0] sm:$0xff] }
 0x3da   :  { %9530 = vmatmul.mubr.bf16.vlgmr.msra.gmra.mrb[8].mxu0 %v15297_v44  ;;  %6233 = vmatpush1.bf16.msra.mxu1 %v14194_v21  ;;  %v14223_v21 = vld [vmem:[#allocation7 + $0x52c] ss:$16 sps:$4 sm:$0xff]   ;;  %v14221_v50 = vld [vmem:[#allocation7 + $0x528] ss:$16 sps:$4 sm:$0xff]  }
 0x3db   :  { %6264 = vmatprep.mubr.bf16.mxu1 %v15226_v46  ;;  %6234 = vmatprep.subr.bf16.mxu1 %v14199_v45  ;;  %v14203_v46 = vld [vmem:[#allocation7 + $0x468] ss:$16 sps:$4 sm:$0xff]   ;;  %v12603_v45 = vcombine.low %v6703_v23, %v6707_v27  ;;  %v14244_v23 = vld [vmem:[#allocation7 + $0x60c] ss:$16 sps:$4 sm:$0xff]  }
 0x3dc   :  { %9580 = vmatpush1.bf16.msra.mxu0 %v12539_v10  ;;  %v12612_v10 = vcombine.high %v6711_v8, %v6715_v42  ;;  %v6763_v15 = vld [vmem:[#allocation10 + $0xbe0] sm:$0xff] }
 0x3dd   :  { %9581 = vmatprep.subr.bf16.mxu0 %v12548_v49  ;;  %v6719_v49 = vld [vmem:[#allocation10 + $0xa80] sm:$0xff] }
 0x3de   :  { %6235 = vmatpush1.bf16.msra.mxu1 %v14197_v51  ;;  %v14226_v51 = vld [vmem:[#allocation7 + $0x54c] ss:$16 sps:$4 sm:$0xff]   ;;  %v14236_v16 = vld [vmem:[#allocation7 + $0x5c8] ss:$16 sps:$4 sm:$0xff]  }
 0x3df   :  { %6236 = vmatprep.subr.bf16.mxu1 %v14202_v54  ;;  %v12611_v54 = vcombine.low %v6711_v8, %v6715_v42  ;;  %v14250_v8 = vld [vmem:[#allocation7 + $0x64c] ss:$16 sps:$4 sm:$0xff]   ;;  %v14248_v42 = vld [vmem:[#allocation7 + $0x648] ss:$16 sps:$4 sm:$0xff]  }
 0x3e0   :  { %9582 = vmatpush1.bf16.msra.mxu0 %v12547_v55  ;;  %v12620_v55 = vcombine.high %v6719_v49, %v6723_v32 }
 0x3e1   :  { %9583 = vmatprep.subr.bf16.mxu0 %v12556_v47  ;;  %v6727_v47 = vld [vmem:[#allocation10 + $0xac0] sm:$0xff] }
 0x3e2   :  { %6237 = vmatpush1.bf16.msra.mxu1 %v14200_v58  ;;  %v14229_v58 = vld [vmem:[#allocation7 + $0x56c] ss:$16 sps:$4 sm:$0xff]  }
 0x3e3   :  { %6238 = vmatprep.subr.bf16.mxu1 %v14205_v20  ;;  %v12619_v20 = vcombine.low %v6719_v49, %v6723_v32  ;;  %v14259_v49 = vld [vmem:[#allocation7 + $0x6ac] ss:$16 sps:$4 sm:$0xff]  }
 0x3e4   :  { %9584 = vmatpush1.bf16.msra.mxu0 %v12555_v43  ;;  %v12628_v43 = vcombine.high %v6727_v47, %v6731_v56  ;;  %v14262_v32 = vld [vmem:[#allocation7 + $0x6cc] ss:$16 sps:$4 sm:$0xff]  }
 0x3e5   :  { %9585 = vmatprep.subr.bf16.mxu0 %v12564_v52  ;;  %v6735_v52 = vld [vmem:[#allocation10 + $0xb00] sm:$0xff] }
 0x3e6   :  { %6239 = vmatpush1.bf16.msra.mxu1 %v14203_v46  ;;  %v14232_v46 = vld [vmem:[#allocation7 + $0x58c] ss:$16 sps:$4 sm:$0xff]  }
 0x3e7   :  { %6240 = vmatprep.subr.bf16.mxu1 %v14208_v0  ;;  %v12627_v0 = vcombine.low %v6727_v47, %v6731_v56  ;;  %v14265_v47 = vld [vmem:[#allocation7 + $0x6ec] ss:$16 sps:$4 sm:$0xff]   ;;  %v14263_v56 = vld [vmem:[#allocation7 + $0x6e8] ss:$16 sps:$4 sm:$0xff]  }
 0x3e8   :  { %9586 = vmatpush1.bf16.msra.mxu0 %v12563_v53  ;;  %v12636_v53 = vcombine.high %v6735_v52, %v6739_v61 }
 0x3e9   :  { %9587 = vmatprep.subr.bf16.mxu0 %v12572_v26  ;;  %v6743_v26 = vld [vmem:[#allocation10 + $0xb40] sm:$0xff] }
 0x3ea   :  { %6241 = vmatpush1.bf16.msra.mxu1 %v14206_v3  ;;  %v14235_v3 = vld [vmem:[#allocation7 + $0x5ac] ss:$16 sps:$4 sm:$0xff]  }
 0x3eb   :  { %6242 = vmatprep.subr.bf16.mxu1 %v14211_v4  ;;  %v12635_v4 = vcombine.low %v6735_v52, %v6739_v61  ;;  %v14274_v52 = vld [vmem:[#allocation7 + $0x74c] ss:$16 sps:$4 sm:$0xff]   ;;  %v14272_v61 = vld [vmem:[#allocation7 + $0x748] ss:$16 sps:$4 sm:$0xff]  }
 0x3ec   :  { %9588 = vmatpush1.bf16.msra.mxu0 %v12571_v5  ;;  %v12644_v5 = vcombine.high %v6743_v26, %v6747_v1 }
 0x3ed   :  { %9589 = vmatprep.subr.bf16.mxu0 %v12580_v11  ;;  %v6751_v11 = vld [vmem:[#allocation10 + $0xb80] sm:$0xff] }
 0x3ee   :  { %6243 = vmatpush1.bf16.msra.mxu1 %v14209_v31  ;;  %v14238_v31 = vld [vmem:[#allocation7 + $0x5cc] ss:$16 sps:$4 sm:$0xff]  }
 0x3ef   :  { %6244 = vmatprep.subr.bf16.mxu1 %v14214_v9  ;;  %v12643_v9 = vcombine.low %v6743_v26, %v6747_v1  ;;  %v14283_v26 = vld [vmem:[#allocation7 + $0x7ac] ss:$16 sps:$4 sm:$0xff]   ;;  %v14281_v1 = vld [vmem:[#allocation7 + $0x7a8] ss:$16 sps:$4 sm:$0xff]  }
 0x3f0   :  { %9590 = vmatpush1.bf16.msra.mxu0 %v12579_v12  ;;  %v12652_v12 = vcombine.high %v6751_v11, %v6755_v6 }
 0x3f1   :  { %9591 = vmatprep.subr.bf16.mxu0 %v12588_v13  ;;  %v6759_v13 = vld [vmem:[#allocation10 + $0xbc0] sm:$0xff] }
 0x3f2   :  { %6245 = vmatpush1.bf16.msra.mxu1 %v14212_v17  ;;  %v14241_v17 = vld [vmem:[#allocation7 + $0x5ec] ss:$16 sps:$4 sm:$0xff]   ;;  %v12659_v27 = vcombine.low %v6759_v13, %v6763_v15 }
 0x3f3   :  { %6246 = vmatprep.subr.bf16.mxu1 %v14217_v18  ;;  %v12651_v18 = vcombine.low %v6751_v11, %v6755_v6  ;;  %v14292_v11 = vld [vmem:[#allocation7 + $0x80c] ss:$16 sps:$4 sm:$0xff]   ;;  %v14290_v6 = vld [vmem:[#allocation7 + $0x808] ss:$16 sps:$4 sm:$0xff]  }
 0x3f4   :  { %9592 = vmatpush1.bf16.msra.mxu0 %v12587_v22  ;;  %v12660_v22 = vcombine.high %v6759_v13, %v6763_v15  ;;  %v14301_v13 = vld [vmem:[#allocation7 + $0x86c] ss:$16 sps:$4 sm:$0xff]   ;;  %v14299_v15 = vld [vmem:[#allocation7 + $0x868] ss:$16 sps:$4 sm:$0xff]  }
 0x3f5   :  { %9593 = vmatprep.subr.bf16.mxu0 %v12596_v25  ;;  %v14239_v25 = vld [vmem:[#allocation7 + $0x5e8] ss:$16 sps:$4 sm:$0xff]  }
 0x3f6   :  { %6247 = vmatpush1.bf16.msra.mxu1 %v14215_v29  ;;  %v12286_v29 = vcombine.high %v15302_v30, %v15304_v33  ;;  %v14322_v30 = vld [vmem:[#allocation7 + $0x94c] ss:$16 sps:$4 sm:$0xff]  }
 0x3f7   :  { %6248 = vmatprep.subr.bf16.mxu1 %v14220_v37  ;;  %v14242_v37 = vld [vmem:[#allocation7 + $0x608] ss:$16 sps:$4 sm:$0xff]   ;;  %v6416_v33 = vld [vmem:[#allocation10 + $0x108] sm:$0xff] }
 0x3f8   :  { %9594 = vmatpush1.bf16.msra.mxu0 %v12595_v38  ;;  %v14247_v38 = vld [vmem:[#allocation7 + $0x62c] ss:$16 sps:$4 sm:$0xff]  }
 0x3f9   :  { %9595 = vmatprep.subr.bf16.mxu0 %v12604_v39  ;;  %v14245_v39 = vld [vmem:[#allocation7 + $0x628] ss:$16 sps:$4 sm:$0xff]  }
 0x3fa   :  { %6249 = vmatpush1.bf16.msra.mxu1 %v14218_v48  ;;  %v14253_v48 = vld [vmem:[#allocation7 + $0x66c] ss:$16 sps:$4 sm:$0xff]  }
 0x3fb   :  { %6250 = vmatprep.subr.bf16.mxu1 %v14223_v21  ;;  %v14251_v21 = vld [vmem:[#allocation7 + $0x668] ss:$16 sps:$4 sm:$0xff]  }
 0x3fc   :  { %9596 = vmatpush1.bf16.msra.mxu0 %v12603_v45  ;;  %v14256_v45 = vld [vmem:[#allocation7 + $0x68c] ss:$16 sps:$4 sm:$0xff]  }
 0x3fd   :  { %9597 = vmatprep.subr.bf16.mxu0 %v12612_v10  ;;  %v14254_v10 = vld [vmem:[#allocation7 + $0x688] ss:$16 sps:$4 sm:$0xff]  }
 0x3fe   :  { %6251 = vmatpush1.bf16.msra.mxu1 %v14221_v50 }
 0x3ff   :  { %6252 = vmatprep.subr.bf16.mxu1 %v14226_v51 }
 0x400   :  { %9598 = vmatpush1.bf16.msra.mxu0 %v12611_v54  ;;  %v14260_v54 = vld [vmem:[#allocation7 + $0x6c8] ss:$16 sps:$4 sm:$0xff]  }
 0x401   :  { %9599 = vmatprep.subr.bf16.mxu0 %v12620_v55 }
 0x402   :  { %6253 = vmatpush1.bf16.msra.mxu1 %v14224_v34  ;;  %v14268_v34 = vld [vmem:[#allocation7 + $0x70c] ss:$16 sps:$4 sm:$0xff]  }
 0x403   :  { %6254 = vmatprep.subr.bf16.mxu1 %v14229_v58  ;;  %v14266_v58 = vld [vmem:[#allocation7 + $0x708] ss:$16 sps:$4 sm:$0xff]  }
 0x404   :  { %9600 = vmatpush1.bf16.msra.mxu0 %v12619_v20  ;;  %v14271_v20 = vld [vmem:[#allocation7 + $0x72c] ss:$16 sps:$4 sm:$0xff]  }
 0x405   :  { %9601 = vmatprep.subr.bf16.mxu0 %v12628_v43  ;;  %v14269_v43 = vld [vmem:[#allocation7 + $0x728] ss:$16 sps:$4 sm:$0xff]  }
 0x406   :  { %6255 = vmatpush1.bf16.msra.mxu1 %v14227_v62  ;;  %v14277_v62 = vld [vmem:[#allocation7 + $0x76c] ss:$16 sps:$4 sm:$0xff]  }
 0x407   :  { %6256 = vmatprep.subr.bf16.mxu1 %v14232_v46  ;;  %v14275_v46 = vld [vmem:[#allocation7 + $0x768] ss:$16 sps:$4 sm:$0xff]  }
 0x408   :  { %9602 = vmatpush1.bf16.msra.mxu0 %v12627_v0  ;;  %v14280_v0 = vld [vmem:[#allocation7 + $0x78c] ss:$16 sps:$4 sm:$0xff]  }
 0x409   :  { %9603 = vmatprep.subr.bf16.mxu0 %v12636_v53  ;;  %v14278_v53 = vld [vmem:[#allocation7 + $0x788] ss:$16 sps:$4 sm:$0xff]  }
 0x40a   :  { %6257 = vmatpush1.bf16.msra.mxu1 %v14230_v2  ;;  %v14286_v2 = vld [vmem:[#allocation7 + $0x7cc] ss:$16 sps:$4 sm:$0xff]  }
 0x40b   :  { %6258 = vmatprep.subr.bf16.mxu1 %v14235_v3  ;;  %v14284_v3 = vld [vmem:[#allocation7 + $0x7c8] ss:$16 sps:$4 sm:$0xff]  }
 0x40c   :  { %9604 = vmatpush1.bf16.msra.mxu0 %v12635_v4  ;;  %v14289_v4 = vld [vmem:[#allocation7 + $0x7ec] ss:$16 sps:$4 sm:$0xff]  }
 0x40d   :  { %9605 = vmatprep.subr.bf16.mxu0 %v12644_v5  ;;  %v14287_v5 = vld [vmem:[#allocation7 + $0x7e8] ss:$16 sps:$4 sm:$0xff]  }
 0x40e   :  { %6259 = vmatpush1.bf16.msra.mxu1 %v14233_v63  ;;  %v14295_v63 = vld [vmem:[#allocation7 + $0x82c] ss:$16 sps:$4 sm:$0xff]  }
 0x40f   :  { %6260 = vmatprep.subr.bf16.mxu1 %v14238_v31  ;;  %v14293_v31 = vld [vmem:[#allocation7 + $0x828] ss:$16 sps:$4 sm:$0xff]  }
 0x410   :  { %9606 = vmatpush1.bf16.msra.mxu0 %v12643_v9  ;;  %v14298_v9 = vld [vmem:[#allocation7 + $0x84c] ss:$16 sps:$4 sm:$0xff]  }
 0x411   :  { %9607 = vmatprep.subr.bf16.mxu0 %v12652_v12  ;;  %v14296_v12 = vld [vmem:[#allocation7 + $0x848] ss:$16 sps:$4 sm:$0xff]  }
 0x412   :  { %6261 = vmatpush1.bf16.msra.mxu1 %v14236_v16  ;;  %v14304_v16 = vld [vmem:[#allocation7 + $0x88c] ss:$16 sps:$4 sm:$0xff]  }
 0x413   :  { %6262 = vmatprep.subr.bf16.mxu1 %v14241_v17  ;;  %v14302_v17 = vld [vmem:[#allocation7 + $0x888] ss:$16 sps:$4 sm:$0xff]  }
 0x414   :  { %9608 = vmatpush1.bf16.msra.mxu0 %v12651_v18  ;;  %v4323_v18 = vld [vmem:[#allocation8] sm:$0xf] }
 0x415   :  { %9609 = vmatprep.subr.bf16.mxu0 %v12660_v22  ;;  %v14307_v22 = vld [vmem:[#allocation7 + $0x8ac] ss:$16 sps:$4 sm:$0xff]  }
 0x416   :  { %6263 = vmatpush1.bf16.msra.mxu1 %v14239_v25  ;;  %v14305_v25 = vld [vmem:[#allocation7 + $0x8a8] ss:$16 sps:$4 sm:$0xff]  }
 0x417   :  { %6273 = vmatprep.subr.bf16.mxu1 %v14244_v23  ;;  %v14310_v23 = vld [vmem:[#allocation7 + $0x8cc] ss:$16 sps:$4 sm:$0xff]  }
 0x418   :  { %9610 = vmatpush1.bf16.msra.mxu0 %v12659_v27 }
 0x419   :  { %9661 = vmatprep.subr.bf16.mxu0 %v12286_v29  ;;  %6265 = vmatmul.mubr.bf16.vlgmr.msra.gmra.mrb[8].mxu1 %v15235_v36  ;;  %v14257_v36 = vld [vmem:[#allocation7 + $0x6a8] ss:$16 sps:$4 sm:$0xff]  }
 0x41a   :  { %6274 = vmatpush1.bf16.msra.mxu1 %v14242_v37  ;;  %6305 = vmatprep.mubr.bf16.mxu1 %v15240_v60 }
 0x41b   :  { %6275 = vmatprep.subr.bf16.mxu1 %v14247_v38 }
 0x41e   :  { %6276 = vmatpush1.bf16.msra.mxu1 %v14245_v39 }
 0x41f   :  { %6277 = vmatprep.subr.bf16.mxu1 %v14250_v8  ;;  %v14308_v8 = vld [vmem:[#allocation7 + $0x8c8] ss:$16 sps:$4 sm:$0xff]  }
 0x422   :  { %6278 = vmatpush1.bf16.msra.mxu1 %v14248_v42 }
 0x423   :  { %6279 = vmatprep.subr.bf16.mxu1 %v14253_v48 }
 0x426   :  { %6280 = vmatpush1.bf16.msra.mxu1 %v14251_v21  ;;  %v14313_v21 = vld [vmem:[#allocation7 + $0x8ec] ss:$16 sps:$4 sm:$0xff]  }
 0x427   :  { %6281 = vmatprep.subr.bf16.mxu1 %v14256_v45 }
 0x42a   :  { %6282 = vmatpush1.bf16.msra.mxu1 %v14254_v10  ;;  %v6392_v10 = vld [vmem:[#allocation10 + $0x48] sm:$0xff] }
 0x42b   :  { %6283 = vmatprep.subr.bf16.mxu1 %v14259_v49  ;;  %v6396_v49 = vld [vmem:[#allocation10 + $0x68] sm:$0xff] }
 0x42c   :  { %v15312_v50 = vpop.f32.mrb[4].mxu1 }
 0x42d   :  { %v15314_v60 = vpop.f32.mrb[5].mxu1 }
 0x42e   :  { %v3976_v51 = vpop.f32.mrb[6].mxu1  ;;  %6284 = vmatpush1.bf16.msra.mxu1 %v14257_v36 }
 0x42f   :  { %v3977_v55 = vpop.f32.mrb[7].mxu1  ;;  %6285 = vmatprep.subr.bf16.mxu1 %v14262_v32  ;;  %v14311_v32 = vld [vmem:[#allocation7 + $0x8e8] ss:$16 sps:$4 sm:$0xff]  }
 0x430   :  { %v14316_v55 = vld [vmem:[#allocation7 + $0x90c] ss:$16 sps:$4 sm:$0xff]  }
 0x432   :  { %6286 = vmatpush1.bf16.msra.mxu1 %v14260_v54  ;;  %v12294_v54 = vcombine.high %v6392_v10, %v6396_v49 }
 0x433   :  { %6287 = vmatprep.subr.bf16.mxu1 %v14265_v47  ;;  %v6400_v47 = vld [vmem:[#allocation10 + $0x88] sm:$0xff] }
 0x436   :  { %6288 = vmatpush1.bf16.msra.mxu1 %v14263_v56  ;;  %v6404_v56 = vld [vmem:[#allocation10 + $0xa8] sm:$0xff] }
 0x437   :  { %6289 = vmatprep.subr.bf16.mxu1 %v14268_v34  ;;  %v12293_v34 = vcombine.low %v6392_v10, %v6396_v49  ;;  %v6456_v10 = vld [vmem:[#allocation10 + $0x248] sm:$0xff] }
 0x438   :  { %v6460_v49 = vld [vmem:[#allocation10 + $0x268] sm:$0xff] }
 0x43a   :  { %6290 = vmatpush1.bf16.msra.mxu1 %v14266_v58  ;;  %v14314_v58 = vld [vmem:[#allocation7 + $0x908] ss:$16 sps:$4 sm:$0xff]  }
 0x43b   :  { %6291 = vmatprep.subr.bf16.mxu1 %v14271_v20  ;;  %v12302_v20 = vcombine.high %v6400_v47, %v6404_v56 }
 0x43e   :  { %6292 = vmatpush1.bf16.msra.mxu1 %v14269_v43  ;;  %v14319_v43 = vld [vmem:[#allocation7 + $0x92c] ss:$16 sps:$4 sm:$0xff]  }
 0x43f   :  { %6293 = vmatprep.subr.bf16.mxu1 %v14274_v52  ;;  %v6408_v52 = vld [vmem:[#allocation10 + $0xc8] sm:$0xff] }
 0x442   :  { %6294 = vmatpush1.bf16.msra.mxu1 %v14272_v61  ;;  %v6412_v61 = vld [vmem:[#allocation10 + $0xe8] sm:$0xff] }
 0x443   :  { %6295 = vmatprep.subr.bf16.mxu1 %v14277_v62  ;;  %v12301_v62 = vcombine.low %v6400_v47, %v6404_v56  ;;  %v14335_v56 = vld [vmem:[#allocation7 + $0x9e8] ss:$16 sps:$4 sm:$0xff]  }
 0x446   :  { %6296 = vmatpush1.bf16.msra.mxu1 %v14275_v46  ;;  %v14317_v46 = vld [vmem:[#allocation7 + $0x928] ss:$16 sps:$4 sm:$0xff]  }
 0x447   :  { %6297 = vmatprep.subr.bf16.mxu1 %v14280_v0  ;;  %v12310_v0 = vcombine.high %v6408_v52, %v6412_v61 }
 0x44a   :  { %6298 = vmatpush1.bf16.msra.mxu1 %v14278_v53  ;;  %v12309_v53 = vcombine.low %v6408_v52, %v6412_v61  ;;  %v6519_v61 = vld [vmem:[#allocation10 + $0x440] sm:$0xff] }
 0x44b   :  { %6299 = vmatprep.subr.bf16.mxu1 %v14283_v26  ;;  %v14320_v26 = vld [vmem:[#allocation7 + $0x948] ss:$16 sps:$4 sm:$0xff]  }
 0x44e   :  { %6300 = vmatpush1.bf16.msra.mxu1 %v14281_v1 }
 0x44f   :  { %6301 = vmatprep.subr.bf16.mxu1 %v14286_v2  ;;  %v14325_v2 = vld [vmem:[#allocation7 + $0x96c] ss:$16 sps:$4 sm:$0xff]  }
 0x452   :  { %6302 = vmatpush1.bf16.msra.mxu1 %v14284_v3  ;;  %v6424_v3 = vld [vmem:[#allocation10 + $0x148] sm:$0xff] }
 0x453   :  { %6303 = vmatprep.subr.bf16.mxu1 %v14289_v4  ;;  %v6428_v4 = vld [vmem:[#allocation10 + $0x168] sm:$0xff] }
 0x456   :  { %6304 = vmatpush1.bf16.msra.mxu1 %v14287_v5 }
 0x457   :  { %6314 = vmatprep.subr.bf16.mxu1 %v14292_v11  ;;  %v14323_v11 = vld [vmem:[#allocation7 + $0x968] ss:$16 sps:$4 sm:$0xff]  }
 0x459   :  { %6306 = vmatmul.mubr.bf16.vlgmr.msra.gmra.mrb[8].mxu1 %v15265_v24  ;;  %v4328_v24 = vrot.slane %v4323_v18, %v15249_v7 }
 0x45a   :  { %6315 = vmatpush1.bf16.msra.mxu1 %v14290_v6  ;;  %6346 = vmatprep.mubr.bf16.mxu1 %v15270_v28  ;;  %v4332_v28 = vrot.slane %v4323_v18, %v15252_v40  ;;  %v12326_v6 = vcombine.high %v6424_v3, %v6428_v4  ;;  %v6444_v18 = vld [vmem:[#allocation10 + $0x1e8] sm:$0xff] }
 0x45b   :  { %6316 = vmatprep.subr.bf16.mxu1 %v14295_v63  ;;  %v14328_v63 = vld [vmem:[#allocation7 + $0x98c] ss:$16 sps:$4 sm:$0xff]  }
 0x45e   :  { %6317 = vmatpush1.bf16.msra.mxu1 %v14293_v31  ;;  %v6432_v31 = vld [vmem:[#allocation10 + $0x188] sm:$0xff] }
 0x45f   :  { %6318 = vmatprep.subr.bf16.mxu1 %v14298_v9  ;;  %v6436_v9 = vld [vmem:[#allocation10 + $0x1a8] sm:$0xff] }
 0x462   :  { %6319 = vmatpush1.bf16.msra.mxu1 %v14296_v12  ;;  %v12325_v12 = vcombine.low %v6424_v3, %v6428_v4 }
 0x463   :  { %6320 = vmatprep.subr.bf16.mxu1 %v14301_v13  ;;  %v14326_v13 = vld [vmem:[#allocation7 + $0x988] ss:$16 sps:$4 sm:$0xff]  }
 0x466   :  { %6321 = vmatpush1.bf16.msra.mxu1 %v14299_v15  ;;  %v12334_v15 = vcombine.high %v6432_v31, %v6436_v9 }
 0x467   :  { %6322 = vmatprep.subr.bf16.mxu1 %v14304_v16  ;;  %v14331_v16 = vld [vmem:[#allocation7 + $0x9ac] ss:$16 sps:$4 sm:$0xff]  }
 0x46a   :  { %6323 = vmatpush1.bf16.msra.mxu1 %v14302_v17  ;;  %v6440_v17 = vld [vmem:[#allocation10 + $0x1c8] sm:$0xff] }
 0x46b   :  { %6324 = vmatprep.subr.bf16.mxu1 %v14307_v22  ;;  %v15339_v22 = vsub.s32 3, %v15246_v59 }
 0x46d   :  { %v6143_v27 = vpop.f32.mrb[4].mxu0 }
 0x46e   :  { %v12968_v29 = vadd.f32 %v6143_v27, %v4328_v24  ;;  %v6145_v37 = vpop.f32.mrb[5].mxu0  ;;  %6325 = vmatpush1.bf16.msra.mxu1 %v14305_v25  ;;  %v12333_v24 = vcombine.low %v6432_v31, %v6436_v9  ;;  %v12342_v25 = vcombine.high %v6440_v17, %v6444_v18  ;;  %v6448_v27 = vld [vmem:[#allocation10 + $0x208] sm:$0xff]  ;;  %v6539_v31 = vld [vmem:[#allocation10 + $0x4e0] sm:$0xff] }
 0x46f   :  { %v12969_v38 = vadd.f32 %v6145_v37, %v4332_v28  ;;  %v6147_v39 = vpop.f32.mrb[6].mxu0  ;;  %6326 = vmatprep.subr.bf16.mxu1 %v14310_v23  ;;  %v14329_v28 = vld [vmem:[#allocation7 + $0x9a8] ss:$16 sps:$4 sm:$0xff]   ;;  %v14334_v23 = vld [vmem:[#allocation7 + $0x9cc] ss:$16 sps:$4 sm:$0xff]  }
 0x470   :  { %v15320_v42 = vmax.f32 %v12968_v29, 0.0  ;;  %v6148_v48 = vpop.f32.mrb[7].mxu0  ;;  %v6452_v29 = vld [vmem:[#allocation10 + $0x228] sm:$0xff]  ;;  %v15341_v37 = vld [vmem:[#allocation5] sm:$0xf]  ;;  %v12341_v39 = vcombine.low %v6440_v17, %v6444_v18  ;;  %v6543_v17 = vld [vmem:[#allocation10 + $0x500] sm:$0xff] }
 0x471   :  { %v15322_v45 = vmax.f32 %v12969_v38, 0.0  ;;  %v758_v38 = vrot.slane %v15341_v37, %v15339_v22  ;;  %v12350_v48 = vcombine.high %v6448_v27, %v6452_v29  ;;  %v12349_v47 = vcombine.low %v6448_v27, %v6452_v29  ;;  %v6547_v18 = vld [vmem:[#allocation10 + $0x520] sm:$0xff]  ;;  %v6496_v27 = vld [vmem:[#allocation10 + $0x388] sm:$0xff] }
 0x472   :  { %6327 = vmatpush1.bf16.msra.mxu1 %v14308_v8  ;;  %v15330_v51 = vpack.c.bf16 %v15320_v42, %v15320_v42  ;;  %v14332_v8 = vld [vmem:[#allocation7 + $0x9c8] ss:$16 sps:$4 sm:$0xff]   ;;  %v6500_v29 = vld [vmem:[#allocation10 + $0x3a8] sm:$0xff] }
 0x473   :  { %v15326_v36 = vpack.c.bf16 %v15322_v45, %v15322_v45  ;;  %6328 = vmatprep.subr.bf16.mxu1 %v14313_v21  ;;  %v14337_v21 = vld [vmem:[#allocation7 + $0x9ec] ss:$16 sps:$4 sm:$0xff]  }
 0x475   :  { %9611 = vmatprep.mubr.bf16.mxu0 %v15326_v36 }
 0x476   :  { %9612 = vmatmul.mubr.bf16.vlgmr.msra.gmra.mrb[12].mxu0 %v15330_v51  ;;  %6329 = vmatpush1.bf16.msra.mxu1 %v14311_v32  ;;  %v6511_v32 = vld [vmem:[#allocation10 + $0x400] sm:$0xff] }
 0x477   :  { %9662 = vmatpush1.bf16.msra.mxu0 %v12285_v19  ;;  %9693 = vmatprep.mubr.bf16.mxu0 %v15286_v57  ;;  %v6420_v19 = vld [vmem:[#allocation10 + $0x128] sm:$0xff] }
 0x478   :  { %9663 = vmatprep.subr.bf16.mxu0 %v12294_v54  ;;  %6330 = vmatprep.subr.bf16.mxu1 %v14316_v55  ;;  %v12318_v1 = vcombine.high %v6416_v33, %v6420_v19  ;;  %v12317_v5 = vcombine.low %v6416_v33, %v6420_v19  ;;  %v6515_v54 = vld [vmem:[#allocation10 + $0x420] sm:$0xff]  ;;  %v12967_v55 = vadd.f32 %v15314_v60, %v758_v38  ;;  %v6476_v19 = vld [vmem:[#allocation10 + $0x2e8] sm:$0xff] }
 0x479   :  { %v6551_v38 = vld [vmem:[#allocation10 + $0x540] sm:$0xff] }
 0x47a   :  { %6331 = vmatpush1.bf16.msra.mxu1 %v14314_v58  ;;  %v12412_v58 = vcombine.high %v6511_v32, %v6515_v54  ;;  %v15346_v52 = vmax.f32 %v12967_v55, 0.0  ;;  %v6563_v55 = vld [vmem:[#allocation10 + $0x5a0] sm:$0xff] }
 0x47b   :  { %9664 = vmatpush1.bf16.msra.mxu0 %v12293_v34  ;;  %6332 = vmatprep.subr.bf16.mxu1 %v14319_v43  ;;  %v12358_v34 = vcombine.high %v6456_v10, %v6460_v49  ;;  %v6468_v43 = vld [vmem:[#allocation10 + $0x2a8] sm:$0xff] }
 0x47c   :  { %9665 = vmatprep.subr.bf16.mxu0 %v12302_v20  ;;  %v6464_v20 = vld [vmem:[#allocation10 + $0x288] sm:$0xff] }
 0x47d   :  { %v12366_v60 = vcombine.high %v6464_v20, %v6468_v43 }
 0x47e   :  { %6333 = vmatpush1.bf16.msra.mxu1 %v14317_v46  ;;  %v12357_v46 = vcombine.low %v6456_v10, %v6460_v49  ;;  %v6504_v49 = vld [vmem:[#allocation10 + $0x3c8] sm:$0xff] }
 0x47f   :  { %9666 = vmatpush1.bf16.msra.mxu0 %v12301_v62  ;;  %6334 = vmatprep.subr.bf16.mxu1 %v14322_v30  ;;  %v6523_v62 = vld [vmem:[#allocation10 + $0x460] sm:$0xff]  ;;  %v6472_v30 = vld [vmem:[#allocation10 + $0x2c8] sm:$0xff] }
 0x480   :  { %9667 = vmatprep.subr.bf16.mxu0 %v12310_v0  ;;  %v12411_v0 = vcombine.low %v6511_v32, %v6515_v54  ;;  %v12420_v33 = vcombine.high %v6519_v61, %v6523_v62  ;;  %v12419_v3 = vcombine.low %v6519_v61, %v6523_v62  ;;  %v12374_v4 = vcombine.high %v6472_v30, %v6476_v19  ;;  %v6508_v32 = vld [vmem:[#allocation10 + $0x3e8] sm:$0xff]  ;;  %v6559_v54 = vld [vmem:[#allocation10 + $0x580] sm:$0xff] }
 0x481   :  { %v12373_v9 = vcombine.low %v6472_v30, %v6476_v19  ;;  %v6644_v61 = vld [vmem:[#allocation10 + $0x828] sm:$0xff]  ;;  %v6567_v62 = vld [vmem:[#allocation10 + $0x5c0] sm:$0xff]  ;;  %v12405_v30 = vcombine.low %v6504_v49, %v6508_v32 }
 0x482   :  { %6335 = vmatpush1.bf16.msra.mxu1 %v14320_v26  ;;  %v6531_v26 = vld [vmem:[#allocation10 + $0x4a0] sm:$0xff] }
 0x483   :  { %9668 = vmatpush1.bf16.msra.mxu0 %v12309_v53  ;;  %6336 = vmatprep.subr.bf16.mxu1 %v14325_v2  ;;  %v6527_v53 = vld [vmem:[#allocation10 + $0x480] sm:$0xff]  ;;  %v12365_v2 = vcombine.low %v6464_v20, %v6468_v43  ;;  %v6640_v20 = vld [vmem:[#allocation10 + $0x808] sm:$0xff] }
 0x484   :  { %9669 = vmatprep.subr.bf16.mxu0 %v12318_v1  ;;  %v15350_v1 = vpack.c.bf16 %v15346_v52, %v15346_v52 }
 0x486   :  { %6337 = vmatpush1.bf16.msra.mxu1 %v14323_v11  ;;  %v6480_v11 = vld [vmem:[#allocation10 + $0x308] sm:$0xff] }
 0x487   :  { %9670 = vmatpush1.bf16.msra.mxu0 %v12317_v5  ;;  %6338 = vmatprep.subr.bf16.mxu1 %v14328_v63  ;;  %v12428_v5 = vcombine.high %v6527_v53, %v6531_v26  ;;  %v6535_v63 = vld [vmem:[#allocation10 + $0x4c0] sm:$0xff] }
 0x488   :  { %9671 = vmatprep.subr.bf16.mxu0 %v12326_v6  ;;  %v6484_v6 = vld [vmem:[#allocation10 + $0x328] sm:$0xff] }
 0x48a   :  { %6339 = vmatpush1.bf16.msra.mxu1 %v14326_v13  ;;  %v12436_v13 = vcombine.high %v6535_v63, %v6539_v31 }
 0x48b   :  { %9672 = vmatpush1.bf16.msra.mxu0 %v12325_v12  ;;  %6340 = vmatprep.subr.bf16.mxu1 %v14331_v16  ;;  %v12427_v12 = vcombine.low %v6527_v53, %v6531_v26  ;;  %v6492_v16 = vld [vmem:[#allocation10 + $0x368] sm:$0xff]  ;;  %v12542_v53 = vcombine.high %v6640_v20, %v6644_v61 }
 0x48c   :  { %9673 = vmatprep.subr.bf16.mxu0 %v12334_v15  ;;  %v6488_v15 = vld [vmem:[#allocation10 + $0x348] sm:$0xff] }
 0x48e   :  { %6341 = vmatpush1.bf16.msra.mxu1 %v14329_v28  ;;  %v12435_v28 = vcombine.low %v6535_v63, %v6539_v31 }
 0x48f   :  { %9674 = vmatpush1.bf16.msra.mxu0 %v12333_v24  ;;  %6342 = vmatprep.subr.bf16.mxu1 %v14334_v23  ;;  %v12381_v24 = vcombine.low %v6480_v11, %v6484_v6  ;;  %v12444_v23 = vcombine.high %v6543_v17, %v6547_v18 }
 0x490   :  { %9675 = vmatprep.subr.bf16.mxu0 %v12342_v25  ;;  %v12390_v25 = vcombine.high %v6488_v15, %v6492_v16 }
 0x492   :  { %6343 = vmatpush1.bf16.msra.mxu1 %v14332_v8  ;;  %v12389_v8 = vcombine.low %v6488_v15, %v6492_v16 }
 0x493   :  { %9676 = vmatpush1.bf16.msra.mxu0 %v12341_v39  ;;  %6344 = vmatprep.subr.bf16.mxu1 %v14337_v21  ;;  %v6555_v39 = vld [vmem:[#allocation10 + $0x560] sm:$0xff]  ;;  %v12398_v21 = vcombine.high %v6496_v27, %v6500_v29 }
 0x494   :  { %9677 = vmatprep.subr.bf16.mxu0 %v12350_v48  ;;  %v12443_v48 = vcombine.low %v6543_v17, %v6547_v18  ;;  %v12452_v10 = vcombine.high %v6551_v38, %v6555_v39 }
 0x496   :  { %6345 = vmatpush1.bf16.msra.mxu1 %v14335_v56  ;;  %v12451_v56 = vcombine.low %v6551_v38, %v6555_v39 }
 0x497   :  { %9678 = vmatpush1.bf16.msra.mxu0 %v12349_v47  ;;  %9538 = vmatprep.subr.bf16.mxu1 %v12412_v58  ;;  %v12397_v47 = vcombine.low %v6496_v27, %v6500_v29  ;;  %v12460_v58 = vcombine.high %v6559_v54, %v6563_v55 }
 0x498   :  { %9679 = vmatprep.subr.bf16.mxu0 %v12358_v34  ;;  %v12406_v34 = vcombine.high %v6504_v49, %v6508_v32 }
 0x499   :  { %6347 = vmatmul.mubr.bf16.vlgmr.msra.gmra.mrb[8].mxu1 %v15282_v14  ;;  %v12382_v14 = vcombine.high %v6480_v11, %v6484_v6  ;;  %v12541_v11 = vcombine.low %v6640_v20, %v6644_v61 }
 0x49a   :  { %9539 = vmatpush1.bf16.msra.mxu1 %v12411_v0  ;;  %9570 = vmatprep.mubr.bf16.mxu1 %v15350_v1 }
 0x49b   :  { %9680 = vmatpush1.bf16.msra.mxu0 %v12357_v46  ;;  %9540 = vmatprep.subr.bf16.mxu1 %v12420_v33  ;;  %v6571_v46 = vld [vmem:[#allocation10 + $0x5e0] sm:$0xff]  ;;  %v12459_v33 = vcombine.low %v6559_v54, %v6563_v55 }
 0x49c   :  { %9681 = vmatprep.subr.bf16.mxu0 %v12366_v60  ;;  %v12468_v26 = vcombine.high %v6567_v62, %v6571_v46  ;;  %v12467_v6 = vcombine.low %v6567_v62, %v6571_v46 }
 0x49e   :  { %9541 = vmatpush1.bf16.msra.mxu1 %v12419_v3  ;;  %v6652_v3 = vld [vmem:[#allocation10 + $0x868] sm:$0xff] }
 0x49f   :  { %9682 = vmatpush1.bf16.msra.mxu0 %v12365_v2  ;;  %9542 = vmatprep.subr.bf16.mxu1 %v12428_v5  ;;  %v6648_v2 = vld [vmem:[#allocation10 + $0x848] sm:$0xff]  ;;  %v6579_v5 = vld [vmem:[#allocation10 + $0x620] sm:$0xff] }
 0x4a0   :  { %9683 = vmatprep.subr.bf16.mxu0 %v12374_v4  ;;  %v6575_v4 = vld [vmem:[#allocation10 + $0x600] sm:$0xff]  ;;  %v12550_v63 = vcombine.high %v6648_v2, %v6652_v3  ;;  %v12549_v15 = vcombine.low %v6648_v2, %v6652_v3  ;;  %v15361_v3 = vsub.s32 2, %v15246_v59 }
 0x4a1   :  { %v12476_v31 = vcombine.high %v6575_v4, %v6579_v5  ;;  %v12475_v16 = vcombine.low %v6575_v4, %v6579_v5  ;;  %v6696_v5 = vld [vmem:[#allocation10 + $0x9c8] sm:$0xff] }
 0x4a2   :  { %9543 = vmatpush1.bf16.msra.mxu1 %v12427_v12  ;;  %v6660_v12 = vld [vmem:[#allocation10 + $0x8a8] sm:$0xff] }
 0x4a3   :  { %9684 = vmatpush1.bf16.msra.mxu0 %v12373_v9  ;;  %9544 = vmatprep.subr.bf16.mxu1 %v12436_v13  ;;  %v6656_v9 = vld [vmem:[#allocation10 + $0x888] sm:$0xff]  ;;  %v6587_v13 = vld [vmem:[#allocation10 + $0x660] sm:$0xff] }
 0x4a4   :  { %9685 = vmatprep.subr.bf16.mxu0 %v12382_v14  ;;  %v6583_v14 = vld [vmem:[#allocation10 + $0x640] sm:$0xff]  ;;  %v12558_v17 = vcombine.high %v6656_v9, %v6660_v12  ;;  %v12557_v27 = vcombine.low %v6656_v9, %v6660_v12 }
 0x4a5   :  { %v12484_v18 = vcombine.high %v6583_v14, %v6587_v13  ;;  %v12483_v29 = vcombine.low %v6583_v14, %v6587_v13  ;;  %v754_v14 = vrot.slane %v15341_v37, %v15361_v3  ;;  %v6771_v37 = vld [vmem:[#allocation10 + $0xc20] sm:$0xff] }
 0x4a6   :  { %9545 = vmatpush1.bf16.msra.mxu1 %v12435_v28  ;;  %v6668_v28 = vld [vmem:[#allocation10 + $0x8e8] sm:$0xff] }
 0x4a7   :  { %9686 = vmatpush1.bf16.msra.mxu0 %v12381_v24  ;;  %9546 = vmatprep.subr.bf16.mxu1 %v12444_v23  ;;  %v6664_v24 = vld [vmem:[#allocation10 + $0x8c8] sm:$0xff]  ;;  %v6595_v23 = vld [vmem:[#allocation10 + $0x6a0] sm:$0xff] }
 0x4a8   :  { %9687 = vmatprep.subr.bf16.mxu0 %v12390_v25  ;;  %v6591_v25 = vld [vmem:[#allocation10 + $0x680] sm:$0xff]  ;;  %v12566_v38 = vcombine.high %v6664_v24, %v6668_v28  ;;  %v12565_v49 = vcombine.low %v6664_v24, %v6668_v28 }
 0x4a9   :  { %v12492_v39 = vcombine.high %v6591_v25, %v6595_v23  ;;  %v12491_v32 = vcombine.low %v6591_v25, %v6595_v23  ;;  %v12966_v23 = vadd.f32 %v15312_v50, %v754_v14  ;;  %v6779_v50 = vld [vmem:[#allocation10 + $0xc60] sm:$0xff] }
 0x4aa   :  { %9547 = vmatpush1.bf16.msra.mxu1 %v12443_v48  ;;  %v6676_v48 = vld [vmem:[#allocation10 + $0x928] sm:$0xff]  ;;  %v6799_v14 = vld [vmem:[#allocation10 + $0xd00] sm:$0xff] }
 0x4ab   :  { %9688 = vmatpush1.bf16.msra.mxu0 %v12389_v8  ;;  %9548 = vmatprep.subr.bf16.mxu1 %v12452_v10  ;;  %v6672_v8 = vld [vmem:[#allocation10 + $0x908] sm:$0xff]  ;;  %v6603_v10 = vld [vmem:[#allocation10 + $0x6e0] sm:$0xff] }
 0x4ac   :  { %9689 = vmatprep.subr.bf16.mxu0 %v12398_v21  ;;  %v6599_v21 = vld [vmem:[#allocation10 + $0x6c0] sm:$0xff]  ;;  %v12574_v54 = vcombine.high %v6672_v8, %v6676_v48  ;;  %v12573_v20 = vcombine.low %v6672_v8, %v6676_v48 }
 0x4ad   :  { %v15354_v43 = vpop.f32.mrb[8].mxu0  ;;  %v12500_v55 = vcombine.high %v6599_v21, %v6603_v10  ;;  %v12499_v61 = vcombine.low %v6599_v21, %v6603_v10  ;;  %v15366_v10 = vmax.f32 %v12966_v23, 0.0  ;;  %v6811_v23 = vld [vmem:[#allocation10 + $0xd60] sm:$0xff] }
 0x4ae   :  { %v15356_v0 = vpop.f32.mrb[9].mxu0  ;;  %9549 = vmatpush1.bf16.msra.mxu1 %v12451_v56  ;;  %v6684_v56 = vld [vmem:[#allocation10 + $0x968] sm:$0xff] }
 0x4af   :  { %9690 = vmatpush1.bf16.msra.mxu0 %v12397_v47  ;;  %v9535_v60 = vpop.f32.mrb[10].mxu0  ;;  %9550 = vmatprep.subr.bf16.mxu1 %v12460_v58  ;;  %v6680_v47 = vld [vmem:[#allocation10 + $0x948] sm:$0xff]  ;;  %v6611_v58 = vld [vmem:[#allocation10 + $0x720] sm:$0xff] }
 0x4b0   :  { %v9536_v19 = vpop.f32.mrb[11].mxu0  ;;  %9691 = vmatprep.subr.bf16.mxu0 %v12406_v34  ;;  %v6607_v34 = vld [vmem:[#allocation10 + $0x700] sm:$0xff]  ;;  %v12582_v62 = vcombine.high %v6680_v47, %v6684_v56  ;;  %v6688_v60 = vld [vmem:[#allocation10 + $0x988] sm:$0xff] }
 0x4b1   :  { %v12508_v46 = vcombine.high %v6607_v34, %v6611_v58  ;;  %v6619_v19 = vld [vmem:[#allocation10 + $0x760] sm:$0xff] }
 0x4b2   :  { %9551 = vmatpush1.bf16.msra.mxu1 %v12459_v33  ;;  %v6615_v33 = vld [vmem:[#allocation10 + $0x740] sm:$0xff] }
 0x4b3   :  { %9692 = vmatpush1.bf16.msra.mxu0 %v12405_v30  ;;  %9552 = vmatprep.subr.bf16.mxu1 %v12468_v26  ;;  %v6692_v30 = vld [vmem:[#allocation10 + $0x9a8] sm:$0xff]  ;;  %v12507_v26 = vcombine.low %v6607_v34, %v6611_v58  ;;  %v12516_v4 = vcombine.high %v6615_v33, %v6619_v19  ;;  %v12515_v9 = vcombine.low %v6615_v33, %v6619_v19 }
 0x4b4   :  { %9743 = vmatprep.subr.bf16.mxu0 %v12542_v53  ;;  %v12581_v53 = vcombine.low %v6680_v47, %v6684_v56  ;;  %v12590_v2 = vcombine.high %v6688_v60, %v6692_v30  ;;  %v15370_v58 = vpack.c.bf16 %v15366_v10, %v15366_v10 }
 0x4b6   :  { %9694 = vmatmul.mubr.bf16.vlgmr.msra.gmra.mrb[16].mxu0 %v15297_v44  ;;  %9553 = vmatpush1.bf16.msra.mxu1 %v12467_v6  ;;  %v6623_v6 = vld [vmem:[#allocation10 + $0x780] sm:$0xff] }
 0x4b7   :  { %9744 = vmatpush1.bf16.msra.mxu0 %v12541_v11  ;;  %9775 = vmatprep.mubr.bf16.mxu0 %v15326_v36  ;;  %v6700_v11 = vld [vmem:[#allocation10 + $0x9e8] sm:$0xff] }
 0x4b8   :  { %9745 = vmatprep.subr.bf16.mxu0 %v12550_v63  ;;  %9554 = vmatprep.subr.bf16.mxu1 %v12476_v31  ;;  %v6627_v63 = vld [vmem:[#allocation10 + $0x7a0] sm:$0xff]  ;;  %v12589_v31 = vcombine.low %v6688_v60, %v6692_v30  ;;  %v12598_v12 = vcombine.high %v6696_v5, %v6700_v11  ;;  %v12597_v24 = vcombine.low %v6696_v5, %v6700_v11 }
 0x4b9   :  { %v12524_v13 = vcombine.high %v6623_v6, %v6627_v63  ;;  %v12523_v28 = vcombine.low %v6623_v6, %v6627_v63  ;;  %v6787_v60 = vld [vmem:[#allocation10 + $0xca0] sm:$0xff] }
 0x4ba   :  { %9555 = vmatpush1.bf16.msra.mxu1 %v12475_v16  ;;  %v6708_v16 = vld [vmem:[#allocation10 + $0xa28] sm:$0xff]  ;;  %v6795_v5 = vld [vmem:[#allocation10 + $0xce0] sm:$0xff] }
 0x4bb   :  { %9746 = vmatpush1.bf16.msra.mxu0 %v12549_v15  ;;  %9556 = vmatprep.subr.bf16.mxu1 %v12484_v18  ;;  %v6704_v15 = vld [vmem:[#allocation10 + $0xa08] sm:$0xff]  ;;  %v6635_v18 = vld [vmem:[#allocation10 + $0x7e0] sm:$0xff] }
 0x4bc   :  { %9747 = vmatprep.subr.bf16.mxu0 %v12558_v17  ;;  %v6631_v17 = vld [vmem:[#allocation10 + $0x7c0] sm:$0xff]  ;;  %v12606_v25 = vcombine.high %v6704_v15, %v6708_v16  ;;  %v12605_v8 = vcombine.low %v6704_v15, %v6708_v16 }
 0x4bd   :  { %v12531_v48 = vcombine.low %v6631_v17, %v6635_v18 }
 0x4be   :  { %9557 = vmatpush1.bf16.msra.mxu1 %v12483_v29  ;;  %v6712_v29 = vld [vmem:[#allocation10 + $0xa48] sm:$0xff] }
 0x4bf   :  { %9748 = vmatpush1.bf16.msra.mxu0 %v12557_v27  ;;  %9558 = vmatprep.subr.bf16.mxu1 %v12492_v39  ;;  %v12532_v27 = vcombine.high %v6631_v17, %v6635_v18  ;;  %v6767_v39 = vld [vmem:[#allocation10 + $0xc00] sm:$0xff]  ;;  %v6752_v18 = vld [vmem:[#allocation10 + $0xb88] sm:$0xff] }
 0x4c0   :  { %9749 = vmatprep.subr.bf16.mxu0 %v12566_v38  ;;  %v6716_v38 = vld [vmem:[#allocation10 + $0xa68] sm:$0xff]  ;;  %v12667_v34 = vcombine.low %v6767_v39, %v6771_v37 }
 0x4c1   :  { %v12614_v21 = vcombine.high %v6712_v29, %v6716_v38  ;;  %v12613_v47 = vcombine.low %v6712_v29, %v6716_v38 }
 0x4c2   :  { %9559 = vmatpush1.bf16.msra.mxu1 %v12491_v32  ;;  %v6724_v32 = vld [vmem:[#allocation10 + $0xaa8] sm:$0xff] }
 0x4c3   :  { %9750 = vmatpush1.bf16.msra.mxu0 %v12565_v49  ;;  %9560 = vmatprep.subr.bf16.mxu1 %v12500_v55  ;;  %v6720_v49 = vld [vmem:[#allocation10 + $0xa88] sm:$0xff]  ;;  %v6775_v55 = vld [vmem:[#allocation10 + $0xc40] sm:$0xff] }
 0x4c4   :  { %9751 = vmatprep.subr.bf16.mxu0 %v12574_v54  ;;  %v12668_v54 = vcombine.high %v6767_v39, %v6771_v37  ;;  %v12622_v56 = vcombine.high %v6720_v49, %v6724_v32  ;;  %v12621_v30 = vcombine.low %v6720_v49, %v6724_v32  ;;  %v12675_v19 = vcombine.low %v6775_v55, %v6779_v50  ;;  %v6760_v39 = vld [vmem:[#allocation10 + $0xbc8] sm:$0xff] }
 0x4c5   :  { %v6764_v37 = vld [vmem:[#allocation10 + $0xbe8] sm:$0xff] }
 0x4c6   :  { %9561 = vmatpush1.bf16.msra.mxu1 %v12499_v61  ;;  %v6732_v61 = vld [vmem:[#allocation10 + $0xae8] sm:$0xff]  ;;  %v12662_v32 = vcombine.high %v6760_v39, %v6764_v37 }
 0x4c7   :  { %9752 = vmatpush1.bf16.msra.mxu0 %v12573_v20  ;;  %9562 = vmatprep.subr.bf16.mxu1 %v12508_v46  ;;  %v6728_v20 = vld [vmem:[#allocation10 + $0xac8] sm:$0xff]  ;;  %v6783_v46 = vld [vmem:[#allocation10 + $0xc80] sm:$0xff] }
 0x4c8   :  { %9753 = vmatprep.subr.bf16.mxu0 %v12582_v62  ;;  %v12676_v62 = vcombine.high %v6775_v55, %v6779_v50  ;;  %v12630_v33 = vcombine.high %v6728_v20, %v6732_v61  ;;  %v12629_v11 = vcombine.low %v6728_v20, %v6732_v61  ;;  %v12683_v63 = vcombine.low %v6783_v46, %v6787_v60  ;;  %v6385_v55 = vld [vmem:[#allocation10 + $0x10] sm:$0xff] }
 0x4c9   :  { %v6389_v50 = vld [vmem:[#allocation10 + $0x30] sm:$0xff]  ;;  %v12661_v20 = vcombine.low %v6760_v39, %v6764_v37  ;;  %v6855_v37 = vld [vmem:[#allocation10 + $0xec0] sm:$0xff] }
 0x4ca   :  { %9563 = vmatpush1.bf16.msra.mxu1 %v12507_v26  ;;  %v6740_v26 = vld [vmem:[#allocation10 + $0xb28] sm:$0xff]  ;;  %v12288_v61 = vcombine.high %v6385_v55, %v6389_v50 }
 0x4cb   :  { %9754 = vmatpush1.bf16.msra.mxu0 %v12581_v53  ;;  %9564 = vmatprep.subr.bf16.mxu1 %v12516_v4  ;;  %v6736_v53 = vld [vmem:[#allocation10 + $0xb08] sm:$0xff]  ;;  %v6791_v4 = vld [vmem:[#allocation10 + $0xcc0] sm:$0xff] }
 0x4cc   :  { %9755 = vmatprep.subr.bf16.mxu0 %v12590_v2  ;;  %v12684_v2 = vcombine.high %v6783_v46, %v6787_v60  ;;  %v12638_v6 = vcombine.high %v6736_v53, %v6740_v26  ;;  %v12637_v15 = vcombine.low %v6736_v53, %v6740_v26  ;;  %v12691_v17 = vcombine.low %v6791_v4, %v6795_v5  ;;  %v6393_v46 = vld [vmem:[#allocation10 + $0x50] sm:$0xff]  ;;  %v15373_v26 = vld [vmem:[#allocation10 + $0x408] sm:$0xff] }
 0x4cd   :  { %v6397_v60 = vld [vmem:[#allocation10 + $0x70] sm:$0xff]  ;;  %v12287_v53 = vcombine.low %v6385_v55, %v6389_v50  ;;  %v6863_v50 = vld [vmem:[#allocation10 + $0xf00] sm:$0xff] }
 0x4ce   :  { %9565 = vmatpush1.bf16.msra.mxu1 %v12515_v9  ;;  %v6748_v9 = vld [vmem:[#allocation10 + $0xb68] sm:$0xff] }
 0x4cf   :  { %9756 = vmatpush1.bf16.msra.mxu0 %v12589_v31  ;;  %9566 = vmatprep.subr.bf16.mxu1 %v12524_v13  ;;  %v6744_v31 = vld [vmem:[#allocation10 + $0xb48] sm:$0xff]  ;;  %v6803_v13 = vld [vmem:[#allocation10 + $0xd20] sm:$0xff] }
 0x4d0   :  { %9757 = vmatprep.subr.bf16.mxu0 %v12598_v12  ;;  %v12692_v12 = vcombine.high %v6791_v4, %v6795_v5  ;;  %v12646_v16 = vcombine.high %v6744_v31, %v6748_v9  ;;  %v12699_v38 = vcombine.low %v6799_v14, %v6803_v13  ;;  %v12296_v4 = vcombine.high %v6393_v46, %v6397_v60 }
 0x4d2   :  { %9567 = vmatpush1.bf16.msra.mxu1 %v12523_v28  ;;  %v12700_v28 = vcombine.high %v6799_v14, %v6803_v13  ;;  %v12295_v14 = vcombine.low %v6393_v46, %v6397_v60  ;;  %v6871_v60 = vld [vmem:[#allocation10 + $0xf40] sm:$0xff] }
 0x4d3   :  { %9758 = vmatpush1.bf16.msra.mxu0 %v12597_v24  ;;  %9568 = vmatprep.subr.bf16.mxu1 %v12532_v27  ;;  %v6756_v24 = vld [vmem:[#allocation10 + $0xba8] sm:$0xff]  ;;  %v12645_v27 = vcombine.low %v6744_v31, %v6748_v9  ;;  %v6839_v9 = vld [vmem:[#allocation10 + $0xe40] sm:$0xff] }
 0x4d4   :  { %9759 = vmatprep.subr.bf16.mxu0 %v12606_v25  ;;  %v6807_v25 = vld [vmem:[#allocation10 + $0xd40] sm:$0xff]  ;;  %v12654_v29 = vcombine.high %v6752_v18, %v6756_v24  ;;  %v12653_v49 = vcombine.low %v6752_v18, %v6756_v24 }
 0x4d5   :  { %v6847_v24 = vld [vmem:[#allocation10 + $0xe80] sm:$0xff] }
 0x4d6   :  { %9569 = vmatpush1.bf16.msra.mxu1 %v12531_v48  ;;  %v6815_v48 = vld [vmem:[#allocation10 + $0xd80] sm:$0xff] }
 0x4d7   :  { %9760 = vmatpush1.bf16.msra.mxu0 %v12605_v8  ;;  %9620 = vmatprep.subr.bf16.mxu1 %v12668_v54  ;;  %v12708_v8 = vcombine.high %v6807_v25, %v6811_v23  ;;  %v12707_v54 = vcombine.low %v6807_v25, %v6811_v23 }
 0x4d8   :  { %9761 = vmatprep.subr.bf16.mxu0 %v12614_v21  ;;  %v6819_v21 = vld [vmem:[#allocation10 + $0xda0] sm:$0xff] }
 0x4d9   :  { %9571 = vmatmul.mubr.bf16.vlgmr.msra.gmra.mrb[12].mxu1 %v15370_v58 }
 0x4da   :  { %9621 = vmatpush1.bf16.msra.mxu1 %v12667_v34  ;;  %v6827_v34 = vld [vmem:[#allocation10 + $0xde0] sm:$0xff] }
 0x4db   :  { %9762 = vmatpush1.bf16.msra.mxu0 %v12613_v47  ;;  %9622 = vmatprep.subr.bf16.mxu1 %v12676_v62  ;;  %v12716_v47 = vcombine.high %v6815_v48, %v6819_v21  ;;  %v12715_v62 = vcombine.low %v6815_v48, %v6819_v21 }
 0x4dc   :  { %9763 = vmatprep.subr.bf16.mxu0 %v12622_v56  ;;  %v6823_v56 = vld [vmem:[#allocation10 + $0xdc0] sm:$0xff] }
 0x4dd   :  { %v12723_v5 = vcombine.low %v6823_v56, %v6827_v34 }
 0x4de   :  { %9623 = vmatpush1.bf16.msra.mxu1 %v12675_v19  ;;  %v6835_v19 = vld [vmem:[#allocation10 + $0xe20] sm:$0xff] }
 0x4df   :  { %9764 = vmatpush1.bf16.msra.mxu0 %v12621_v30  ;;  %9624 = vmatprep.subr.bf16.mxu1 %v12684_v2  ;;  %v12724_v30 = vcombine.high %v6823_v56, %v6827_v34  ;;  %v15375_v2 = vld [vmem:[#allocation10 + $0x428] sm:$0xff] }
 0x4e0   :  { %9765 = vmatprep.subr.bf16.mxu0 %v12630_v33  ;;  %v6831_v33 = vld [vmem:[#allocation10 + $0xe00] sm:$0xff]  ;;  %v12413_v31 = vcombine.low %v15373_v26, %v15375_v2 }
 0x4e2   :  { %9625 = vmatpush1.bf16.msra.mxu1 %v12683_v63  ;;  %v12732_v63 = vcombine.high %v6831_v33, %v6835_v19 }
 0x4e3   :  { %9766 = vmatpush1.bf16.msra.mxu0 %v12629_v11  ;;  %9626 = vmatprep.subr.bf16.mxu1 %v12692_v12  ;;  %v6401_v11 = vld [vmem:[#allocation10 + $0x90] sm:$0xff]  ;;  %v6843_v12 = vld [vmem:[#allocation10 + $0xe60] sm:$0xff] }
 0x4e4   :  { %9767 = vmatprep.subr.bf16.mxu0 %v12638_v6  ;;  %v6405_v6 = vld [vmem:[#allocation10 + $0xb0] sm:$0xff]  ;;  %v12740_v18 = vcombine.high %v6839_v9, %v6843_v12 }
 0x4e5   :  { %v12304_v13 = vcombine.high %v6401_v11, %v6405_v6  ;;  %v12303_v25 = vcombine.low %v6401_v11, %v6405_v6  ;;  %v6879_v6 = vld [vmem:[#allocation10 + $0xf80] sm:$0xff] }
 0x4e6   :  { %9627 = vmatpush1.bf16.msra.mxu1 %v12691_v17  ;;  %v6413_v17 = vld [vmem:[#allocation10 + $0xf0] sm:$0xff] }
 0x4e7   :  { %9768 = vmatpush1.bf16.msra.mxu0 %v12637_v15  ;;  %9628 = vmatprep.subr.bf16.mxu1 %v12700_v28  ;;  %v12731_v15 = vcombine.low %v6831_v33, %v6835_v19  ;;  %v6851_v28 = vld [vmem:[#allocation10 + $0xea0] sm:$0xff] }
 0x4e8   :  { %9769 = vmatprep.subr.bf16.mxu0 %v12646_v16  ;;  %v6409_v16 = vld [vmem:[#allocation10 + $0xd0] sm:$0xff]  ;;  %v12748_v39 = vcombine.high %v6847_v24, %v6851_v28 }
 0x4e9   :  { %v12312_v23 = vcombine.high %v6409_v16, %v6413_v17  ;;  %v12311_v48 = vcombine.low %v6409_v16, %v6413_v17  ;;  %v6887_v17 = vld [vmem:[#allocation10 + $0xfc0] sm:$0xff] }
 0x4ea   :  { %9629 = vmatpush1.bf16.msra.mxu1 %v12699_v38  ;;  %v6421_v38 = vld [vmem:[#allocation10 + $0x130] sm:$0xff] }
 0x4eb   :  { %9770 = vmatpush1.bf16.msra.mxu0 %v12645_v27  ;;  %9630 = vmatprep.subr.bf16.mxu1 %v12708_v8  ;;  %v12739_v27 = vcombine.low %v6839_v9, %v6843_v12  ;;  %v6859_v8 = vld [vmem:[#allocation10 + $0xee0] sm:$0xff] }
 0x4ec   :  { %9771 = vmatprep.subr.bf16.mxu0 %v12654_v29  ;;  %v6417_v29 = vld [vmem:[#allocation10 + $0x110] sm:$0xff]  ;;  %v12756_v55 = vcombine.high %v6855_v37, %v6859_v8 }
 0x4ed   :  { %v12320_v21 = vcombine.high %v6417_v29, %v6421_v38  ;;  %v12319_v56 = vcombine.low %v6417_v29, %v6421_v38 }
 0x4ee   :  { %9631 = vmatpush1.bf16.msra.mxu1 %v12707_v54  ;;  %v6429_v54 = vld [vmem:[#allocation10 + $0x170] sm:$0xff] }
 0x4ef   :  { %9772 = vmatpush1.bf16.msra.mxu0 %v12653_v49  ;;  %9632 = vmatprep.subr.bf16.mxu1 %v12716_v47  ;;  %v12747_v49 = vcombine.low %v6847_v24, %v6851_v28  ;;  %v6867_v47 = vld [vmem:[#allocation10 + $0xf20] sm:$0xff] }
 0x4f0   :  { %9773 = vmatprep.subr.bf16.mxu0 %v12662_v32  ;;  %v6425_v32 = vld [vmem:[#allocation10 + $0x150] sm:$0xff]  ;;  %v12764_v46 = vcombine.high %v6863_v50, %v6867_v47 }
 0x4f1   :  { %v12328_v34 = vcombine.high %v6425_v32, %v6429_v54  ;;  %v12327_v33 = vcombine.low %v6425_v32, %v6429_v54  ;;  %v6473_v54 = vld [vmem:[#allocation10 + $0x2d0] sm:$0xff] }
 0x4f2   :  { %9633 = vmatpush1.bf16.msra.mxu1 %v12715_v62  ;;  %v6437_v62 = vld [vmem:[#allocation10 + $0x1b0] sm:$0xff] }
 0x4f3   :  { %9774 = vmatpush1.bf16.msra.mxu0 %v12661_v20  ;;  %9634 = vmatprep.subr.bf16.mxu1 %v12724_v30  ;;  %v12755_v20 = vcombine.low %v6855_v37, %v6859_v8  ;;  %v6875_v30 = vld [vmem:[#allocation10 + $0xf60] sm:$0xff]  ;;  %v6465_v8 = vld [vmem:[#allocation10 + $0x290] sm:$0xff] }
 0x4f4   :  { %9825 = vmatprep.subr.bf16.mxu0 %v12288_v61  ;;  %v6433_v61 = vld [vmem:[#allocation10 + $0x190] sm:$0xff]  ;;  %v12772_v11 = vcombine.high %v6871_v60, %v6875_v30 }
 0x4f5   :  { %v12336_v19 = vcombine.high %v6433_v61, %v6437_v62  ;;  %v12335_v9 = vcombine.low %v6433_v61, %v6437_v62  ;;  %v6489_v62 = vld [vmem:[#allocation10 + $0x350] sm:$0xff] }
 0x4f6   :  { %9776 = vmatmul.mubr.bf16.vlgmr.msra.gmra.mrb[20].mxu0 %v15330_v51  ;;  %9635 = vmatpush1.bf16.msra.mxu1 %v12723_v5  ;;  %v6445_v5 = vld [vmem:[#allocation10 + $0x1f0] sm:$0xff] }
 0x4f7   :  { %9826 = vmatpush1.bf16.msra.mxu0 %v12287_v53  ;;  %9857 = vmatprep.mubr.bf16.mxu0 %v15286_v57  ;;  %v12763_v53 = vcombine.low %v6863_v50, %v6867_v47 }
 0x4f8   :  { %9827 = vmatprep.subr.bf16.mxu0 %v12296_v4  ;;  %9636 = vmatprep.subr.bf16.mxu1 %v12732_v63  ;;  %v6441_v4 = vld [vmem:[#allocation10 + $0x1d0] sm:$0xff]  ;;  %v6883_v63 = vld [vmem:[#allocation10 + $0xfa0] sm:$0xff] }
 0x4f9   :  { %v12344_v12 = vcombine.high %v6441_v4, %v6445_v5  ;;  %v12780_v16 = vcombine.high %v6879_v6, %v6883_v63  ;;  %v12343_v24 = vcombine.low %v6441_v4, %v6445_v5  ;;  %v6505_v5 = vld [vmem:[#allocation10 + $0x3d0] sm:$0xff] }
 0x4fa   :  { %9637 = vmatpush1.bf16.msra.mxu1 %v12731_v15  ;;  %v6453_v15 = vld [vmem:[#allocation10 + $0x230] sm:$0xff] }
 0x4fb   :  { %9828 = vmatpush1.bf16.msra.mxu0 %v12295_v14  ;;  %9638 = vmatprep.subr.bf16.mxu1 %v12740_v18  ;;  %v12771_v14 = vcombine.low %v6871_v60, %v6875_v30  ;;  %v6891_v18 = vld [vmem:[#allocation10 + $0xfe0] sm:$0xff] }
 0x4fc   :  { %9829 = vmatprep.subr.bf16.mxu0 %v12304_v13  ;;  %v6449_v13 = vld [vmem:[#allocation10 + $0x210] sm:$0xff]  ;;  %v12788_v29 = vcombine.high %v6887_v17, %v6891_v18  ;;  %v12787_v37 = vcombine.low %v6887_v17, %v6891_v18 }
 0x4fd   :  { %v12352_v28 = vcombine.high %v6449_v13, %v6453_v15  ;;  %v12351_v38 = vcombine.low %v6449_v13, %v6453_v15  ;;  %v6649_v15 = vld [vmem:[#allocation10 + $0x850] sm:$0xff] }
 0x4fe   :  { %9639 = vmatpush1.bf16.msra.mxu1 %v12739_v27  ;;  %v6461_v27 = vld [vmem:[#allocation10 + $0x270] sm:$0xff] }
 0x4ff   :  { %9830 = vmatpush1.bf16.msra.mxu0 %v12303_v25  ;;  %9640 = vmatprep.subr.bf16.mxu1 %v12748_v39  ;;  %v12779_v25 = vcombine.low %v6879_v6, %v6883_v63 }
 0x500   :  { %9831 = vmatprep.subr.bf16.mxu0 %v12312_v23  ;;  %v6457_v23 = vld [vmem:[#allocation10 + $0x250] sm:$0xff] }
 0x501   :  { %v12360_v39 = vcombine.high %v6457_v23, %v6461_v27 }
 0x502   :  { %9641 = vmatpush1.bf16.msra.mxu1 %v12747_v49  ;;  %v12359_v49 = vcombine.low %v6457_v23, %v6461_v27  ;;  %v6665_v27 = vld [vmem:[#allocation10 + $0x8d0] sm:$0xff] }
 0x503   :  { %9832 = vmatpush1.bf16.msra.mxu0 %v12311_v48  ;;  %9642 = vmatprep.subr.bf16.mxu1 %v12756_v55  ;;  %v6469_v48 = vld [vmem:[#allocation10 + $0x2b0] sm:$0xff] }
 0x504   :  { %9833 = vmatprep.subr.bf16.mxu0 %v12320_v21  ;;  %v12414_v21 = vcombine.high %v15373_v26, %v15375_v2  ;;  %v12368_v32 = vcombine.high %v6465_v8, %v6469_v48  ;;  %v6477_v55 = vld [vmem:[#allocation10 + $0x2f0] sm:$0xff]  ;;  %v12367_v50 = vcombine.low %v6465_v8, %v6469_v48 }
 0x505   :  { %v12376_v47 = vcombine.high %v6473_v54, %v6477_v55  ;;  %v6677_v8 = vld [vmem:[#allocation10 + $0x930] sm:$0xff] }
 0x506   :  { %9643 = vmatpush1.bf16.msra.mxu1 %v12755_v20  ;;  %v12375_v20 = vcombine.low %v6473_v54, %v6477_v55 }
 0x507   :  { %9834 = vmatpush1.bf16.msra.mxu0 %v12319_v56  ;;  %9644 = vmatprep.subr.bf16.mxu1 %v12764_v46  ;;  %v6481_v56 = vld [vmem:[#allocation10 + $0x310] sm:$0xff] }
 0x508   :  { %9835 = vmatprep.subr.bf16.mxu0 %v12328_v34  ;;  %v6485_v34 = vld [vmem:[#allocation10 + $0x330] sm:$0xff] }
 0x509   :  { %v12384_v61 = vcombine.high %v6481_v56, %v6485_v34  ;;  %v6493_v46 = vld [vmem:[#allocation10 + $0x370] sm:$0xff]  ;;  %v12383_v60 = vcombine.low %v6481_v56, %v6485_v34 }
 0x50a   :  { %9645 = vmatpush1.bf16.msra.mxu1 %v12763_v53  ;;  %v12392_v30 = vcombine.high %v6489_v62, %v6493_v46  ;;  %v12391_v53 = vcombine.low %v6489_v62, %v6493_v46  ;;  %v6701_v62 = vld [vmem:[#allocation10 + $0x9f0] sm:$0xff] }
 0x50b   :  { %9836 = vmatpush1.bf16.msra.mxu0 %v12327_v33  ;;  %9646 = vmatprep.subr.bf16.mxu1 %v12772_v11  ;;  %v6497_v33 = vld [vmem:[#allocation10 + $0x390] sm:$0xff] }
 0x50c   :  { %9837 = vmatprep.subr.bf16.mxu0 %v12336_v19  ;;  %v6501_v19 = vld [vmem:[#allocation10 + $0x3b0] sm:$0xff] }
 0x50d   :  { %v12400_v4 = vcombine.high %v6497_v33, %v6501_v19  ;;  %v6509_v11 = vld [vmem:[#allocation10 + $0x3f0] sm:$0xff]  ;;  %v12399_v6 = vcombine.low %v6497_v33, %v6501_v19 }
 0x50e   :  { %9647 = vmatpush1.bf16.msra.mxu1 %v12771_v14  ;;  %v12408_v63 = vcombine.high %v6505_v5, %v6509_v11  ;;  %v12407_v14 = vcombine.low %v6505_v5, %v6509_v11 }
 0x50f   :  { %9838 = vmatpush1.bf16.msra.mxu0 %v12335_v9  ;;  %9648 = vmatprep.subr.bf16.mxu1 %v12780_v16  ;;  %v6641_v9 = vld [vmem:[#allocation10 + $0x810] sm:$0xff] }
 0x510   :  { %9839 = vmatprep.subr.bf16.mxu0 %v12344_v12  ;;  %v6645_v12 = vld [vmem:[#allocation10 + $0x830] sm:$0xff] }
 0x511   :  { %v12544_v13 = vcombine.high %v6641_v9, %v6645_v12  ;;  %v6653_v16 = vld [vmem:[#allocation10 + $0x870] sm:$0xff]  ;;  %v12543_v17 = vcombine.low %v6641_v9, %v6645_v12 }
 0x512   :  { %9649 = vmatpush1.bf16.msra.mxu1 %v12779_v25  ;;  %v12552_v18 = vcombine.high %v6649_v15, %v6653_v16  ;;  %v12551_v25 = vcombine.low %v6649_v15, %v6653_v16 }
 0x513   :  { %9840 = vmatpush1.bf16.msra.mxu0 %v12343_v24  ;;  %9650 = vmatprep.subr.bf16.mxu1 %v12788_v29  ;;  %v6657_v24 = vld [vmem:[#allocation10 + $0x890] sm:$0xff] }
 0x514   :  { %9841 = vmatprep.subr.bf16.mxu0 %v12352_v28  ;;  %v6661_v28 = vld [vmem:[#allocation10 + $0x8b0] sm:$0xff] }
 0x515   :  { %v12560_v23 = vcombine.high %v6657_v24, %v6661_v28  ;;  %v6669_v29 = vld [vmem:[#allocation10 + $0x8f0] sm:$0xff] }
 0x516   :  { %9651 = vmatpush1.bf16.msra.mxu1 %v12787_v37  ;;  %v6673_v37 = vld [vmem:[#allocation10 + $0x910] sm:$0xff]  ;;  %v12567_v48 = vcombine.low %v6665_v27, %v6669_v29 }
 0x517   :  { %9842 = vmatpush1.bf16.msra.mxu0 %v12351_v38  ;;  %9702 = vmatprep.subr.bf16.mxu1 %v12414_v21  ;;  %v12559_v38 = vcombine.low %v6657_v24, %v6661_v28  ;;  %v12576_v21 = vcombine.high %v6673_v37, %v6677_v8  ;;  %v12575_v54 = vcombine.low %v6673_v37, %v6677_v8 }
 0x518   :  { %9843 = vmatprep.subr.bf16.mxu0 %v12360_v39  ;;  %v12568_v39 = vcombine.high %v6665_v27, %v6669_v29 }
 0x51b   :  { %9844 = vmatpush1.bf16.msra.mxu0 %v12359_v49  ;;  %v6681_v49 = vld [vmem:[#allocation10 + $0x950] sm:$0xff] }
 0x51c   :  { %9845 = vmatprep.subr.bf16.mxu0 %v12368_v32  ;;  %v6685_v32 = vld [vmem:[#allocation10 + $0x970] sm:$0xff] }
 0x51d   :  { %v12584_v55 = vcombine.high %v6681_v49, %v6685_v32  ;;  %v12583_v56 = vcombine.low %v6681_v49, %v6685_v32 }
 0x51f   :  { %9846 = vmatpush1.bf16.msra.mxu0 %v12367_v50  ;;  %v6689_v50 = vld [vmem:[#allocation10 + $0x990] sm:$0xff] }
 0x520   :  { %9847 = vmatprep.subr.bf16.mxu0 %v12376_v47  ;;  %v6693_v47 = vld [vmem:[#allocation10 + $0x9b0] sm:$0xff] }
 0x521   :  { %v12592_v34 = vcombine.high %v6689_v50, %v6693_v47 }
 0x523   :  { %9848 = vmatpush1.bf16.msra.mxu0 %v12375_v20 }
 0x524   :  { %9849 = vmatprep.subr.bf16.mxu0 %v12384_v61  ;;  %v6697_v61 = vld [vmem:[#allocation10 + $0x9d0] sm:$0xff] }
 0x525   :  { %v12600_v19 = vcombine.high %v6697_v61, %v6701_v62  ;;  %v12599_v5 = vcombine.low %v6697_v61, %v6701_v62 }
 0x527   :  { %9850 = vmatpush1.bf16.msra.mxu0 %v12383_v60 }
 0x528   :  { %9851 = vmatprep.subr.bf16.mxu0 %v12392_v30  ;;  %v12591_v30 = vcombine.low %v6689_v50, %v6693_v47  ;;  %v14549_v50 = vld [vmem:[#allocation8] sm:$0xf] }
 0x529   :  { %v4336_v47 = vrot.slane %v14549_v50, %v15361_v3 }
 0x52b   :  { %9852 = vmatpush1.bf16.msra.mxu0 %v12391_v53  ;;  %v6705_v53 = vld [vmem:[#allocation10 + $0xa10] sm:$0xff] }
 0x52c   :  { %9853 = vmatprep.subr.bf16.mxu0 %v12400_v4  ;;  %v6709_v4 = vld [vmem:[#allocation10 + $0xa30] sm:$0xff] }
 0x52d   :  { %v12608_v11 = vcombine.high %v6705_v53, %v6709_v4  ;;  %v12607_v9 = vcombine.low %v6705_v53, %v6709_v4 }
 0x52f   :  { %9854 = vmatpush1.bf16.msra.mxu0 %v12399_v6  ;;  %v6713_v6 = vld [vmem:[#allocation10 + $0xa50] sm:$0xff] }
 0x530   :  { %9855 = vmatprep.subr.bf16.mxu0 %v12408_v63  ;;  %v6717_v63 = vld [vmem:[#allocation10 + $0xa70] sm:$0xff] }
 0x531   :  { %v12616_v12 = vcombine.high %v6713_v6, %v6717_v63  ;;  %v12615_v15 = vcombine.low %v6713_v6, %v6717_v63 }
 0x533   :  { %9856 = vmatpush1.bf16.msra.mxu0 %v12407_v14  ;;  %v6721_v14 = vld [vmem:[#allocation10 + $0xa90] sm:$0xff] }
 0x534   :  { %9907 = vmatprep.subr.bf16.mxu0 %v12544_v13  ;;  %v6725_v13 = vld [vmem:[#allocation10 + $0xab0] sm:$0xff] }
 0x535   :  { %v12624_v16 = vcombine.high %v6721_v14, %v6725_v13  ;;  %v12623_v24 = vcombine.low %v6721_v14, %v6725_v13  ;;  %v6524_v14 = vld [vmem:[#allocation10 + $0x468] sm:$0xff]  ;;  %v6394_v13 = vld [vmem:[#allocation10 + $0x58] sm:$0xff] }
 0x536   :  { %9858 = vmatmul.mubr.bf16.vlgmr.msra.gmra.mrb[24].mxu0 %v15297_v44 }
 0x537   :  { %9908 = vmatpush1.bf16.msra.mxu0 %v12543_v17  ;;  %9939 = vmatprep.mubr.bf16.mxu0 %v15326_v36  ;;  %v6729_v17 = vld [vmem:[#allocation10 + $0xad0] sm:$0xff] }
 0x538   :  { %9909 = vmatprep.subr.bf16.mxu0 %v12552_v18  ;;  %v6733_v18 = vld [vmem:[#allocation10 + $0xaf0] sm:$0xff] }
 0x539   :  { %v12632_v28 = vcombine.high %v6729_v17, %v6733_v18  ;;  %v12631_v27 = vcombine.low %v6729_v17, %v6733_v18 }
 0x53b   :  { %9910 = vmatpush1.bf16.msra.mxu0 %v12551_v25  ;;  %v6737_v25 = vld [vmem:[#allocation10 + $0xb10] sm:$0xff] }
 0x53c   :  { %9911 = vmatprep.subr.bf16.mxu0 %v12560_v23  ;;  %v6741_v23 = vld [vmem:[#allocation10 + $0xb30] sm:$0xff] }
 0x53d   :  { %v12640_v29 = vcombine.high %v6737_v25, %v6741_v23  ;;  %v12639_v37 = vcombine.low %v6737_v25, %v6741_v23  ;;  %v6532_v23 = vld [vmem:[#allocation10 + $0x4a8] sm:$0xff] }
 0x53f   :  { %9912 = vmatpush1.bf16.msra.mxu0 %v12559_v38  ;;  %v6745_v38 = vld [vmem:[#allocation10 + $0xb50] sm:$0xff] }
 0x540   :  { %9913 = vmatprep.subr.bf16.mxu0 %v12568_v39  ;;  %v6749_v39 = vld [vmem:[#allocation10 + $0xb70] sm:$0xff] }
 0x541   :  { %v12648_v8 = vcombine.high %v6745_v38, %v6749_v39  ;;  %v12647_v49 = vcombine.low %v6745_v38, %v6749_v39 }
 0x543   :  { %9914 = vmatpush1.bf16.msra.mxu0 %v12567_v48  ;;  %v6753_v48 = vld [vmem:[#allocation10 + $0xb90] sm:$0xff] }
 0x544   :  { %9915 = vmatprep.subr.bf16.mxu0 %v12576_v21  ;;  %v6757_v21 = vld [vmem:[#allocation10 + $0xbb0] sm:$0xff] }
 0x545   :  { %v12656_v32 = vcombine.high %v6753_v48, %v6757_v21 }
 0x547   :  { %9916 = vmatpush1.bf16.msra.mxu0 %v12575_v54  ;;  %v6761_v54 = vld [vmem:[#allocation10 + $0xbd0] sm:$0xff] }
 0x548   :  { %9917 = vmatprep.subr.bf16.mxu0 %v12584_v55  ;;  %v6765_v55 = vld [vmem:[#allocation10 + $0xbf0] sm:$0xff] }
 0x549   :  { %v15385_v20 = vpop.f32.mrb[12].mxu0  ;;  %v12664_v61 = vcombine.high %v6761_v54, %v6765_v55 }
 0x54a   :  { %v15387_v46 = vpop.f32.mrb[13].mxu0 }
 0x54b   :  { %9918 = vmatpush1.bf16.msra.mxu0 %v12583_v56  ;;  %v9617_v60 = vpop.f32.mrb[14].mxu0  ;;  %v12655_v56 = vcombine.low %v6753_v48, %v6757_v21  ;;  %v6536_v48 = vld [vmem:[#allocation10 + $0x4c8] sm:$0xff] }
 0x54c   :  { %v9618_v33 = vpop.f32.mrb[15].mxu0  ;;  %9919 = vmatprep.subr.bf16.mxu0 %v12592_v34  ;;  %v4340_v34 = vrot.slane %v14549_v50, %v15339_v22  ;;  %v6386_v60 = vld [vmem:[#allocation10 + $0x18] sm:$0xff]  ;;  %v6540_v21 = vld [vmem:[#allocation10 + $0x4e8] sm:$0xff] }
 0x54d   :  { %v12438_v2 = vcombine.high %v6536_v48, %v6540_v21  ;;  %v6418_v50 = vld [vmem:[#allocation10 + $0x118] sm:$0xff] }
 0x54f   :  { %9920 = vmatpush1.bf16.msra.mxu0 %v12591_v30  ;;  %v6390_v30 = vld [vmem:[#allocation10 + $0x38] sm:$0xff] }
 0x550   :  { %9921 = vmatprep.subr.bf16.mxu0 %v12600_v19  ;;  %v12290_v63 = vcombine.high %v6386_v60, %v6390_v30  ;;  %v12289_v17 = vcombine.low %v6386_v60, %v6390_v30  ;;  %v6552_v60 = vld [vmem:[#allocation10 + $0x548] sm:$0xff] }
 0x551   :  { %v6556_v30 = vld [vmem:[#allocation10 + $0x568] sm:$0xff] }
 0x553   :  { %9922 = vmatpush1.bf16.msra.mxu0 %v12599_v5  ;;  %v12663_v5 = vcombine.low %v6761_v54, %v6765_v55  ;;  %v6544_v55 = vld [vmem:[#allocation10 + $0x508] sm:$0xff] }
 0x554   :  { %9923 = vmatprep.subr.bf16.mxu0 %v12608_v11 }
 0x557   :  { %9924 = vmatpush1.bf16.msra.mxu0 %v12607_v9 }
 0x558   :  { %9925 = vmatprep.subr.bf16.mxu0 %v12616_v12  ;;  %v6520_v12 = vld [vmem:[#allocation10 + $0x448] sm:$0xff] }
 0x559   :  { %v12421_v38 = vcombine.low %v6520_v12, %v6524_v14 }
 0x55b   :  { %9926 = vmatpush1.bf16.msra.mxu0 %v12615_v15  ;;  %v6398_v15 = vld [vmem:[#allocation10 + $0x78] sm:$0xff] }
 0x55c   :  { %9927 = vmatprep.subr.bf16.mxu0 %v12624_v16  ;;  %v12298_v25 = vcombine.high %v6394_v13, %v6398_v15  ;;  %v12297_v39 = vcombine.low %v6394_v13, %v6398_v15  ;;  %v6438_v13 = vld [vmem:[#allocation10 + $0x1b8] sm:$0xff]  ;;  %v12453_v15 = vcombine.low %v6552_v60, %v6556_v30 }
 0x55f   :  { %9928 = vmatpush1.bf16.msra.mxu0 %v12623_v24  ;;  %v6528_v24 = vld [vmem:[#allocation10 + $0x488] sm:$0xff] }
 0x560   :  { %9929 = vmatprep.subr.bf16.mxu0 %v12632_v28  ;;  %v12422_v28 = vcombine.high %v6520_v12, %v6524_v14  ;;  %v12429_v54 = vcombine.low %v6528_v24, %v6532_v23  ;;  %v6564_v12 = vld [vmem:[#allocation10 + $0x5a8] sm:$0xff]  ;;  %v6434_v14 = vld [vmem:[#allocation10 + $0x198] sm:$0xff] }
 0x563   :  { %9930 = vmatpush1.bf16.msra.mxu0 %v12631_v27  ;;  %v6402_v27 = vld [vmem:[#allocation10 + $0x98] sm:$0xff] }
 0x564   :  { %9931 = vmatprep.subr.bf16.mxu0 %v12640_v29  ;;  %v6406_v29 = vld [vmem:[#allocation10 + $0xb8] sm:$0xff] }
 0x565   :  { %v12305_v26 = vcombine.low %v6402_v27, %v6406_v29 }
 0x567   :  { %9932 = vmatpush1.bf16.msra.mxu0 %v12639_v37  ;;  %v12430_v37 = vcombine.high %v6528_v24, %v6532_v23 }
 0x568   :  { %9933 = vmatprep.subr.bf16.mxu0 %v12648_v8  ;;  %v12306_v8 = vcombine.high %v6402_v27, %v6406_v29  ;;  %v6572_v27 = vld [vmem:[#allocation10 + $0x5e8] sm:$0xff]  ;;  %v6442_v29 = vld [vmem:[#allocation10 + $0x1d8] sm:$0xff] }
 0x56b   :  { %9934 = vmatpush1.bf16.msra.mxu0 %v12647_v49  ;;  %v6410_v49 = vld [vmem:[#allocation10 + $0xd8] sm:$0xff] }
 0x56c   :  { %9935 = vmatprep.subr.bf16.mxu0 %v12656_v32  ;;  %v6348_v62 = vpop.f32.mrb[8].mxu1  ;;  %v6414_v32 = vld [vmem:[#allocation10 + $0xf8] sm:$0xff] }
 0x56d   :  { %v12970_v33 = vadd.f32 %v6348_v62, %v4336_v47  ;;  %v6350_v19 = vpop.f32.mrb[9].mxu1  ;;  %v6422_v47 = vld [vmem:[#allocation10 + $0x138] sm:$0xff] }
 0x56e   :  { %v12971_v53 = vadd.f32 %v6350_v19, %v4340_v34  ;;  %v6352_v4 = vpop.f32.mrb[10].mxu1  ;;  %v12313_v34 = vcombine.low %v6410_v49, %v6414_v32  ;;  %v12322_v62 = vcombine.high %v6418_v50, %v6422_v47  ;;  %v6430_v19 = vld [vmem:[#allocation10 + $0x178] sm:$0xff] }
 0x56f   :  { %9936 = vmatpush1.bf16.msra.mxu0 %v12655_v56  ;;  %v15391_v11 = vmax.f32 %v12970_v33, 0.0  ;;  %v6353_v6 = vpop.f32.mrb[11].mxu1  ;;  %v12437_v56 = vcombine.low %v6536_v48, %v6540_v21  ;;  %v6426_v33 = vld [vmem:[#allocation10 + $0x158] sm:$0xff]  ;;  %v12321_v4 = vcombine.low %v6418_v50, %v6422_v47  ;;  %v12337_v48 = vcombine.low %v6434_v14, %v6438_v13 }
 0x570   :  { %9937 = vmatprep.subr.bf16.mxu0 %v12664_v61  ;;  %v15393_v9 = vmax.f32 %v12971_v53, 0.0  ;;  %v12330_v6 = vcombine.high %v6426_v33, %v6430_v19 }
 0x571   :  { %v15401_v18 = vpack.c.bf16 %v15391_v11, %v15391_v11 }
 0x572   :  { %v15397_v16 = vpack.c.bf16 %v15393_v9, %v15393_v9 }
 0x573   :  { %9938 = vmatpush1.bf16.msra.mxu0 %v12663_v5  ;;  %v12454_v5 = vcombine.high %v6552_v60, %v6556_v30 }
 0x574   :  { %9989 = vmatprep.subr.bf16.mxu0 %v12290_v63  ;;  %9652 = vmatprep.mubr.bf16.mxu1 %v15397_v16  ;;  %v6560_v63 = vld [vmem:[#allocation10 + $0x588] sm:$0xff] }
 0x575   :  { %9653 = vmatmul.mubr.bf16.vlgmr.msra.gmra.mrb[16].mxu1 %v15401_v18  ;;  %v12462_v24 = vcombine.high %v6560_v63, %v6564_v12 }
 0x576   :  { %9940 = vmatmul.mubr.bf16.vlgmr.msra.gmra.mrb[28].mxu0 %v15330_v51  ;;  %9703 = vmatpush1.bf16.msra.mxu1 %v12413_v31  ;;  %v12314_v31 = vcombine.high %v6410_v49, %v6414_v32 }
 0x577   :  { %9990 = vmatpush1.bf16.msra.mxu0 %v12289_v17  ;;  %10021 = vmatprep.mubr.bf16.mxu0 %v15286_v57  ;;  %v6548_v57 = vld [vmem:[#allocation10 + $0x528] sm:$0xff]  ;;  %v12329_v17 = vcombine.low %v6426_v33, %v6430_v19 }
 0x578   :  { %9734 = vmatprep.mubr.bf16.mxu1 %v15350_v1  ;;  %9704 = vmatprep.subr.bf16.mxu1 %v12422_v28  ;;  %v12446_v61 = vcombine.high %v6544_v55, %v6548_v57  ;;  %v12445_v53 = vcombine.low %v6544_v55, %v6548_v57  ;;  %v12338_v28 = vcombine.high %v6434_v14, %v6438_v13 }
 0x579   :  { %9991 = vmatprep.subr.bf16.mxu0 %v12298_v25  ;;  %v6568_v25 = vld [vmem:[#allocation10 + $0x5c8] sm:$0xff] }
 0x57a   :  { %9705 = vmatpush1.bf16.msra.mxu1 %v12421_v38  ;;  %v6446_v38 = vld [vmem:[#allocation10 + $0x1f8] sm:$0xff]  ;;  %v12470_v49 = vcombine.high %v6568_v25, %v6572_v27  ;;  %v12469_v55 = vcombine.low %v6568_v25, %v6572_v27 }
 0x57b   :  { %9992 = vmatpush1.bf16.msra.mxu0 %v12297_v39  ;;  %9706 = vmatprep.subr.bf16.mxu1 %v12430_v37  ;;  %v12346_v32 = vcombine.high %v6442_v29, %v6446_v38  ;;  %v12345_v57 = vcombine.low %v6442_v29, %v6446_v38 }
 0x57c   :  { %9993 = vmatprep.subr.bf16.mxu0 %v12306_v8  ;;  %v12461_v8 = vcombine.low %v6560_v63, %v6564_v12 }
 0x57e   :  { %9707 = vmatpush1.bf16.msra.mxu1 %v12429_v54  ;;  %v6576_v54 = vld [vmem:[#allocation10 + $0x608] sm:$0xff] }
 0x57f   :  { %9994 = vmatpush1.bf16.msra.mxu0 %v12305_v26  ;;  %9708 = vmatprep.subr.bf16.mxu1 %v12438_v2  ;;  %v6580_v26 = vld [vmem:[#allocation10 + $0x628] sm:$0xff]  ;;  %v6450_v2 = vld [vmem:[#allocation10 + $0x218] sm:$0xff] }
 0x580   :  { %9995 = vmatprep.subr.bf16.mxu0 %v12314_v31  ;;  %v6454_v31 = vld [vmem:[#allocation10 + $0x238] sm:$0xff]  ;;  %v12478_v50 = vcombine.high %v6576_v54, %v6580_v26  ;;  %v12477_v60 = vcombine.low %v6576_v54, %v6580_v26 }
 0x581   :  { %v12354_v47 = vcombine.high %v6450_v2, %v6454_v31  ;;  %v12353_v30 = vcombine.low %v6450_v2, %v6454_v31  ;;  %v6616_v2 = vld [vmem:[#allocation10 + $0x748] sm:$0xff] }
 0x582   :  { %9709 = vmatpush1.bf16.msra.mxu1 %v12437_v56  ;;  %v6584_v56 = vld [vmem:[#allocation10 + $0x648] sm:$0xff] }
 0x583   :  { %9996 = vmatpush1.bf16.msra.mxu0 %v12313_v34  ;;  %9710 = vmatprep.subr.bf16.mxu1 %v12446_v61  ;;  %v6588_v34 = vld [vmem:[#allocation10 + $0x668] sm:$0xff]  ;;  %v6458_v61 = vld [vmem:[#allocation10 + $0x258] sm:$0xff] }
 0x584   :  { %9997 = vmatprep.subr.bf16.mxu0 %v12322_v62  ;;  %v6462_v62 = vld [vmem:[#allocation10 + $0x278] sm:$0xff]  ;;  %v12486_v33 = vcombine.high %v6584_v56, %v6588_v34  ;;  %v12485_v63 = vcombine.low %v6584_v56, %v6588_v34  ;;  %v6620_v31 = vld [vmem:[#allocation10 + $0x768] sm:$0xff] }
 0x585   :  { %v12362_v19 = vcombine.high %v6458_v61, %v6462_v62  ;;  %v12361_v12 = vcombine.low %v6458_v61, %v6462_v62  ;;  %v12518_v56 = vcombine.high %v6616_v2, %v6620_v31  ;;  %v6624_v61 = vld [vmem:[#allocation10 + $0x788] sm:$0xff] }
 0x586   :  { %9711 = vmatpush1.bf16.msra.mxu1 %v12445_v53  ;;  %v6592_v53 = vld [vmem:[#allocation10 + $0x688] sm:$0xff] }
 0x587   :  { %9998 = vmatpush1.bf16.msra.mxu0 %v12321_v4  ;;  %9712 = vmatprep.subr.bf16.mxu1 %v12454_v5  ;;  %v6596_v4 = vld [vmem:[#allocation10 + $0x6a8] sm:$0xff]  ;;  %v6466_v5 = vld [vmem:[#allocation10 + $0x298] sm:$0xff] }
 0x588   :  { %9999 = vmatprep.subr.bf16.mxu0 %v12330_v6  ;;  %v6470_v6 = vld [vmem:[#allocation10 + $0x2b8] sm:$0xff]  ;;  %v12494_v14 = vcombine.high %v6592_v53, %v6596_v4  ;;  %v12493_v25 = vcombine.low %v6592_v53, %v6596_v4  ;;  %v6628_v62 = vld [vmem:[#allocation10 + $0x7a8] sm:$0xff] }
 0x589   :  { %v15411_v23 = vpop.f32.mrb[16].mxu0  ;;  %v12370_v13 = vcombine.high %v6466_v5, %v6470_v6  ;;  %v12369_v27 = vcombine.low %v6466_v5, %v6470_v6  ;;  %v12526_v4 = vcombine.high %v6624_v61, %v6628_v62  ;;  %v6632_v6 = vld [vmem:[#allocation10 + $0x7c8] sm:$0xff] }
 0x58a   :  { %v15413_v39 = vpop.f32.mrb[17].mxu0  ;;  %9713 = vmatpush1.bf16.msra.mxu1 %v12453_v15  ;;  %v6600_v15 = vld [vmem:[#allocation10 + $0x6c8] sm:$0xff] }
 0x58b   :  { %v9699_v37 = vpop.f32.mrb[18].mxu0  ;;  %10000 = vmatpush1.bf16.msra.mxu0 %v12329_v17  ;;  %9714 = vmatprep.subr.bf16.mxu1 %v12462_v24  ;;  %v6604_v17 = vld [vmem:[#allocation10 + $0x6e8] sm:$0xff]  ;;  %v6474_v24 = vld [vmem:[#allocation10 + $0x2d8] sm:$0xff] }
 0x58c   :  { %v9700_v21 = vpop.f32.mrb[19].mxu0  ;;  %10001 = vmatprep.subr.bf16.mxu0 %v12338_v28  ;;  %v6478_v28 = vld [vmem:[#allocation10 + $0x2f8] sm:$0xff]  ;;  %v12502_v29 = vcombine.high %v6600_v15, %v6604_v17  ;;  %v6608_v37 = vld [vmem:[#allocation10 + $0x708] sm:$0xff] }
 0x58d   :  { %v12378_v38 = vcombine.high %v6474_v24, %v6478_v28  ;;  %v6486_v21 = vld [vmem:[#allocation10 + $0x338] sm:$0xff] }
 0x58e   :  { %9715 = vmatpush1.bf16.msra.mxu1 %v12461_v8  ;;  %v6612_v8 = vld [vmem:[#allocation10 + $0x728] sm:$0xff] }
 0x58f   :  { %10002 = vmatpush1.bf16.msra.mxu0 %v12337_v48  ;;  %9716 = vmatprep.subr.bf16.mxu1 %v12470_v49  ;;  %v6482_v48 = vld [vmem:[#allocation10 + $0x318] sm:$0xff]  ;;  %v12501_v49 = vcombine.low %v6600_v15, %v6604_v17  ;;  %v12510_v54 = vcombine.high %v6608_v37, %v6612_v8  ;;  %v12525_v17 = vcombine.low %v6624_v61, %v6628_v62 }
 0x590   :  { %10003 = vmatprep.subr.bf16.mxu0 %v12346_v32  ;;  %v12377_v32 = vcombine.low %v6474_v24, %v6478_v28  ;;  %v12386_v26 = vcombine.high %v6482_v48, %v6486_v21 }
 0x592   :  { %9717 = vmatpush1.bf16.msra.mxu1 %v12469_v55  ;;  %v6490_v55 = vld [vmem:[#allocation10 + $0x358] sm:$0xff] }
 0x593   :  { %10004 = vmatpush1.bf16.msra.mxu0 %v12345_v57  ;;  %9718 = vmatprep.subr.bf16.mxu1 %v12478_v50  ;;  %v6494_v57 = vld [vmem:[#allocation10 + $0x378] sm:$0xff]  ;;  %v12509_v50 = vcombine.low %v6608_v37, %v6612_v8 }
 0x594   :  { %10005 = vmatprep.subr.bf16.mxu0 %v12354_v47  ;;  %v12385_v47 = vcombine.low %v6482_v48, %v6486_v21  ;;  %v12394_v34 = vcombine.high %v6490_v55, %v6494_v57  ;;  %v12393_v53 = vcombine.low %v6490_v55, %v6494_v57  ;;  %v6642_v37 = vld [vmem:[#allocation10 + $0x818] sm:$0xff] }
 0x595   :  { %v6646_v8 = vld [vmem:[#allocation10 + $0x838] sm:$0xff] }
 0x596   :  { %9719 = vmatpush1.bf16.msra.mxu1 %v12477_v60  ;;  %v6498_v60 = vld [vmem:[#allocation10 + $0x398] sm:$0xff]  ;;  %v12546_v57 = vcombine.high %v6642_v37, %v6646_v8 }
 0x597   :  { %10006 = vmatpush1.bf16.msra.mxu0 %v12353_v30  ;;  %9720 = vmatprep.subr.bf16.mxu1 %v12486_v33  ;;  %v6502_v30 = vld [vmem:[#allocation10 + $0x3b8] sm:$0xff]  ;;  %v15415_v33 = vld [vmem:[#allocation11] sm:$0xff] }
 0x598   :  { %10007 = vmatprep.subr.bf16.mxu0 %v12362_v19  ;;  %v12517_v19 = vcombine.low %v6616_v2, %v6620_v31  ;;  %v12402_v5 = vcombine.high %v6498_v60, %v6502_v30  ;;  %v6904_v15 = vrot.slane %v15415_v33, %v15252_v40  ;;  %v12401_v24 = vcombine.low %v6498_v60, %v6502_v30 }
 0x599   :  { %v12545_v60 = vcombine.low %v6642_v37, %v6646_v8 }
 0x59a   :  { %9721 = vmatpush1.bf16.msra.mxu1 %v12485_v63  ;;  %v6900_v63 = vrot.slane %v15415_v33, %v15249_v7  ;;  %v9534_v48 = vadd.f32 %v15356_v0, %v6904_v15  ;;  %v6650_v0 = vld [vmem:[#allocation10 + $0x858] sm:$0xff] }
 0x59b   :  { %10008 = vmatpush1.bf16.msra.mxu0 %v12361_v12  ;;  %9722 = vmatprep.subr.bf16.mxu1 %v12494_v14  ;;  %v6636_v12 = vld [vmem:[#allocation10 + $0x7e8] sm:$0xff]  ;;  %v6506_v14 = vld [vmem:[#allocation10 + $0x3d8] sm:$0xff] }
 0x59c   :  { %10009 = vmatprep.subr.bf16.mxu0 %v12370_v13  ;;  %v6510_v13 = vld [vmem:[#allocation10 + $0x3f8] sm:$0xff]  ;;  %v12534_v28 = vcombine.high %v6632_v6, %v6636_v12 }
 0x59d   :  { %v6666_v15 = vld [vmem:[#allocation10 + $0x8d8] sm:$0xff] }
 0x59e   :  { %9723 = vmatpush1.bf16.msra.mxu1 %v12493_v25  ;;  %v12410_v25 = vcombine.high %v6506_v14, %v6510_v13 }
 0x59f   :  { %10010 = vmatpush1.bf16.msra.mxu0 %v12369_v27  ;;  %9724 = vmatprep.subr.bf16.mxu1 %v12502_v29  ;;  %v6768_v27 = vld [vmem:[#allocation10 + $0xc08] sm:$0xff]  ;;  %v9532_v29 = vadd.f32 %v15354_v43, %v6900_v63 }
 0x5a0   :  { %10011 = vmatprep.subr.bf16.mxu0 %v12378_v38  ;;  %v6772_v38 = vld [vmem:[#allocation10 + $0xc28] sm:$0xff] }
 0x5a1   :  { %v12670_v55 = vcombine.high %v6768_v27, %v6772_v38  ;;  %v6776_v43 = vld [vmem:[#allocation10 + $0xc48] sm:$0xff]  ;;  %v12669_v62 = vcombine.low %v6768_v27, %v6772_v38  ;;  %v6678_v38 = vld [vmem:[#allocation10 + $0x938] sm:$0xff] }
 0x5a2   :  { %9725 = vmatpush1.bf16.msra.mxu1 %v12501_v49  ;;  %v6800_v27 = vld [vmem:[#allocation10 + $0xd08] sm:$0xff] }
 0x5a3   :  { %10012 = vmatpush1.bf16.msra.mxu0 %v12377_v32  ;;  %9726 = vmatprep.subr.bf16.mxu1 %v12510_v54  ;;  %v12533_v54 = vcombine.low %v6632_v6, %v6636_v12 }
 0x5a4   :  { %10013 = vmatprep.subr.bf16.mxu0 %v12386_v26  ;;  %v12409_v26 = vcombine.low %v6506_v14, %v6510_v13  ;;  %v6792_v14 = vld [vmem:[#allocation10 + $0xcc8] sm:$0xff] }
 0x5a5   :  { %v6796_v13 = vld [vmem:[#allocation10 + $0xce8] sm:$0xff] }
 0x5a6   :  { %9727 = vmatpush1.bf16.msra.mxu1 %v12509_v50  ;;  %v12693_v37 = vcombine.low %v6792_v14, %v6796_v13 }
 0x5a7   :  { %10014 = vmatpush1.bf16.msra.mxu0 %v12385_v47  ;;  %9728 = vmatprep.subr.bf16.mxu1 %v12518_v56  ;;  %v6780_v56 = vld [vmem:[#allocation10 + $0xc68] sm:$0xff] }
 0x5a8   :  { %10015 = vmatprep.subr.bf16.mxu0 %v12394_v34  ;;  %v6654_v34 = vld [vmem:[#allocation10 + $0x878] sm:$0xff]  ;;  %v12678_v30 = vcombine.high %v6776_v43, %v6780_v56 }
 0x5a9   :  { %v12553_v6 = vcombine.low %v6650_v0, %v6654_v34 }
 0x5aa   :  { %9729 = vmatpush1.bf16.msra.mxu1 %v12517_v19  ;;  %v12554_v19 = vcombine.high %v6650_v0, %v6654_v34  ;;  %v6694_v0 = vld [vmem:[#allocation10 + $0x9b8] sm:$0xff] }
 0x5ab   :  { %10016 = vmatpush1.bf16.msra.mxu0 %v12393_v53  ;;  %9730 = vmatprep.subr.bf16.mxu1 %v12526_v4  ;;  %v6784_v53 = vld [vmem:[#allocation10 + $0xc88] sm:$0xff] }
 0x5ac   :  { %10017 = vmatprep.subr.bf16.mxu0 %v12402_v5  ;;  %v9572_v21 = vpop.f32.mrb[12].mxu1  ;;  %v6788_v4 = vld [vmem:[#allocation10 + $0xca8] sm:$0xff]  ;;  %v6662_v5 = vld [vmem:[#allocation10 + $0x8b8] sm:$0xff] }
 0x5ad   :  { %v9573_v49 = vadd.f32 %v9572_v21, %v9532_v29  ;;  %v9574_v32 = vpop.f32.mrb[13].mxu1  ;;  %v12686_v63 = vcombine.high %v6784_v53, %v6788_v4  ;;  %v6804_v29 = vld [vmem:[#allocation10 + $0xd28] sm:$0xff] }
 0x5ae   :  { %9731 = vmatpush1.bf16.msra.mxu1 %v12525_v17  ;;  %v9575_v2 = vadd.f32 %v9574_v32, %v9534_v48  ;;  %v9576_v31 = vpop.f32.mrb[14].mxu1  ;;  %v6670_v17 = vld [vmem:[#allocation10 + $0x8f8] sm:$0xff]  ;;  %v12702_v48 = vcombine.high %v6800_v27, %v6804_v29  ;;  %v6812_v32 = vld [vmem:[#allocation10 + $0xd68] sm:$0xff] }
 0x5af   :  { %10018 = vmatpush1.bf16.msra.mxu0 %v12401_v24  ;;  %9732 = vmatprep.subr.bf16.mxu1 %v12534_v28  ;;  %v9577_v50 = vpop.f32.mrb[15].mxu1  ;;  %v15424_v47 = vadd.f32 %v15385_v20, %v9573_v49  ;;  %v6658_v20 = vld [vmem:[#allocation10 + $0x898] sm:$0xff]  ;;  %v12694_v28 = vcombine.high %v6792_v14, %v6796_v13  ;;  %v12569_v8 = vcombine.low %v6666_v15, %v6670_v17  ;;  %v6808_v49 = vld [vmem:[#allocation10 + $0xd48] sm:$0xff] }
 0x5b0   :  { %10019 = vmatprep.subr.bf16.mxu0 %v12410_v25  ;;  %v15427_v61 = vadd.f32 %v15387_v46, %v9575_v2  ;;  %v12677_v46 = vcombine.low %v6776_v43, %v6780_v56  ;;  %v12562_v12 = vcombine.high %v6658_v20, %v6662_v5  ;;  %v12561_v24 = vcombine.low %v6658_v20, %v6662_v5  ;;  %v6816_v50 = vld [vmem:[#allocation10 + $0xd88] sm:$0xff]  ;;  %v6690_v56 = vld [vmem:[#allocation10 + $0x998] sm:$0xff] }
 0x5b1   :  { %v12570_v25 = vcombine.high %v6666_v15, %v6670_v17  ;;  %v12701_v2 = vcombine.low %v6800_v27, %v6804_v29  ;;  %v6820_v43 = vld [vmem:[#allocation10 + $0xda8] sm:$0xff]  ;;  %v12709_v34 = vcombine.low %v6808_v49, %v6812_v32  ;;  %v6698_v5 = vld [vmem:[#allocation10 + $0x9d8] sm:$0xff]  ;;  %v12593_v14 = vcombine.low %v6690_v56, %v6694_v0 }
 0x5b2   :  { %9733 = vmatpush1.bf16.msra.mxu1 %v12533_v54  ;;  %v6682_v54 = vld [vmem:[#allocation10 + $0x958] sm:$0xff]  ;;  %v6832_v17 = vld [vmem:[#allocation10 + $0xe08] sm:$0xff] }
 0x5b3   :  { %10020 = vmatpush1.bf16.msra.mxu0 %v12409_v26  ;;  %9784 = vmatprep.subr.bf16.mxu1 %v12670_v55  ;;  %v6686_v26 = vld [vmem:[#allocation10 + $0x978] sm:$0xff]  ;;  %v12710_v55 = vcombine.high %v6808_v49, %v6812_v32 }
 0x5b4   :  { %10071 = vmatprep.subr.bf16.mxu0 %v12546_v57  ;;  %v12586_v57 = vcombine.high %v6682_v54, %v6686_v26 }
 0x5b5   :  { %9735 = vmatmul.mubr.bf16.vlgmr.msra.gmra.mrb[20].mxu1 %v15370_v58 }
 0x5b6   :  { %10022 = vmatmul.mubr.bf16.vlgmr.msra.gmra.mrb[32].mxu0 %v15297_v44  ;;  %9785 = vmatpush1.bf16.msra.mxu1 %v12669_v62  ;;  %v12685_v44 = vcombine.low %v6784_v53, %v6788_v4  ;;  %v12585_v62 = vcombine.low %v6682_v54, %v6686_v26  ;;  %v6824_v53 = vld [vmem:[#allocation10 + $0xdc8] sm:$0xff] }
 0x5b7   :  { %9816 = vmatprep.mubr.bf16.mxu1 %v15397_v16  ;;  %10072 = vmatpush1.bf16.msra.mxu0 %v12545_v60  ;;  %v12718_v60 = vcombine.high %v6816_v50, %v6820_v43  ;;  %v6828_v4 = vld [vmem:[#allocation10 + $0xde8] sm:$0xff] }
 0x5b8   :  { %10103 = vmatprep.mubr.bf16.mxu0 %v15326_v36  ;;  %9786 = vmatprep.subr.bf16.mxu1 %v12678_v30  ;;  %v6674_v36 = vld [vmem:[#allocation10 + $0x918] sm:$0xff]  ;;  %v12726_v13 = vcombine.high %v6824_v53, %v6828_v4  ;;  %v6848_v26 = vld [vmem:[#allocation10 + $0xe88] sm:$0xff] }
 0x5b9   :  { %10073 = vmatprep.subr.bf16.mxu0 %v12554_v19  ;;  %v12578_v21 = vcombine.high %v6674_v36, %v6678_v38  ;;  %v12577_v31 = vcombine.low %v6674_v36, %v6678_v38  ;;  %v12594_v19 = vcombine.high %v6690_v56, %v6694_v0  ;;  %v6840_v38 = vld [vmem:[#allocation10 + $0xe48] sm:$0xff] }
 0x5ba   :  { %9787 = vmatpush1.bf16.msra.mxu1 %v12677_v46  ;;  %v6702_v46 = vld [vmem:[#allocation10 + $0x9f8] sm:$0xff]  ;;  %v6856_v0 = vld [vmem:[#allocation10 + $0xec8] sm:$0xff] }
 0x5bb   :  { %10074 = vmatpush1.bf16.msra.mxu0 %v12553_v6  ;;  %9788 = vmatprep.subr.bf16.mxu1 %v12686_v63  ;;  %v12717_v63 = vcombine.low %v6816_v50, %v6820_v43  ;;  %v12602_v15 = vcombine.high %v6698_v5, %v6702_v46  ;;  %v12601_v27 = vcombine.low %v6698_v5, %v6702_v46  ;;  %v6864_v46 = vld [vmem:[#allocation10 + $0xf08] sm:$0xff] }
 0x5bc   :  { %10075 = vmatprep.subr.bf16.mxu0 %v12562_v12 }
 0x5be   :  { %9789 = vmatpush1.bf16.msra.mxu1 %v12685_v44  ;;  %v6836_v44 = vld [vmem:[#allocation10 + $0xe28] sm:$0xff] }
 0x5bf   :  { %10076 = vmatpush1.bf16.msra.mxu0 %v12561_v24  ;;  %9790 = vmatprep.subr.bf16.mxu1 %v12694_v28  ;;  %v6706_v24 = vld [vmem:[#allocation10 + $0xa18] sm:$0xff]  ;;  %v12734_v29 = vcombine.high %v6832_v17, %v6836_v44 }
 0x5c0   :  { %10077 = vmatprep.subr.bf16.mxu0 %v12570_v25  ;;  %v6710_v28 = vld [vmem:[#allocation10 + $0xa38] sm:$0xff]  ;;  %v12725_v25 = vcombine.low %v6824_v53, %v6828_v4 }
 0x5c1   :  { %v12610_v36 = vcombine.high %v6706_v24, %v6710_v28  ;;  %v12609_v49 = vcombine.low %v6706_v24, %v6710_v28  ;;  %v6876_v24 = vld [vmem:[#allocation10 + $0xf68] sm:$0xff]  ;;  %v6746_v28 = vld [vmem:[#allocation10 + $0xb58] sm:$0xff] }
 0x5c2   :  { %9791 = vmatpush1.bf16.msra.mxu1 %v12693_v37  ;;  %v6844_v37 = vld [vmem:[#allocation10 + $0xe68] sm:$0xff] }
 0x5c3   :  { %10078 = vmatpush1.bf16.msra.mxu0 %v12569_v8  ;;  %9792 = vmatprep.subr.bf16.mxu1 %v12702_v48  ;;  %v6714_v8 = vld [vmem:[#allocation10 + $0xa58] sm:$0xff]  ;;  %v12742_v32 = vcombine.high %v6840_v38, %v6844_v37 }
 0x5c4   :  { %10079 = vmatprep.subr.bf16.mxu0 %v12578_v21  ;;  %v6718_v48 = vld [vmem:[#allocation10 + $0xa78] sm:$0xff]  ;;  %v12733_v21 = vcombine.low %v6832_v17, %v6836_v44  ;;  %v6872_v44 = vld [vmem:[#allocation10 + $0xf48] sm:$0xff] }
 0x5c5   :  { %v12618_v54 = vcombine.high %v6714_v8, %v6718_v48  ;;  %v12617_v50 = vcombine.low %v6714_v8, %v6718_v48  ;;  %v6884_v8 = vld [vmem:[#allocation10 + $0xfa8] sm:$0xff]  ;;  %v6754_v48 = vld [vmem:[#allocation10 + $0xb98] sm:$0xff] }
 0x5c6   :  { %9793 = vmatpush1.bf16.msra.mxu1 %v12701_v2  ;;  %v6852_v2 = vld [vmem:[#allocation10 + $0xea8] sm:$0xff] }
 0x5c7   :  { %10080 = vmatpush1.bf16.msra.mxu0 %v12577_v31  ;;  %9794 = vmatprep.subr.bf16.mxu1 %v12710_v55  ;;  %v6722_v31 = vld [vmem:[#allocation10 + $0xa98] sm:$0xff]  ;;  %v12750_v43 = vcombine.high %v6848_v26, %v6852_v2 }
 0x5c8   :  { %10081 = vmatprep.subr.bf16.mxu0 %v12586_v57  ;;  %v6726_v55 = vld [vmem:[#allocation10 + $0xab8] sm:$0xff]  ;;  %v12741_v57 = vcombine.low %v6840_v38, %v6844_v37  ;;  %v6880_v37 = vld [vmem:[#allocation10 + $0xf88] sm:$0xff] }
 0x5c9   :  { %v15433_v30 = vpop.f32.mrb[20].mxu0  ;;  %v12626_v56 = vcombine.high %v6722_v31, %v6726_v55  ;;  %v12625_v53 = vcombine.low %v6722_v31, %v6726_v55  ;;  %v6892_v31 = vld [vmem:[#allocation10 + $0xfe8] sm:$0xff]  ;;  %v6762_v55 = vld [vmem:[#allocation10 + $0xbd8] sm:$0xff] }
 0x5ca   :  { %v15435_v20 = vpop.f32.mrb[21].mxu0  ;;  %9795 = vmatpush1.bf16.msra.mxu1 %v12709_v34  ;;  %v6860_v34 = vld [vmem:[#allocation10 + $0xee8] sm:$0xff] }
 0x5cb   :  { %v9781_v6 = vpop.f32.mrb[22].mxu0  ;;  %10082 = vmatpush1.bf16.msra.mxu0 %v12585_v62  ;;  %9796 = vmatprep.subr.bf16.mxu1 %v12718_v60  ;;  %v6730_v62 = vld [vmem:[#allocation10 + $0xad8] sm:$0xff]  ;;  %v12758_v4 = vcombine.high %v6856_v0, %v6860_v34 }
 0x5cc   :  { %v9782_v12 = vpop.f32.mrb[23].mxu0  ;;  %10083 = vmatprep.subr.bf16.mxu0 %v12594_v19  ;;  %v6734_v60 = vld [vmem:[#allocation10 + $0xaf8] sm:$0xff]  ;;  %v12749_v19 = vcombine.low %v6848_v26, %v6852_v2  ;;  %v6868_v6 = vld [vmem:[#allocation10 + $0xf28] sm:$0xff] }
 0x5cd   :  { %v12634_v5 = vcombine.high %v6730_v62, %v6734_v60  ;;  %v6742_v12 = vld [vmem:[#allocation10 + $0xb38] sm:$0xff]  ;;  %v6888_v2 = vld [vmem:[#allocation10 + $0xfc8] sm:$0xff] }
 0x5ce   :  { %9797 = vmatpush1.bf16.msra.mxu1 %v12717_v63  ;;  %v6738_v63 = vld [vmem:[#allocation10 + $0xb18] sm:$0xff] }
 0x5cf   :  { %10084 = vmatpush1.bf16.msra.mxu0 %v12593_v14  ;;  %9798 = vmatprep.subr.bf16.mxu1 %v12726_v13  ;;  %v12757_v14 = vcombine.low %v6856_v0, %v6860_v34  ;;  %v12633_v13 = vcombine.low %v6730_v62, %v6734_v60  ;;  %v12642_v17 = vcombine.high %v6738_v63, %v6742_v12  ;;  %v6513_v34 = vld [vmem:[#allocation10 + $0x410] sm:$0xff] }
 0x5d0   :  { %10085 = vmatprep.subr.bf16.mxu0 %v12602_v15  ;;  %v12766_v15 = vcombine.high %v6864_v46, %v6868_v6  ;;  %v6517_v62 = vld [vmem:[#allocation10 + $0x430] sm:$0xff]  ;;  %v12789_v60 = vcombine.low %v6888_v2, %v6892_v31 }
 0x5d2   :  { %9799 = vmatpush1.bf16.msra.mxu1 %v12725_v25  ;;  %v6750_v25 = vld [vmem:[#allocation10 + $0xb78] sm:$0xff] }
 0x5d3   :  { %10086 = vmatpush1.bf16.msra.mxu0 %v12601_v27  ;;  %9800 = vmatprep.subr.bf16.mxu1 %v12734_v29  ;;  %v12765_v27 = vcombine.low %v6864_v46, %v6868_v6  ;;  %v12641_v29 = vcombine.low %v6738_v63, %v6742_v12  ;;  %v12650_v38 = vcombine.high %v6746_v28, %v6750_v25  ;;  %v6529_v63 = vld [vmem:[#allocation10 + $0x490] sm:$0xff] }
 0x5d4   :  { %10087 = vmatprep.subr.bf16.mxu0 %v12610_v36  ;;  %v12774_v36 = vcombine.high %v6872_v44, %v6876_v24  ;;  %v12415_v46 = vcombine.low %v6513_v34, %v6517_v62  ;;  %v6533_v12 = vld [vmem:[#allocation10 + $0x4b0] sm:$0xff] }
 0x5d6   :  { %9801 = vmatpush1.bf16.msra.mxu1 %v12733_v21  ;;  %v6758_v21 = vld [vmem:[#allocation10 + $0xbb8] sm:$0xff] }
 0x5d7   :  { %10088 = vmatpush1.bf16.msra.mxu0 %v12609_v49  ;;  %9802 = vmatprep.subr.bf16.mxu1 %v12742_v32  ;;  %v12773_v49 = vcombine.low %v6872_v44, %v6876_v24  ;;  %v12649_v32 = vcombine.low %v6746_v28, %v6750_v25  ;;  %v12658_v26 = vcombine.high %v6754_v48, %v6758_v21  ;;  %v6545_v28 = vld [vmem:[#allocation10 + $0x510] sm:$0xff] }
 0x5d8   :  { %10089 = vmatprep.subr.bf16.mxu0 %v12618_v54  ;;  %v12782_v54 = vcombine.high %v6880_v37, %v6884_v8  ;;  %v12431_v44 = vcombine.low %v6529_v63, %v6533_v12  ;;  %v6549_v25 = vld [vmem:[#allocation10 + $0x530] sm:$0xff] }
 0x5da   :  { %9803 = vmatpush1.bf16.msra.mxu1 %v12741_v57  ;;  %v6766_v57 = vld [vmem:[#allocation10 + $0xbf8] sm:$0xff] }
 0x5db   :  { %10090 = vmatpush1.bf16.msra.mxu0 %v12617_v50  ;;  %9804 = vmatprep.subr.bf16.mxu1 %v12750_v43  ;;  %v12781_v50 = vcombine.low %v6880_v37, %v6884_v8  ;;  %v12657_v43 = vcombine.low %v6754_v48, %v6758_v21  ;;  %v12666_v0 = vcombine.high %v6762_v55, %v6766_v57  ;;  %v6561_v8 = vld [vmem:[#allocation10 + $0x590] sm:$0xff] }
 0x5dc   :  { %10091 = vmatprep.subr.bf16.mxu0 %v12626_v56  ;;  %v12790_v56 = vcombine.high %v6888_v2, %v6892_v31  ;;  %v6565_v48 = vld [vmem:[#allocation10 + $0x5b0] sm:$0xff] }
 0x5de   :  { %9805 = vmatpush1.bf16.msra.mxu1 %v12749_v19  ;;  %v12665_v19 = vcombine.low %v6762_v55, %v6766_v57  ;;  %v12463_v55 = vcombine.low %v6561_v8, %v6565_v48 }
 0x5df   :  { %10092 = vmatpush1.bf16.msra.mxu0 %v12625_v53  ;;  %9806 = vmatprep.subr.bf16.mxu1 %v12758_v4  ;;  %v12416_v53 = vcombine.high %v6513_v34, %v6517_v62  ;;  %v6521_v4 = vld [vmem:[#allocation10 + $0x450] sm:$0xff] }
 0x5e0   :  { %10093 = vmatprep.subr.bf16.mxu0 %v12634_v5  ;;  %v6525_v5 = vld [vmem:[#allocation10 + $0x470] sm:$0xff] }
 0x5e1   :  { %v12424_v6 = vcombine.high %v6521_v4, %v6525_v5  ;;  %v6585_v62 = vld [vmem:[#allocation10 + $0x650] sm:$0xff] }
 0x5e2   :  { %9807 = vmatpush1.bf16.msra.mxu1 %v12757_v14  ;;  %v12423_v14 = vcombine.low %v6521_v4, %v6525_v5  ;;  %v6593_v4 = vld [vmem:[#allocation10 + $0x690] sm:$0xff] }
 0x5e3   :  { %10094 = vmatpush1.bf16.msra.mxu0 %v12633_v13  ;;  %9808 = vmatprep.subr.bf16.mxu1 %v12766_v15  ;;  %v12432_v13 = vcombine.high %v6529_v63, %v6533_v12  ;;  %v6537_v15 = vld [vmem:[#allocation10 + $0x4d0] sm:$0xff] }
 0x5e4   :  { %10095 = vmatprep.subr.bf16.mxu0 %v12642_v17  ;;  %v6541_v17 = vld [vmem:[#allocation10 + $0x4f0] sm:$0xff] }
 0x5e5   :  { %v12440_v24 = vcombine.high %v6537_v15, %v6541_v17  ;;  %v6597_v5 = vld [vmem:[#allocation10 + $0x6b0] sm:$0xff] }
 0x5e6   :  { %9809 = vmatpush1.bf16.msra.mxu1 %v12765_v27  ;;  %v12439_v27 = vcombine.low %v6537_v15, %v6541_v17  ;;  %v6601_v63 = vld [vmem:[#allocation10 + $0x6d0] sm:$0xff] }
 0x5e7   :  { %10096 = vmatpush1.bf16.msra.mxu0 %v12641_v29  ;;  %9810 = vmatprep.subr.bf16.mxu1 %v12774_v36  ;;  %v12448_v29 = vcombine.high %v6545_v28, %v6549_v25  ;;  %v6553_v36 = vld [vmem:[#allocation10 + $0x550] sm:$0xff] }
 0x5e8   :  { %10097 = vmatprep.subr.bf16.mxu0 %v12650_v38  ;;  %v12447_v38 = vcombine.low %v6545_v28, %v6549_v25  ;;  %v6605_v12 = vld [vmem:[#allocation10 + $0x6f0] sm:$0xff] }
 0x5e9   :  { %v6609_v15 = vld [vmem:[#allocation10 + $0x710] sm:$0xff] }
 0x5ea   :  { %9811 = vmatpush1.bf16.msra.mxu1 %v12773_v49  ;;  %v12464_v49 = vcombine.high %v6561_v8, %v6565_v48  ;;  %v6613_v17 = vld [vmem:[#allocation10 + $0x730] sm:$0xff] }
 0x5eb   :  { %10098 = vmatpush1.bf16.msra.mxu0 %v12649_v32  ;;  %9812 = vmatprep.subr.bf16.mxu1 %v12782_v54  ;;  %v6569_v54 = vld [vmem:[#allocation10 + $0x5d0] sm:$0xff] }
 0x5ec   :  { %10099 = vmatprep.subr.bf16.mxu0 %v12658_v26  ;;  %v6573_v26 = vld [vmem:[#allocation10 + $0x5f0] sm:$0xff] }
 0x5ed   :  { %v6617_v28 = vld [vmem:[#allocation10 + $0x750] sm:$0xff] }
 0x5ee   :  { %9813 = vmatpush1.bf16.msra.mxu1 %v12781_v50  ;;  %v12472_v50 = vcombine.high %v6569_v54, %v6573_v26  ;;  %v6621_v25 = vld [vmem:[#allocation10 + $0x770] sm:$0xff] }
 0x5ef   :  { %10100 = vmatpush1.bf16.msra.mxu0 %v12657_v43  ;;  %9814 = vmatprep.subr.bf16.mxu1 %v12790_v56  ;;  %v6577_v43 = vld [vmem:[#allocation10 + $0x610] sm:$0xff] }
 0x5f0   :  { %10101 = vmatprep.subr.bf16.mxu0 %v12666_v0  ;;  %v6581_v56 = vld [vmem:[#allocation10 + $0x630] sm:$0xff]  ;;  %v12471_v0 = vcombine.low %v6569_v54, %v6573_v26 }
 0x5f1   :  { %v12480_v34 = vcombine.high %v6577_v43, %v6581_v56  ;;  %v6633_v8 = vld [vmem:[#allocation10 + $0x7d0] sm:$0xff] }
 0x5f2   :  { %9815 = vmatpush1.bf16.msra.mxu1 %v12789_v60  ;;  %v6589_v60 = vld [vmem:[#allocation10 + $0x670] sm:$0xff] }
 0x5f3   :  { %10102 = vmatpush1.bf16.msra.mxu0 %v12665_v19  ;;  %9866 = vmatprep.subr.bf16.mxu1 %v12416_v53  ;;  %v12479_v19 = vcombine.low %v6577_v43, %v6581_v56  ;;  %v12488_v53 = vcombine.high %v6585_v62, %v6589_v60  ;;  %v6637_v48 = vld [vmem:[#allocation10 + $0x7f0] sm:$0xff] }
 0x5f4   :  { %v6769_v54 = vld [vmem:[#allocation10 + $0xc10] sm:$0xff] }
 0x5f5   :  { %9817 = vmatmul.mubr.bf16.vlgmr.msra.gmra.mrb[24].mxu1 %v15401_v18  ;;  %v6773_v26 = vld [vmem:[#allocation10 + $0xc30] sm:$0xff] }
 0x5f6   :  { %10104 = vmatmul.mubr.bf16.vlgmr.msra.gmra.mrb[36].mxu0 %v15330_v51  ;;  %9867 = vmatpush1.bf16.msra.mxu1 %v12415_v46  ;;  %v6557_v51 = vld [vmem:[#allocation10 + $0x570] sm:$0xff]  ;;  %v12487_v46 = vcombine.low %v6585_v62, %v6589_v60  ;;  %v12671_v43 = vcombine.low %v6769_v54, %v6773_v26 }
 0x5f7   :  { %9898 = vmatprep.mubr.bf16.mxu1 %v15350_v1  ;;  %9868 = vmatprep.subr.bf16.mxu1 %v12424_v6  ;;  %v12456_v37 = vcombine.high %v6553_v36, %v6557_v51  ;;  %v12455_v21 = vcombine.low %v6553_v36, %v6557_v51  ;;  %v12496_v6 = vcombine.high %v6593_v4, %v6597_v5  ;;  %v6625_v36 = vld [vmem:[#allocation10 + $0x790] sm:$0xff] }
 0x5f8   :  { %v6629_v51 = vld [vmem:[#allocation10 + $0x7b0] sm:$0xff] }
 0x5fa   :  { %9869 = vmatpush1.bf16.msra.mxu1 %v12423_v14  ;;  %v12495_v14 = vcombine.low %v6593_v4, %v6597_v5 }
 0x5fb   :  { %9870 = vmatprep.subr.bf16.mxu1 %v12432_v13  ;;  %v12504_v13 = vcombine.high %v6601_v63, %v6605_v12 }
 0x5fe   :  { %9871 = vmatpush1.bf16.msra.mxu1 %v12431_v44  ;;  %v12503_v44 = vcombine.low %v6601_v63, %v6605_v12 }
 0x5ff   :  { %9872 = vmatprep.subr.bf16.mxu1 %v12440_v24  ;;  %v12512_v24 = vcombine.high %v6609_v15, %v6613_v17 }
 0x602   :  { %9873 = vmatpush1.bf16.msra.mxu1 %v12439_v27  ;;  %v12511_v27 = vcombine.low %v6609_v15, %v6613_v17 }
 0x603   :  { %9874 = vmatprep.subr.bf16.mxu1 %v12448_v29  ;;  %v12520_v29 = vcombine.high %v6617_v28, %v6621_v25 }
 0x606   :  { %9875 = vmatpush1.bf16.msra.mxu1 %v12447_v38  ;;  %v12519_v38 = vcombine.low %v6617_v28, %v6621_v25 }
 0x607   :  { %9876 = vmatprep.subr.bf16.mxu1 %v12456_v37  ;;  %v12528_v37 = vcombine.high %v6625_v36, %v6629_v51 }
 0x609   :  { %v15440_v32 = vpop.f32.mrb[24].mxu0 }
 0x60a   :  { %v15442_v2 = vpop.f32.mrb[25].mxu0  ;;  %9877 = vmatpush1.bf16.msra.mxu1 %v12455_v21  ;;  %v12527_v21 = vcombine.low %v6625_v36, %v6629_v51  ;;  %v6825_v36 = vld [vmem:[#allocation10 + $0xdd0] sm:$0xff] }
 0x60b   :  { %v9863_v31 = vpop.f32.mrb[26].mxu0  ;;  %9878 = vmatprep.subr.bf16.mxu1 %v12464_v49  ;;  %v12536_v49 = vcombine.high %v6633_v8, %v6637_v48  ;;  %v6829_v51 = vld [vmem:[#allocation10 + $0xdf0] sm:$0xff] }
 0x60c   :  { %v9864_v57 = vpop.f32.mrb[27].mxu0  ;;  %v12535_v31 = vcombine.low %v6633_v8, %v6637_v48 }
 0x60d   :  { %v6777_v57 = vld [vmem:[#allocation10 + $0xc50] sm:$0xff] }
 0x60e   :  { %9879 = vmatpush1.bf16.msra.mxu1 %v12463_v55  ;;  %v12672_v55 = vcombine.high %v6769_v54, %v6773_v26 }
 0x60f   :  { %9880 = vmatprep.subr.bf16.mxu1 %v12472_v50  ;;  %v6781_v50 = vld [vmem:[#allocation10 + $0xc70] sm:$0xff] }
 0x610   :  { %v12680_v56 = vcombine.high %v6777_v57, %v6781_v50  ;;  %v12679_v62 = vcombine.low %v6777_v57, %v6781_v50  ;;  %v6833_v57 = vld [vmem:[#allocation10 + $0xe10] sm:$0xff] }
 0x611   :  { %v6837_v50 = vld [vmem:[#allocation10 + $0xe30] sm:$0xff] }
 0x612   :  { %9881 = vmatpush1.bf16.msra.mxu1 %v12471_v0  ;;  %v6785_v0 = vld [vmem:[#allocation10 + $0xc90] sm:$0xff] }
 0x613   :  { %9882 = vmatprep.subr.bf16.mxu1 %v12480_v34  ;;  %v6789_v34 = vld [vmem:[#allocation10 + $0xcb0] sm:$0xff] }
 0x614   :  { %v12688_v60 = vcombine.high %v6785_v0, %v6789_v34  ;;  %v12687_v4 = vcombine.low %v6785_v0, %v6789_v34  ;;  %v6845_v0 = vld [vmem:[#allocation10 + $0xe70] sm:$0xff]  ;;  %v12735_v34 = vcombine.low %v6833_v57, %v6837_v50 }
 0x616   :  { %9883 = vmatpush1.bf16.msra.mxu1 %v12479_v19  ;;  %v6793_v19 = vld [vmem:[#allocation10 + $0xcd0] sm:$0xff] }
 0x617   :  { %9884 = vmatprep.subr.bf16.mxu1 %v12488_v53  ;;  %v6797_v53 = vld [vmem:[#allocation10 + $0xcf0] sm:$0xff] }
 0x618   :  { %v12696_v5 = vcombine.high %v6793_v19, %v6797_v53  ;;  %v12695_v63 = vcombine.low %v6793_v19, %v6797_v53 }
 0x61a   :  { %9885 = vmatpush1.bf16.msra.mxu1 %v12487_v46  ;;  %v6801_v46 = vld [vmem:[#allocation10 + $0xd10] sm:$0xff] }
 0x61b   :  { %9886 = vmatprep.subr.bf16.mxu1 %v12496_v6  ;;  %v6805_v6 = vld [vmem:[#allocation10 + $0xd30] sm:$0xff] }
 0x61c   :  { %v12704_v12 = vcombine.high %v6801_v46, %v6805_v6  ;;  %v12703_v15 = vcombine.low %v6801_v46, %v6805_v6 }
 0x61e   :  { %9887 = vmatpush1.bf16.msra.mxu1 %v12495_v14  ;;  %v6809_v14 = vld [vmem:[#allocation10 + $0xd50] sm:$0xff] }
 0x61f   :  { %9888 = vmatprep.subr.bf16.mxu1 %v12504_v13  ;;  %v6813_v13 = vld [vmem:[#allocation10 + $0xd70] sm:$0xff] }
 0x620   :  { %v12712_v17 = vcombine.high %v6809_v14, %v6813_v13  ;;  %v12711_v28 = vcombine.low %v6809_v14, %v6813_v13 }
 0x622   :  { %9889 = vmatpush1.bf16.msra.mxu1 %v12503_v44  ;;  %v6817_v44 = vld [vmem:[#allocation10 + $0xd90] sm:$0xff] }
 0x623   :  { %9890 = vmatprep.subr.bf16.mxu1 %v12512_v24  ;;  %v6821_v24 = vld [vmem:[#allocation10 + $0xdb0] sm:$0xff] }
 0x624   :  { %v12720_v25 = vcombine.high %v6817_v44, %v6821_v24  ;;  %v12719_v54 = vcombine.low %v6817_v44, %v6821_v24 }
 0x626   :  { %9891 = vmatpush1.bf16.msra.mxu1 %v12511_v27 }
 0x627   :  { %9892 = vmatprep.subr.bf16.mxu1 %v12520_v29 }
 0x62a   :  { %9893 = vmatpush1.bf16.msra.mxu1 %v12519_v38 }
 0x62b   :  { %9894 = vmatprep.subr.bf16.mxu1 %v12528_v37 }
 0x62e   :  { %9895 = vmatpush1.bf16.msra.mxu1 %v12527_v21 }
 0x62f   :  { %9896 = vmatprep.subr.bf16.mxu1 %v12536_v49 }
 0x632   :  { %9897 = vmatpush1.bf16.msra.mxu1 %v12535_v31 }
 0x633   :  { %9948 = vmatprep.subr.bf16.mxu1 %v12672_v55  ;;  %v12728_v55 = vcombine.high %v6825_v36, %v6829_v51 }
 0x635   :  { %9899 = vmatmul.mubr.bf16.vlgmr.msra.gmra.mrb[28].mxu1 %v15370_v58 }
 0x636   :  { %9949 = vmatpush1.bf16.msra.mxu1 %v12671_v43  ;;  %9980 = vmatprep.mubr.bf16.mxu1 %v15397_v16  ;;  %v12727_v43 = vcombine.low %v6825_v36, %v6829_v51  ;;  %v6889_v51 = vld [vmem:[#allocation10 + $0xfd0] sm:$0xff] }
 0x637   :  { %9950 = vmatprep.subr.bf16.mxu1 %v12680_v56  ;;  %v6841_v56 = vld [vmem:[#allocation10 + $0xe50] sm:$0xff] }
 0x638   :  { %v12743_v19 = vcombine.low %v6841_v56, %v6845_v0 }
 0x63a   :  { %9951 = vmatpush1.bf16.msra.mxu1 %v12679_v62  ;;  %v6849_v62 = vld [vmem:[#allocation10 + $0xe90] sm:$0xff] }
 0x63b   :  { %9952 = vmatprep.subr.bf16.mxu1 %v12688_v60  ;;  %v6853_v60 = vld [vmem:[#allocation10 + $0xeb0] sm:$0xff] }
 0x63c   :  { %v12752_v53 = vcombine.high %v6849_v62, %v6853_v60  ;;  %v12751_v46 = vcombine.low %v6849_v62, %v6853_v60  ;;  %v6538_v62 = vld [vmem:[#allocation10 + $0x4d8] sm:$0xff] }
 0x63d   :  { %v6542_v60 = vld [vmem:[#allocation10 + $0x4f8] sm:$0xff] }
 0x63e   :  { %9953 = vmatpush1.bf16.msra.mxu1 %v12687_v4  ;;  %v6857_v4 = vld [vmem:[#allocation10 + $0xed0] sm:$0xff] }
 0x63f   :  { %9954 = vmatprep.subr.bf16.mxu1 %v12696_v5  ;;  %v6861_v5 = vld [vmem:[#allocation10 + $0xef0] sm:$0xff] }
 0x640   :  { %v12760_v6 = vcombine.high %v6857_v4, %v6861_v5  ;;  %v12759_v14 = vcombine.low %v6857_v4, %v6861_v5  ;;  %v6546_v4 = vld [vmem:[#allocation10 + $0x518] sm:$0xff] }
 0x641   :  { %v6550_v5 = vld [vmem:[#allocation10 + $0x538] sm:$0xff] }
 0x642   :  { %9955 = vmatpush1.bf16.msra.mxu1 %v12695_v63  ;;  %v6865_v63 = vld [vmem:[#allocation10 + $0xf10] sm:$0xff] }
 0x643   :  { %9956 = vmatprep.subr.bf16.mxu1 %v12704_v12  ;;  %v6869_v12 = vld [vmem:[#allocation10 + $0xf30] sm:$0xff] }
 0x644   :  { %v12768_v13 = vcombine.high %v6865_v63, %v6869_v12  ;;  %v12767_v44 = vcombine.low %v6865_v63, %v6869_v12  ;;  %v6554_v63 = vld [vmem:[#allocation10 + $0x558] sm:$0xff] }
 0x645   :  { %v6558_v12 = vld [vmem:[#allocation10 + $0x578] sm:$0xff] }
 0x646   :  { %9957 = vmatpush1.bf16.msra.mxu1 %v12703_v15  ;;  %v6873_v15 = vld [vmem:[#allocation10 + $0xf50] sm:$0xff] }
 0x647   :  { %9958 = vmatprep.subr.bf16.mxu1 %v12712_v17  ;;  %v6877_v17 = vld [vmem:[#allocation10 + $0xf70] sm:$0xff] }
 0x648   :  { %v9654_v29 = vpop.f32.mrb[16].mxu1  ;;  %v12776_v24 = vcombine.high %v6873_v15, %v6877_v17 }
 0x649   :  { %v15446_v27 = vpop.f32.mrb[28].mxu0  ;;  %v15449_v38 = vadd.f32 %v9654_v29, %v15424_v47  ;;  %v9656_v8 = vpop.f32.mrb[17].mxu1  ;;  %v12736_v47 = vcombine.high %v6833_v57, %v6837_v50  ;;  %v12775_v29 = vcombine.low %v6873_v15, %v6877_v17  ;;  %v6522_v57 = vld [vmem:[#allocation10 + $0x458] sm:$0xff]  ;;  %v6912_v15 = vrot.slane %v15415_v33, %v15339_v22 }
 0x64a   :  { %v15451_v37 = vpop.f32.mrb[29].mxu0  ;;  %v15454_v48 = vadd.f32 %v9656_v8, %v15427_v61  ;;  %9959 = vmatpush1.bf16.msra.mxu1 %v12711_v28  ;;  %v9658_v49 = vpop.f32.mrb[18].mxu1  ;;  %v12744_v61 = vcombine.high %v6841_v56, %v6845_v0  ;;  %v6881_v28 = vld [vmem:[#allocation10 + $0xf90] sm:$0xff]  ;;  %v6526_v50 = vld [vmem:[#allocation10 + $0x478] sm:$0xff] }
 0x64b   :  { %v9945_v21 = vpop.f32.mrb[30].mxu0  ;;  %v9659_v31 = vpop.f32.mrb[19].mxu1  ;;  %9960 = vmatprep.subr.bf16.mxu1 %v12720_v25  ;;  %v6885_v25 = vld [vmem:[#allocation10 + $0xfb0] sm:$0xff]  ;;  %v6530_v56 = vld [vmem:[#allocation10 + $0x498] sm:$0xff] }
 0x64c   :  { %v9946_v26 = vpop.f32.mrb[31].mxu0  ;;  %v12784_v36 = vcombine.high %v6881_v28, %v6885_v25  ;;  %v6893_v8 = vld [vmem:[#allocation10 + $0xff0] sm:$0xff]  ;;  %v12783_v21 = vcombine.low %v6881_v28, %v6885_v25  ;;  %v6534_v0 = vld [vmem:[#allocation10 + $0x4b8] sm:$0xff] }
 0x64d   :  { %v12792_v49 = vcombine.high %v6889_v51, %v6893_v8  ;;  %v6518_v26 = vld [vmem:[#allocation10 + $0x438] sm:$0xff]  ;;  %v12791_v31 = vcombine.low %v6889_v51, %v6893_v8 }
 0x64e   :  { %9961 = vmatpush1.bf16.msra.mxu1 %v12719_v54  ;;  %v6514_v54 = vld [vmem:[#allocation10 + $0x418] sm:$0xff] }
 0x64f   :  { %9962 = vmatprep.subr.bf16.mxu1 %v12728_v55  ;;  %v12418_v55 = vcombine.high %v6514_v54, %v6518_v26  ;;  %v6562_v17 = vld [vmem:[#allocation10 + $0x598] sm:$0xff] }
 0x650   :  { %v6570_v8 = vld [vmem:[#allocation10 + $0x5d8] sm:$0xff] }
 0x652   :  { %9963 = vmatpush1.bf16.msra.mxu1 %v12727_v43  ;;  %v12417_v43 = vcombine.low %v6514_v54, %v6518_v26 }
 0x653   :  { %9964 = vmatprep.subr.bf16.mxu1 %v12736_v47  ;;  %v12426_v47 = vcombine.high %v6522_v57, %v6526_v50 }
 0x656   :  { %9965 = vmatpush1.bf16.msra.mxu1 %v12735_v34  ;;  %v12425_v34 = vcombine.low %v6522_v57, %v6526_v50 }
 0x657   :  { %9966 = vmatprep.subr.bf16.mxu1 %v12744_v61  ;;  %v12434_v61 = vcombine.high %v6530_v56, %v6534_v0 }
 0x65a   :  { %9967 = vmatpush1.bf16.msra.mxu1 %v12743_v19  ;;  %v12433_v19 = vcombine.low %v6530_v56, %v6534_v0  ;;  %v6582_v56 = vld [vmem:[#allocation10 + $0x638] sm:$0xff] }
 0x65b   :  { %9968 = vmatprep.subr.bf16.mxu1 %v12752_v53  ;;  %v12442_v53 = vcombine.high %v6538_v62, %v6542_v60 }
 0x65e   :  { %9969 = vmatpush1.bf16.msra.mxu1 %v12751_v46  ;;  %v12441_v46 = vcombine.low %v6538_v62, %v6542_v60  ;;  %v6586_v62 = vld [vmem:[#allocation10 + $0x658] sm:$0xff] }
 0x65f   :  { %9970 = vmatprep.subr.bf16.mxu1 %v12760_v6  ;;  %v12450_v6 = vcombine.high %v6546_v4, %v6550_v5  ;;  %v6590_v60 = vld [vmem:[#allocation10 + $0x678] sm:$0xff] }
 0x662   :  { %9971 = vmatpush1.bf16.msra.mxu1 %v12759_v14  ;;  %v12449_v14 = vcombine.low %v6546_v4, %v6550_v5  ;;  %v6594_v4 = vld [vmem:[#allocation10 + $0x698] sm:$0xff] }
 0x663   :  { %9972 = vmatprep.subr.bf16.mxu1 %v12768_v13  ;;  %v12458_v13 = vcombine.high %v6554_v63, %v6558_v12  ;;  %v6598_v5 = vld [vmem:[#allocation10 + $0x6b8] sm:$0xff] }
 0x666   :  { %9973 = vmatpush1.bf16.msra.mxu1 %v12767_v44  ;;  %v6566_v44 = vld [vmem:[#allocation10 + $0x5b8] sm:$0xff] }
 0x667   :  { %9974 = vmatprep.subr.bf16.mxu1 %v12776_v24  ;;  %v12457_v24 = vcombine.low %v6554_v63, %v6558_v12  ;;  %v12466_v25 = vcombine.high %v6562_v17, %v6566_v44  ;;  %v12465_v57 = vcombine.low %v6562_v17, %v6566_v44  ;;  %v6606_v63 = vld [vmem:[#allocation10 + $0x6f8] sm:$0xff] }
 0x668   :  { %v6618_v17 = vld [vmem:[#allocation10 + $0x758] sm:$0xff] }
 0x669   :  { %v6622_v44 = vld [vmem:[#allocation10 + $0x778] sm:$0xff] }
 0x66a   :  { %9975 = vmatpush1.bf16.msra.mxu1 %v12775_v29  ;;  %v9698_v29 = vadd.f32 %v15413_v39, %v6912_v15 }
 0x66b   :  { %9976 = vmatprep.subr.bf16.mxu1 %v12784_v36 }
 0x66e   :  { %9977 = vmatpush1.bf16.msra.mxu1 %v12783_v21  ;;  %v6574_v21 = vld [vmem:[#allocation10 + $0x5f8] sm:$0xff] }
 0x66f   :  { %9978 = vmatprep.subr.bf16.mxu1 %v12792_v49 }
 0x672   :  { %9979 = vmatpush1.bf16.msra.mxu1 %v12791_v31 }
 0x673   :  { %10030 = vmatprep.subr.bf16.mxu1 %v12418_v55 }
 0x675   :  { %9981 = vmatmul.mubr.bf16.vlgmr.msra.gmra.mrb[32].mxu1 %v15401_v18 }
 0x676   :  { %10031 = vmatpush1.bf16.msra.mxu1 %v12417_v43  ;;  %10062 = vmatprep.mubr.bf16.mxu1 %v15350_v1  ;;  %v6908_v1 = vrot.slane %v15415_v33, %v15361_v3  ;;  %v12474_v43 = vcombine.high %v6570_v8, %v6574_v21 }
 0x677   :  { %10032 = vmatprep.subr.bf16.mxu1 %v12426_v47  ;;  %v6578_v47 = vld [vmem:[#allocation10 + $0x618] sm:$0xff] }
 0x678   :  { %v9696_v28 = vadd.f32 %v15411_v23, %v6908_v1  ;;  %v6614_v1 = vld [vmem:[#allocation10 + $0x738] sm:$0xff] }
 0x67a   :  { %10033 = vmatpush1.bf16.msra.mxu1 %v12425_v34  ;;  %v12473_v34 = vcombine.low %v6570_v8, %v6574_v21  ;;  %v6634_v21 = vld [vmem:[#allocation10 + $0x7d8] sm:$0xff] }
 0x67b   :  { %10034 = vmatprep.subr.bf16.mxu1 %v12434_v61  ;;  %v12482_v61 = vcombine.high %v6578_v47, %v6582_v56 }
 0x67e   :  { %10035 = vmatpush1.bf16.msra.mxu1 %v12433_v19  ;;  %v12481_v19 = vcombine.low %v6578_v47, %v6582_v56 }
 0x67f   :  { %10036 = vmatprep.subr.bf16.mxu1 %v12442_v53  ;;  %v12490_v53 = vcombine.high %v6586_v62, %v6590_v60 }
 0x682   :  { %10037 = vmatpush1.bf16.msra.mxu1 %v12441_v46  ;;  %v12498_v46 = vcombine.high %v6594_v4, %v6598_v5 }
 0x683   :  { %10038 = vmatprep.subr.bf16.mxu1 %v12450_v6  ;;  %v6602_v6 = vld [vmem:[#allocation10 + $0x6d8] sm:$0xff] }
 0x684   :  { %v12506_v12 = vcombine.high %v6602_v6, %v6606_v63 }
 0x686   :  { %10039 = vmatpush1.bf16.msra.mxu1 %v12449_v14  ;;  %v6610_v14 = vld [vmem:[#allocation10 + $0x718] sm:$0xff] }
 0x687   :  { %10040 = vmatprep.subr.bf16.mxu1 %v12458_v13  ;;  %v12505_v13 = vcombine.low %v6602_v6, %v6606_v63  ;;  %v12514_v15 = vcombine.high %v6610_v14, %v6614_v1 }
 0x688   :  { %v9736_v36 = vpop.f32.mrb[20].mxu1 }
 0x689   :  { %v15464_v51 = vpop.f32.mrb[32].mxu0  ;;  %v9737_v49 = vadd.f32 %v9736_v36, %v9696_v28  ;;  %v9738_v54 = vpop.f32.mrb[21].mxu1  ;;  %v12522_v28 = vcombine.high %v6618_v17, %v6622_v44  ;;  %v12521_v36 = vcombine.low %v6618_v17, %v6622_v44  ;;  %v6826_v44 = vld [vmem:[#allocation10 + $0xdd8] sm:$0xff] }
 0x68a   :  { %v15466_v26 = vpop.f32.mrb[33].mxu0  ;;  %v9739_v33 = vadd.f32 %v9738_v54, %v9698_v29  ;;  %v9740_v31 = vpop.f32.mrb[22].mxu1  ;;  %10041 = vmatpush1.bf16.msra.mxu1 %v12457_v24  ;;  %v12513_v24 = vcombine.low %v6610_v14, %v6614_v1  ;;  %v6630_v29 = vld [vmem:[#allocation10 + $0x7b8] sm:$0xff] }
 0x68b   :  { %v10027_v55 = vpop.f32.mrb[34].mxu0  ;;  %v9741_v50 = vpop.f32.mrb[23].mxu1  ;;  %10042 = vmatprep.subr.bf16.mxu1 %v12466_v25  ;;  %v15469_v39 = vadd.f32 %v15433_v30, %v9737_v49  ;;  %v12489_v30 = vcombine.low %v6586_v62, %v6590_v60  ;;  %v6626_v25 = vld [vmem:[#allocation10 + $0x798] sm:$0xff] }
 0x68c   :  { %v10028_v23 = vpop.f32.mrb[35].mxu0  ;;  %v15472_v0 = vadd.f32 %v15435_v20, %v9739_v33  ;;  %v12497_v20 = vcombine.low %v6594_v4, %v6598_v5  ;;  %v12530_v8 = vcombine.high %v6626_v25, %v6630_v29  ;;  %v6638_v49 = vld [vmem:[#allocation10 + $0x7f8] sm:$0xff]  ;;  %v12529_v54 = vcombine.low %v6626_v25, %v6630_v29 }
 0x68d   :  { %v12538_v33 = vcombine.high %v6634_v21, %v6638_v49  ;;  %v6770_v31 = vld [vmem:[#allocation10 + $0xc18] sm:$0xff] }
 0x68e   :  { %10043 = vmatpush1.bf16.msra.mxu1 %v12465_v57  ;;  %v6774_v55 = vld [vmem:[#allocation10 + $0xc38] sm:$0xff]  ;;  %v12537_v57 = vcombine.low %v6634_v21, %v6638_v49 }
 0x68f   :  { %10044 = vmatprep.subr.bf16.mxu1 %v12474_v43  ;;  %v12674_v50 = vcombine.high %v6770_v31, %v6774_v55  ;;  %v6778_v23 = vld [vmem:[#allocation10 + $0xc58] sm:$0xff]  ;;  %v12673_v47 = vcombine.low %v6770_v31, %v6774_v55 }
 0x690   :  { %v6782_v43 = vld [vmem:[#allocation10 + $0xc78] sm:$0xff] }
 0x691   :  { %v12682_v56 = vcombine.high %v6778_v23, %v6782_v43  ;;  %v12681_v62 = vcombine.low %v6778_v23, %v6782_v43  ;;  %v6818_v14 = vld [vmem:[#allocation10 + $0xd98] sm:$0xff] }
 0x692   :  { %10045 = vmatpush1.bf16.msra.mxu1 %v12473_v34  ;;  %v6786_v34 = vld [vmem:[#allocation10 + $0xc98] sm:$0xff] }
 0x693   :  { %10046 = vmatprep.subr.bf16.mxu1 %v12482_v61  ;;  %v6790_v61 = vld [vmem:[#allocation10 + $0xcb8] sm:$0xff] }
 0x694   :  { %v12690_v60 = vcombine.high %v6786_v34, %v6790_v61  ;;  %v12689_v4 = vcombine.low %v6786_v34, %v6790_v61  ;;  %v6822_v1 = vld [vmem:[#allocation10 + $0xdb8] sm:$0xff] }
 0x695   :  { %v12721_v49 = vcombine.low %v6818_v14, %v6822_v1  ;;  %v6842_v43 = vld [vmem:[#allocation10 + $0xe58] sm:$0xff] }
 0x696   :  { %10047 = vmatpush1.bf16.msra.mxu1 %v12481_v19  ;;  %v6794_v19 = vld [vmem:[#allocation10 + $0xcd8] sm:$0xff] }
 0x697   :  { %10048 = vmatprep.subr.bf16.mxu1 %v12490_v53  ;;  %v6798_v53 = vld [vmem:[#allocation10 + $0xcf8] sm:$0xff] }
 0x698   :  { %v12698_v5 = vcombine.high %v6794_v19, %v6798_v53  ;;  %v12697_v6 = vcombine.low %v6794_v19, %v6798_v53  ;;  %v6850_v34 = vld [vmem:[#allocation10 + $0xe98] sm:$0xff] }
 0x699   :  { %v6854_v61 = vld [vmem:[#allocation10 + $0xeb8] sm:$0xff] }
 0x69a   :  { %10049 = vmatpush1.bf16.msra.mxu1 %v12489_v30  ;;  %v6802_v30 = vld [vmem:[#allocation10 + $0xd18] sm:$0xff] }
 0x69b   :  { %10050 = vmatprep.subr.bf16.mxu1 %v12498_v46  ;;  %v6806_v46 = vld [vmem:[#allocation10 + $0xd38] sm:$0xff] }
 0x69c   :  { %v12706_v63 = vcombine.high %v6802_v30, %v6806_v46  ;;  %v6858_v19 = vld [vmem:[#allocation10 + $0xed8] sm:$0xff] }
 0x69d   :  { %v6862_v53 = vld [vmem:[#allocation10 + $0xef8] sm:$0xff] }
 0x69e   :  { %10051 = vmatpush1.bf16.msra.mxu1 %v12497_v20  ;;  %v6810_v20 = vld [vmem:[#allocation10 + $0xd58] sm:$0xff] }
 0x69f   :  { %10052 = vmatprep.subr.bf16.mxu1 %v12506_v12  ;;  %v12705_v12 = vcombine.low %v6802_v30, %v6806_v46  ;;  %v6866_v30 = vld [vmem:[#allocation10 + $0xf18] sm:$0xff] }
 0x6a0   :  { %v6870_v46 = vld [vmem:[#allocation10 + $0xf38] sm:$0xff] }
 0x6a2   :  { %10053 = vmatpush1.bf16.msra.mxu1 %v12505_v13 }
 0x6a3   :  { %10054 = vmatprep.subr.bf16.mxu1 %v12514_v15  ;;  %v12722_v15 = vcombine.high %v6818_v14, %v6822_v1  ;;  %v6882_v14 = vld [vmem:[#allocation10 + $0xf98] sm:$0xff] }
 0x6a4   :  { %v6886_v1 = vld [vmem:[#allocation10 + $0xfb8] sm:$0xff] }
 0x6a6   :  { %10055 = vmatpush1.bf16.msra.mxu1 %v12513_v24  ;;  %v6830_v24 = vld [vmem:[#allocation10 + $0xdf8] sm:$0xff] }
 0x6a7   :  { %10056 = vmatprep.subr.bf16.mxu1 %v12522_v28  ;;  %v12730_v31 = vcombine.high %v6826_v44, %v6830_v24 }
 0x6aa   :  { %10057 = vmatpush1.bf16.msra.mxu1 %v12521_v36 }
 0x6ab   :  { %10058 = vmatprep.subr.bf16.mxu1 %v12530_v8 }
 0x6ae   :  { %10059 = vmatpush1.bf16.msra.mxu1 %v12529_v54 }
 0x6af   :  { %10060 = vmatprep.subr.bf16.mxu1 %v12538_v33 }
 0x6b2   :  { %10061 = vmatpush1.bf16.msra.mxu1 %v12537_v57  ;;  %v6834_v57 = vld [vmem:[#allocation10 + $0xe18] sm:$0xff] }
 0x6b3   :  { %10112 = vmatprep.subr.bf16.mxu1 %v12674_v50  ;;  %v6838_v50 = vld [vmem:[#allocation10 + $0xe38] sm:$0xff] }
 0x6b4   :  { %v12738_v23 = vcombine.high %v6834_v57, %v6838_v50 }
 0x6b5   :  { %10063 = vmatmul.mubr.bf16.vlgmr.msra.gmra.mrb[36].mxu1 %v15370_v58  ;;  %v6814_v58 = vld [vmem:[#allocation10 + $0xd78] sm:$0xff] }
 0x6b6   :  { %10113 = vmatpush1.bf16.msra.mxu1 %v12673_v47  ;;  %10144 = vmatprep.mubr.bf16.mxu1 %v15397_v16  ;;  %v12714_v16 = vcombine.high %v6810_v20, %v6814_v58  ;;  %v12713_v13 = vcombine.low %v6810_v20, %v6814_v58  ;;  %v6846_v47 = vld [vmem:[#allocation10 + $0xe78] sm:$0xff] }
 0x6b7   :  { %10114 = vmatprep.subr.bf16.mxu1 %v12682_v56  ;;  %v12746_v56 = vcombine.high %v6842_v43, %v6846_v47  ;;  %v6874_v20 = vld [vmem:[#allocation10 + $0xf58] sm:$0xff] }
 0x6b8   :  { %v6878_v58 = vld [vmem:[#allocation10 + $0xf78] sm:$0xff] }
 0x6ba   :  { %10115 = vmatpush1.bf16.msra.mxu1 %v12681_v62  ;;  %v12745_v62 = vcombine.low %v6842_v43, %v6846_v47 }
 0x6bb   :  { %10116 = vmatprep.subr.bf16.mxu1 %v12690_v60  ;;  %v12754_v60 = vcombine.high %v6850_v34, %v6854_v61 }
 0x6be   :  { %10117 = vmatpush1.bf16.msra.mxu1 %v12689_v4  ;;  %v12753_v4 = vcombine.low %v6850_v34, %v6854_v61 }
 0x6bf   :  { %10118 = vmatprep.subr.bf16.mxu1 %v12698_v5  ;;  %v12762_v5 = vcombine.high %v6858_v19, %v6862_v53 }
 0x6c2   :  { %10119 = vmatpush1.bf16.msra.mxu1 %v12697_v6  ;;  %v12761_v6 = vcombine.low %v6858_v19, %v6862_v53 }
 0x6c3   :  { %10120 = vmatprep.subr.bf16.mxu1 %v12706_v63  ;;  %v12770_v63 = vcombine.high %v6866_v30, %v6870_v46 }
 0x6c6   :  { %10121 = vmatpush1.bf16.msra.mxu1 %v12705_v12  ;;  %v12769_v12 = vcombine.low %v6866_v30, %v6870_v46 }
 0x6c7   :  { %10122 = vmatprep.subr.bf16.mxu1 %v12714_v16  ;;  %v12778_v16 = vcombine.high %v6874_v20, %v6878_v58 }
 0x6c8   :  { %v9818_v17 = vpop.f32.mrb[24].mxu1 }
 0x6c9   :  { %v15477_v28 = vadd.f32 %v9818_v17, %v15469_v39  ;;  %v15479_v25 = vpop.f32.mrb[36].mxu0  ;;  %v9820_v29 = vpop.f32.mrb[25].mxu1  ;;  %v12729_v39 = vcombine.low %v6826_v44, %v6830_v24  ;;  %v6890_v17 = vld [vmem:[#allocation10 + $0xfd8] sm:$0xff]  ;;  %v12785_v24 = vcombine.low %v6882_v14, %v6886_v1 }
 0x6ca   :  { %v15482_v36 = vadd.f32 %v9820_v29, %v15472_v0  ;;  %v15484_v8 = vpop.f32.mrb[37].mxu0  ;;  %v9822_v21 = vpop.f32.mrb[26].mxu1  ;;  %10123 = vmatpush1.bf16.msra.mxu1 %v12713_v13  ;;  %v12737_v0 = vcombine.low %v6834_v57, %v6838_v50  ;;  %v12777_v13 = vcombine.low %v6874_v20, %v6878_v58  ;;  %v6894_v44 = vld [vmem:[#allocation10 + $0xff8] sm:$0xff] }
 0x6cb   :  { %v10109_v54 = vpop.f32.mrb[38].mxu0  ;;  %v9823_v33 = vpop.f32.mrb[27].mxu1  ;;  %10124 = vmatprep.subr.bf16.mxu1 %v12722_v15  ;;  %v12786_v15 = vcombine.high %v6882_v14, %v6886_v1  ;;  %v12794_v29 = vcombine.high %v6890_v17, %v6894_v44  ;;  %v12793_v21 = vcombine.low %v6890_v17, %v6894_v44  ;;  %v15517_v1 = vadd.f32 %v15454_v48, %v15280_v41 }
 0x6cc   :  { %v10110_v55 = vpop.f32.mrb[39].mxu0  ;;  %v15491_v54 = vsub.s32 5, %v15246_v59  ;;  %v14550_v33 = vld [vmem:[#allocation11] sm:$0xff] }
 0x6ce   :  { %10125 = vmatpush1.bf16.msra.mxu1 %v12721_v49  ;;  %v15488_v49 = vsub.s32 4, %v15246_v59  ;;  %v6920_v55 = vrot.slane %v14550_v33, %v15491_v54 }
 0x6cf   :  { %10126 = vmatprep.subr.bf16.mxu1 %v12730_v31 }
 0x6d0   :  { %v6916_v31 = vrot.slane %v14550_v33, %v15488_v49  ;;  %v9862_v50 = vadd.f32 %v15442_v2, %v6920_v55  ;;  %v15503_v2 = vsub.s32 7, %v15246_v59  ;;  %v14344_v55 = vld [vmem:[#allocation16 + $0x20] ss:$8 sps:$4 sm:$0xff]  }
 0x6d2   :  { %10127 = vmatpush1.bf16.msra.mxu1 %v12729_v39  ;;  %v9860_v57 = vadd.f32 %v15440_v32, %v6916_v31  ;;  %v15500_v32 = vsub.s32 6, %v15246_v59  ;;  %v6928_v30 = vrot.slane %v14550_v33, %v15503_v2  ;;  %v15513_v59 = vadd.f32 %v15449_v38, %v15293_v35  ;;  %v14341_v31 = vld [vmem:[#allocation16 + $0x10] ss:$8 sps:$4 sm:$0xff]  }
 0x6d3   :  { %10128 = vmatprep.subr.bf16.mxu1 %v12738_v23 }
 0x6d6   :  { %10129 = vmatpush1.bf16.msra.mxu1 %v12737_v0 }
 0x6d7   :  { %10130 = vmatprep.subr.bf16.mxu1 %v12746_v56 }
 0x6da   :  { %10131 = vmatpush1.bf16.msra.mxu1 %v12745_v62 }
 0x6db   :  { %10132 = vmatprep.subr.bf16.mxu1 %v12754_v60 }
 0x6de   :  { %10133 = vmatpush1.bf16.msra.mxu1 %v12753_v4 }
 0x6df   :  { %10134 = vmatprep.subr.bf16.mxu1 %v12762_v5  ;;  %v6924_v5 = vrot.slane %v14550_v33, %v15500_v32  ;;  %v14343_v33 = vld [vmem:[#allocation16 + $0x14] ss:$8 sps:$4 sm:$0xff]  }
 0x6e2   :  { %10135 = vmatpush1.bf16.msra.mxu1 %v12761_v6 }
 0x6e3   :  { %10136 = vmatprep.subr.bf16.mxu1 %v12770_v63 }
 0x6e6   :  { %10137 = vmatpush1.bf16.msra.mxu1 %v12769_v12 }
 0x6e7   :  { %10138 = vmatprep.subr.bf16.mxu1 %v12778_v16 }
 0x6ea   :  { %10139 = vmatpush1.bf16.msra.mxu1 %v12777_v13 }
 0x6eb   :  { %10140 = vmatprep.subr.bf16.mxu1 %v12786_v15 }
 0x6ee   :  { %10141 = vmatpush1.bf16.msra.mxu1 %v12785_v24 }
 0x6ef   :  { %10142 = vmatprep.subr.bf16.mxu1 %v12794_v29 }
 0x6f2   :  { %10143 = vmatpush1.bf16.msra.mxu1 %v12793_v21  ;;  %v14340_v21 = vld [vmem:[#allocation16 + $0x4] ss:$8 sps:$4 sm:$0xff]  }
 0x6f3   :  { %11096 = vmatprep.subr.bf16.mxu0 %v14340_v21  ;;  %v14388_v21 = vld [vmem:[#allocation16 + $0x104] ss:$8 sps:$4 sm:$0xff]  }
 0x6f5   :  { %10145 = vmatmul.mubr.bf16.vlgmr.msra.gmra.mrb[40].mxu1 %v15401_v18 }
 0x708   :  { %v9900_v39 = vpop.f32.mrb[28].mxu1 }
 0x709   :  { %v9901_v23 = vadd.f32 %v9900_v39, %v9860_v57  ;;  %v9902_v43 = vpop.f32.mrb[29].mxu1  ;;  %v14349_v57 = vld [vmem:[#allocation16 + $0x34] ss:$8 sps:$4 sm:$0xff]   ;;  %v14350_v39 = vld [vmem:[#allocation16 + $0x40] ss:$8 sps:$4 sm:$0xff]  }
 0x70a   :  { %v9903_v47 = vadd.f32 %v9902_v43, %v9862_v50  ;;  %v9904_v18 = vpop.f32.mrb[30].mxu1  ;;  %v14352_v50 = vld [vmem:[#allocation16 + $0x44] ss:$8 sps:$4 sm:$0xff]   ;;  %v14353_v43 = vld [vmem:[#allocation16 + $0x50] ss:$8 sps:$4 sm:$0xff]  }
 0x70b   :  { %v9905_v0 = vpop.f32.mrb[31].mxu1  ;;  %v9942_v56 = vadd.f32 %v15446_v27, %v9901_v23  ;;  %v10024_v27 = vadd.f32 %v15464_v51, %v6924_v5  ;;  %v15521_v51 = vadd.f32 %v15477_v28, %v15366_v10  ;;  %v14355_v23 = vld [vmem:[#allocation16 + $0x54] ss:$8 sps:$4 sm:$0xff]   ;;  %v14356_v18 = vld [vmem:[#allocation16 + $0x60] ss:$8 sps:$4 sm:$0xff]  }
 0x70c   :  { %v9944_v34 = vadd.f32 %v15451_v37, %v9903_v47  ;;  %v10026_v37 = vadd.f32 %v15466_v26, %v6928_v30  ;;  %v10161_v26 = vadd.f32 %v15517_v1, %v15513_v59  ;;  %v14358_v47 = vld [vmem:[#allocation16 + $0x64] ss:$8 sps:$4 sm:$0xff]   ;;  %v14361_v0 = vld [vmem:[#allocation16 + $0x74] ss:$8 sps:$4 sm:$0xff]  }
 0x70e   :  { %v10162_v13 = vadd.f32 %v10161_v26, %v15521_v51 }
 0x748   :  { %v9982_v61 = vpop.f32.mrb[32].mxu1 }
 0x749   :  { %v9983_v62 = vadd.f32 %v9982_v61, %v9942_v56  ;;  %v9984_v60 = vpop.f32.mrb[33].mxu1  ;;  %v14359_v56 = vld [vmem:[#allocation16 + $0x70] ss:$8 sps:$4 sm:$0xff]   ;;  %v14362_v61 = vld [vmem:[#allocation16 + $0x80] ss:$8 sps:$4 sm:$0xff]  }
 0x74a   :  { %v9985_v19 = vadd.f32 %v9984_v60, %v9944_v34  ;;  %v9986_v53 = vpop.f32.mrb[34].mxu1  ;;  %v14364_v34 = vld [vmem:[#allocation16 + $0x84] ss:$8 sps:$4 sm:$0xff]   ;;  %v14365_v60 = vld [vmem:[#allocation16 + $0x90] ss:$8 sps:$4 sm:$0xff]  }
 0x74b   :  { %v9987_v4 = vpop.f32.mrb[35].mxu1  ;;  %v15531_v35 = vadd.f32 %v9983_v62, %v15320_v42  ;;  %v14367_v62 = vld [vmem:[#allocation16 + $0x94] ss:$8 sps:$4 sm:$0xff]   ;;  %v14368_v53 = vld [vmem:[#allocation16 + $0xa0] ss:$8 sps:$4 sm:$0xff]  }
 0x74c   :  { %v15536_v48 = vadd.f32 %v9985_v19, %v15322_v45  ;;  %v14338_v45 = vld [vmem:[#allocation16] ss:$8 sps:$4 sm:$0xff]   ;;  %v14370_v19 = vld [vmem:[#allocation16 + $0xa4] ss:$8 sps:$4 sm:$0xff]  }
 0x74d   :  { %11097 = vmatpush1.bf16.msra.mxu0 %v14338_v45  ;;  %v14383_v45 = vld [vmem:[#allocation16 + $0xf0] ss:$8 sps:$4 sm:$0xff]  }
 0x74e   :  { %11098 = vmatprep.subr.bf16.mxu0 %v14343_v33 }
 0x751   :  { %11099 = vmatpush1.bf16.msra.mxu0 %v14341_v31 }
 0x788   :  { %v10064_v46 = vpop.f32.mrb[36].mxu1 }
 0x789   :  { %v10065_v6 = vadd.f32 %v10064_v46, %v10024_v27  ;;  %v10066_v63 = vpop.f32.mrb[37].mxu1 }
 0x78a   :  { %v10067_v20 = vadd.f32 %v10066_v63, %v10026_v37  ;;  %v10068_v58 = vpop.f32.mrb[38].mxu1 }
 0x78b   :  { %v10069_v12 = vpop.f32.mrb[39].mxu1  ;;  %v10106_v16 = vadd.f32 %v15479_v25, %v10065_v6  ;;  %v15528_v25 = vadd.f32 %v15482_v36, %v15346_v52 }
 0x78c   :  { %v10108_v14 = vadd.f32 %v15484_v8, %v10067_v20 }
 0x78d   :  { %v10163_v38 = vadd.f32 %v10162_v13, %v15528_v25 }
 0x78f   :  { %v10164_v41 = vadd.f32 %v10163_v38, %v15531_v35 }
 0x791   :  { %v10165_v36 = vadd.f32 %v10164_v41, %v15536_v48 }
 0x7c8   :  { %v10146_v10 = vpop.f32.mrb[40].mxu1 }
 0x7c9   :  { %v10147_v28 = vadd.f32 %v10146_v10, %v10106_v16  ;;  %v10148_v8 = vpop.f32.mrb[41].mxu1 }
 0x7ca   :  { %v10149_v15 = vadd.f32 %v10148_v8, %v10108_v14  ;;  %v10150_v17 = vpop.f32.mrb[42].mxu1  ;;  %v14373_v8 = vld [vmem:[#allocation16 + $0xb4] ss:$8 sps:$4 sm:$0xff]  }
 0x7cb   :  { %v15539_v44 = vadd.f32 %v10147_v28, %v15391_v11  ;;  %v10151_v52 = vpop.f32.mrb[43].mxu1  ;;  %v14346_v11 = vld [vmem:[#allocation16 + $0x24] ss:$8 sps:$4 sm:$0xff]  }
 0x7cc   :  { %v15543_v42 = vadd.f32 %v10149_v15, %v15393_v9  ;;  %11100 = vmatprep.subr.bf16.mxu0 %v14346_v11  ;;  %v14347_v9 = vld [vmem:[#allocation16 + $0x30] ss:$8 sps:$4 sm:$0xff]   ;;  %v14376_v17 = vld [vmem:[#allocation16 + $0xc4] ss:$8 sps:$4 sm:$0xff]   ;;  %v14379_v52 = vld [vmem:[#allocation16 + $0xd4] ss:$8 sps:$4 sm:$0xff]  }
 0x7cd   :  { %v10166_v24 = vadd.f32 %v10165_v36, %v15539_v44  ;;  %11101 = vmatpush1.bf16.msra.mxu0 %v14344_v55  ;;  %v14371_v15 = vld [vmem:[#allocation16 + $0xb0] ss:$8 sps:$4 sm:$0xff]  }
 0x7ce   :  { %11102 = vmatprep.subr.bf16.mxu0 %v14349_v57  ;;  %v14377_v36 = vld [vmem:[#allocation16 + $0xd0] ss:$8 sps:$4 sm:$0xff]  }
 0x7cf   :  { %v10167_v29 = vadd.f32 %v10166_v24, %v15543_v42  ;;  %v14380_v24 = vld [vmem:[#allocation16 + $0xe0] ss:$8 sps:$4 sm:$0xff]   ;;  %v10208_v55 = vld [vmem:[#allocation13] sm:$0xff]  ;;  %v10258_v57 = vld [vmem:[#allocation14] sm:$0xff] }
 0x7d1   :  { %10168 = vadd.xlane.f32.xlu0 %v10167_v29  ;;  %11103 = vmatpush1.bf16.msra.mxu0 %v14347_v9  ;;  %v14385_v29 = vld [vmem:[#allocation16 + $0xf4] ss:$8 sps:$4 sm:$0xff]   ;;  %v10229_v9 = vrot.slane %v10208_v55, %v15488_v49 }
 0x7d2   :  { %11104 = vmatprep.subr.bf16.mxu0 %v14352_v50  ;;  %v10237_v50 = vrot.slane %v10208_v55, %v15500_v32 }
 0x7d5   :  { %11105 = vmatpush1.bf16.msra.mxu0 %v14350_v39  ;;  %v10217_v39 = vrot.slane %v10208_v55, %v15252_v40 }
 0x7d6   :  { %11106 = vmatprep.subr.bf16.mxu0 %v14355_v23  ;;  %v10213_v23 = vrot.slane %v10208_v55, %v15249_v7 }
 0x7d9   :  { %11107 = vmatpush1.bf16.msra.mxu0 %v14353_v43  ;;  %v10225_v43 = vrot.slane %v10208_v55, %v15339_v22 }
 0x7da   :  { %11108 = vmatprep.subr.bf16.mxu0 %v14358_v47  ;;  %v10221_v47 = vrot.slane %v10208_v55, %v15361_v3 }
 0x7dd   :  { %11109 = vmatpush1.bf16.msra.mxu0 %v14356_v18  ;;  %v10233_v18 = vrot.slane %v10208_v55, %v15491_v54 }
 0x7de   :  { %11110 = vmatprep.subr.bf16.mxu0 %v14361_v0  ;;  %v10241_v0 = vrot.slane %v10208_v55, %v15503_v2  ;;  %v14410_v55 = vld [vmem:[#allocation16 + $0x180] ss:$8 sps:$4 sm:$0xff]  }
 0x7e1   :  { %11111 = vmatpush1.bf16.msra.mxu0 %v14359_v56  ;;  %v10267_v56 = vrot.slane %v10258_v57, %v15252_v40 }
 0x7e2   :  { %11112 = vmatprep.subr.bf16.mxu0 %v14364_v34  ;;  %v10263_v34 = vrot.slane %v10258_v57, %v15249_v7 }
 0x7e5   :  { %11113 = vmatpush1.bf16.msra.mxu0 %v14362_v61  ;;  %v10275_v61 = vrot.slane %v10258_v57, %v15339_v22 }
 0x7e6   :  { %11114 = vmatprep.subr.bf16.mxu0 %v14367_v62  ;;  %v10271_v62 = vrot.slane %v10258_v57, %v15361_v3 }
 0x7e9   :  { %11115 = vmatpush1.bf16.msra.mxu0 %v14365_v60 }
 0x7ea   :  { %11116 = vmatprep.subr.bf16.mxu0 %v14370_v19  ;;  %v10283_v19 = vrot.slane %v10258_v57, %v15491_v54 }
 0x7ed   :  { %11117 = vmatpush1.bf16.msra.mxu0 %v14368_v53  ;;  %v10279_v53 = vrot.slane %v10258_v57, %v15488_v49 }
 0x7ee   :  { %11118 = vmatprep.subr.bf16.mxu0 %v14373_v8  ;;  %v14389_v8 = vld [vmem:[#allocation16 + $0x110] ss:$8 sps:$4 sm:$0xff]  }
 0x7f1   :  { %11119 = vmatpush1.bf16.msra.mxu0 %v14371_v15  ;;  %v14394_v15 = vld [vmem:[#allocation16 + $0x124] ss:$8 sps:$4 sm:$0xff]  }
 0x7f2   :  { %11120 = vmatprep.subr.bf16.mxu0 %v14376_v17  ;;  %v14392_v17 = vld [vmem:[#allocation16 + $0x120] ss:$8 sps:$4 sm:$0xff]  }
 0x85e   :  { %v10169_v4 = vpop.xlane.xlu0 %10168 }
 0x85f   :  { %v10171_v5 = vmul.f32 0.0009765625, %v10169_v4  ;;  %v10291_v4 = vrot.slane %v10258_v57, %v15503_v2 }
 0x861   :  { %v15548_v30 = vsub.f32 %v15513_v59, %v10171_v5  ;;  %v15551_v27 = vsub.f32 %v15517_v1, %v10171_v5  ;;  %v15554_v37 = vsub.f32 %v15521_v51, %v10171_v5  ;;  %v15557_v46 = vsub.f32 %v15528_v25, %v10171_v5 }
 0x862   :  { %v15564_v20 = vsub.f32 %v15531_v35, %v10171_v5  ;;  %v15569_v16 = vsub.f32 %v15536_v48, %v10171_v5  ;;  %v15574_v1 = vsub.f32 %v15539_v44, %v10171_v5  ;;  %v10179_v13 = vsub.f32 %v15543_v42, %v10171_v5  ;;  %v14374_v44 = vld [vmem:[#allocation16 + $0xc0] ss:$8 sps:$4 sm:$0xff]   ;;  %v14382_v42 = vld [vmem:[#allocation16 + $0xe4] ss:$8 sps:$4 sm:$0xff]  }
 0x863   :  { %v10180_v6 = vmul.f32 %v15548_v30, %v15548_v30  ;;  %v10181_v63 = vmul.f32 %v15551_v27, %v15551_v27  ;;  %v10182_v58 = vmul.f32 %v15554_v37, %v15554_v37  ;;  %v10183_v14 = vmul.f32 %v15557_v46, %v15557_v46  ;;  %11121 = vmatpush1.bf16.msra.mxu0 %v14374_v44  ;;  %v14397_v44 = vld [vmem:[#allocation16 + $0x134] ss:$8 sps:$4 sm:$0xff]  }
 0x864   :  { %v10184_v51 = vmul.f32 %v15564_v20, %v15564_v20  ;;  %v10185_v25 = vmul.f32 %v15569_v16, %v15569_v16  ;;  %v10186_v38 = vmul.f32 %v15574_v1, %v15574_v1  ;;  %v10187_v48 = vmul.f32 %v10179_v13, %v10179_v13  ;;  %11122 = vmatprep.subr.bf16.mxu0 %v14379_v52  ;;  %v14395_v52 = vld [vmem:[#allocation16 + $0x130] ss:$8 sps:$4 sm:$0xff]  }
 0x865   :  { %v10188_v12 = vadd.f32 %v10181_v63, %v10180_v6  ;;  %v10287_v5 = vrot.slane %v10258_v57, %v15500_v32  ;;  %v14415_v57 = vld [vmem:[#allocation16 + $0x194] ss:$8 sps:$4 sm:$0xff]  }
 0x867   :  { %v10189_v59 = vadd.f32 %v10188_v12, %v10182_v58  ;;  %11123 = vmatpush1.bf16.msra.mxu0 %v14377_v36  ;;  %v14400_v36 = vld [vmem:[#allocation16 + $0x144] ss:$8 sps:$4 sm:$0xff]  }
 0x868   :  { %11124 = vmatprep.subr.bf16.mxu0 %v14382_v42  ;;  %v14398_v42 = vld [vmem:[#allocation16 + $0x140] ss:$8 sps:$4 sm:$0xff]  }
 0x869   :  { %v10190_v26 = vadd.f32 %v10189_v59, %v10183_v14 }
 0x86b   :  { %v10191_v35 = vadd.f32 %v10190_v26, %v10184_v51  ;;  %11125 = vmatpush1.bf16.msra.mxu0 %v14380_v24  ;;  %v14403_v24 = vld [vmem:[#allocation16 + $0x154] ss:$8 sps:$4 sm:$0xff]  }
 0x86c   :  { %11126 = vmatprep.subr.bf16.mxu0 %v14385_v29  ;;  %v14401_v29 = vld [vmem:[#allocation16 + $0x150] ss:$8 sps:$4 sm:$0xff]  }
 0x86d   :  { %v10192_v41 = vadd.f32 %v10191_v35, %v10185_v25 }
 0x86f   :  { %v10193_v10 = vadd.f32 %v10192_v41, %v10186_v38  ;;  %11127 = vmatpush1.bf16.msra.mxu0 %v14383_v45  ;;  %v14386_v41 = vld [vmem:[#allocation16 + $0x100] ss:$8 sps:$4 sm:$0xff]   ;;  %v14406_v45 = vld [vmem:[#allocation16 + $0x164] ss:$8 sps:$4 sm:$0xff]  }
 0x870   :  { %11137 = vmatprep.subr.bf16.mxu0 %v14388_v21  ;;  %v14404_v21 = vld [vmem:[#allocation16 + $0x160] ss:$8 sps:$4 sm:$0xff]  }
 0x871   :  { %v10194_v28 = vadd.f32 %v10193_v10, %v10187_v48  ;;  %v14391_v10 = vld [vmem:[#allocation16 + $0x114] ss:$8 sps:$4 sm:$0xff]  }
 0x873   :  { %10195 = vadd.xlane.f32.xlu0 %v10194_v28 }
 0x900   :  { %v10196_v33 = vpop.xlane.xlu0 %10195 }
 0x901   :  { %v10197_v31 = vmul.f32 0.0009765625, %v10196_v33  ;;  %v14409_v33 = vld [vmem:[#allocation16 + $0x174] ss:$8 sps:$4 sm:$0xff]  }
 0x903   :  { %v10198_v11 = vadd.f32 1e-05, %v10197_v31  ;;  %v14407_v31 = vld [vmem:[#allocation16 + $0x170] ss:$8 sps:$4 sm:$0xff]  }
 0x905   :  { %14546 = vrsqrt.f32 %v10198_v11  ;;  %v14412_v11 = vld [vmem:[#allocation16 + $0x184] ss:$8 sps:$4 sm:$0xff]  }
 0x90f   :  { %v14547_v60 = vpop.eup %14546 }
 0x910   :  { %v10201_v6 = vmul.f32 %v14547_v60, %v15551_v27  ;;  %v10200_v63 = vmul.f32 %v14547_v60, %v15548_v30  ;;  %v10203_v58 = vmul.f32 %v14547_v60, %v15557_v46  ;;  %v10202_v12 = vmul.f32 %v14547_v60, %v15554_v37 }
 0x911   :  { %v10205_v22 = vmul.f32 %v14547_v60, %v15569_v16  ;;  %v10204_v3 = vmul.f32 %v14547_v60, %v15564_v20  ;;  %v10207_v14 = vmul.f32 %v14547_v60, %v10179_v13  ;;  %v10206_v54 = vmul.f32 %v14547_v60, %v15574_v1  ;;  %v14431_v60 = vld [vmem:[#allocation16 + $0x1f0] ss:$8 sps:$4 sm:$0xff]  }
 0x912   :  { %v10251_v49 = vmul.f32 %v10217_v39, %v10201_v6  ;;  %v10250_v59 = vmul.f32 %v10213_v23, %v10200_v63  ;;  %v10253_v2 = vmul.f32 %v10225_v43, %v10203_v58  ;;  %v10252_v51 = vmul.f32 %v10221_v47, %v10202_v12  ;;  %v14416_v39 = vld [vmem:[#allocation16 + $0x1a0] ss:$8 sps:$4 sm:$0xff]   ;;  %v14421_v23 = vld [vmem:[#allocation16 + $0x1b4] ss:$8 sps:$4 sm:$0xff]   ;;  %v14419_v43 = vld [vmem:[#allocation16 + $0x1b0] ss:$8 sps:$4 sm:$0xff]  }
 0x913   :  { %v10255_v32 = vmul.f32 %v10233_v18, %v10205_v22  ;;  %v10254_v26 = vmul.f32 %v10229_v9, %v10204_v3  ;;  %v10257_v27 = vmul.f32 %v10241_v0, %v10207_v14  ;;  %v10256_v25 = vmul.f32 %v10237_v50, %v10206_v54  ;;  %v14413_v9 = vld [vmem:[#allocation16 + $0x190] ss:$8 sps:$4 sm:$0xff]   ;;  %v14418_v50 = vld [vmem:[#allocation16 + $0x1a4] ss:$8 sps:$4 sm:$0xff]   ;;  %v14422_v18 = vld [vmem:[#allocation16 + $0x1c0] ss:$8 sps:$4 sm:$0xff]  }
 0x914   :  { %v10301_v30 = vadd.f32 %v10267_v56, %v10251_v49  ;;  %v10300_v35 = vadd.f32 %v10263_v34, %v10250_v59  ;;  %v10303_v46 = vadd.f32 %v10275_v61, %v10253_v2  ;;  %v15606_v38 = vadd.f32 %v10271_v62, %v10252_v51  ;;  %v14424_v47 = vld [vmem:[#allocation16 + $0x1c4] ss:$8 sps:$4 sm:$0xff]   ;;  %v14427_v0 = vld [vmem:[#allocation16 + $0x1d4] ss:$8 sps:$4 sm:$0xff]   ;;  %v14425_v56 = vld [vmem:[#allocation16 + $0x1d0] ss:$8 sps:$4 sm:$0xff]  }
 0x915   :  { %v15608_v37 = vadd.f32 %v10283_v19, %v10255_v32  ;;  %v15610_v16 = vadd.f32 %v10279_v53, %v10254_v26  ;;  %v15612_v20 = vadd.f32 %v10291_v4, %v10257_v27  ;;  %v15614_v1 = vadd.f32 %v10287_v5, %v10256_v25  ;;  %v14430_v34 = vld [vmem:[#allocation16 + $0x1e4] ss:$8 sps:$4 sm:$0xff]   ;;  %v14428_v61 = vld [vmem:[#allocation16 + $0x1e0] ss:$8 sps:$4 sm:$0xff]   ;;  %v14433_v62 = vld [vmem:[#allocation16 + $0x1f4] ss:$8 sps:$4 sm:$0xff]  }
 0x916   :  { %v10309_v13 = vpack.c.bf16 %v10301_v30, %v10301_v30  ;;  %v10308_v48 = vpack.c.bf16 %v10300_v35, %v10300_v35  ;;  %v10311_v28 = vpack.c.bf16 %v10303_v46, %v10303_v46  ;;  %v14436_v19 = vld [vmem:[#allocation16 + $0x204] ss:$8 sps:$4 sm:$0xff]   ;;  %v14434_v53 = vld [vmem:[#allocation16 + $0x200] ss:$8 sps:$4 sm:$0xff]   ;;  %v10310_v4 = vpack.c.bf16 %v15606_v38, %v15606_v38  ;;  %v14439_v5 = vld [vmem:[#allocation16 + $0x214] ss:$8 sps:$4 sm:$0xff]  }
 0x917   :  { %v10313_v6 = vpack.c.bf16 %v15608_v37, %v15608_v37  ;;  %v14530_v63 = vld [vmem:[#allocation19 + $0x40] sm:$0xff]   ;;  %v14532_v12 = vld [vmem:[#allocation19 + $0x48] sm:$0xff]   ;;  %v14534_v54 = vld [vmem:[#allocation19 + $0x50] sm:$0xff]  }
 0x918   :  { %11128 = vmatprep.mubr.bf16.mxu0 %v10309_v13  ;;  %v14531_v58 = vld [vmem:[#allocation19] sm:$0xff]   ;;  %v14437_v22 = vld [vmem:[#allocation16 + $0x210] ss:$8 sps:$4 sm:$0xff]   ;;  %12940 = vmatprep.subr.bf16.mxu1 %v14530_v63  ;;  %v14445_v59 = vld [vmem:[#allocation16 + $0x234] ss:$8 sps:$4 sm:$0xff]  }
 0x919   :  { %11129 = vmatmul.mubr.bf16.vlgmr.msra.gmra.mrb[40].mxu0 %v10308_v48  ;;  %v14442_v3 = vld [vmem:[#allocation16 + $0x224] ss:$8 sps:$4 sm:$0xff]   ;;  %12941 = vmatpush3.bf16.msra.mxu1 %v14531_v58  ;;  %v14440_v49 = vld [vmem:[#allocation16 + $0x220] ss:$8 sps:$4 sm:$0xff]   ;;  %v14535_v2 = vld [vmem:[#allocation19 + $0x10] sm:$0xff]  }
 0x91a   :  { %11138 = vmatpush1.bf16.msra.mxu0 %v14386_v41  ;;  %11169 = vmatprep.mubr.bf16.mxu0 %v10311_v28  ;;  %v14533_v14 = vld [vmem:[#allocation19 + $0x8] sm:$0xff]   ;;  %v14536_v51 = vld [vmem:[#allocation19 + $0x58] sm:$0xff]   ;;  %v14538_v25 = vld [vmem:[#allocation19 + $0x60] sm:$0xff]  }
 0x91b   :  { %11139 = vmatprep.subr.bf16.mxu0 %v14391_v10  ;;  %12942 = vmatprep.subr.bf16.mxu1 %v14532_v12  ;;  %v14443_v32 = vld [vmem:[#allocation16 + $0x230] ss:$8 sps:$4 sm:$0xff]   ;;  %v14448_v26 = vld [vmem:[#allocation16 + $0x244] ss:$8 sps:$4 sm:$0xff]   ;;  %v14446_v30 = vld [vmem:[#allocation16 + $0x240] ss:$8 sps:$4 sm:$0xff]  }
 0x91c   :  { %v14537_v27 = vld [vmem:[#allocation19 + $0x18] sm:$0xff]   ;;  %v14539_v46 = vld [vmem:[#allocation19 + $0x20] sm:$0xff]   ;;  %v14540_v38 = vld [vmem:[#allocation19 + $0x68] sm:$0xff]  }
 0x91d   :  { %12943 = vmatpush3.bf16.msra.mxu1 %v14533_v14  ;;  %v14451_v35 = vld [vmem:[#allocation16 + $0x254] ss:$8 sps:$4 sm:$0xff]   ;;  %v14449_v37 = vld [vmem:[#allocation16 + $0x250] ss:$8 sps:$4 sm:$0xff]   ;;  %v14454_v13 = vld [vmem:[#allocation16 + $0x264] ss:$8 sps:$4 sm:$0xff]  }
 0x91e   :  { %11140 = vmatpush1.bf16.msra.mxu0 %v14389_v8  ;;  %12944 = vmatprep.subr.bf16.mxu1 %v14534_v54  ;;  %v14541_v41 = vld [vmem:[#allocation19 + $0x28] sm:$0xff]   ;;  %v14457_v10 = vld [vmem:[#allocation16 + $0x274] ss:$8 sps:$4 sm:$0xff]  }
 0x91f   :  { %11141 = vmatprep.subr.bf16.mxu0 %v14394_v15  ;;  %v14452_v48 = vld [vmem:[#allocation16 + $0x260] ss:$8 sps:$4 sm:$0xff]   ;;  %v14455_v28 = vld [vmem:[#allocation16 + $0x270] ss:$8 sps:$4 sm:$0xff]   ;;  %v14460_v8 = vld [vmem:[#allocation16 + $0x284] ss:$8 sps:$4 sm:$0xff]  }
 0x920   :  { %v14458_v15 = vld [vmem:[#allocation16 + $0x280] ss:$8 sps:$4 sm:$0xff]   ;;  %v14511_v63 = vld [vmem:[#allocation16 + $0x394] ss:$8 sps:$4 sm:$0xff]   ;;  %v14509_v58 = vld [vmem:[#allocation16 + $0x390] ss:$8 sps:$4 sm:$0xff]  }
 0x921   :  { %12945 = vmatpush3.bf16.msra.mxu1 %v14535_v2  ;;  %v14514_v12 = vld [vmem:[#allocation16 + $0x3a4] ss:$8 sps:$4 sm:$0xff]   ;;  %v14515_v14 = vld [vmem:[#allocation16 + $0x3b0] ss:$8 sps:$4 sm:$0xff]  }
 0x922   :  { %11142 = vmatpush1.bf16.msra.mxu0 %v14392_v17  ;;  %12946 = vmatprep.subr.bf16.mxu1 %v14536_v51  ;;  %v14463_v17 = vld [vmem:[#allocation16 + $0x294] ss:$8 sps:$4 sm:$0xff]   ;;  %v14520_v54 = vld [vmem:[#allocation16 + $0x3c4] ss:$8 sps:$4 sm:$0xff]   ;;  %v14521_v2 = vld [vmem:[#allocation16 + $0x3d0] ss:$8 sps:$4 sm:$0xff]  }
 0x923   :  { %11143 = vmatprep.subr.bf16.mxu0 %v14397_v44  ;;  %v14461_v44 = vld [vmem:[#allocation16 + $0x290] ss:$8 sps:$4 sm:$0xff]   ;;  %v14526_v51 = vld [vmem:[#allocation16 + $0x3e4] ss:$8 sps:$4 sm:$0xff]  }
 0x925   :  { %12947 = vmatpush3.bf16.msra.mxu1 %v14537_v27  ;;  %v14527_v27 = vld [vmem:[#allocation16 + $0x3f0] ss:$8 sps:$4 sm:$0xff]  }
 0x926   :  { %11144 = vmatpush1.bf16.msra.mxu0 %v14395_v52  ;;  %12948 = vmatprep.subr.bf16.mxu1 %v14538_v25  ;;  %v14466_v52 = vld [vmem:[#allocation16 + $0x2a4] ss:$8 sps:$4 sm:$0xff]   ;;  %v10314_v25 = vpack.c.bf16 %v15614_v1, %v15614_v1 }
 0x927   :  { %11145 = vmatprep.subr.bf16.mxu0 %v14400_v36  ;;  %v14464_v36 = vld [vmem:[#allocation16 + $0x2a0] ss:$8 sps:$4 sm:$0xff]  }
 0x929   :  { %12949 = vmatpush3.bf16.msra.mxu1 %v14539_v46  ;;  %v14544_v46 = vld [vmem:[#allocation19 + $0x78] sm:$0xff]  }
 0x92a   :  { %11146 = vmatpush1.bf16.msra.mxu0 %v14398_v42  ;;  %12950 = vmatprep.subr.bf16.mxu1 %v14540_v38  ;;  %v14469_v42 = vld [vmem:[#allocation16 + $0x2b4] ss:$8 sps:$4 sm:$0xff]  }
 0x92b   :  { %11147 = vmatprep.subr.bf16.mxu0 %v14403_v24  ;;  %v14467_v24 = vld [vmem:[#allocation16 + $0x2b0] ss:$8 sps:$4 sm:$0xff]  }
 0x92c   :  { %v14545_v38 = vld [vmem:[#allocation19 + $0x38] sm:$0xff]  }
 0x92d   :  { %12951 = vmatpush3.bf16.msra.mxu1 %v14541_v41 }
 0x92e   :  { %11148 = vmatpush1.bf16.msra.mxu0 %v14401_v29  ;;  %v14472_v29 = vld [vmem:[#allocation16 + $0x2c4] ss:$8 sps:$4 sm:$0xff]  }
 0x92f   :  { %11149 = vmatprep.subr.bf16.mxu0 %v14406_v45  ;;  %v14470_v45 = vld [vmem:[#allocation16 + $0x2c0] ss:$8 sps:$4 sm:$0xff]  }
 0x932   :  { %11150 = vmatpush1.bf16.msra.mxu0 %v14404_v21  ;;  %v14475_v21 = vld [vmem:[#allocation16 + $0x2d4] ss:$8 sps:$4 sm:$0xff]  }
 0x933   :  { %11151 = vmatprep.subr.bf16.mxu0 %v14409_v33  ;;  %v14473_v33 = vld [vmem:[#allocation16 + $0x2d0] ss:$8 sps:$4 sm:$0xff]  }
 0x936   :  { %11152 = vmatpush1.bf16.msra.mxu0 %v14407_v31  ;;  %v14478_v31 = vld [vmem:[#allocation16 + $0x2e4] ss:$8 sps:$4 sm:$0xff]  }
 0x937   :  { %11153 = vmatprep.subr.bf16.mxu0 %v14412_v11  ;;  %v14476_v11 = vld [vmem:[#allocation16 + $0x2e0] ss:$8 sps:$4 sm:$0xff]  }
 0x93a   :  { %11154 = vmatpush1.bf16.msra.mxu0 %v14410_v55  ;;  %v14481_v55 = vld [vmem:[#allocation16 + $0x2f4] ss:$8 sps:$4 sm:$0xff]  }
 0x93b   :  { %11155 = vmatprep.subr.bf16.mxu0 %v14415_v57  ;;  %v14479_v57 = vld [vmem:[#allocation16 + $0x2f0] ss:$8 sps:$4 sm:$0xff]  }
 0x93e   :  { %11156 = vmatpush1.bf16.msra.mxu0 %v14413_v9  ;;  %v14484_v9 = vld [vmem:[#allocation16 + $0x304] ss:$8 sps:$4 sm:$0xff]  }
 0x93f   :  { %11157 = vmatprep.subr.bf16.mxu0 %v14418_v50  ;;  %v14482_v50 = vld [vmem:[#allocation16 + $0x300] ss:$8 sps:$4 sm:$0xff]  }
 0x942   :  { %11158 = vmatpush1.bf16.msra.mxu0 %v14416_v39  ;;  %v10312_v39 = vpack.c.bf16 %v15610_v16, %v15610_v16  ;;  %v14494_v16 = vld [vmem:[#allocation16 + $0x340] ss:$8 sps:$4 sm:$0xff]  }
 0x943   :  { %11159 = vmatprep.subr.bf16.mxu0 %v14421_v23  ;;  %v14487_v23 = vld [vmem:[#allocation16 + $0x314] ss:$8 sps:$4 sm:$0xff]  }
 0x946   :  { %11160 = vmatpush1.bf16.msra.mxu0 %v14419_v43  ;;  %v10315_v43 = vpack.c.bf16 %v15612_v20, %v15612_v20  ;;  %v14497_v20 = vld [vmem:[#allocation16 + $0x350] ss:$8 sps:$4 sm:$0xff]  }
 0x947   :  { %11161 = vmatprep.subr.bf16.mxu0 %v14424_v47  ;;  %v14485_v47 = vld [vmem:[#allocation16 + $0x310] ss:$8 sps:$4 sm:$0xff]  }
 0x94a   :  { %11162 = vmatpush1.bf16.msra.mxu0 %v14422_v18  ;;  %v14490_v18 = vld [vmem:[#allocation16 + $0x324] ss:$8 sps:$4 sm:$0xff]  }
 0x94b   :  { %11163 = vmatprep.subr.bf16.mxu0 %v14427_v0  ;;  %v14488_v0 = vld [vmem:[#allocation16 + $0x320] ss:$8 sps:$4 sm:$0xff]  }
 0x94e   :  { %11164 = vmatpush1.bf16.msra.mxu0 %v14425_v56  ;;  %v14493_v56 = vld [vmem:[#allocation16 + $0x334] ss:$8 sps:$4 sm:$0xff]  }
 0x94f   :  { %11165 = vmatprep.subr.bf16.mxu0 %v14430_v34  ;;  %v14491_v34 = vld [vmem:[#allocation16 + $0x330] ss:$8 sps:$4 sm:$0xff]  }
 0x952   :  { %11166 = vmatpush1.bf16.msra.mxu0 %v14428_v61  ;;  %v14496_v61 = vld [vmem:[#allocation16 + $0x344] ss:$8 sps:$4 sm:$0xff]  }
 0x953   :  { %11167 = vmatprep.subr.bf16.mxu0 %v14433_v62  ;;  %v14499_v62 = vld [vmem:[#allocation16 + $0x354] ss:$8 sps:$4 sm:$0xff]  }
 0x956   :  { %11168 = vmatpush1.bf16.msra.mxu0 %v14431_v60  ;;  %v14502_v60 = vld [vmem:[#allocation16 + $0x364] ss:$8 sps:$4 sm:$0xff]  }
 0x957   :  { %11178 = vmatprep.subr.bf16.mxu0 %v14436_v19  ;;  %v14500_v19 = vld [vmem:[#allocation16 + $0x360] ss:$8 sps:$4 sm:$0xff]  }
 0x959   :  { %11170 = vmatmul.mubr.bf16.vlgmr.msra.gmra.mrb[40].mxu0 %v10310_v4  ;;  %v14503_v4 = vld [vmem:[#allocation16 + $0x370] ss:$8 sps:$4 sm:$0xff]  }
 0x95a   :  { %11179 = vmatpush1.bf16.msra.mxu0 %v14434_v53  ;;  %11210 = vmatprep.mubr.bf16.mxu0 %v10313_v6  ;;  %v14505_v53 = vld [vmem:[#allocation16 + $0x374] ss:$8 sps:$4 sm:$0xff]   ;;  %v14506_v6 = vld [vmem:[#allocation16 + $0x380] ss:$8 sps:$4 sm:$0xff]  }
 0x95b   :  { %11180 = vmatprep.subr.bf16.mxu0 %v14439_v5  ;;  %v14508_v5 = vld [vmem:[#allocation16 + $0x384] ss:$8 sps:$4 sm:$0xff]  }
 0x95e   :  { %11181 = vmatpush1.bf16.msra.mxu0 %v14437_v22  ;;  %v14512_v22 = vld [vmem:[#allocation16 + $0x3a0] ss:$8 sps:$4 sm:$0xff]  }
 0x95f   :  { %11182 = vmatprep.subr.bf16.mxu0 %v14442_v3  ;;  %v14517_v3 = vld [vmem:[#allocation16 + $0x3b4] ss:$8 sps:$4 sm:$0xff]  }
 0x962   :  { %11183 = vmatpush1.bf16.msra.mxu0 %v14440_v49  ;;  %v14518_v49 = vld [vmem:[#allocation16 + $0x3c0] ss:$8 sps:$4 sm:$0xff]  }
 0x963   :  { %11184 = vmatprep.subr.bf16.mxu0 %v14445_v59  ;;  %v14523_v59 = vld [vmem:[#allocation16 + $0x3d4] ss:$8 sps:$4 sm:$0xff]  }
 0x966   :  { %11185 = vmatpush1.bf16.msra.mxu0 %v14443_v32  ;;  %v14524_v32 = vld [vmem:[#allocation16 + $0x3e0] ss:$8 sps:$4 sm:$0xff]  }
 0x967   :  { %11186 = vmatprep.subr.bf16.mxu0 %v14448_v26  ;;  %v14529_v26 = vld [vmem:[#allocation16 + $0x3f4] ss:$8 sps:$4 sm:$0xff]  }
 0x96a   :  { %11187 = vmatpush1.bf16.msra.mxu0 %v14446_v30  ;;  %v14542_v30 = vld [vmem:[#allocation19 + $0x70] sm:$0xff]  }
 0x96b   :  { %11188 = vmatprep.subr.bf16.mxu0 %v14451_v35  ;;  %v14543_v35 = vld [vmem:[#allocation19 + $0x30] sm:$0xff]   ;;  %12952 = vmatprep.subr.bf16.mxu1 %v14542_v30 }
 0x96c   :  { %12953 = vmatpush3.bf16.msra.mxu1 %v14543_v35 }
 0x96d   :  { %12954 = vmatprep.subr.bf16.mxu1 %v14544_v46 }
 0x96e   :  { %11189 = vmatpush1.bf16.msra.mxu0 %v14449_v37  ;;  %v10444_v37 = vld [vmem:[#allocation17] sm:$0x3] }
 0x96f   :  { %11190 = vmatprep.subr.bf16.mxu0 %v14454_v13  ;;  %v10449_v13 = vrot.slane %v10444_v37, %v15249_v7  ;;  %v10453_v41 = vrot.slane %v10444_v37, %v15252_v40 }
 0x970   :  { %12955 = vmatpush3.bf16.msra.mxu1 %v14545_v38 }
 0x972   :  { %11191 = vmatpush1.bf16.msra.mxu0 %v14452_v48 }
 0x973   :  { %11192 = vmatprep.subr.bf16.mxu0 %v14457_v10 }
 0x976   :  { %11193 = vmatpush1.bf16.msra.mxu0 %v14455_v28 }
 0x977   :  { %11194 = vmatprep.subr.bf16.mxu0 %v14460_v8 }
 0x97a   :  { %11195 = vmatpush1.bf16.msra.mxu0 %v14458_v15 }
 0x97b   :  { %11196 = vmatprep.subr.bf16.mxu0 %v14463_v17 }
 0x97e   :  { %11197 = vmatpush1.bf16.msra.mxu0 %v14461_v44 }
 0x97f   :  { %11198 = vmatprep.subr.bf16.mxu0 %v14466_v52 }
 0x982   :  { %11199 = vmatpush1.bf16.msra.mxu0 %v14464_v36 }
 0x983   :  { %11200 = vmatprep.subr.bf16.mxu0 %v14469_v42 }
 0x986   :  { %11201 = vmatpush1.bf16.msra.mxu0 %v14467_v24  ;;  %v12923_v24 = vld [vmem:[#allocation20] ss:$0 sm:$0xff] }
 0x987   :  { %11202 = vmatprep.subr.bf16.mxu0 %v14472_v29 }
 0x98a   :  { %11203 = vmatpush1.bf16.msra.mxu0 %v14470_v45 }
 0x98b   :  { %11204 = vmatprep.subr.bf16.mxu0 %v14475_v21 }
 0x98e   :  { %11205 = vmatpush1.bf16.msra.mxu0 %v14473_v33 }
 0x98f   :  { %11206 = vmatprep.subr.bf16.mxu0 %v14478_v31 }
 0x992   :  { %11207 = vmatpush1.bf16.msra.mxu0 %v14476_v11 }
 0x993   :  { %11208 = vmatprep.subr.bf16.mxu0 %v14481_v55 }
 0x996   :  { %11209 = vmatpush1.bf16.msra.mxu0 %v14479_v57 }
 0x997   :  { %11219 = vmatprep.subr.bf16.mxu0 %v14484_v9 }
 0x999   :  { %11211 = vmatmul.mubr.bf16.vlgmr.msra.gmra.mrb[40].mxu0 %v10312_v39 }
 0x99a   :  { %11220 = vmatpush1.bf16.msra.mxu0 %v14482_v50  ;;  %11251 = vmatprep.mubr.bf16.mxu0 %v10315_v43 }
 0x99b   :  { %11221 = vmatprep.subr.bf16.mxu0 %v14487_v23 }
 0x99e   :  { %11222 = vmatpush1.bf16.msra.mxu0 %v14485_v47 }
 0x99f   :  { %11223 = vmatprep.subr.bf16.mxu0 %v14490_v18 }
 0x9a2   :  { %11224 = vmatpush1.bf16.msra.mxu0 %v14488_v0 }
 0x9a3   :  { %11225 = vmatprep.subr.bf16.mxu0 %v14493_v56 }
 0x9a6   :  { %11226 = vmatpush1.bf16.msra.mxu0 %v14491_v34 }
 0x9a7   :  { %11227 = vmatprep.subr.bf16.mxu0 %v14496_v61 }
 0x9aa   :  { %11228 = vmatpush1.bf16.msra.mxu0 %v14494_v16 }
 0x9ab   :  { %11229 = vmatprep.subr.bf16.mxu0 %v14499_v62 }
 0x9ae   :  { %11230 = vmatpush1.bf16.msra.mxu0 %v14497_v20 }
 0x9af   :  { %11231 = vmatprep.subr.bf16.mxu0 %v14502_v60 }
 0x9b2   :  { %11232 = vmatpush1.bf16.msra.mxu0 %v14500_v19 }
 0x9b3   :  { %11233 = vmatprep.subr.bf16.mxu0 %v14505_v53 }
 0x9b6   :  { %11234 = vmatpush1.bf16.msra.mxu0 %v14503_v4 }
 0x9b7   :  { %11235 = vmatprep.subr.bf16.mxu0 %v14508_v5 }
 0x9ba   :  { %11236 = vmatpush1.bf16.msra.mxu0 %v14506_v6 }
 0x9bb   :  { %11237 = vmatprep.subr.bf16.mxu0 %v14511_v63 }
 0x9be   :  { %11238 = vmatpush1.bf16.msra.mxu0 %v14509_v58 }
 0x9bf   :  { %11239 = vmatprep.subr.bf16.mxu0 %v14514_v12 }
 0x9c2   :  { %11240 = vmatpush1.bf16.msra.mxu0 %v14512_v22 }
 0x9c3   :  { %11241 = vmatprep.subr.bf16.mxu0 %v14517_v3 }
 0x9c6   :  { %11242 = vmatpush1.bf16.msra.mxu0 %v14515_v14 }
 0x9c7   :  { %11243 = vmatprep.subr.bf16.mxu0 %v14520_v54 }
 0x9ca   :  { %11244 = vmatpush1.bf16.msra.mxu0 %v14518_v49 }
 0x9cb   :  { %11245 = vmatprep.subr.bf16.mxu0 %v14523_v59 }
 0x9ce   :  { %11246 = vmatpush1.bf16.msra.mxu0 %v14521_v2 }
 0x9cf   :  { %11247 = vmatprep.subr.bf16.mxu0 %v14526_v51 }
 0x9d2   :  { %11248 = vmatpush1.bf16.msra.mxu0 %v14524_v32 }
 0x9d3   :  { %11249 = vmatprep.subr.bf16.mxu0 %v14529_v26 }
 0x9d6   :  { %11250 = vmatpush1.bf16.msra.mxu0 %v14527_v27 }
 0x9d9   :  { %11252 = vmatmul.mubr.bf16.vlgmr.msra.gmra.mrb[40].mxu0 %v10314_v25 }
 0xaac   :  { %v11253_v48 = vpop.f32.mrb[40].mxu0 }
 0xaad   :  { %v12972_v10 = vadd.f32 %v11253_v48, %v10449_v13  ;;  %v11255_v28 = vpop.f32.mrb[41].mxu0 }
 0xaae   :  { %v12973_v8 = vadd.f32 %v11255_v28, %v10453_v41  ;;  %v11257_v15 = vpop.f32.mrb[42].mxu0 }
 0xaaf   :  { %v11260_v1 = vmax.f32 %v12972_v10, 0.0  ;;  %v11258_v17 = vpop.f32.mrb[43].mxu0 }
 0xab0   :  { %v11261_v44 = vmax.f32 %v12973_v8, 0.0 }
 0xab1   :  { %v11262_v36 = vpack.c.bf16 %v11260_v1, %v11260_v1 }
 0xab2   :  { %v11263_v52 = vpack.c.bf16 %v11261_v44, %v11261_v44 }
 0xab4   :  { %11431 = vmatprep.mubr.bf16.mxu1 %v11263_v52 }
 0xab5   :  { %11432 = vmatmul.mubr.bf16.vlgmr.msra.gmra.mrb[44].mxu1 %v11262_v36 }
 0xb88   :  { %v12956_v42 = vpop.f32.mrb[44].mxu1 }
 0xb89   :  { %v12957_v29 = vpop.f32.mrb[45].mxu1 }
 0xb8a   :  { %v12958_v45 = vadd.f32 %v12957_v29, %v12956_v42  ;;  %v12959_v21 = vpop.f32.mrb[46].mxu1 }
 0xb8b   :  { %v12960_v7 = vpop.f32.mrb[47].mxu1 }
 0xb8c   :  { %v11434_v33 = vadd.f32 %v12958_v45, %v12923_v24 }
 0xb8e   :  { %11439 = vst [vmem:[%s15645_s14] sm:$0xff] %v11434_v33 }
 0xb8f   :  { %11444 = vsyncpa [#allocation4], 1 }
 0xb90   :  { %11445 = vsyncpa [#allocation6], 1 }
 0xb91   :  { %11446 = vsyncpa [#allocation9], 1 }
 0xb92   :  { %11447 = vsyncpa [#allocation12], 1 }
 0xb93   :  { %11448 = vsyncpa [#allocation15], 1 }
 0xb94   :  { %11449 = vsyncpa [#allocation18], 1 }
 0xb95   :  { %11450 = vsyncpa [#allocation21], 1 }

</bundles_post_ra>
